<compile_context>
chip_gen: v7x
topology: tpu7x:2x2x1
jax: 0.10.0
libtpu: 0.0.40
codegen_flags: <defaults>
</compile_context>

<pallas_src>
import math
from functools import partial

import jax
import jax.numpy as jnp
from jax.experimental import pallas as pl
from jax.experimental.pallas import tpu as pltpu


# ----------------------------------------------------------------------------
# Per-chip configuration (tile budget, scoped VMEM limit, e-path compute dtype)
# ----------------------------------------------------------------------------
def _chip_config():
    try:
        kind = jax.devices()[0].device_kind.lower()
    except Exception:
        kind = ""
    if "v7" in kind:
        # v7x: 64 MiB VMEM / TC, bf16 VPU/EUP available.
        return {"tile_budget": 12 << 20, "vmem_limit": 48 << 20,
                "ew_dtype": jnp.bfloat16}
    if "v6" in kind:
        # v6e: 128 MiB VMEM, bf16 VPU/EUP available.
        return {"tile_budget": 40 << 20, "vmem_limit": 96 << 20,
                "ew_dtype": jnp.bfloat16}
    if "v5" in kind:
        # v5e/v5p: 128 MiB VMEM, no bf16 VPU/EUP -> keep elementwise math f32.
        return {"tile_budget": 40 << 20, "vmem_limit": 96 << 20,
                "ew_dtype": jnp.float32}
    # Unknown chip: conservative.
    return {"tile_budget": 12 << 20, "vmem_limit": 32 << 20,
            "ew_dtype": jnp.float32}


# ----------------------------------------------------------------------------
# Node positional embedding (tiny (B, N, H) tensor -> plain JAX glue)
# ----------------------------------------------------------------------------
def pos_embedding_sine(x, num_pos_feats, temperature=10000.0, normalize=True):
    # x: (B, N, 2) node coordinates -> (B, N, 2*num_pos_feats)
    scale = 2.0 * math.pi
    y_embed = x[:, :, 0]
    x_embed = x[:, :, 1]
    if normalize:
        y_embed = y_embed * scale
        x_embed = x_embed * scale
    dim_t = jnp.arange(num_pos_feats, dtype=jnp.float32)
    dim_t = temperature ** (2.0 * jnp.floor(dim_t / 2.0) / num_pos_feats)
    pos_x = x_embed[:, :, None] / dim_t
    pos_y = y_embed[:, :, None] / dim_t
    B, N = x.shape[0], x.shape[1]
    pos_x = jnp.stack(
        (jnp.sin(pos_x[:, :, 0::2]), jnp.cos(pos_x[:, :, 1::2])), axis=3
    ).reshape(B, N, num_pos_feats)
    pos_y = jnp.stack(
        (jnp.sin(pos_y[:, :, 0::2]), jnp.cos(pos_y[:, :, 1::2])), axis=3
    ).reshape(B, N, num_pos_feats)
    return jnp.concatenate((pos_y, pos_x), axis=2)


# ----------------------------------------------------------------------------
# Small shared helpers
# ----------------------------------------------------------------------------
def _layer_norm(v, gamma, beta, eps=1e-5):
    # Fused single-pass statistics: mean + mean-of-squares (no (v-mu) repass).
    mu = jnp.mean(v, axis=-1, keepdims=True)
    msq = jnp.mean(v * v, axis=-1, keepdims=True)
    var = jnp.maximum(msq - mu * mu, 0.0)
    return (v - mu) * jax.lax.rsqrt(var + eps) * gamma + beta


def _choose_row_tile(N, H, budget_bytes):
    # ~9 f32-equivalent live copies of a (TI, N, H) block (f32 temporaries +
    # double-buffered bf16 in/out edge blocks).
    cands = [
        ti for ti in range(1, N + 1)
        if N % ti == 0 and (ti == N or (ti % 8 == 0 and (ti * N) % 128 == 0))
    ]
    fitting = [ti for ti in cands if 9 * ti * N * H * 4 <= budget_bytes]
    return max(fitting) if fitting else min(cands)


# ----------------------------------------------------------------------------
# M-tiled linear (node embedding)
# ----------------------------------------------------------------------------
def _linear_kernel(x_ref, w_ref, b_ref, o_ref):
    o_ref[...] = (
        jnp.dot(x_ref[...].astype(jnp.bfloat16), w_ref[...],
                preferred_element_type=jnp.float32)
        + b_ref[...]
    )


def pallas_linear(x2d, w_bf16, b, vmem_limit, block_rows=1024):
    M, K = x2d.shape
    Nout = w_bf16.shape[1]
    bm = M if M <= block_rows else block_rows
    return pl.pallas_call(
        _linear_kernel,
        out_shape=jax.ShapeDtypeStruct((M, Nout), jnp.float32),
        grid=(pl.cdiv(M, bm),),
        in_specs=[
            pl.BlockSpec((bm, K), lambda i: (i, 0)),
            pl.BlockSpec((K, Nout), lambda i: (0, 0)),
            pl.BlockSpec((1, Nout), lambda i: (0, 0)),
        ],
        out_specs=pl.BlockSpec((bm, Nout), lambda i: (i, 0)),
        compiler_params=pltpu.CompilerParams(
            dimension_semantics=("parallel",),
            vmem_limit_bytes=vmem_limit),
    )(x2d, w_bf16, b.reshape(1, Nout))


# ----------------------------------------------------------------------------
# Gated-GCN layer (mode='direct', aggregation='sum', norm='layer')
# + per_layer_out (LN -> SiLU -> zero Linear) + both encoder residuals,
# row-tiled over the edge tensor.
#   * fuse_embed=True  : the first layer also computes ScalarEmbeddingSine3D +
#                        edge_embed from the scalar (TI, N) edge block in-kernel.
#   * emit_stats=True  : the final layer also emits per-channel [sum, sum_sq]
#                        of its output edge tensor for the GroupNorm32 head.
# ----------------------------------------------------------------------------
def _gnn_layer_kernel(*refs, fuse_embed: bool, emit_stats: bool, ew_dtype):
    it = iter(refs)
    xf_ref = next(it)                       # (1, N, H)   f32, all nodes
    e_ref = next(it)                        # (1, TI, N) f32  OR (1, TI, N, H) bf16
    if fuse_embed:
        invf_ref = next(it)                 # (1, H)
        phase_ref = next(it)                # (1, H)
        eew_ref = next(it)                  # (H, H) bf16
        eeb_ref = next(it)                  # (1, H)
    w4_ref, b4_ref = next(it), next(it)     # (H, 4H) bf16, (1, 4H)
    wc_ref, bc_ref = next(it), next(it)     # (H, H) bf16,  (1, H)
    lnh_g_ref, lnh_b_ref = next(it), next(it)
    lne_g_ref, lne_b_ref = next(it), next(it)
    plo_g_ref, plo_b_ref = next(it), next(it)
    plo_w_ref, plo_lb_ref = next(it), next(it)
    xo_ref, eo_ref = next(it), next(it)     # (1, TI, H) f32, (1, TI, N, H) bf16
    stats_ref = next(it) if emit_stats else None
    proj_ref = next(it)                     # (N, 4H) f32 scratch

    i = pl.program_id(1)
    N, H = xf_ref.shape[1], xf_ref.shape[2]
    TI = e_ref.shape[1]

    # Cache the fused [U|V|A|B] projection of ALL nodes once per batch element.
    @pl.when(i == 0)
    def _():
        hf = xf_ref[0].astype(jnp.bfloat16)                       # (N, H)
        proj_ref[...] = (
            jnp.dot(hf, w4_ref[...], preferred_element_type=jnp.float32)
            + b4_ref[...])

    row0 = pl.multiple_of(i * TI, TI)

    # Static, lane-aligned slices of the cached projection (no full-scratch load).
    Vh = proj_ref[:, H:2 * H]                                     # (N, H)
    Ah = proj_ref[:, 2 * H:3 * H]                                 # (N, H)
    proj_t = proj_ref[pl.ds(row0, TI), :]                         # (TI, 4H)
    Uh_t = proj_t[:, 0:H]
    Bh_t = proj_t[:, 3 * H:4 * H]

    if fuse_embed:
        # ScalarEmbeddingSine3D (interleaved sin/cos == sin(x*inv_freq + phase))
        # + edge_embed linear, computed from the lane-dense scalar edge block.
        es = e_ref[0]                                             # (TI, N) f32
        emb = jnp.sin(es[:, :, None] * invf_ref[0] + phase_ref[0])  # (TI, N, H)
        e_in = (jnp.dot(emb.reshape(TI * N, H).astype(jnp.bfloat16), eew_ref[...],
                        preferred_element_type=jnp.float32) + eeb_ref[...])
        e_in_mx = e_in.astype(jnp.bfloat16)                       # MXU operand
    else:
        e_in_mx = e_ref[0].reshape(TI * N, H)                     # bf16 from HBM
        e_in = e_in_mx.astype(jnp.float32)

    Ce = (jnp.dot(e_in_mx, wc_ref[...], preferred_element_type=jnp.float32)
          + bc_ref[...]).reshape(TI, N, H)

    # e_new[i, j, :] = Ah[j] + Bh[i] + Ce[i, j]
    e_new = Ah[None, :, :] + Bh_t[:, None, :] + Ce                # f32

    # aggregation='sum': agg[i] = sum_j sigmoid(e_new[i, j]) * Vh[j]
    # (elementwise path in bf16 on v6e/v7x, f32 on v5e; accumulation f32)
    gates = jax.nn.sigmoid(e_new.astype(ew_dtype))
    prod = gates * Vh.astype(ew_dtype)[None, :, :]
    agg = jnp.sum(prod.astype(jnp.float32), axis=1)               # (TI, H)
    h_new = Uh_t + agg

    # norm='layer' then ReLU; mode='direct' -> no in-layer residual.
    h_new = jax.nn.relu(_layer_norm(h_new, lnh_g_ref[...], lnh_b_ref[...]))
    e_act = jax.nn.relu(
        _layer_norm(e_new.reshape(TI * N, H), lne_g_ref[...], lne_b_ref[...]))

    # per_layer_out: LayerNorm -> SiLU -> Linear (zero-initialized, faithful)
    t = _layer_norm(e_act, plo_g_ref[...], plo_b_ref[...])
    t = t * jax.nn.sigmoid(t)
    t = (jnp.dot(t.astype(jnp.bfloat16), plo_w_ref[...],
                 preferred_element_type=jnp.float32) + plo_lb_ref[...])

    # encoder-level residuals (f32), bf16 store of e.
    h_tile = xf_ref[0, pl.ds(row0, TI), :]                        # (TI, H) f32
    xo_ref[0] = h_tile + h_new
    e_out = e_in.reshape(TI, N, H) + t.reshape(TI, N, H)
    eo_ref[0] = e_out.astype(eo_ref.dtype)

    if emit_stats:
        # Fused per-channel [sum, sum_sq] for the GroupNorm32 head, accumulated
        # across row tiles in the resident stats output block.
        ef = e_out.reshape(TI * N, H)
        tile_stats = jnp.concatenate(
            [jnp.sum(ef, axis=0, keepdims=True),
             jnp.sum(ef * ef, axis=0, keepdims=True)], axis=0)[None]  # (1, 2, H)

        @pl.when(i == 0)
        def _():
            stats_ref[...] = jnp.zeros_like(stats_ref)

        stats_ref[...] += tile_stats


def gnn_layer(x, e, lp, params, tile_rows, *, fuse_embed, emit_stats,
              ew_dtype, vmem_limit):
    B, N, H = x.shape
    TI = tile_rows
    nI = N // TI

    def const2(shape):
        return pl.BlockSpec(shape, lambda b, i: (0, 0))

    in_specs = [pl.BlockSpec((1, N, H), lambda b, i: (b, 0, 0))]      # x (all nodes)
    inputs = [x]
    if fuse_embed:
        # scalar edges, lane-dense block (no size-1 minor dim)
        in_specs.append(pl.BlockSpec((1, TI, N), lambda b, i: (b, i, 0)))
        inputs.append(e)
        in_specs += [const2((1, H)), const2((1, H)), const2((H, H)), const2((1, H))]
        inputs += [params["edge_inv_freq"], params["edge_phase"],
                   params["edge_w"], params["edge_b"]]
    else:
        in_specs.append(pl.BlockSpec((1, TI, N, H), lambda b, i: (b, i, 0, 0)))
        inputs.append(e)

    in_specs += [
        const2((H, 4 * H)), const2((1, 4 * H)),     # W_[U|V|A|B], bias
        const2((H, H)), const2((1, H)),             # W_C, bias
        const2((1, H)), const2((1, H)),             # LN h
        const2((1, H)), const2((1, H)),             # LN e
        const2((1, H)), const2((1, H)),             # per_layer_out LN
        const2((H, H)), const2((1, H)),             # per_layer_out W, bias
    ]
    inputs += [lp["w4"], lp["b4"], lp["wc"], lp["bc"],
               lp["ln_h_g"], lp["ln_h_b"], lp["ln_e_g"], lp["ln_e_b"],
               lp["plo_g"], lp["plo_b"], lp["plo_w"], lp["plo_lb"]]

    out_shapes = [
        jax.ShapeDtypeStruct((B, N, H), jnp.float32),
        jax.ShapeDtypeStruct((B, N, N, H), jnp.bfloat16),             # bf16 edge stream
    ]
    out_specs = [
        pl.BlockSpec((1, TI, H), lambda b, i: (b, i, 0)),
        pl.BlockSpec((1, TI, N, H), lambda b, i: (b, i, 0, 0)),
    ]
    if emit_stats:
        out_shapes.append(jax.ShapeDtypeStruct((B, 2, H), jnp.float32))
        out_specs.append(pl.BlockSpec((1, 2, H), lambda b, i: (b, 0, 0)))

    # TODO(synk): v7x megacore with small B — split the row-tile axis into a
    # 'parallel' sub-axis and emit per-core stats partials summed in JAX.
    return pl.pallas_call(
        partial(_gnn_layer_kernel, fuse_embed=fuse_embed,
                emit_stats=emit_stats, ew_dtype=ew_dtype),
        out_shape=tuple(out_shapes),
        grid=(B, nI),
        in_specs=in_specs,
        out_specs=tuple(out_specs),
        scratch_shapes=[pltpu.VMEM((N, 4 * H), jnp.float32)],
        compiler_params=pltpu.CompilerParams(
            dimension_semantics=("parallel", "arbitrary"),
            vmem_limit_bytes=vmem_limit),
    )(*inputs)


# ----------------------------------------------------------------------------
# Output head: GroupNorm32 (stats pre-reduced by the final layer) -> ReLU ->
# 1x1 conv, written channel-first (lane-dense) as (B, 2, N*N).
# ----------------------------------------------------------------------------
def _head_kernel(e_ref, scale_ref, shift_ref, w_ref, b_ref, o_ref):
    TI, N, H = e_ref.shape[1], e_ref.shape[2], e_ref.shape[3]
    ef = e_ref[0].reshape(TI * N, H).astype(jnp.float32)          # bf16 -> f32
    y = jax.nn.relu(ef * scale_ref[0] + shift_ref[0])             # folded GroupNorm
    out = jax.lax.dot_general(                                    # (2, TI*N)
        w_ref[...], y.astype(jnp.bfloat16),
        dimension_numbers=(((1,), (1,)), ((), ())),
        preferred_element_type=jnp.float32)
    o_ref[0] = out + b_ref[...]


def out_head(e, stats, params, tile_rows, vmem_limit):
    B, N, _, H = e.shape
    TI = tile_rows
    nI = N // TI
    n_groups = 32
    cpg = H // n_groups
    count = float(N * N * cpg)

    # Per-group mean / rstd from the per-channel [sum, sum_sq] (tiny arrays).
    gsum = stats[:, 0, :].reshape(B, n_groups, cpg).sum(-1)
    gsq = stats[:, 1, :].reshape(B, n_groups, cpg).sum(-1)
    mean_g = gsum / count
    # TODO(synk): E[x^2]-mean^2 in f32; switch to per-tile centered partials
    # (tile mean + centered sum-sq combined here) if activation magnitudes ever
    # become large enough to cancel catastrophically.
    var_g = jnp.maximum(gsq / count - mean_g * mean_g, 0.0)
    rstd_g = jax.lax.rsqrt(var_g + 1e-5)
    mean_c = jnp.repeat(mean_g, cpg, axis=1)                      # (B, H)
    rstd_c = jnp.repeat(rstd_g, cpg, axis=1)
    scale_c = (rstd_c * params["gn_g"][None, :]).reshape(B, 1, H)
    shift_c = (params["gn_b"][None, :]
               - mean_c * rstd_c * params["gn_g"][None, :]).reshape(B, 1, H)

    out = pl.pallas_call(
        _head_kernel,
        out_shape=jax.ShapeDtypeStruct((B, 2, N * N), jnp.float32),
        grid=(B, nI),
        in_specs=[
            pl.BlockSpec((1, TI, N, H), lambda b, i: (b, i, 0, 0)),
            pl.BlockSpec((1, 1, H), lambda b, i: (b, 0, 0)),
            pl.BlockSpec((1, 1, H), lambda b, i: (b, 0, 0)),
            pl.BlockSpec((2, H), lambda b, i: (0, 0)),
            pl.BlockSpec((2, 1), lambda b, i: (0, 0)),
        ],
        out_specs=pl.BlockSpec((1, 2, TI * N), lambda b, i: (b, 0, i)),
        compiler_params=pltpu.CompilerParams(
            dimension_semantics=("parallel", "parallel"),
            vmem_limit_bytes=vmem_limit),
    )(e, scale_c, shift_c, params["out_conv_w2"], params["out_conv_b"])
    return out.reshape(B, 2, N, N)                                # NCHW, reshape is free


# ----------------------------------------------------------------------------
# Parameters (deterministic, shapes follow the module's __init__)
# ----------------------------------------------------------------------------
def _linear_init(key, fan_in, fan_out):
    k1, k2 = jax.random.split(key)
    bound = 1.0 / math.sqrt(fan_in)
    w = jax.random.uniform(k1, (fan_in, fan_out), jnp.float32, -bound, bound)
    b = jax.random.uniform(k2, (fan_out,), jnp.float32, -bound, bound)
    return w, b


def init_params(key, hidden_dim, num_layers):
    assert hidden_dim % 32 == 0, "GroupNorm32 requires hidden_dim % 32 == 0"
    H = hidden_dim
    keys = jax.random.split(key, 3 + num_layers)
    params = {}

    nw, nb = _linear_init(keys[0], H, H)
    params["node_w"] = nw.astype(jnp.bfloat16)
    params["node_b"] = nb
    ew, eb = _linear_init(keys[1], H, H)
    params["edge_w"] = ew.astype(jnp.bfloat16)
    params["edge_b"] = eb.reshape(1, H)

    # ScalarEmbeddingSine3D constants: interleaved sin/cos == sin(x*invf + phase)
    dim_t = 10000.0 ** (2.0 * jnp.floor(jnp.arange(H, dtype=jnp.float32) / 2.0) / H)
    params["edge_inv_freq"] = (1.0 / dim_t).reshape(1, H)
    params["edge_phase"] = (
        (jnp.arange(H) % 2).astype(jnp.float32) * (math.pi / 2.0)).reshape(1, H)

    # output head: GroupNorm32(32, H) (weight=1, bias=0) + Conv2d(H, 2, 1)
    cw, cb = _linear_init(keys[2], H, 2)
    params["out_conv_w2"] = cw.T.astype(jnp.bfloat16)             # (2, H)
    params["out_conv_b"] = cb.reshape(2, 1)
    params["gn_g"] = jnp.ones((H,), jnp.float32)
    params["gn_b"] = jnp.zeros((H,), jnp.float32)

    layers = []
    for i in range(num_layers):
        lk = jax.random.split(keys[3 + i], 5)
        ws, bs = [], []
        for kk in lk[:4]:                                         # U, V, A, B
            w, b = _linear_init(kk, H, H)
            ws.append(w)
            bs.append(b)
        lp = {
            "w4": jnp.concatenate(ws, axis=1).astype(jnp.bfloat16),   # (H, 4H)
            "b4": jnp.concatenate(bs, axis=0).reshape(1, 4 * H),
        }
        wc, bc = _linear_init(lk[4], H, H)
        lp["wc"] = wc.astype(jnp.bfloat16)
        lp["bc"] = bc.reshape(1, H)
        lp["ln_h_g"] = jnp.ones((1, H), jnp.float32)
        lp["ln_h_b"] = jnp.zeros((1, H), jnp.float32)
        lp["ln_e_g"] = jnp.ones((1, H), jnp.float32)
        lp["ln_e_b"] = jnp.zeros((1, H), jnp.float32)
        lp["plo_g"] = jnp.ones((1, H), jnp.float32)
        lp["plo_b"] = jnp.zeros((1, H), jnp.float32)
        # zero_module(nn.Linear(H, H)): weights/bias zeroed, kept faithful.
        lp["plo_w"] = jnp.zeros((H, H), jnp.bfloat16)
        lp["plo_lb"] = jnp.zeros((1, H), jnp.float32)
        layers.append(lp)
    params["layers"] = layers
    return params


# ----------------------------------------------------------------------------
# Full forward (dense branch of TSPGNNEncoder.forward)
# ----------------------------------------------------------------------------
def tsp_gnn_encoder_forward(params, x, e, tile_rows=None):
    B, N, _ = x.shape
    H = params["node_w"].shape[0]
    cfg = _chip_config()
    TI = tile_rows if tile_rows is not None else _choose_row_tile(
        N, H, cfg["tile_budget"])
    assert N % TI == 0 and (TI == N or (TI % 8 == 0 and (TI * N) % 128 == 0))
    n_layers = len(params["layers"])
    assert n_layers >= 1

    # Node path (tiny): sine position embedding in JAX + tiled Pallas linear (f32).
    xp = pos_embedding_sine(x, H // 2, normalize=True)            # (B, N, H)
    xh = pallas_linear(xp.reshape(B * N, H), params["node_w"], params["node_b"],
                       cfg["vmem_limit"])
    xh = xh.reshape(B, N, H)

    # Edge path: ScalarEmbeddingSine3D + edge_embed are fused into the first
    # GNN layer's kernel; `eh` starts as the raw scalar (B, N, N) tensor and
    # becomes a bf16 (B, N, N, H) stream afterwards.
    # TODO(synk): for N small enough that the bf16 edge tensor fits VMEM
    # (~N<=256 on v6e, ~N<=192 on v7x), keep e resident across all layers in a
    # single pallas_call to remove L x (read+write) of the edge stream.
    eh = e
    stats = None
    for li, lp in enumerate(params["layers"]):
        outs = gnn_layer(
            xh, eh, lp, params, TI,
            fuse_embed=(li == 0),
            emit_stats=(li == n_layers - 1),
            ew_dtype=cfg["ew_dtype"],
            vmem_limit=cfg["vmem_limit"])
        if li == n_layers - 1:
            xh, eh, stats = outs
        else:
            xh, eh = outs

    e_out = out_head(eh, stats, params, TI, cfg["vmem_limit"])    # (B, 2, N, N)
    return xh, e_out


if __name__ == "__main__":
    # hidden_dim=128 (multiple of 32 and of the 128-lane width), 3 GNN layers.
    B, N, H, NUM_LAYERS = 2, 16, 128, 3
    TILE_ROWS = 8          # 2 row tiles per batch -> exercises the tiled path

    key = jax.random.PRNGKey(0)
    kx, ke, kp = jax.random.split(key, 3)
    x = jax.random.uniform(kx, (B, N, 2), jnp.float32)     # node coordinates
    e = jax.random.uniform(ke, (B, N, N), jnp.float32)     # scalar edge features
    # edge_index is unused in the dense (sparse=False) branch.

    params = init_params(kp, H, NUM_LAYERS)

    fwd = jax.jit(lambda p, xx, ee: tsp_gnn_encoder_forward(p, xx, ee,
                                                            tile_rows=TILE_ROWS))
    x_out, e_out = fwd(params, x, e)
    jax.block_until_ready((x_out, e_out))

    assert x_out.shape == (B, N, H)
    assert e_out.shape == (B, 2, N, N)
    assert bool(jnp.all(jnp.isfinite(x_out))) and bool(jnp.all(jnp.isfinite(e_out)))
    print("KERNEL_OK")
</pallas_src>

<mosaic_0001>
module attributes {stable_mosaic.version = 11 : i64} {
  func.func @_linear_kernel(%arg0: i32, %arg1: memref<32x128xf32, #tpu.memory_space<vmem>>, %arg2: memref<128x128xbf16, #tpu.memory_space<vmem>>, %arg3: memref<1x128xf32, #tpu.memory_space<vmem>>, %arg4: memref<32x128xf32, #tpu.memory_space<vmem>>) attributes {dimension_semantics = [#tpu.dimension_semantics<parallel>], iteration_bounds = array<i64: 1>, scalar_prefetch = 0 : i64, scratch_operands = 0 : i64, tpu.core_type = #tpu.core_type<tc>, window_params = [{transform_indices = @transform_0, window_bounds = array<i64: 32, 128>}, {pipeline_mode = #tpu.pipeline_mode<synchronous>, transform_indices = @transform_1, window_bounds = array<i64: 128, 128>}, {pipeline_mode = #tpu.pipeline_mode<synchronous>, transform_indices = @transform_2, window_bounds = array<i64: 1, 128>}, {transform_indices = @transform_3, window_bounds = array<i64: 32, 128>}]} {
    %c0 = arith.constant 0 : index
    %c0_0 = arith.constant 0 : index
    %0 = vector.load %arg1[%c0, %c0_0] : memref<32x128xf32, #tpu.memory_space<vmem>>, vector<32x128xf32>
    %1 = arith.truncf %0 : vector<32x128xf32> to vector<32x128xbf16>
    %c0_1 = arith.constant 0 : index
    %c0_2 = arith.constant 0 : index
    %2 = vector.load %arg2[%c0_1, %c0_2] : memref<128x128xbf16, #tpu.memory_space<vmem>>, vector<128x128xbf16>
    %cst = arith.constant dense<0.000000e+00> : vector<32x128xf32>
    %3 = tpu.matmul %1, %2, %cst {dimension_numbers = #tpu.dot_dimension_numbers<[1], [0], [0], [1], [0, 0, 1, 1], [], []>} : vector<32x128xbf16>, vector<128x128xbf16>, vector<32x128xf32> -> vector<32x128xf32>
    %c0_3 = arith.constant 0 : index
    %c0_4 = arith.constant 0 : index
    %4 = vector.load %arg3[%c0_3, %c0_4] : memref<1x128xf32, #tpu.memory_space<vmem>>, vector<1x128xf32>
    %5 = vector.broadcast %4 : vector<1x128xf32> to vector<32x128xf32>
    %6 = arith.addf %3, %5 : vector<32x128xf32>
    %c0_5 = arith.constant 0 : index
    %c0_6 = arith.constant 0 : index
    %7 = vector.load %arg4[%c0_5, %c0_6] : memref<32x128xf32, #tpu.memory_space<vmem>>, vector<32x128xf32>
    tpu.vector_store %arg4[%c0_5, %c0_6], %6 {strides = array<i32>} : memref<32x128xf32, #tpu.memory_space<vmem>>, vector<32x128xf32>,
    return
  }
  func.func @transform_0(%arg0: i32) -> (i32, i32) {
    %c0_i32 = arith.constant 0 : i32
    %c0_i32_0 = arith.constant 0 : i32
    return %arg0, %c0_i32 : i32, i32
  }
  func.func @transform_1(%arg0: i32) -> (i32, i32) {
    %c0_i32 = arith.constant 0 : i32
    %c0_i32_0 = arith.constant 0 : i32
    %c0_i32_1 = arith.constant 0 : i32
    return %c0_i32, %c0_i32_0 : i32, i32
  }
  func.func @transform_2(%arg0: i32) -> (i32, i32) {
    %c0_i32 = arith.constant 0 : i32
    %c0_i32_0 = arith.constant 0 : i32
    %c0_i32_1 = arith.constant 0 : i32
    return %c0_i32, %c0_i32_0 : i32, i32
  }
  func.func @transform_3(%arg0: i32) -> (i32, i32) {
    %c0_i32 = arith.constant 0 : i32
    %c0_i32_0 = arith.constant 0 : i32
    return %arg0, %c0_i32 : i32, i32
  }
}

module attributes {stable_mosaic.version = 11 : i64} {
  func.func @_gnn_layer_kernel(%arg0: i32, %arg1: i32, %arg2: memref<1x16x128xf32, #tpu.memory_space<vmem>>, %arg3: memref<1x8x16x128xbf16, #tpu.memory_space<vmem>>, %arg4: memref<128x512xbf16, #tpu.memory_space<vmem>>, %arg5: memref<1x512xf32, #tpu.memory_space<vmem>>, %arg6: memref<128x128xbf16, #tpu.memory_space<vmem>>, %arg7: memref<1x128xf32, #tpu.memory_space<vmem>>, %arg8: memref<1x128xf32, #tpu.memory_space<vmem>>, %arg9: memref<1x128xf32, #tpu.memory_space<vmem>>, %arg10: memref<1x128xf32, #tpu.memory_space<vmem>>, %arg11: memref<1x128xf32, #tpu.memory_space<vmem>>, %arg12: memref<1x128xf32, #tpu.memory_space<vmem>>, %arg13: memref<1x128xf32, #tpu.memory_space<vmem>>, %arg14: memref<128x128xbf16, #tpu.memory_space<vmem>>, %arg15: memref<1x128xf32, #tpu.memory_space<vmem>>, %arg16: memref<1x8x128xf32, #tpu.memory_space<vmem>>, %arg17: memref<1x8x16x128xbf16, #tpu.memory_space<vmem>>, %arg18: memref<1x2x128xf32, #tpu.memory_space<vmem>>, %arg19: memref<16x512xf32, #tpu.memory_space<vmem>>) attributes {dimension_semantics = [#tpu.dimension_semantics<parallel>, #tpu.dimension_semantics<arbitrary>], iteration_bounds = array<i64: 2, 2>, scalar_prefetch = 0 : i64, scratch_operands = 1 : i64, tpu.core_type = #tpu.core_type<tc>, window_params = [{transform_indices = @transform_0, window_bounds = array<i64: 1, 16, 128>}, {transform_indices = @transform_1, window_bounds = array<i64: 1, 8, 16, 128>}, {pipeline_mode = #tpu.pipeline_mode<synchronous>, transform_indices = @transform_2, window_bounds = array<i64: 128, 512>}, {pipeline_mode = #tpu.pipeline_mode<synchronous>, transform_indices = @transform_3, window_bounds = array<i64: 1, 512>}, {pipeline_mode = #tpu.pipeline_mode<synchronous>, transform_indices = @transform_4, window_bounds = array<i64: 128, 128>}, {pipeline_mode = #tpu.pipeline_mode<synchronous>, transform_indices = @transform_5, window_bounds = array<i64: 1, 128>}, {pipeline_mode = #tpu.pipeline_mode<synchronous>, transform_indices = @transform_6, window_bounds = array<i64: 1, 128>}, {pipeline_mode = #tpu.pipeline_mode<synchronous>, transform_indices = @transform_7, window_bounds = array<i64: 1, 128>}, {pipeline_mode = #tpu.pipeline_mode<synchronous>, transform_indices = @transform_8, window_bounds = array<i64: 1, 128>}, {pipeline_mode = #tpu.pipeline_mode<synchronous>, transform_indices = @transform_9, window_bounds = array<i64: 1, 128>}, {pipeline_mode = #tpu.pipeline_mode<synchronous>, transform_indices = @transform_10, window_bounds = array<i64: 1, 128>}, {pipeline_mode = #tpu.pipeline_mode<synchronous>, transform_indices = @transform_11, window_bounds = array<i64: 1, 128>}, {pipeline_mode = #tpu.pipeline_mode<synchronous>, transform_indices = @transform_12, window_bounds = array<i64: 128, 128>}, {pipeline_mode = #tpu.pipeline_mode<synchronous>, transform_indices = @transform_13, window_bounds = array<i64: 1, 128>}, {transform_indices = @transform_14, window_bounds = array<i64: 1, 8, 128>}, {transform_indices = @transform_15, window_bounds = array<i64: 1, 8, 16, 128>}, {transform_indices = @transform_16, window_bounds = array<i64: 1, 2, 128>}]} {
    %c0_i32 = arith.constant 0 : i32
    %0 = arith.cmpi eq, %arg1, %c0_i32 : i32
    %1 = arith.extui %0 : i1 to i32
    %c0_i32_0 = arith.constant 0 : i32
    %2 = arith.cmpi ne, %1, %c0_i32_0 : i32
    scf.if %2 {
      %c0_70 = arith.constant 0 : index
      %c0_71 = arith.constant 0 : index
      %c0_72 = arith.constant 0 : index
      %160 = vector.load %arg2[%c0_70, %c0_71, %c0_72] : memref<1x16x128xf32, #tpu.memory_space<vmem>>, vector<1x16x128xf32>
      %161 = vector.shape_cast %160 : vector<1x16x128xf32> to vector<16x128xf32>
      %162 = arith.truncf %161 : vector<16x128xf32> to vector<16x128xbf16>
      %c0_73 = arith.constant 0 : index
      %c0_74 = arith.constant 0 : index
      %163 = vector.load %arg4[%c0_73, %c0_74] : memref<128x512xbf16, #tpu.memory_space<vmem>>, vector<128x512xbf16>
      %cst_75 = arith.constant dense<0.000000e+00> : vector<16x512xf32>
      %164 = tpu.matmul %162, %163, %cst_75 {dimension_numbers = #tpu.dot_dimension_numbers<[1], [0], [0], [1], [0, 0, 1, 1], [], []>} : vector<16x128xbf16>, vector<128x512xbf16>, vector<16x512xf32> -> vector<16x512xf32>
      %c0_76 = arith.constant 0 : index
      %c0_77 = arith.constant 0 : index
      %165 = vector.load %arg5[%c0_76, %c0_77] : memref<1x512xf32, #tpu.memory_space<vmem>>, vector<1x512xf32>
      %166 = vector.broadcast %165 : vector<1x512xf32> to vector<16x512xf32>
      %167 = arith.addf %164, %166 : vector<16x512xf32>
      %c0_78 = arith.constant 0 : index
      %c0_79 = arith.constant 0 : index
      %168 = vector.load %arg19[%c0_78, %c0_79] : memref<16x512xf32, #tpu.memory_space<vmem>>, vector<16x512xf32>
      tpu.vector_store %arg19[%c0_78, %c0_79], %167 {strides = array<i32>} : memref<16x512xf32, #tpu.memory_space<vmem>>, vector<16x512xf32>,
    } else {
    }
    %c8_i32 = arith.constant 8 : i32
    %3 = arith.muli %arg1, %c8_i32 : i32
    %4 = tpu.assume_multiple %3, 8 : i32
    %c0 = arith.constant 0 : index
    %c128 = arith.constant 128 : index
    %5 = vector.load %arg19[%c0, %c128] : memref<16x512xf32, #tpu.memory_space<vmem>>, vector<16x128xf32>
    %c0_1 = arith.constant 0 : index
    %c256 = arith.constant 256 : index
    %6 = vector.load %arg19[%c0_1, %c256] : memref<16x512xf32, #tpu.memory_space<vmem>>, vector<16x128xf32>
    %7 = arith.index_cast %4 : i32 to index
    %c0_2 = arith.constant 0 : index
    %8 = vector.load %arg19[%7, %c0_2] : memref<16x512xf32, #tpu.memory_space<vmem>>, vector<8x512xf32>
    %9 = vector.extract_strided_slice %8 {offsets = [0, 0], sizes = [8, 128], strides = [1, 1]} : vector<8x512xf32> to vector<8x128xf32>
    %10 = vector.extract_strided_slice %8 {offsets = [0, 384], sizes = [8, 128], strides = [1, 1]} : vector<8x512xf32> to vector<8x128xf32>
    %c0_3 = arith.constant 0 : index
    %c0_4 = arith.constant 0 : index
    %c0_5 = arith.constant 0 : index
    %c0_6 = arith.constant 0 : index
    %11 = vector.load %arg3[%c0_3, %c0_4, %c0_5, %c0_6] : memref<1x8x16x128xbf16, #tpu.memory_space<vmem>>, vector<1x8x16x128xbf16>
    %12 = vector.shape_cast %11 : vector<1x8x16x128xbf16> to vector<8x16x128xbf16>
    %13 = vector.shape_cast %12 : vector<8x16x128xbf16> to vector<128x128xbf16>
    %14 = arith.extf %13 : vector<128x128xbf16> to vector<128x128xf32>
    %c0_7 = arith.constant 0 : index
    %c0_8 = arith.constant 0 : index
    %15 = vector.load %arg6[%c0_7, %c0_8] : memref<128x128xbf16, #tpu.memory_space<vmem>>, vector<128x128xbf16>
    %cst = arith.constant dense<0.000000e+00> : vector<128x128xf32>
    %16 = tpu.matmul %13, %15, %cst {dimension_numbers = #tpu.dot_dimension_numbers<[1], [0], [0], [1], [0, 0, 1, 1], [], []>} : vector<128x128xbf16>, vector<128x128xbf16>, vector<128x128xf32> -> vector<128x128xf32>
    %c0_9 = arith.constant 0 : index
    %c0_10 = arith.constant 0 : index
    %17 = vector.load %arg7[%c0_9, %c0_10] : memref<1x128xf32, #tpu.memory_space<vmem>>, vector<1x128xf32>
    %18 = vector.broadcast %17 : vector<1x128xf32> to vector<128x128xf32>
    %19 = arith.addf %16, %18 : vector<128x128xf32>
    %20 = vector.shape_cast %19 : vector<128x128xf32> to vector<8x16x128xf32>
    %21 = vector.shape_cast %6 : vector<16x128xf32> to vector<1x16x128xf32>
    %22 = vector.shape_cast %10 : vector<8x128xf32> to vector<8x1x128xf32>
    %23 = vector.broadcast %21 : vector<1x16x128xf32> to vector<8x16x128xf32>
    %24 = vector.broadcast %22 : vector<8x1x128xf32> to vector<8x16x128xf32>
    %25 = arith.addf %23, %24 : vector<8x16x128xf32>
    %26 = arith.addf %25, %20 : vector<8x16x128xf32>
    %27 = arith.negf %26 : vector<8x16x128xf32>
    %28 = math.exp %27 : vector<8x16x128xf32>
    %cst_11 = arith.constant 1.000000e+00 : f32
    %29 = vector.broadcast %cst_11 : f32 to vector<8x16x128xf32>
    %30 = arith.addf %29, %28 : vector<8x16x128xf32>
    %31 = arith.divf %29, %30 : vector<8x16x128xf32>
    %32 = vector.shape_cast %5 : vector<16x128xf32> to vector<1x16x128xf32>
    %33 = vector.broadcast %32 : vector<1x16x128xf32> to vector<8x16x128xf32>
    %34 = arith.mulf %31, %33 : vector<8x16x128xf32>
    %cst_12 = arith.constant dense<0.000000e+00> : vector<8x128xf32>
    %35 = vector.multi_reduction <add>, %34, %cst_12 [1] : vector<8x16x128xf32> to vector<8x128xf32>
    %36 = arith.addf %9, %35 : vector<8x128xf32>
    %c0_13 = arith.constant 0 : index
    %c0_14 = arith.constant 0 : index
    %37 = vector.load %arg8[%c0_13, %c0_14] : memref<1x128xf32, #tpu.memory_space<vmem>>, vector<1x128xf32>
    %c0_15 = arith.constant 0 : index
    %c0_16 = arith.constant 0 : index
    %38 = vector.load %arg9[%c0_15, %c0_16] : memref<1x128xf32, #tpu.memory_space<vmem>>, vector<1x128xf32>
    %cst_17 = arith.constant dense<0.000000e+00> : vector<8xf32>
    %39 = vector.multi_reduction <add>, %36, %cst_17 [1] : vector<8x128xf32> to vector<8xf32>
    %40 = vector.shape_cast %39 : vector<8xf32> to vector<8x1xf32>
    %cst_18 = arith.constant 1.280000e+02 : f32
    %41 = vector.broadcast %cst_18 : f32 to vector<8x1xf32>
    %42 = arith.divf %40, %41 : vector<8x1xf32>
    %43 = arith.mulf %36, %36 : vector<8x128xf32>
    %cst_19 = arith.constant dense<0.000000e+00> : vector<8xf32>
    %44 = vector.multi_reduction <add>, %43, %cst_19 [1] : vector<8x128xf32> to vector<8xf32>
    %45 = vector.shape_cast %44 : vector<8xf32> to vector<8x1xf32>
    %cst_20 = arith.constant 1.280000e+02 : f32
    %46 = vector.broadcast %cst_20 : f32 to vector<8x1xf32>
    %47 = arith.divf %45, %46 : vector<8x1xf32>
    %48 = arith.mulf %42, %42 : vector<8x1xf32>
    %49 = arith.subf %47, %48 : vector<8x1xf32>
    %cst_21 = arith.constant 0.000000e+00 : f32
    %50 = vector.broadcast %cst_21 : f32 to vector<8x1xf32>
    %51 = arith.maximumf %49, %50 : vector<8x1xf32>
    %52 = vector.broadcast %42 : vector<8x1xf32> to vector<8x128xf32>
    %53 = arith.subf %36, %52 : vector<8x128xf32>
    %cst_22 = arith.constant 9.99999974E-6 : f32
    %54 = vector.broadcast %cst_22 : f32 to vector<8x1xf32>
    %55 = arith.addf %51, %54 : vector<8x1xf32>
    %56 = math.rsqrt %55 : vector<8x1xf32>
    %57 = vector.broadcast %56 : vector<8x1xf32> to vector<8x128xf32>
    %58 = arith.mulf %53, %57 : vector<8x128xf32>
    %59 = vector.broadcast %37 : vector<1x128xf32> to vector<8x128xf32>
    %60 = arith.mulf %58, %59 : vector<8x128xf32>
    %61 = vector.broadcast %38 : vector<1x128xf32> to vector<8x128xf32>
    %62 = arith.addf %60, %61 : vector<8x128xf32>
    %cst_23 = arith.constant 0.000000e+00 : f32
    %63 = vector.broadcast %cst_23 : f32 to vector<8x128xf32>
    %64 = arith.maximumf %62, %63 : vector<8x128xf32>
    %65 = vector.shape_cast %26 : vector<8x16x128xf32> to vector<128x128xf32>
    %c0_24 = arith.constant 0 : index
    %c0_25 = arith.constant 0 : index
    %66 = vector.load %arg10[%c0_24, %c0_25] : memref<1x128xf32, #tpu.memory_space<vmem>>, vector<1x128xf32>
    %c0_26 = arith.constant 0 : index
    %c0_27 = arith.constant 0 : index
    %67 = vector.load %arg11[%c0_26, %c0_27] : memref<1x128xf32, #tpu.memory_space<vmem>>, vector<1x128xf32>
    %cst_28 = arith.constant dense<0.000000e+00> : vector<128xf32>
    %68 = vector.multi_reduction <add>, %65, %cst_28 [1] : vector<128x128xf32> to vector<128xf32>
    %69 = vector.shape_cast %68 : vector<128xf32> to vector<128x1xf32>
    %cst_29 = arith.constant 1.280000e+02 : f32
    %70 = vector.broadcast %cst_29 : f32 to vector<128x1xf32>
    %71 = arith.divf %69, %70 : vector<128x1xf32>
    %72 = arith.mulf %65, %65 : vector<128x128xf32>
    %cst_30 = arith.constant dense<0.000000e+00> : vector<128xf32>
    %73 = vector.multi_reduction <add>, %72, %cst_30 [1] : vector<128x128xf32> to vector<128xf32>
    %74 = vector.shape_cast %73 : vector<128xf32> to vector<128x1xf32>
    %cst_31 = arith.constant 1.280000e+02 : f32
    %75 = vector.broadcast %cst_31 : f32 to vector<128x1xf32>
    %76 = arith.divf %74, %75 : vector<128x1xf32>
    %77 = arith.mulf %71, %71 : vector<128x1xf32>
    %78 = arith.subf %76, %77 : vector<128x1xf32>
    %cst_32 = arith.constant 0.000000e+00 : f32
    %79 = vector.broadcast %cst_32 : f32 to vector<128x1xf32>
    %80 = arith.maximumf %78, %79 : vector<128x1xf32>
    %81 = vector.broadcast %71 : vector<128x1xf32> to vector<128x128xf32>
    %82 = arith.subf %65, %81 : vector<128x128xf32>
    %cst_33 = arith.constant 9.99999974E-6 : f32
    %83 = vector.broadcast %cst_33 : f32 to vector<128x1xf32>
    %84 = arith.addf %80, %83 : vector<128x1xf32>
    %85 = math.rsqrt %84 : vector<128x1xf32>
    %86 = vector.broadcast %85 : vector<128x1xf32> to vector<128x128xf32>
    %87 = arith.mulf %82, %86 : vector<128x128xf32>
    %88 = vector.broadcast %66 : vector<1x128xf32> to vector<128x128xf32>
    %89 = arith.mulf %87, %88 : vector<128x128xf32>
    %90 = vector.broadcast %67 : vector<1x128xf32> to vector<128x128xf32>
    %91 = arith.addf %89, %90 : vector<128x128xf32>
    %cst_34 = arith.constant 0.000000e+00 : f32
    %92 = vector.broadcast %cst_34 : f32 to vector<128x128xf32>
    %93 = arith.maximumf %91, %92 : vector<128x128xf32>
    %c0_35 = arith.constant 0 : index
    %c0_36 = arith.constant 0 : index
    %94 = vector.load %arg12[%c0_35, %c0_36] : memref<1x128xf32, #tpu.memory_space<vmem>>, vector<1x128xf32>
    %c0_37 = arith.constant 0 : index
    %c0_38 = arith.constant 0 : index
    %95 = vector.load %arg13[%c0_37, %c0_38] : memref<1x128xf32, #tpu.memory_space<vmem>>, vector<1x128xf32>
    %cst_39 = arith.constant dense<0.000000e+00> : vector<128xf32>
    %96 = vector.multi_reduction <add>, %93, %cst_39 [1] : vector<128x128xf32> to vector<128xf32>
    %97 = vector.shape_cast %96 : vector<128xf32> to vector<128x1xf32>
    %cst_40 = arith.constant 1.280000e+02 : f32
    %98 = vector.broadcast %cst_40 : f32 to vector<128x1xf32>
    %99 = arith.divf %97, %98 : vector<128x1xf32>
    %100 = arith.mulf %93, %93 : vector<128x128xf32>
    %cst_41 = arith.constant dense<0.000000e+00> : vector<128xf32>
    %101 = vector.multi_reduction <add>, %100, %cst_41 [1] : vector<128x128xf32> to vector<128xf32>
    %102 = vector.shape_cast %101 : vector<128xf32> to vector<128x1xf32>
    %cst_42 = arith.constant 1.280000e+02 : f32
    %103 = vector.broadcast %cst_42 : f32 to vector<128x1xf32>
    %104 = arith.divf %102, %103 : vector<128x1xf32>
    %105 = arith.mulf %99, %99 : vector<128x1xf32>
    %106 = arith.subf %104, %105 : vector<128x1xf32>
    %cst_43 = arith.constant 0.000000e+00 : f32
    %107 = vector.broadcast %cst_43 : f32 to vector<128x1xf32>
    %108 = arith.maximumf %106, %107 : vector<128x1xf32>
    %109 = vector.broadcast %99 : vector<128x1xf32> to vector<128x128xf32>
    %110 = arith.subf %93, %109 : vector<128x128xf32>
    %cst_44 = arith.constant 9.99999974E-6 : f32
    %111 = vector.broadcast %cst_44 : f32 to vector<128x1xf32>
    %112 = arith.addf %108, %111 : vector<128x1xf32>
    %113 = math.rsqrt %112 : vector<128x1xf32>
    %114 = vector.broadcast %113 : vector<128x1xf32> to vector<128x128xf32>
    %115 = arith.mulf %110, %114 : vector<128x128xf32>
    %116 = vector.broadcast %94 : vector<1x128xf32> to vector<128x128xf32>
    %117 = arith.mulf %115, %116 : vector<128x128xf32>
    %118 = vector.broadcast %95 : vector<1x128xf32> to vector<128x128xf32>
    %119 = arith.addf %117, %118 : vector<128x128xf32>
    %120 = arith.negf %119 : vector<128x128xf32>
    %121 = math.exp %120 : vector<128x128xf32>
    %cst_45 = arith.constant 1.000000e+00 : f32
    %122 = vector.broadcast %cst_45 : f32 to vector<128x128xf32>
    %123 = arith.addf %122, %121 : vector<128x128xf32>
    %124 = arith.divf %122, %123 : vector<128x128xf32>
    %125 = arith.mulf %119, %124 : vector<128x128xf32>
    %126 = arith.truncf %125 : vector<128x128xf32> to vector<128x128xbf16>
    %c0_46 = arith.constant 0 : index
    %c0_47 = arith.constant 0 : index
    %127 = vector.load %arg14[%c0_46, %c0_47] : memref<128x128xbf16, #tpu.memory_space<vmem>>, vector<128x128xbf16>
    %cst_48 = arith.constant dense<0.000000e+00> : vector<128x128xf32>
    %128 = tpu.matmul %126, %127, %cst_48 {dimension_numbers = #tpu.dot_dimension_numbers<[1], [0], [0], [1], [0, 0, 1, 1], [], []>} : vector<128x128xbf16>, vector<128x128xbf16>, vector<128x128xf32> -> vector<128x128xf32>
    %c0_49 = arith.constant 0 : index
    %c0_50 = arith.constant 0 : index
    %129 = vector.load %arg15[%c0_49, %c0_50] : memref<1x128xf32, #tpu.memory_space<vmem>>, vector<1x128xf32>
    %130 = vector.broadcast %129 : vector<1x128xf32> to vector<128x128xf32>
    %131 = arith.addf %128, %130 : vector<128x128xf32>
    %c0_51 = arith.constant 0 : index
    %132 = arith.index_cast %4 : i32 to index
    %c0_52 = arith.constant 0 : index
    %133 = vector.load %arg2[%c0_51, %132, %c0_52] : memref<1x16x128xf32, #tpu.memory_space<vmem>>, vector<1x8x128xf32>
    %134 = vector.shape_cast %133 : vector<1x8x128xf32> to vector<8x128xf32>
    %135 = arith.addf %134, %64 : vector<8x128xf32>
    %c0_53 = arith.constant 0 : index
    %c0_54 = arith.constant 0 : index
    %c0_55 = arith.constant 0 : index
    %136 = vector.load %arg16[%c0_53, %c0_54, %c0_55] : memref<1x8x128xf32, #tpu.memory_space<vmem>>, vector<1x8x128xf32>
    %137 = vector.shape_cast %136 : vector<1x8x128xf32> to vector<8x128xf32>
    %138 = vector.shape_cast %135 : vector<8x128xf32> to vector<1x8x128xf32>
    tpu.vector_store %arg16[%c0_53, %c0_54, %c0_55], %138 {strides = array<i32>} : memref<1x8x128xf32, #tpu.memory_space<vmem>>, vector<1x8x128xf32>,
    %139 = vector.shape_cast %14 : vector<128x128xf32> to vector<8x16x128xf32>
    %140 = vector.shape_cast %131 : vector<128x128xf32> to vector<8x16x128xf32>
    %141 = arith.addf %139, %140 : vector<8x16x128xf32>
    %142 = arith.truncf %141 : vector<8x16x128xf32> to vector<8x16x128xbf16>
    %c0_56 = arith.constant 0 : index
    %c0_57 = arith.constant 0 : index
    %c0_58 = arith.constant 0 : index
    %c0_59 = arith.constant 0 : index
    %143 = vector.load %arg17[%c0_56, %c0_57, %c0_58, %c0_59] : memref<1x8x16x128xbf16, #tpu.memory_space<vmem>>, vector<1x8x16x128xbf16>
    %144 = vector.shape_cast %143 : vector<1x8x16x128xbf16> to vector<8x16x128xbf16>
    %145 = vector.shape_cast %142 : vector<8x16x128xbf16> to vector<1x8x16x128xbf16>
    tpu.vector_store %arg17[%c0_56, %c0_57, %c0_58, %c0_59], %145 {strides = array<i32>} : memref<1x8x16x128xbf16, #tpu.memory_space<vmem>>, vector<1x8x16x128xbf16>,
    %146 = vector.shape_cast %141 : vector<8x16x128xf32> to vector<128x128xf32>
    %cst_60 = arith.constant dense<0.000000e+00> : vector<128xf32>
    %147 = vector.multi_reduction <add>, %146, %cst_60 [0] : vector<128x128xf32> to vector<128xf32>
    %148 = vector.shape_cast %147 : vector<128xf32> to vector<1x128xf32>
    %149 = arith.mulf %146, %146 : vector<128x128xf32>
    %cst_61 = arith.constant dense<0.000000e+00> : vector<128xf32>
    %150 = vector.multi_reduction <add>, %149, %cst_61 [0] : vector<128x128xf32> to vector<128xf32>
    %151 = vector.shape_cast %150 : vector<128xf32> to vector<1x128xf32>
    %152 = tpu.concatenate %148, %151 in 0 : vector<1x128xf32>, vector<1x128xf32> -> vector<2x128xf32>
    %153 = vector.shape_cast %152 : vector<2x128xf32> to vector<1x2x128xf32>
    %c0_i32_62 = arith.constant 0 : i32
    %154 = arith.cmpi eq, %arg1, %c0_i32_62 : i32
    %155 = arith.extui %154 : i1 to i32
    %c0_i32_63 = arith.constant 0 : i32
    %156 = arith.cmpi ne, %155, %c0_i32_63 : i32
    scf.if %156 {
      %cst_70 = arith.constant 0.000000e+00 : f32
      %160 = vector.broadcast %cst_70 : f32 to vector<1x2x128xf32>
      %c0_71 = arith.constant 0 : index
      %c0_72 = arith.constant 0 : index
      %c0_73 = arith.constant 0 : index
      %161 = vector.load %arg18[%c0_71, %c0_72, %c0_73] : memref<1x2x128xf32, #tpu.memory_space<vmem>>, vector<1x2x128xf32>
      tpu.vector_store %arg18[%c0_71, %c0_72, %c0_73], %160 {strides = array<i32>} : memref<1x2x128xf32, #tpu.memory_space<vmem>>, vector<1x2x128xf32>,
    } else {
    }
    %c0_64 = arith.constant 0 : index
    %c0_65 = arith.constant 0 : index
    %c0_66 = arith.constant 0 : index
    %157 = vector.load %arg18[%c0_64, %c0_65, %c0_66] : memref<1x2x128xf32, #tpu.memory_space<vmem>>, vector<1x2x128xf32>
    %158 = arith.addf %157, %153 : vector<1x2x128xf32>
    %c0_67 = arith.constant 0 : index
    %c0_68 = arith.constant 0 : index
    %c0_69 = arith.constant 0 : index
    %159 = vector.load %arg18[%c0_67, %c0_68, %c0_69] : memref<1x2x128xf32, #tpu.memory_space<vmem>>, vector<1x2x128xf32>
    tpu.vector_store %arg18[%c0_67, %c0_68, %c0_69], %158 {strides = array<i32>} : memref<1x2x128xf32, #tpu.memory_space<vmem>>, vector<1x2x128xf32>,
    return
  }
  func.func @transform_0(%arg0: i32, %arg1: i32) -> (i32, i32, i32) {
    %c0_i32 = arith.constant 0 : i32
    %c0_i32_0 = arith.constant 0 : i32
    %c0_i32_1 = arith.constant 0 : i32
    return %arg0, %c0_i32, %c0_i32_0 : i32, i32, i32
  }
  func.func @transform_1(%arg0: i32, %arg1: i32) -> (i32, i32, i32, i32) {
    %c0_i32 = arith.constant 0 : i32
    %c0_i32_0 = arith.constant 0 : i32
    %c0_i32_1 = arith.constant 0 : i32
    return %arg0, %arg1, %c0_i32, %c0_i32_0 : i32, i32, i32, i32
  }
  func.func @transform_2(%arg0: i32, %arg1: i32) -> (i32, i32) {
    %c0_i32 = arith.constant 0 : i32
    %c0_i32_0 = arith.constant 0 : i32
    %c0_i32_1 = arith.constant 0 : i32
    return %c0_i32, %c0_i32_0 : i32, i32
  }
  func.func @transform_3(%arg0: i32, %arg1: i32) -> (i32, i32) {
    %c0_i32 = arith.constant 0 : i32
    %c0_i32_0 = arith.constant 0 : i32
    %c0_i32_1 = arith.constant 0 : i32
    return %c0_i32, %c0_i32_0 : i32, i32
  }
  func.func @transform_4(%arg0: i32, %arg1: i32) -> (i32, i32) {
    %c0_i32 = arith.constant 0 : i32
    %c0_i32_0 = arith.constant 0 : i32
    %c0_i32_1 = arith.constant 0 : i32
    return %c0_i32, %c0_i32_0 : i32, i32
  }
  func.func @transform_5(%arg0: i32, %arg1: i32) -> (i32, i32) {
    %c0_i32 = arith.constant 0 : i32
    %c0_i32_0 = arith.constant 0 : i32
    %c0_i32_1 = arith.constant 0 : i32
    return %c0_i32, %c0_i32_0 : i32, i32
  }
  func.func @transform_6(%arg0: i32, %arg1: i32) -> (i32, i32) {
    %c0_i32 = arith.constant 0 : i32
    %c0_i32_0 = arith.constant 0 : i32
    %c0_i32_1 = arith.constant 0 : i32
    return %c0_i32, %c0_i32_0 : i32, i32
  }
  func.func @transform_7(%arg0: i32, %arg1: i32) -> (i32, i32) {
    %c0_i32 = arith.constant 0 : i32
    %c0_i32_0 = arith.constant 0 : i32
    %c0_i32_1 = arith.constant 0 : i32
    return %c0_i32, %c0_i32_0 : i32, i32
  }
  func.func @transform_8(%arg0: i32, %arg1: i32) -> (i32, i32) {
    %c0_i32 = arith.constant 0 : i32
    %c0_i32_0 = arith.constant 0 : i32
    %c0_i32_1 = arith.constant 0 : i32
    return %c0_i32, %c0_i32_0 : i32, i32
  }
  func.func @transform_9(%arg0: i32, %arg1: i32) -> (i32, i32) {
    %c0_i32 = arith.constant 0 : i32
    %c0_i32_0 = arith.constant 0 : i32
    %c0_i32_1 = arith.constant 0 : i32
    return %c0_i32, %c0_i32_0 : i32, i32
  }
  func.func @transform_10(%arg0: i32, %arg1: i32) -> (i32, i32) {
    %c0_i32 = arith.constant 0 : i32
    %c0_i32_0 = arith.constant 0 : i32
    %c0_i32_1 = arith.constant 0 : i32
    return %c0_i32, %c0_i32_0 : i32, i32
  }
  func.func @transform_11(%arg0: i32, %arg1: i32) -> (i32, i32) {
    %c0_i32 = arith.constant 0 : i32
    %c0_i32_0 = arith.constant 0 : i32
    %c0_i32_1 = arith.constant 0 : i32
    return %c0_i32, %c0_i32_0 : i32, i32
  }
  func.func @transform_12(%arg0: i32, %arg1: i32) -> (i32, i32) {
    %c0_i32 = arith.constant 0 : i32
    %c0_i32_0 = arith.constant 0 : i32
    %c0_i32_1 = arith.constant 0 : i32
    return %c0_i32, %c0_i32_0 : i32, i32
  }
  func.func @transform_13(%arg0: i32, %arg1: i32) -> (i32, i32) {
    %c0_i32 = arith.constant 0 : i32
    %c0_i32_0 = arith.constant 0 : i32
    %c0_i32_1 = arith.constant 0 : i32
    return %c0_i32, %c0_i32_0 : i32, i32
  }
  func.func @transform_14(%arg0: i32, %arg1: i32) -> (i32, i32, i32) {
    %c0_i32 = arith.constant 0 : i32
    %c0_i32_0 = arith.constant 0 : i32
    return %arg0, %arg1, %c0_i32 : i32, i32, i32
  }
  func.func @transform_15(%arg0: i32, %arg1: i32) -> (i32, i32, i32, i32) {
    %c0_i32 = arith.constant 0 : i32
    %c0_i32_0 = arith.constant 0 : i32
    %c0_i32_1 = arith.constant 0 : i32
    return %arg0, %arg1, %c0_i32, %c0_i32_0 : i32, i32, i32, i32
  }
  func.func @transform_16(%arg0: i32, %arg1: i32) -> (i32, i32, i32) {
    %c0_i32 = arith.constant 0 : i32
    %c0_i32_0 = arith.constant 0 : i32
    %c0_i32_1 = arith.constant 0 : i32
    return %arg0, %c0_i32, %c0_i32_0 : i32, i32, i32
  }
}

module attributes {stable_mosaic.version = 11 : i64} {
  func.func @_gnn_layer_kernel(%arg0: i32, %arg1: i32, %arg2: memref<1x16x128xf32, #tpu.memory_space<vmem>>, %arg3: memref<1x8x16xf32, #tpu.memory_space<vmem>>, %arg4: memref<1x128xf32, #tpu.memory_space<vmem>>, %arg5: memref<1x128xf32, #tpu.memory_space<vmem>>, %arg6: memref<128x128xbf16, #tpu.memory_space<vmem>>, %arg7: memref<1x128xf32, #tpu.memory_space<vmem>>, %arg8: memref<128x512xbf16, #tpu.memory_space<vmem>>, %arg9: memref<1x512xf32, #tpu.memory_space<vmem>>, %arg10: memref<128x128xbf16, #tpu.memory_space<vmem>>, %arg11: memref<1x128xf32, #tpu.memory_space<vmem>>, %arg12: memref<1x128xf32, #tpu.memory_space<vmem>>, %arg13: memref<1x128xf32, #tpu.memory_space<vmem>>, %arg14: memref<1x128xf32, #tpu.memory_space<vmem>>, %arg15: memref<1x128xf32, #tpu.memory_space<vmem>>, %arg16: memref<1x128xf32, #tpu.memory_space<vmem>>, %arg17: memref<1x128xf32, #tpu.memory_space<vmem>>, %arg18: memref<128x128xbf16, #tpu.memory_space<vmem>>, %arg19: memref<1x128xf32, #tpu.memory_space<vmem>>, %arg20: memref<1x8x128xf32, #tpu.memory_space<vmem>>, %arg21: memref<1x8x16x128xbf16, #tpu.memory_space<vmem>>, %arg22: memref<16x512xf32, #tpu.memory_space<vmem>>) attributes {dimension_semantics = [#tpu.dimension_semantics<parallel>, #tpu.dimension_semantics<arbitrary>], iteration_bounds = array<i64: 2, 2>, scalar_prefetch = 0 : i64, scratch_operands = 1 : i64, tpu.core_type = #tpu.core_type<tc>, window_params = [{transform_indices = @transform_0, window_bounds = array<i64: 1, 16, 128>}, {transform_indices = @transform_1, window_bounds = array<i64: 1, 8, 16>}, {pipeline_mode = #tpu.pipeline_mode<synchronous>, transform_indices = @transform_2, window_bounds = array<i64: 1, 128>}, {pipeline_mode = #tpu.pipeline_mode<synchronous>, transform_indices = @transform_3, window_bounds = array<i64: 1, 128>}, {pipeline_mode = #tpu.pipeline_mode<synchronous>, transform_indices = @transform_4, window_bounds = array<i64: 128, 128>}, {pipeline_mode = #tpu.pipeline_mode<synchronous>, transform_indices = @transform_5, window_bounds = array<i64: 1, 128>}, {pipeline_mode = #tpu.pipeline_mode<synchronous>, transform_indices = @transform_6, window_bounds = array<i64: 128, 512>}, {pipeline_mode = #tpu.pipeline_mode<synchronous>, transform_indices = @transform_7, window_bounds = array<i64: 1, 512>}, {pipeline_mode = #tpu.pipeline_mode<synchronous>, transform_indices = @transform_8, window_bounds = array<i64: 128, 128>}, {pipeline_mode = #tpu.pipeline_mode<synchronous>, transform_indices = @transform_9, window_bounds = array<i64: 1, 128>}, {pipeline_mode = #tpu.pipeline_mode<synchronous>, transform_indices = @transform_10, window_bounds = array<i64: 1, 128>}, {pipeline_mode = #tpu.pipeline_mode<synchronous>, transform_indices = @transform_11, window_bounds = array<i64: 1, 128>}, {pipeline_mode = #tpu.pipeline_mode<synchronous>, transform_indices = @transform_12, window_bounds = array<i64: 1, 128>}, {pipeline_mode = #tpu.pipeline_mode<synchronous>, transform_indices = @transform_13, window_bounds = array<i64: 1, 128>}, {pipeline_mode = #tpu.pipeline_mode<synchronous>, transform_indices = @transform_14, window_bounds = array<i64: 1, 128>}, {pipeline_mode = #tpu.pipeline_mode<synchronous>, transform_indices = @transform_15, window_bounds = array<i64: 1, 128>}, {pipeline_mode = #tpu.pipeline_mode<synchronous>, transform_indices = @transform_16, window_bounds = array<i64: 128, 128>}, {pipeline_mode = #tpu.pipeline_mode<synchronous>, transform_indices = @transform_17, window_bounds = array<i64: 1, 128>}, {transform_indices = @transform_18, window_bounds = array<i64: 1, 8, 128>}, {transform_indices = @transform_19, window_bounds = array<i64: 1, 8, 16, 128>}]} {
    %c0_i32 = arith.constant 0 : i32
    %0 = arith.cmpi eq, %arg1, %c0_i32 : i32
    %1 = arith.extui %0 : i1 to i32
    %c0_i32_0 = arith.constant 0 : i32
    %2 = arith.cmpi ne, %1, %c0_i32_0 : i32
    scf.if %2 {
      %c0_68 = arith.constant 0 : index
      %c0_69 = arith.constant 0 : index
      %c0_70 = arith.constant 0 : index
      %165 = vector.load %arg2[%c0_68, %c0_69, %c0_70] : memref<1x16x128xf32, #tpu.memory_space<vmem>>, vector<1x16x128xf32>
      %166 = vector.shape_cast %165 : vector<1x16x128xf32> to vector<16x128xf32>
      %167 = arith.truncf %166 : vector<16x128xf32> to vector<16x128xbf16>
      %c0_71 = arith.constant 0 : index
      %c0_72 = arith.constant 0 : index
      %168 = vector.load %arg8[%c0_71, %c0_72] : memref<128x512xbf16, #tpu.memory_space<vmem>>, vector<128x512xbf16>
      %cst_73 = arith.constant dense<0.000000e+00> : vector<16x512xf32>
      %169 = tpu.matmul %167, %168, %cst_73 {dimension_numbers = #tpu.dot_dimension_numbers<[1], [0], [0], [1], [0, 0, 1, 1], [], []>} : vector<16x128xbf16>, vector<128x512xbf16>, vector<16x512xf32> -> vector<16x512xf32>
      %c0_74 = arith.constant 0 : index
      %c0_75 = arith.constant 0 : index
      %170 = vector.load %arg9[%c0_74, %c0_75] : memref<1x512xf32, #tpu.memory_space<vmem>>, vector<1x512xf32>
      %171 = vector.broadcast %170 : vector<1x512xf32> to vector<16x512xf32>
      %172 = arith.addf %169, %171 : vector<16x512xf32>
      %c0_76 = arith.constant 0 : index
      %c0_77 = arith.constant 0 : index
      %173 = vector.load %arg22[%c0_76, %c0_77] : memref<16x512xf32, #tpu.memory_space<vmem>>, vector<16x512xf32>
      tpu.vector_store %arg22[%c0_76, %c0_77], %172 {strides = array<i32>} : memref<16x512xf32, #tpu.memory_space<vmem>>, vector<16x512xf32>,
    } else {
    }
    %c8_i32 = arith.constant 8 : i32
    %3 = arith.muli %arg1, %c8_i32 : i32
    %4 = tpu.assume_multiple %3, 8 : i32
    %c0 = arith.constant 0 : index
    %c128 = arith.constant 128 : index
    %5 = vector.load %arg22[%c0, %c128] : memref<16x512xf32, #tpu.memory_space<vmem>>, vector<16x128xf32>
    %c0_1 = arith.constant 0 : index
    %c256 = arith.constant 256 : index
    %6 = vector.load %arg22[%c0_1, %c256] : memref<16x512xf32, #tpu.memory_space<vmem>>, vector<16x128xf32>
    %7 = arith.index_cast %4 : i32 to index
    %c0_2 = arith.constant 0 : index
    %8 = vector.load %arg22[%7, %c0_2] : memref<16x512xf32, #tpu.memory_space<vmem>>, vector<8x512xf32>
    %9 = vector.extract_strided_slice %8 {offsets = [0, 0], sizes = [8, 128], strides = [1, 1]} : vector<8x512xf32> to vector<8x128xf32>
    %10 = vector.extract_strided_slice %8 {offsets = [0, 384], sizes = [8, 128], strides = [1, 1]} : vector<8x512xf32> to vector<8x128xf32>
    %c0_3 = arith.constant 0 : index
    %c0_4 = arith.constant 0 : index
    %c0_5 = arith.constant 0 : index
    %11 = vector.load %arg3[%c0_3, %c0_4, %c0_5] : memref<1x8x16xf32, #tpu.memory_space<vmem>>, vector<1x8x16xf32>
    %12 = vector.shape_cast %11 : vector<1x8x16xf32> to vector<8x16xf32>
    %13 = vector.shape_cast %12 : vector<8x16xf32> to vector<8x16x1xf32>
    %c0_6 = arith.constant 0 : index
    %c0_7 = arith.constant 0 : index
    %14 = vector.load %arg4[%c0_6, %c0_7] : memref<1x128xf32, #tpu.memory_space<vmem>>, vector<1x128xf32>
    %15 = vector.shape_cast %14 : vector<1x128xf32> to vector<128xf32>
    %16 = vector.shape_cast %15 : vector<128xf32> to vector<1x1x128xf32>
    %17 = vector.broadcast %13 : vector<8x16x1xf32> to vector<8x16x128xf32>
    %18 = vector.broadcast %16 : vector<1x1x128xf32> to vector<8x16x128xf32>
    %19 = arith.mulf %17, %18 : vector<8x16x128xf32>
    %c0_8 = arith.constant 0 : index
    %c0_9 = arith.constant 0 : index
    %20 = vector.load %arg5[%c0_8, %c0_9] : memref<1x128xf32, #tpu.memory_space<vmem>>, vector<1x128xf32>
    %21 = vector.shape_cast %20 : vector<1x128xf32> to vector<128xf32>
    %22 = vector.shape_cast %21 : vector<128xf32> to vector<1x1x128xf32>
    %23 = vector.broadcast %22 : vector<1x1x128xf32> to vector<8x16x128xf32>
    %24 = arith.addf %19, %23 : vector<8x16x128xf32>
    %25 = math.sin %24 : vector<8x16x128xf32>
    %26 = vector.shape_cast %25 : vector<8x16x128xf32> to vector<128x128xf32>
    %27 = arith.truncf %26 : vector<128x128xf32> to vector<128x128xbf16>
    %c0_10 = arith.constant 0 : index
    %c0_11 = arith.constant 0 : index
    %28 = vector.load %arg6[%c0_10, %c0_11] : memref<128x128xbf16, #tpu.memory_space<vmem>>, vector<128x128xbf16>
    %cst = arith.constant dense<0.000000e+00> : vector<128x128xf32>
    %29 = tpu.matmul %27, %28, %cst {dimension_numbers = #tpu.dot_dimension_numbers<[1], [0], [0], [1], [0, 0, 1, 1], [], []>} : vector<128x128xbf16>, vector<128x128xbf16>, vector<128x128xf32> -> vector<128x128xf32>
    %c0_12 = arith.constant 0 : index
    %c0_13 = arith.constant 0 : index
    %30 = vector.load %arg7[%c0_12, %c0_13] : memref<1x128xf32, #tpu.memory_space<vmem>>, vector<1x128xf32>
    %31 = vector.broadcast %30 : vector<1x128xf32> to vector<128x128xf32>
    %32 = arith.addf %29, %31 : vector<128x128xf32>
    %33 = arith.truncf %32 : vector<128x128xf32> to vector<128x128xbf16>
    %c0_14 = arith.constant 0 : index
    %c0_15 = arith.constant 0 : index
    %34 = vector.load %arg10[%c0_14, %c0_15] : memref<128x128xbf16, #tpu.memory_space<vmem>>, vector<128x128xbf16>
    %cst_16 = arith.constant dense<0.000000e+00> : vector<128x128xf32>
    %35 = tpu.matmul %33, %34, %cst_16 {dimension_numbers = #tpu.dot_dimension_numbers<[1], [0], [0], [1], [0, 0, 1, 1], [], []>} : vector<128x128xbf16>, vector<128x128xbf16>, vector<128x128xf32> -> vector<128x128xf32>
    %c0_17 = arith.constant 0 : index
    %c0_18 = arith.constant 0 : index
    %36 = vector.load %arg11[%c0_17, %c0_18] : memref<1x128xf32, #tpu.memory_space<vmem>>, vector<1x128xf32>
    %37 = vector.broadcast %36 : vector<1x128xf32> to vector<128x128xf32>
    %38 = arith.addf %35, %37 : vector<128x128xf32>
    %39 = vector.shape_cast %38 : vector<128x128xf32> to vector<8x16x128xf32>
    %40 = vector.shape_cast %6 : vector<16x128xf32> to vector<1x16x128xf32>
    %41 = vector.shape_cast %10 : vector<8x128xf32> to vector<8x1x128xf32>
    %42 = vector.broadcast %40 : vector<1x16x128xf32> to vector<8x16x128xf32>
    %43 = vector.broadcast %41 : vector<8x1x128xf32> to vector<8x16x128xf32>
    %44 = arith.addf %42, %43 : vector<8x16x128xf32>
    %45 = arith.addf %44, %39 : vector<8x16x128xf32>
    %46 = arith.negf %45 : vector<8x16x128xf32>
    %47 = math.exp %46 : vector<8x16x128xf32>
    %cst_19 = arith.constant 1.000000e+00 : f32
    %48 = vector.broadcast %cst_19 : f32 to vector<8x16x128xf32>
    %49 = arith.addf %48, %47 : vector<8x16x128xf32>
    %50 = arith.divf %48, %49 : vector<8x16x128xf32>
    %51 = vector.shape_cast %5 : vector<16x128xf32> to vector<1x16x128xf32>
    %52 = vector.broadcast %51 : vector<1x16x128xf32> to vector<8x16x128xf32>
    %53 = arith.mulf %50, %52 : vector<8x16x128xf32>
    %cst_20 = arith.constant dense<0.000000e+00> : vector<8x128xf32>
    %54 = vector.multi_reduction <add>, %53, %cst_20 [1] : vector<8x16x128xf32> to vector<8x128xf32>
    %55 = arith.addf %9, %54 : vector<8x128xf32>
    %c0_21 = arith.constant 0 : index
    %c0_22 = arith.constant 0 : index
    %56 = vector.load %arg12[%c0_21, %c0_22] : memref<1x128xf32, #tpu.memory_space<vmem>>, vector<1x128xf32>
    %c0_23 = arith.constant 0 : index
    %c0_24 = arith.constant 0 : index
    %57 = vector.load %arg13[%c0_23, %c0_24] : memref<1x128xf32, #tpu.memory_space<vmem>>, vector<1x128xf32>
    %cst_25 = arith.constant dense<0.000000e+00> : vector<8xf32>
    %58 = vector.multi_reduction <add>, %55, %cst_25 [1] : vector<8x128xf32> to vector<8xf32>
    %59 = vector.shape_cast %58 : vector<8xf32> to vector<8x1xf32>
    %cst_26 = arith.constant 1.280000e+02 : f32
    %60 = vector.broadcast %cst_26 : f32 to vector<8x1xf32>
    %61 = arith.divf %59, %60 : vector<8x1xf32>
    %62 = arith.mulf %55, %55 : vector<8x128xf32>
    %cst_27 = arith.constant dense<0.000000e+00> : vector<8xf32>
    %63 = vector.multi_reduction <add>, %62, %cst_27 [1] : vector<8x128xf32> to vector<8xf32>
    %64 = vector.shape_cast %63 : vector<8xf32> to vector<8x1xf32>
    %cst_28 = arith.constant 1.280000e+02 : f32
    %65 = vector.broadcast %cst_28 : f32 to vector<8x1xf32>
    %66 = arith.divf %64, %65 : vector<8x1xf32>
    %67 = arith.mulf %61, %61 : vector<8x1xf32>
    %68 = arith.subf %66, %67 : vector<8x1xf32>
    %cst_29 = arith.constant 0.000000e+00 : f32
    %69 = vector.broadcast %cst_29 : f32 to vector<8x1xf32>
    %70 = arith.maximumf %68, %69 : vector<8x1xf32>
    %71 = vector.broadcast %61 : vector<8x1xf32> to vector<8x128xf32>
    %72 = arith.subf %55, %71 : vector<8x128xf32>
    %cst_30 = arith.constant 9.99999974E-6 : f32
    %73 = vector.broadcast %cst_30 : f32 to vector<8x1xf32>
    %74 = arith.addf %70, %73 : vector<8x1xf32>
    %75 = math.rsqrt %74 : vector<8x1xf32>
    %76 = vector.broadcast %75 : vector<8x1xf32> to vector<8x128xf32>
    %77 = arith.mulf %72, %76 : vector<8x128xf32>
    %78 = vector.broadcast %56 : vector<1x128xf32> to vector<8x128xf32>
    %79 = arith.mulf %77, %78 : vector<8x128xf32>
    %80 = vector.broadcast %57 : vector<1x128xf32> to vector<8x128xf32>
    %81 = arith.addf %79, %80 : vector<8x128xf32>
    %cst_31 = arith.constant 0.000000e+00 : f32
    %82 = vector.broadcast %cst_31 : f32 to vector<8x128xf32>
    %83 = arith.maximumf %81, %82 : vector<8x128xf32>
    %84 = vector.shape_cast %45 : vector<8x16x128xf32> to vector<128x128xf32>
    %c0_32 = arith.constant 0 : index
    %c0_33 = arith.constant 0 : index
    %85 = vector.load %arg14[%c0_32, %c0_33] : memref<1x128xf32, #tpu.memory_space<vmem>>, vector<1x128xf32>
    %c0_34 = arith.constant 0 : index
    %c0_35 = arith.constant 0 : index
    %86 = vector.load %arg15[%c0_34, %c0_35] : memref<1x128xf32, #tpu.memory_space<vmem>>, vector<1x128xf32>
    %cst_36 = arith.constant dense<0.000000e+00> : vector<128xf32>
    %87 = vector.multi_reduction <add>, %84, %cst_36 [1] : vector<128x128xf32> to vector<128xf32>
    %88 = vector.shape_cast %87 : vector<128xf32> to vector<128x1xf32>
    %cst_37 = arith.constant 1.280000e+02 : f32
    %89 = vector.broadcast %cst_37 : f32 to vector<128x1xf32>
    %90 = arith.divf %88, %89 : vector<128x1xf32>
    %91 = arith.mulf %84, %84 : vector<128x128xf32>
    %cst_38 = arith.constant dense<0.000000e+00> : vector<128xf32>
    %92 = vector.multi_reduction <add>, %91, %cst_38 [1] : vector<128x128xf32> to vector<128xf32>
    %93 = vector.shape_cast %92 : vector<128xf32> to vector<128x1xf32>
    %cst_39 = arith.constant 1.280000e+02 : f32
    %94 = vector.broadcast %cst_39 : f32 to vector<128x1xf32>
    %95 = arith.divf %93, %94 : vector<128x1xf32>
    %96 = arith.mulf %90, %90 : vector<128x1xf32>
    %97 = arith.subf %95, %96 : vector<128x1xf32>
    %cst_40 = arith.constant 0.000000e+00 : f32
    %98 = vector.broadcast %cst_40 : f32 to vector<128x1xf32>
    %99 = arith.maximumf %97, %98 : vector<128x1xf32>
    %100 = vector.broadcast %90 : vector<128x1xf32> to vector<128x128xf32>
    %101 = arith.subf %84, %100 : vector<128x128xf32>
    %cst_41 = arith.constant 9.99999974E-6 : f32
    %102 = vector.broadcast %cst_41 : f32 to vector<128x1xf32>
    %103 = arith.addf %99, %102 : vector<128x1xf32>
    %104 = math.rsqrt %103 : vector<128x1xf32>
    %105 = vector.broadcast %104 : vector<128x1xf32> to vector<128x128xf32>
    %106 = arith.mulf %101, %105 : vector<128x128xf32>
    %107 = vector.broadcast %85 : vector<1x128xf32> to vector<128x128xf32>
    %108 = arith.mulf %106, %107 : vector<128x128xf32>
    %109 = vector.broadcast %86 : vector<1x128xf32> to vector<128x128xf32>
    %110 = arith.addf %108, %109 : vector<128x128xf32>
    %cst_42 = arith.constant 0.000000e+00 : f32
    %111 = vector.broadcast %cst_42 : f32 to vector<128x128xf32>
    %112 = arith.maximumf %110, %111 : vector<128x128xf32>
    %c0_43 = arith.constant 0 : index
    %c0_44 = arith.constant 0 : index
    %113 = vector.load %arg16[%c0_43, %c0_44] : memref<1x128xf32, #tpu.memory_space<vmem>>, vector<1x128xf32>
    %c0_45 = arith.constant 0 : index
    %c0_46 = arith.constant 0 : index
    %114 = vector.load %arg17[%c0_45, %c0_46] : memref<1x128xf32, #tpu.memory_space<vmem>>, vector<1x128xf32>
    %cst_47 = arith.constant dense<0.000000e+00> : vector<128xf32>
    %115 = vector.multi_reduction <add>, %112, %cst_47 [1] : vector<128x128xf32> to vector<128xf32>
    %116 = vector.shape_cast %115 : vector<128xf32> to vector<128x1xf32>
    %cst_48 = arith.constant 1.280000e+02 : f32
    %117 = vector.broadcast %cst_48 : f32 to vector<128x1xf32>
    %118 = arith.divf %116, %117 : vector<128x1xf32>
    %119 = arith.mulf %112, %112 : vector<128x128xf32>
    %cst_49 = arith.constant dense<0.000000e+00> : vector<128xf32>
    %120 = vector.multi_reduction <add>, %119, %cst_49 [1] : vector<128x128xf32> to vector<128xf32>
    %121 = vector.shape_cast %120 : vector<128xf32> to vector<128x1xf32>
    %cst_50 = arith.constant 1.280000e+02 : f32
    %122 = vector.broadcast %cst_50 : f32 to vector<128x1xf32>
    %123 = arith.divf %121, %122 : vector<128x1xf32>
    %124 = arith.mulf %118, %118 : vector<128x1xf32>
    %125 = arith.subf %123, %124 : vector<128x1xf32>
    %cst_51 = arith.constant 0.000000e+00 : f32
    %126 = vector.broadcast %cst_51 : f32 to vector<128x1xf32>
    %127 = arith.maximumf %125, %126 : vector<128x1xf32>
    %128 = vector.broadcast %118 : vector<128x1xf32> to vector<128x128xf32>
    %129 = arith.subf %112, %128 : vector<128x128xf32>
    %cst_52 = arith.constant 9.99999974E-6 : f32
    %130 = vector.broadcast %cst_52 : f32 to vector<128x1xf32>
    %131 = arith.addf %127, %130 : vector<128x1xf32>
    %132 = math.rsqrt %131 : vector<128x1xf32>
    %133 = vector.broadcast %132 : vector<128x1xf32> to vector<128x128xf32>
    %134 = arith.mulf %129, %133 : vector<128x128xf32>
    %135 = vector.broadcast %113 : vector<1x128xf32> to vector<128x128xf32>
    %136 = arith.mulf %134, %135 : vector<128x128xf32>
    %137 = vector.broadcast %114 : vector<1x128xf32> to vector<128x128xf32>
    %138 = arith.addf %136, %137 : vector<128x128xf32>
    %139 = arith.negf %138 : vector<128x128xf32>
    %140 = math.exp %139 : vector<128x128xf32>
    %cst_53 = arith.constant 1.000000e+00 : f32
    %141 = vector.broadcast %cst_53 : f32 to vector<128x128xf32>
    %142 = arith.addf %141, %140 : vector<128x128xf32>
    %143 = arith.divf %141, %142 : vector<128x128xf32>
    %144 = arith.mulf %138, %143 : vector<128x128xf32>
    %145 = arith.truncf %144 : vector<128x128xf32> to vector<128x128xbf16>
    %c0_54 = arith.constant 0 : index
    %c0_55 = arith.constant 0 : index
    %146 = vector.load %arg18[%c0_54, %c0_55] : memref<128x128xbf16, #tpu.memory_space<vmem>>, vector<128x128xbf16>
    %cst_56 = arith.constant dense<0.000000e+00> : vector<128x128xf32>
    %147 = tpu.matmul %145, %146, %cst_56 {dimension_numbers = #tpu.dot_dimension_numbers<[1], [0], [0], [1], [0, 0, 1, 1], [], []>} : vector<128x128xbf16>, vector<128x128xbf16>, vector<128x128xf32> -> vector<128x128xf32>
    %c0_57 = arith.constant 0 : index
    %c0_58 = arith.constant 0 : index
    %148 = vector.load %arg19[%c0_57, %c0_58] : memref<1x128xf32, #tpu.memory_space<vmem>>, vector<1x128xf32>
    %149 = vector.broadcast %148 : vector<1x128xf32> to vector<128x128xf32>
    %150 = arith.addf %147, %149 : vector<128x128xf32>
    %c0_59 = arith.constant 0 : index
    %151 = arith.index_cast %4 : i32 to index
    %c0_60 = arith.constant 0 : index
    %152 = vector.load %arg2[%c0_59, %151, %c0_60] : memref<1x16x128xf32, #tpu.memory_space<vmem>>, vector<1x8x128xf32>
    %153 = vector.shape_cast %152 : vector<1x8x128xf32> to vector<8x128xf32>
    %154 = arith.addf %153, %83 : vector<8x128xf32>
    %c0_61 = arith.constant 0 : index
    %c0_62 = arith.constant 0 : index
    %c0_63 = arith.constant 0 : index
    %155 = vector.load %arg20[%c0_61, %c0_62, %c0_63] : memref<1x8x128xf32, #tpu.memory_space<vmem>>, vector<1x8x128xf32>
    %156 = vector.shape_cast %155 : vector<1x8x128xf32> to vector<8x128xf32>
    %157 = vector.shape_cast %154 : vector<8x128xf32> to vector<1x8x128xf32>
    tpu.vector_store %arg20[%c0_61, %c0_62, %c0_63], %157 {strides = array<i32>} : memref<1x8x128xf32, #tpu.memory_space<vmem>>, vector<1x8x128xf32>,
    %158 = vector.shape_cast %32 : vector<128x128xf32> to vector<8x16x128xf32>
    %159 = vector.shape_cast %150 : vector<128x128xf32> to vector<8x16x128xf32>
    %160 = arith.addf %158, %159 : vector<8x16x128xf32>
    %161 = arith.truncf %160 : vector<8x16x128xf32> to vector<8x16x128xbf16>
    %c0_64 = arith.constant 0 : index
    %c0_65 = arith.constant 0 : index
    %c0_66 = arith.constant 0 : index
    %c0_67 = arith.constant 0 : index
    %162 = vector.load %arg21[%c0_64, %c0_65, %c0_66, %c0_67] : memref<1x8x16x128xbf16, #tpu.memory_space<vmem>>, vector<1x8x16x128xbf16>
    %163 = vector.shape_cast %162 : vector<1x8x16x128xbf16> to vector<8x16x128xbf16>
    %164 = vector.shape_cast %161 : vector<8x16x128xbf16> to vector<1x8x16x128xbf16>
    tpu.vector_store %arg21[%c0_64, %c0_65, %c0_66, %c0_67], %164 {strides = array<i32>} : memref<1x8x16x128xbf16, #tpu.memory_space<vmem>>, vector<1x8x16x128xbf16>,
    return
  }
  func.func @transform_0(%arg0: i32, %arg1: i32) -> (i32, i32, i32) {
    %c0_i32 = arith.constant 0 : i32
    %c0_i32_0 = arith.constant 0 : i32
    %c0_i32_1 = arith.constant 0 : i32
    return %arg0, %c0_i32, %c0_i32_0 : i32, i32, i32
  }
  func.func @transform_1(%arg0: i32, %arg1: i32) -> (i32, i32, i32) {
    %c0_i32 = arith.constant 0 : i32
    %c0_i32_0 = arith.constant 0 : i32
    return %arg0, %arg1, %c0_i32 : i32, i32, i32
  }
  func.func @transform_2(%arg0: i32, %arg1: i32) -> (i32, i32) {
    %c0_i32 = arith.constant 0 : i32
    %c0_i32_0 = arith.constant 0 : i32
    %c0_i32_1 = arith.constant 0 : i32
    return %c0_i32, %c0_i32_0 : i32, i32
  }
  func.func @transform_3(%arg0: i32, %arg1: i32) -> (i32, i32) {
    %c0_i32 = arith.constant 0 : i32
    %c0_i32_0 = arith.constant 0 : i32
    %c0_i32_1 = arith.constant 0 : i32
    return %c0_i32, %c0_i32_0 : i32, i32
  }
  func.func @transform_4(%arg0: i32, %arg1: i32) -> (i32, i32) {
    %c0_i32 = arith.constant 0 : i32
    %c0_i32_0 = arith.constant 0 : i32
    %c0_i32_1 = arith.constant 0 : i32
    return %c0_i32, %c0_i32_0 : i32, i32
  }
  func.func @transform_5(%arg0: i32, %arg1: i32) -> (i32, i32) {
    %c0_i32 = arith.constant 0 : i32
    %c0_i32_0 = arith.constant 0 : i32
    %c0_i32_1 = arith.constant 0 : i32
    return %c0_i32, %c0_i32_0 : i32, i32
  }
  func.func @transform_6(%arg0: i32, %arg1: i32) -> (i32, i32) {
    %c0_i32 = arith.constant 0 : i32
    %c0_i32_0 = arith.constant 0 : i32
    %c0_i32_1 = arith.constant 0 : i32
    return %c0_i32, %c0_i32_0 : i32, i32
  }
  func.func @transform_7(%arg0: i32, %arg1: i32) -> (i32, i32) {
    %c0_i32 = arith.constant 0 : i32
    %c0_i32_0 = arith.constant 0 : i32
    %c0_i32_1 = arith.constant 0 : i32
    return %c0_i32, %c0_i32_0 : i32, i32
  }
  func.func @transform_8(%arg0: i32, %arg1: i32) -> (i32, i32) {
    %c0_i32 = arith.constant 0 : i32
    %c0_i32_0 = arith.constant 0 : i32
    %c0_i32_1 = arith.constant 0 : i32
    return %c0_i32, %c0_i32_0 : i32, i32
  }
  func.func @transform_9(%arg0: i32, %arg1: i32) -> (i32, i32) {
    %c0_i32 = arith.constant 0 : i32
    %c0_i32_0 = arith.constant 0 : i32
    %c0_i32_1 = arith.constant 0 : i32
    return %c0_i32, %c0_i32_0 : i32, i32
  }
  func.func @transform_10(%arg0: i32, %arg1: i32) -> (i32, i32) {
    %c0_i32 = arith.constant 0 : i32
    %c0_i32_0 = arith.constant 0 : i32
    %c0_i32_1 = arith.constant 0 : i32
    return %c0_i32, %c0_i32_0 : i32, i32
  }
  func.func @transform_11(%arg0: i32, %arg1: i32) -> (i32, i32) {
    %c0_i32 = arith.constant 0 : i32
    %c0_i32_0 = arith.constant 0 : i32
    %c0_i32_1 = arith.constant 0 : i32
    return %c0_i32, %c0_i32_0 : i32, i32
  }
  func.func @transform_12(%arg0: i32, %arg1: i32) -> (i32, i32) {
    %c0_i32 = arith.constant 0 : i32
    %c0_i32_0 = arith.constant 0 : i32
    %c0_i32_1 = arith.constant 0 : i32
    return %c0_i32, %c0_i32_0 : i32, i32
  }
  func.func @transform_13(%arg0: i32, %arg1: i32) -> (i32, i32) {
    %c0_i32 = arith.constant 0 : i32
    %c0_i32_0 = arith.constant 0 : i32
    %c0_i32_1 = arith.constant 0 : i32
    return %c0_i32, %c0_i32_0 : i32, i32
  }
  func.func @transform_14(%arg0: i32, %arg1: i32) -> (i32, i32) {
    %c0_i32 = arith.constant 0 : i32
    %c0_i32_0 = arith.constant 0 : i32
    %c0_i32_1 = arith.constant 0 : i32
    return %c0_i32, %c0_i32_0 : i32, i32
  }
  func.func @transform_15(%arg0: i32, %arg1: i32) -> (i32, i32) {
    %c0_i32 = arith.constant 0 : i32
    %c0_i32_0 = arith.constant 0 : i32
    %c0_i32_1 = arith.constant 0 : i32
    return %c0_i32, %c0_i32_0 : i32, i32
  }
  func.func @transform_16(%arg0: i32, %arg1: i32) -> (i32, i32) {
    %c0_i32 = arith.constant 0 : i32
    %c0_i32_0 = arith.constant 0 : i32
    %c0_i32_1 = arith.constant 0 : i32
    return %c0_i32, %c0_i32_0 : i32, i32
  }
  func.func @transform_17(%arg0: i32, %arg1: i32) -> (i32, i32) {
    %c0_i32 = arith.constant 0 : i32
    %c0_i32_0 = arith.constant 0 : i32
    %c0_i32_1 = arith.constant 0 : i32
    return %c0_i32, %c0_i32_0 : i32, i32
  }
  func.func @transform_18(%arg0: i32, %arg1: i32) -> (i32, i32, i32) {
    %c0_i32 = arith.constant 0 : i32
    %c0_i32_0 = arith.constant 0 : i32
    return %arg0, %arg1, %c0_i32 : i32, i32, i32
  }
  func.func @transform_19(%arg0: i32, %arg1: i32) -> (i32, i32, i32, i32) {
    %c0_i32 = arith.constant 0 : i32
    %c0_i32_0 = arith.constant 0 : i32
    %c0_i32_1 = arith.constant 0 : i32
    return %arg0, %arg1, %c0_i32, %c0_i32_0 : i32, i32, i32, i32
  }
}

module attributes {stable_mosaic.version = 11 : i64} {
  func.func @_gnn_layer_kernel(%arg0: i32, %arg1: i32, %arg2: memref<1x16x128xf32, #tpu.memory_space<vmem>>, %arg3: memref<1x8x16x128xbf16, #tpu.memory_space<vmem>>, %arg4: memref<128x512xbf16, #tpu.memory_space<vmem>>, %arg5: memref<1x512xf32, #tpu.memory_space<vmem>>, %arg6: memref<128x128xbf16, #tpu.memory_space<vmem>>, %arg7: memref<1x128xf32, #tpu.memory_space<vmem>>, %arg8: memref<1x128xf32, #tpu.memory_space<vmem>>, %arg9: memref<1x128xf32, #tpu.memory_space<vmem>>, %arg10: memref<1x128xf32, #tpu.memory_space<vmem>>, %arg11: memref<1x128xf32, #tpu.memory_space<vmem>>, %arg12: memref<1x128xf32, #tpu.memory_space<vmem>>, %arg13: memref<1x128xf32, #tpu.memory_space<vmem>>, %arg14: memref<128x128xbf16, #tpu.memory_space<vmem>>, %arg15: memref<1x128xf32, #tpu.memory_space<vmem>>, %arg16: memref<1x8x128xf32, #tpu.memory_space<vmem>>, %arg17: memref<1x8x16x128xbf16, #tpu.memory_space<vmem>>, %arg18: memref<16x512xf32, #tpu.memory_space<vmem>>) attributes {dimension_semantics = [#tpu.dimension_semantics<parallel>, #tpu.dimension_semantics<arbitrary>], iteration_bounds = array<i64: 2, 2>, scalar_prefetch = 0 : i64, scratch_operands = 1 : i64, tpu.core_type = #tpu.core_type<tc>, window_params = [{transform_indices = @transform_0, window_bounds = array<i64: 1, 16, 128>}, {transform_indices = @transform_1, window_bounds = array<i64: 1, 8, 16, 128>}, {pipeline_mode = #tpu.pipeline_mode<synchronous>, transform_indices = @transform_2, window_bounds = array<i64: 128, 512>}, {pipeline_mode = #tpu.pipeline_mode<synchronous>, transform_indices = @transform_3, window_bounds = array<i64: 1, 512>}, {pipeline_mode = #tpu.pipeline_mode<synchronous>, transform_indices = @transform_4, window_bounds = array<i64: 128, 128>}, {pipeline_mode = #tpu.pipeline_mode<synchronous>, transform_indices = @transform_5, window_bounds = array<i64: 1, 128>}, {pipeline_mode = #tpu.pipeline_mode<synchronous>, transform_indices = @transform_6, window_bounds = array<i64: 1, 128>}, {pipeline_mode = #tpu.pipeline_mode<synchronous>, transform_indices = @transform_7, window_bounds = array<i64: 1, 128>}, {pipeline_mode = #tpu.pipeline_mode<synchronous>, transform_indices = @transform_8, window_bounds = array<i64: 1, 128>}, {pipeline_mode = #tpu.pipeline_mode<synchronous>, transform_indices = @transform_9, window_bounds = array<i64: 1, 128>}, {pipeline_mode = #tpu.pipeline_mode<synchronous>, transform_indices = @transform_10, window_bounds = array<i64: 1, 128>}, {pipeline_mode = #tpu.pipeline_mode<synchronous>, transform_indices = @transform_11, window_bounds = array<i64: 1, 128>}, {pipeline_mode = #tpu.pipeline_mode<synchronous>, transform_indices = @transform_12, window_bounds = array<i64: 128, 128>}, {pipeline_mode = #tpu.pipeline_mode<synchronous>, transform_indices = @transform_13, window_bounds = array<i64: 1, 128>}, {transform_indices = @transform_14, window_bounds = array<i64: 1, 8, 128>}, {transform_indices = @transform_15, window_bounds = array<i64: 1, 8, 16, 128>}]} {
    %c0_i32 = arith.constant 0 : i32
    %0 = arith.cmpi eq, %arg1, %c0_i32 : i32
    %1 = arith.extui %0 : i1 to i32
    %c0_i32_0 = arith.constant 0 : i32
    %2 = arith.cmpi ne, %1, %c0_i32_0 : i32
    scf.if %2 {
      %c0_60 = arith.constant 0 : index
      %c0_61 = arith.constant 0 : index
      %c0_62 = arith.constant 0 : index
      %146 = vector.load %arg2[%c0_60, %c0_61, %c0_62] : memref<1x16x128xf32, #tpu.memory_space<vmem>>, vector<1x16x128xf32>
      %147 = vector.shape_cast %146 : vector<1x16x128xf32> to vector<16x128xf32>
      %148 = arith.truncf %147 : vector<16x128xf32> to vector<16x128xbf16>
      %c0_63 = arith.constant 0 : index
      %c0_64 = arith.constant 0 : index
      %149 = vector.load %arg4[%c0_63, %c0_64] : memref<128x512xbf16, #tpu.memory_space<vmem>>, vector<128x512xbf16>
      %cst_65 = arith.constant dense<0.000000e+00> : vector<16x512xf32>
      %150 = tpu.matmul %148, %149, %cst_65 {dimension_numbers = #tpu.dot_dimension_numbers<[1], [0], [0], [1], [0, 0, 1, 1], [], []>} : vector<16x128xbf16>, vector<128x512xbf16>, vector<16x512xf32> -> vector<16x512xf32>
      %c0_66 = arith.constant 0 : index
      %c0_67 = arith.constant 0 : index
      %151 = vector.load %arg5[%c0_66, %c0_67] : memref<1x512xf32, #tpu.memory_space<vmem>>, vector<1x512xf32>
      %152 = vector.broadcast %151 : vector<1x512xf32> to vector<16x512xf32>
      %153 = arith.addf %150, %152 : vector<16x512xf32>
      %c0_68 = arith.constant 0 : index
      %c0_69 = arith.constant 0 : index
      %154 = vector.load %arg18[%c0_68, %c0_69] : memref<16x512xf32, #tpu.memory_space<vmem>>, vector<16x512xf32>
      tpu.vector_store %arg18[%c0_68, %c0_69], %153 {strides = array<i32>} : memref<16x512xf32, #tpu.memory_space<vmem>>, vector<16x512xf32>,
    } else {
    }
    %c8_i32 = arith.constant 8 : i32
    %3 = arith.muli %arg1, %c8_i32 : i32
    %4 = tpu.assume_multiple %3, 8 : i32
    %c0 = arith.constant 0 : index
    %c128 = arith.constant 128 : index
    %5 = vector.load %arg18[%c0, %c128] : memref<16x512xf32, #tpu.memory_space<vmem>>, vector<16x128xf32>
    %c0_1 = arith.constant 0 : index
    %c256 = arith.constant 256 : index
    %6 = vector.load %arg18[%c0_1, %c256] : memref<16x512xf32, #tpu.memory_space<vmem>>, vector<16x128xf32>
    %7 = arith.index_cast %4 : i32 to index
    %c0_2 = arith.constant 0 : index
    %8 = vector.load %arg18[%7, %c0_2] : memref<16x512xf32, #tpu.memory_space<vmem>>, vector<8x512xf32>
    %9 = vector.extract_strided_slice %8 {offsets = [0, 0], sizes = [8, 128], strides = [1, 1]} : vector<8x512xf32> to vector<8x128xf32>
    %10 = vector.extract_strided_slice %8 {offsets = [0, 384], sizes = [8, 128], strides = [1, 1]} : vector<8x512xf32> to vector<8x128xf32>
    %c0_3 = arith.constant 0 : index
    %c0_4 = arith.constant 0 : index
    %c0_5 = arith.constant 0 : index
    %c0_6 = arith.constant 0 : index
    %11 = vector.load %arg3[%c0_3, %c0_4, %c0_5, %c0_6] : memref<1x8x16x128xbf16, #tpu.memory_space<vmem>>, vector<1x8x16x128xbf16>
    %12 = vector.shape_cast %11 : vector<1x8x16x128xbf16> to vector<8x16x128xbf16>
    %13 = vector.shape_cast %12 : vector<8x16x128xbf16> to vector<128x128xbf16>
    %14 = arith.extf %13 : vector<128x128xbf16> to vector<128x128xf32>
    %c0_7 = arith.constant 0 : index
    %c0_8 = arith.constant 0 : index
    %15 = vector.load %arg6[%c0_7, %c0_8] : memref<128x128xbf16, #tpu.memory_space<vmem>>, vector<128x128xbf16>
    %cst = arith.constant dense<0.000000e+00> : vector<128x128xf32>
    %16 = tpu.matmul %13, %15, %cst {dimension_numbers = #tpu.dot_dimension_numbers<[1], [0], [0], [1], [0, 0, 1, 1], [], []>} : vector<128x128xbf16>, vector<128x128xbf16>, vector<128x128xf32> -> vector<128x128xf32>
    %c0_9 = arith.constant 0 : index
    %c0_10 = arith.constant 0 : index
    %17 = vector.load %arg7[%c0_9, %c0_10] : memref<1x128xf32, #tpu.memory_space<vmem>>, vector<1x128xf32>
    %18 = vector.broadcast %17 : vector<1x128xf32> to vector<128x128xf32>
    %19 = arith.addf %16, %18 : vector<128x128xf32>
    %20 = vector.shape_cast %19 : vector<128x128xf32> to vector<8x16x128xf32>
    %21 = vector.shape_cast %6 : vector<16x128xf32> to vector<1x16x128xf32>
    %22 = vector.shape_cast %10 : vector<8x128xf32> to vector<8x1x128xf32>
    %23 = vector.broadcast %21 : vector<1x16x128xf32> to vector<8x16x128xf32>
    %24 = vector.broadcast %22 : vector<8x1x128xf32> to vector<8x16x128xf32>
    %25 = arith.addf %23, %24 : vector<8x16x128xf32>
    %26 = arith.addf %25, %20 : vector<8x16x128xf32>
    %27 = arith.negf %26 : vector<8x16x128xf32>
    %28 = math.exp %27 : vector<8x16x128xf32>
    %cst_11 = arith.constant 1.000000e+00 : f32
    %29 = vector.broadcast %cst_11 : f32 to vector<8x16x128xf32>
    %30 = arith.addf %29, %28 : vector<8x16x128xf32>
    %31 = arith.divf %29, %30 : vector<8x16x128xf32>
    %32 = vector.shape_cast %5 : vector<16x128xf32> to vector<1x16x128xf32>
    %33 = vector.broadcast %32 : vector<1x16x128xf32> to vector<8x16x128xf32>
    %34 = arith.mulf %31, %33 : vector<8x16x128xf32>
    %cst_12 = arith.constant dense<0.000000e+00> : vector<8x128xf32>
    %35 = vector.multi_reduction <add>, %34, %cst_12 [1] : vector<8x16x128xf32> to vector<8x128xf32>
    %36 = arith.addf %9, %35 : vector<8x128xf32>
    %c0_13 = arith.constant 0 : index
    %c0_14 = arith.constant 0 : index
    %37 = vector.load %arg8[%c0_13, %c0_14] : memref<1x128xf32, #tpu.memory_space<vmem>>, vector<1x128xf32>
    %c0_15 = arith.constant 0 : index
    %c0_16 = arith.constant 0 : index
    %38 = vector.load %arg9[%c0_15, %c0_16] : memref<1x128xf32, #tpu.memory_space<vmem>>, vector<1x128xf32>
    %cst_17 = arith.constant dense<0.000000e+00> : vector<8xf32>
    %39 = vector.multi_reduction <add>, %36, %cst_17 [1] : vector<8x128xf32> to vector<8xf32>
    %40 = vector.shape_cast %39 : vector<8xf32> to vector<8x1xf32>
    %cst_18 = arith.constant 1.280000e+02 : f32
    %41 = vector.broadcast %cst_18 : f32 to vector<8x1xf32>
    %42 = arith.divf %40, %41 : vector<8x1xf32>
    %43 = arith.mulf %36, %36 : vector<8x128xf32>
    %cst_19 = arith.constant dense<0.000000e+00> : vector<8xf32>
    %44 = vector.multi_reduction <add>, %43, %cst_19 [1] : vector<8x128xf32> to vector<8xf32>
    %45 = vector.shape_cast %44 : vector<8xf32> to vector<8x1xf32>
    %cst_20 = arith.constant 1.280000e+02 : f32
    %46 = vector.broadcast %cst_20 : f32 to vector<8x1xf32>
    %47 = arith.divf %45, %46 : vector<8x1xf32>
    %48 = arith.mulf %42, %42 : vector<8x1xf32>
    %49 = arith.subf %47, %48 : vector<8x1xf32>
    %cst_21 = arith.constant 0.000000e+00 : f32
    %50 = vector.broadcast %cst_21 : f32 to vector<8x1xf32>
    %51 = arith.maximumf %49, %50 : vector<8x1xf32>
    %52 = vector.broadcast %42 : vector<8x1xf32> to vector<8x128xf32>
    %53 = arith.subf %36, %52 : vector<8x128xf32>
    %cst_22 = arith.constant 9.99999974E-6 : f32
    %54 = vector.broadcast %cst_22 : f32 to vector<8x1xf32>
    %55 = arith.addf %51, %54 : vector<8x1xf32>
    %56 = math.rsqrt %55 : vector<8x1xf32>
    %57 = vector.broadcast %56 : vector<8x1xf32> to vector<8x128xf32>
    %58 = arith.mulf %53, %57 : vector<8x128xf32>
    %59 = vector.broadcast %37 : vector<1x128xf32> to vector<8x128xf32>
    %60 = arith.mulf %58, %59 : vector<8x128xf32>
    %61 = vector.broadcast %38 : vector<1x128xf32> to vector<8x128xf32>
    %62 = arith.addf %60, %61 : vector<8x128xf32>
    %cst_23 = arith.constant 0.000000e+00 : f32
    %63 = vector.broadcast %cst_23 : f32 to vector<8x128xf32>
    %64 = arith.maximumf %62, %63 : vector<8x128xf32>
    %65 = vector.shape_cast %26 : vector<8x16x128xf32> to vector<128x128xf32>
    %c0_24 = arith.constant 0 : index
    %c0_25 = arith.constant 0 : index
    %66 = vector.load %arg10[%c0_24, %c0_25] : memref<1x128xf32, #tpu.memory_space<vmem>>, vector<1x128xf32>
    %c0_26 = arith.constant 0 : index
    %c0_27 = arith.constant 0 : index
    %67 = vector.load %arg11[%c0_26, %c0_27] : memref<1x128xf32, #tpu.memory_space<vmem>>, vector<1x128xf32>
    %cst_28 = arith.constant dense<0.000000e+00> : vector<128xf32>
    %68 = vector.multi_reduction <add>, %65, %cst_28 [1] : vector<128x128xf32> to vector<128xf32>
    %69 = vector.shape_cast %68 : vector<128xf32> to vector<128x1xf32>
    %cst_29 = arith.constant 1.280000e+02 : f32
    %70 = vector.broadcast %cst_29 : f32 to vector<128x1xf32>
    %71 = arith.divf %69, %70 : vector<128x1xf32>
    %72 = arith.mulf %65, %65 : vector<128x128xf32>
    %cst_30 = arith.constant dense<0.000000e+00> : vector<128xf32>
    %73 = vector.multi_reduction <add>, %72, %cst_30 [1] : vector<128x128xf32> to vector<128xf32>
    %74 = vector.shape_cast %73 : vector<128xf32> to vector<128x1xf32>
    %cst_31 = arith.constant 1.280000e+02 : f32
    %75 = vector.broadcast %cst_31 : f32 to vector<128x1xf32>
    %76 = arith.divf %74, %75 : vector<128x1xf32>
    %77 = arith.mulf %71, %71 : vector<128x1xf32>
    %78 = arith.subf %76, %77 : vector<128x1xf32>
    %cst_32 = arith.constant 0.000000e+00 : f32
    %79 = vector.broadcast %cst_32 : f32 to vector<128x1xf32>
    %80 = arith.maximumf %78, %79 : vector<128x1xf32>
    %81 = vector.broadcast %71 : vector<128x1xf32> to vector<128x128xf32>
    %82 = arith.subf %65, %81 : vector<128x128xf32>
    %cst_33 = arith.constant 9.99999974E-6 : f32
    %83 = vector.broadcast %cst_33 : f32 to vector<128x1xf32>
    %84 = arith.addf %80, %83 : vector<128x1xf32>
    %85 = math.rsqrt %84 : vector<128x1xf32>
    %86 = vector.broadcast %85 : vector<128x1xf32> to vector<128x128xf32>
    %87 = arith.mulf %82, %86 : vector<128x128xf32>
    %88 = vector.broadcast %66 : vector<1x128xf32> to vector<128x128xf32>
    %89 = arith.mulf %87, %88 : vector<128x128xf32>
    %90 = vector.broadcast %67 : vector<1x128xf32> to vector<128x128xf32>
    %91 = arith.addf %89, %90 : vector<128x128xf32>
    %cst_34 = arith.constant 0.000000e+00 : f32
    %92 = vector.broadcast %cst_34 : f32 to vector<128x128xf32>
    %93 = arith.maximumf %91, %92 : vector<128x128xf32>
    %c0_35 = arith.constant 0 : index
    %c0_36 = arith.constant 0 : index
    %94 = vector.load %arg12[%c0_35, %c0_36] : memref<1x128xf32, #tpu.memory_space<vmem>>, vector<1x128xf32>
    %c0_37 = arith.constant 0 : index
    %c0_38 = arith.constant 0 : index
    %95 = vector.load %arg13[%c0_37, %c0_38] : memref<1x128xf32, #tpu.memory_space<vmem>>, vector<1x128xf32>
    %cst_39 = arith.constant dense<0.000000e+00> : vector<128xf32>
    %96 = vector.multi_reduction <add>, %93, %cst_39 [1] : vector<128x128xf32> to vector<128xf32>
    %97 = vector.shape_cast %96 : vector<128xf32> to vector<128x1xf32>
    %cst_40 = arith.constant 1.280000e+02 : f32
    %98 = vector.broadcast %cst_40 : f32 to vector<128x1xf32>
    %99 = arith.divf %97, %98 : vector<128x1xf32>
    %100 = arith.mulf %93, %93 : vector<128x128xf32>
    %cst_41 = arith.constant dense<0.000000e+00> : vector<128xf32>
    %101 = vector.multi_reduction <add>, %100, %cst_41 [1] : vector<128x128xf32> to vector<128xf32>
    %102 = vector.shape_cast %101 : vector<128xf32> to vector<128x1xf32>
    %cst_42 = arith.constant 1.280000e+02 : f32
    %103 = vector.broadcast %cst_42 : f32 to vector<128x1xf32>
    %104 = arith.divf %102, %103 : vector<128x1xf32>
    %105 = arith.mulf %99, %99 : vector<128x1xf32>
    %106 = arith.subf %104, %105 : vector<128x1xf32>
    %cst_43 = arith.constant 0.000000e+00 : f32
    %107 = vector.broadcast %cst_43 : f32 to vector<128x1xf32>
    %108 = arith.maximumf %106, %107 : vector<128x1xf32>
    %109 = vector.broadcast %99 : vector<128x1xf32> to vector<128x128xf32>
    %110 = arith.subf %93, %109 : vector<128x128xf32>
    %cst_44 = arith.constant 9.99999974E-6 : f32
    %111 = vector.broadcast %cst_44 : f32 to vector<128x1xf32>
    %112 = arith.addf %108, %111 : vector<128x1xf32>
    %113 = math.rsqrt %112 : vector<128x1xf32>
    %114 = vector.broadcast %113 : vector<128x1xf32> to vector<128x128xf32>
    %115 = arith.mulf %110, %114 : vector<128x128xf32>
    %116 = vector.broadcast %94 : vector<1x128xf32> to vector<128x128xf32>
    %117 = arith.mulf %115, %116 : vector<128x128xf32>
    %118 = vector.broadcast %95 : vector<1x128xf32> to vector<128x128xf32>
    %119 = arith.addf %117, %118 : vector<128x128xf32>
    %120 = arith.negf %119 : vector<128x128xf32>
    %121 = math.exp %120 : vector<128x128xf32>
    %cst_45 = arith.constant 1.000000e+00 : f32
    %122 = vector.broadcast %cst_45 : f32 to vector<128x128xf32>
    %123 = arith.addf %122, %121 : vector<128x128xf32>
    %124 = arith.divf %122, %123 : vector<128x128xf32>
    %125 = arith.mulf %119, %124 : vector<128x128xf32>
    %126 = arith.truncf %125 : vector<128x128xf32> to vector<128x128xbf16>
    %c0_46 = arith.constant 0 : index
    %c0_47 = arith.constant 0 : index
    %127 = vector.load %arg14[%c0_46, %c0_47] : memref<128x128xbf16, #tpu.memory_space<vmem>>, vector<128x128xbf16>
    %cst_48 = arith.constant dense<0.000000e+00> : vector<128x128xf32>
    %128 = tpu.matmul %126, %127, %cst_48 {dimension_numbers = #tpu.dot_dimension_numbers<[1], [0], [0], [1], [0, 0, 1, 1], [], []>} : vector<128x128xbf16>, vector<128x128xbf16>, vector<128x128xf32> -> vector<128x128xf32>
    %c0_49 = arith.constant 0 : index
    %c0_50 = arith.constant 0 : index
    %129 = vector.load %arg15[%c0_49, %c0_50] : memref<1x128xf32, #tpu.memory_space<vmem>>, vector<1x128xf32>
    %130 = vector.broadcast %129 : vector<1x128xf32> to vector<128x128xf32>
    %131 = arith.addf %128, %130 : vector<128x128xf32>
    %c0_51 = arith.constant 0 : index
    %132 = arith.index_cast %4 : i32 to index
    %c0_52 = arith.constant 0 : index
    %133 = vector.load %arg2[%c0_51, %132, %c0_52] : memref<1x16x128xf32, #tpu.memory_space<vmem>>, vector<1x8x128xf32>
    %134 = vector.shape_cast %133 : vector<1x8x128xf32> to vector<8x128xf32>
    %135 = arith.addf %134, %64 : vector<8x128xf32>
    %c0_53 = arith.constant 0 : index
    %c0_54 = arith.constant 0 : index
    %c0_55 = arith.constant 0 : index
    %136 = vector.load %arg16[%c0_53, %c0_54, %c0_55] : memref<1x8x128xf32, #tpu.memory_space<vmem>>, vector<1x8x128xf32>
    %137 = vector.shape_cast %136 : vector<1x8x128xf32> to vector<8x128xf32>
    %138 = vector.shape_cast %135 : vector<8x128xf32> to vector<1x8x128xf32>
    tpu.vector_store %arg16[%c0_53, %c0_54, %c0_55], %138 {strides = array<i32>} : memref<1x8x128xf32, #tpu.memory_space<vmem>>, vector<1x8x128xf32>,
    %139 = vector.shape_cast %14 : vector<128x128xf32> to vector<8x16x128xf32>
    %140 = vector.shape_cast %131 : vector<128x128xf32> to vector<8x16x128xf32>
    %141 = arith.addf %139, %140 : vector<8x16x128xf32>
    %142 = arith.truncf %141 : vector<8x16x128xf32> to vector<8x16x128xbf16>
    %c0_56 = arith.constant 0 : index
    %c0_57 = arith.constant 0 : index
    %c0_58 = arith.constant 0 : index
    %c0_59 = arith.constant 0 : index
    %143 = vector.load %arg17[%c0_56, %c0_57, %c0_58, %c0_59] : memref<1x8x16x128xbf16, #tpu.memory_space<vmem>>, vector<1x8x16x128xbf16>
    %144 = vector.shape_cast %143 : vector<1x8x16x128xbf16> to vector<8x16x128xbf16>
    %145 = vector.shape_cast %142 : vector<8x16x128xbf16> to vector<1x8x16x128xbf16>
    tpu.vector_store %arg17[%c0_56, %c0_57, %c0_58, %c0_59], %145 {strides = array<i32>} : memref<1x8x16x128xbf16, #tpu.memory_space<vmem>>, vector<1x8x16x128xbf16>,
    return
  }
  func.func @transform_0(%arg0: i32, %arg1: i32) -> (i32, i32, i32) {
    %c0_i32 = arith.constant 0 : i32
    %c0_i32_0 = arith.constant 0 : i32
    %c0_i32_1 = arith.constant 0 : i32
    return %arg0, %c0_i32, %c0_i32_0 : i32, i32, i32
  }
  func.func @transform_1(%arg0: i32, %arg1: i32) -> (i32, i32, i32, i32) {
    %c0_i32 = arith.constant 0 : i32
    %c0_i32_0 = arith.constant 0 : i32
    %c0_i32_1 = arith.constant 0 : i32
    return %arg0, %arg1, %c0_i32, %c0_i32_0 : i32, i32, i32, i32
  }
  func.func @transform_2(%arg0: i32, %arg1: i32) -> (i32, i32) {
    %c0_i32 = arith.constant 0 : i32
    %c0_i32_0 = arith.constant 0 : i32
    %c0_i32_1 = arith.constant 0 : i32
    return %c0_i32, %c0_i32_0 : i32, i32
  }
  func.func @transform_3(%arg0: i32, %arg1: i32) -> (i32, i32) {
    %c0_i32 = arith.constant 0 : i32
    %c0_i32_0 = arith.constant 0 : i32
    %c0_i32_1 = arith.constant 0 : i32
    return %c0_i32, %c0_i32_0 : i32, i32
  }
  func.func @transform_4(%arg0: i32, %arg1: i32) -> (i32, i32) {
    %c0_i32 = arith.constant 0 : i32
    %c0_i32_0 = arith.constant 0 : i32
    %c0_i32_1 = arith.constant 0 : i32
    return %c0_i32, %c0_i32_0 : i32, i32
  }
  func.func @transform_5(%arg0: i32, %arg1: i32) -> (i32, i32) {
    %c0_i32 = arith.constant 0 : i32
    %c0_i32_0 = arith.constant 0 : i32
    %c0_i32_1 = arith.constant 0 : i32
    return %c0_i32, %c0_i32_0 : i32, i32
  }
  func.func @transform_6(%arg0: i32, %arg1: i32) -> (i32, i32) {
    %c0_i32 = arith.constant 0 : i32
    %c0_i32_0 = arith.constant 0 : i32
    %c0_i32_1 = arith.constant 0 : i32
    return %c0_i32, %c0_i32_0 : i32, i32
  }
  func.func @transform_7(%arg0: i32, %arg1: i32) -> (i32, i32) {
    %c0_i32 = arith.constant 0 : i32
    %c0_i32_0 = arith.constant 0 : i32
    %c0_i32_1 = arith.constant 0 : i32
    return %c0_i32, %c0_i32_0 : i32, i32
  }
  func.func @transform_8(%arg0: i32, %arg1: i32) -> (i32, i32) {
    %c0_i32 = arith.constant 0 : i32
    %c0_i32_0 = arith.constant 0 : i32
    %c0_i32_1 = arith.constant 0 : i32
    return %c0_i32, %c0_i32_0 : i32, i32
  }
  func.func @transform_9(%arg0: i32, %arg1: i32) -> (i32, i32) {
    %c0_i32 = arith.constant 0 : i32
    %c0_i32_0 = arith.constant 0 : i32
    %c0_i32_1 = arith.constant 0 : i32
    return %c0_i32, %c0_i32_0 : i32, i32
  }
  func.func @transform_10(%arg0: i32, %arg1: i32) -> (i32, i32) {
    %c0_i32 = arith.constant 0 : i32
    %c0_i32_0 = arith.constant 0 : i32
    %c0_i32_1 = arith.constant 0 : i32
    return %c0_i32, %c0_i32_0 : i32, i32
  }
  func.func @transform_11(%arg0: i32, %arg1: i32) -> (i32, i32) {
    %c0_i32 = arith.constant 0 : i32
    %c0_i32_0 = arith.constant 0 : i32
    %c0_i32_1 = arith.constant 0 : i32
    return %c0_i32, %c0_i32_0 : i32, i32
  }
  func.func @transform_12(%arg0: i32, %arg1: i32) -> (i32, i32) {
    %c0_i32 = arith.constant 0 : i32
    %c0_i32_0 = arith.constant 0 : i32
    %c0_i32_1 = arith.constant 0 : i32
    return %c0_i32, %c0_i32_0 : i32, i32
  }
  func.func @transform_13(%arg0: i32, %arg1: i32) -> (i32, i32) {
    %c0_i32 = arith.constant 0 : i32
    %c0_i32_0 = arith.constant 0 : i32
    %c0_i32_1 = arith.constant 0 : i32
    return %c0_i32, %c0_i32_0 : i32, i32
  }
  func.func @transform_14(%arg0: i32, %arg1: i32) -> (i32, i32, i32) {
    %c0_i32 = arith.constant 0 : i32
    %c0_i32_0 = arith.constant 0 : i32
    return %arg0, %arg1, %c0_i32 : i32, i32, i32
  }
  func.func @transform_15(%arg0: i32, %arg1: i32) -> (i32, i32, i32, i32) {
    %c0_i32 = arith.constant 0 : i32
    %c0_i32_0 = arith.constant 0 : i32
    %c0_i32_1 = arith.constant 0 : i32
    return %arg0, %arg1, %c0_i32, %c0_i32_0 : i32, i32, i32, i32
  }
}

module attributes {stable_mosaic.version = 11 : i64} {
  func.func @_head_kernel(%arg0: i32, %arg1: i32, %arg2: memref<1x8x16x128xbf16, #tpu.memory_space<vmem>>, %arg3: memref<1x1x128xf32, #tpu.memory_space<vmem>>, %arg4: memref<1x1x128xf32, #tpu.memory_space<vmem>>, %arg5: memref<2x128xbf16, #tpu.memory_space<vmem>>, %arg6: memref<2x1xf32, #tpu.memory_space<vmem>>, %arg7: memref<1x2x128xf32, #tpu.memory_space<vmem>>) attributes {dimension_semantics = [#tpu.dimension_semantics<parallel>, #tpu.dimension_semantics<parallel>], iteration_bounds = array<i64: 2, 2>, scalar_prefetch = 0 : i64, scratch_operands = 0 : i64, tpu.core_type = #tpu.core_type<tc>, window_params = [{transform_indices = @transform_0, window_bounds = array<i64: 1, 8, 16, 128>}, {transform_indices = @transform_1, window_bounds = array<i64: 1, 1, 128>}, {transform_indices = @transform_2, window_bounds = array<i64: 1, 1, 128>}, {pipeline_mode = #tpu.pipeline_mode<synchronous>, transform_indices = @transform_3, window_bounds = array<i64: 2, 128>}, {pipeline_mode = #tpu.pipeline_mode<synchronous>, transform_indices = @transform_4, window_bounds = array<i64: 2, 1>}, {transform_indices = @transform_5, window_bounds = array<i64: 1, 2, 128>}]} {
    %c0 = arith.constant 0 : index
    %c0_0 = arith.constant 0 : index
    %c0_1 = arith.constant 0 : index
    %c0_2 = arith.constant 0 : index
    %0 = vector.load %arg2[%c0, %c0_0, %c0_1, %c0_2] : memref<1x8x16x128xbf16, #tpu.memory_space<vmem>>, vector<1x8x16x128xbf16>
    %1 = vector.shape_cast %0 : vector<1x8x16x128xbf16> to vector<8x16x128xbf16>
    %2 = vector.shape_cast %1 : vector<8x16x128xbf16> to vector<128x128xbf16>
    %3 = arith.extf %2 : vector<128x128xbf16> to vector<128x128xf32>
    %c0_3 = arith.constant 0 : index
    %c0_4 = arith.constant 0 : index
    %c0_5 = arith.constant 0 : index
    %4 = vector.load %arg3[%c0_3, %c0_4, %c0_5] : memref<1x1x128xf32, #tpu.memory_space<vmem>>, vector<1x1x128xf32>
    %5 = vector.shape_cast %4 : vector<1x1x128xf32> to vector<1x128xf32>
    %6 = vector.broadcast %5 : vector<1x128xf32> to vector<128x128xf32>
    %7 = arith.mulf %3, %6 : vector<128x128xf32>
    %c0_6 = arith.constant 0 : index
    %c0_7 = arith.constant 0 : index
    %c0_8 = arith.constant 0 : index
    %8 = vector.load %arg4[%c0_6, %c0_7, %c0_8] : memref<1x1x128xf32, #tpu.memory_space<vmem>>, vector<1x1x128xf32>
    %9 = vector.shape_cast %8 : vector<1x1x128xf32> to vector<1x128xf32>
    %10 = vector.broadcast %9 : vector<1x128xf32> to vector<128x128xf32>
    %11 = arith.addf %7, %10 : vector<128x128xf32>
    %cst = arith.constant 0.000000e+00 : f32
    %12 = vector.broadcast %cst : f32 to vector<128x128xf32>
    %13 = arith.maximumf %11, %12 : vector<128x128xf32>
    %c0_9 = arith.constant 0 : index
    %c0_10 = arith.constant 0 : index
    %14 = vector.load %arg5[%c0_9, %c0_10] : memref<2x128xbf16, #tpu.memory_space<vmem>>, vector<2x128xbf16>
    %15 = arith.truncf %13 : vector<128x128xf32> to vector<128x128xbf16>
    %cst_11 = arith.constant dense<0.000000e+00> : vector<2x128xf32>
    %16 = tpu.matmul %14, %15, %cst_11 {dimension_numbers = #tpu.dot_dimension_numbers<[1], [1], [0], [0], [0, 0, 1, 0], [], []>} : vector<2x128xbf16>, vector<128x128xbf16>, vector<2x128xf32> -> vector<2x128xf32>
    %c0_12 = arith.constant 0 : index
    %c0_13 = arith.constant 0 : index
    %17 = vector.load %arg6[%c0_12, %c0_13] : memref<2x1xf32, #tpu.memory_space<vmem>>, vector<2x1xf32>
    %18 = vector.broadcast %17 : vector<2x1xf32> to vector<2x128xf32>
    %19 = arith.addf %16, %18 : vector<2x128xf32>
    %c0_14 = arith.constant 0 : index
    %c0_15 = arith.constant 0 : index
    %c0_16 = arith.constant 0 : index
    %20 = vector.load %arg7[%c0_14, %c0_15, %c0_16] : memref<1x2x128xf32, #tpu.memory_space<vmem>>, vector<1x2x128xf32>
    %21 = vector.shape_cast %20 : vector<1x2x128xf32> to vector<2x128xf32>
    %22 = vector.shape_cast %19 : vector<2x128xf32> to vector<1x2x128xf32>
    tpu.vector_store %arg7[%c0_14, %c0_15, %c0_16], %22 {strides = array<i32>} : memref<1x2x128xf32, #tpu.memory_space<vmem>>, vector<1x2x128xf32>,
    return
  }
  func.func @transform_0(%arg0: i32, %arg1: i32) -> (i32, i32, i32, i32) {
    %c0_i32 = arith.constant 0 : i32
    %c0_i32_0 = arith.constant 0 : i32
    %c0_i32_1 = arith.constant 0 : i32
    return %arg0, %arg1, %c0_i32, %c0_i32_0 : i32, i32, i32, i32
  }
  func.func @transform_1(%arg0: i32, %arg1: i32) -> (i32, i32, i32) {
    %c0_i32 = arith.constant 0 : i32
    %c0_i32_0 = arith.constant 0 : i32
    %c0_i32_1 = arith.constant 0 : i32
    return %arg0, %c0_i32, %c0_i32_0 : i32, i32, i32
  }
  func.func @transform_2(%arg0: i32, %arg1: i32) -> (i32, i32, i32) {
    %c0_i32 = arith.constant 0 : i32
    %c0_i32_0 = arith.constant 0 : i32
    %c0_i32_1 = arith.constant 0 : i32
    return %arg0, %c0_i32, %c0_i32_0 : i32, i32, i32
  }
  func.func @transform_3(%arg0: i32, %arg1: i32) -> (i32, i32) {
    %c0_i32 = arith.constant 0 : i32
    %c0_i32_0 = arith.constant 0 : i32
    %c0_i32_1 = arith.constant 0 : i32
    return %c0_i32, %c0_i32_0 : i32, i32
  }
  func.func @transform_4(%arg0: i32, %arg1: i32) -> (i32, i32) {
    %c0_i32 = arith.constant 0 : i32
    %c0_i32_0 = arith.constant 0 : i32
    %c0_i32_1 = arith.constant 0 : i32
    return %c0_i32, %c0_i32_0 : i32, i32
  }
  func.func @transform_5(%arg0: i32, %arg1: i32) -> (i32, i32, i32) {
    %c0_i32 = arith.constant 0 : i32
    %c0_i32_0 = arith.constant 0 : i32
    return %arg0, %c0_i32, %arg1 : i32, i32, i32
  }
}

</mosaic_0001>

<bundles_post_ra>
// kernel: _lambda_.5
= control target key start
LH: loop header
LB: loop body
LE: loop exit
PB: predicated region body
PF: predicated region fallthrough
CT: control target
= control target key end

     0   :  { %s267_s1 = inlined_call_operand.vmem [shape: bf16[128,128], index: 1, kind: input, shape index: {}]   ;;  %s268_s0 = inlined_call_operand.vmem [shape: f32[32,128], index: 0, kind: input, shape index: {}]   ;;  %s269_s2 = inlined_call_operand.vmem [shape: f32[1,128], index: 2, kind: input, shape index: {}]   ;;  %s270_s3 = inlined_call_operand.vmem [shape: f32[32,128], index: 3, kind: output, shape index: {}]  }
   0x1   :  { %v188_v0 = vld [vmem:[%s267_s1] sm:$0xff]   ;;  %v189_v1 = vld [vmem:[%s267_s1 + $0x8] sm:$0xff]   ;;  %v190_v2 = vld [vmem:[%s267_s1 + $0x10] sm:$0xff]  }
   0x2   :  { %168 = vmatprep.subr.bf16.mxu0 %v188_v0  ;;  %v191_v3 = vld [vmem:[%s267_s1 + $0x18] sm:$0xff]   ;;  %v15_v4 = vld [vmem:[%s268_s0] sm:$0xff]  ;;  %v16_v5 = vld [vmem:[%s268_s0 + $0x8] sm:$0xff] }
   0x3   :  { %169 = vmatpush3.bf16.msra.mxu0 %v188_v0  ;;  %v19_v6 = vpack.c.bf16 %v16_v5, %v15_v4  ;;  %v192_v7 = vld [vmem:[%s267_s1 + $0x20] sm:$0xff]   ;;  %v193_v8 = vld [vmem:[%s267_s1 + $0x28] sm:$0xff]   ;;  %v194_v9 = vld [vmem:[%s267_s1 + $0x30] sm:$0xff]  }
   0x4   :  { %170 = vmatprep.subr.bf16.mxu0 %v189_v1  ;;  %v195_v10 = vld [vmem:[%s267_s1 + $0x38] sm:$0xff]   ;;  %v17_v11 = vld [vmem:[%s268_s0 + $0x10] sm:$0xff]  ;;  %v149_v14 = vld [vmem:[%s269_s2] ss:$0 sm:$0xff] }
   0x5   :  { %184 = vmatprep.mubr.bf16.mxu0 %v19_v6  ;;  %v18_v12 = vld [vmem:[%s268_s0 + $0x18] sm:$0xff] }
   0x6   :  { %v20_v13 = vpack.c.bf16 %v18_v12, %v17_v11 }
   0x7   :  { %171 = vmatpush3.bf16.msra.mxu0 %v189_v1 }
   0x8   :  { %172 = vmatprep.subr.bf16.mxu0 %v190_v2 }
   0xb   :  { %173 = vmatpush3.bf16.msra.mxu0 %v190_v2 }
   0xc   :  { %174 = vmatprep.subr.bf16.mxu0 %v191_v3 }
   0xf   :  { %175 = vmatpush3.bf16.msra.mxu0 %v191_v3 }
  0x10   :  { %176 = vmatprep.subr.bf16.mxu0 %v192_v7 }
  0x13   :  { %177 = vmatpush3.bf16.msra.mxu0 %v192_v7 }
  0x14   :  { %178 = vmatprep.subr.bf16.mxu0 %v193_v8 }
  0x17   :  { %179 = vmatpush3.bf16.msra.mxu0 %v193_v8 }
  0x18   :  { %180 = vmatprep.subr.bf16.mxu0 %v194_v9 }
  0x1b   :  { %181 = vmatpush3.bf16.msra.mxu0 %v194_v9 }
  0x1c   :  { %182 = vmatprep.subr.bf16.mxu0 %v195_v10 }
  0x1f   :  { %183 = vmatpush3.bf16.msra.mxu0 %v195_v10 }
  0x22   :  { %185 = vmatmul.mubr.bf16.vlgmr.msra.gmra.mrb[0].mxu0 %v20_v13 }
  0xf5   :  { %v186_v15 = vpop.f32.mrb[0].mxu0 }
  0xf6   :  { %v135_v16 = vadd.f32 %v186_v15, %v149_v14  ;;  %v126_v17 = vpop.f32.mrb[1].mxu0 }
  0xf7   :  { %v127_v18 = vadd.f32 %v149_v14, %v126_v17  ;;  %v187_v19 = vpop.f32.mrb[2].mxu0 }
  0xf8   :  { %143 = vst [vmem:[%s270_s3 + $0x10] sm:$0xff] %v135_v16  ;;  %v138_v20 = vadd.f32 %v187_v19, %v149_v14  ;;  %v129_v21 = vpop.f32.mrb[3].mxu0 }
  0xf9   :  { %141 = vst [vmem:[%s270_s3] sm:$0xff] %v127_v18  ;;  %v130_v22 = vadd.f32 %v149_v14, %v129_v21 }
  0xfa   :  { %144 = vst [vmem:[%s270_s3 + $0x18] sm:$0xff] %v138_v20 }
  0xfb   :  { %142 = vst [vmem:[%s270_s3 + $0x8] sm:$0xff] %v130_v22 }

// kernel: squeeze.6
= control target key start
LH: loop header
LB: loop body
LE: loop exit
PB: predicated region body
PF: predicated region fallthrough
CT: control target
= control target key end

     0   :  { %s354_s8 = smov 116   ;;  %s355_s9 = smov 120   ;;  %vm7_vm0 = vcmask 31744   ;;  %s653_s0 = inlined_call_operand.vmem [shape: f32[2,128], index: 0, kind: input, shape index: {}]   ;;  %s654_s1 = inlined_call_operand.vmem [shape: f32[2,32,4], index: 1, kind: output, shape index: {}]  }
   0x1   :  { %v4_v0 = vld [vmem:[%s653_s0] sm:$0x3]  ;;  %s353_s0 = smov 124   ;;  %s356_s10 = smov 112  }
   0x2   :  { %5 = vst [vmem:[#allocation0] sm:$0x3] %v4_v0  ;;  %s357_s11 = smov 108   ;;  %s358_s12 = smov 104  }
   0x3   :  { %s359_s13 = smov 100   ;;  %s360_s14 = smov 96  }
   0x4   :  { %s361_s15 = smov 92   ;;  %s362_s16 = smov 88  }
   0x5   :  { %s363_s17 = smov 84   ;;  %s364_s18 = smov 80  }
   0x6   :  { %s365_s19 = smov 76   ;;  %s366_s20 = smov 72  }
   0x7   :  { %s367_s21 = smov 68   ;;  %s368_s22 = smov 64  }
   0x8   :  { %s369_s23 = smov 60   ;;  %s370_s24 = smov 56  }
   0x9   :  { %v11_v1 = vld [vmem:[#allocation0] sm:$0x3]   ;;  %s371_s25 = smov 52   ;;  %s372_s26 = smov 48  }
   0xa   :  { %v27_v2 = vld [vmem:[#allocation0] sm:$0x3]   ;;  %12 = vrot.lane.b32.xlu0 %v11_v1, %s353_s0  ;;  %s373_s27 = smov 44   ;;  %s374_s28 = smov 40  }
   0xb   :  { %28 = vrot.lane.b32.xlu1 %v27_v2, %s354_s8  ;;  %v19_v3 = vld [vmem:[#allocation0] sm:$0x3]   ;;  %s375_s29 = smov 36   ;;  %s376_s30 = smov 32  }
   0xc   :  { %v35_v4 = vld [vmem:[#allocation0] sm:$0x3]   ;;  %s377_s6 = smov 28   ;;  %s378_s7 = smov 24  }
   0xd   :  { %v43_v5 = vld [vmem:[#allocation0] sm:$0x3]   ;;  %s379_s0 = smov 20   ;;  %s380_s8 = smov 16  }
   0xe   :  { %20 = vrot.lane.b32.xlu0 %v19_v3, %s355_s9  ;;  %v51_v6 = vld [vmem:[#allocation0] sm:$0x3]   ;;  %s381_s9 = smov 12  }
   0xf   :  { %36 = vrot.lane.b32.xlu1 %v35_v4, %s356_s10  ;;  %v59_v7 = vld [vmem:[#allocation0] sm:$0x3]   ;;  %s382_s10 = smov 8  }
  0x10   :  { %v67_v8 = vld [vmem:[#allocation0] sm:$0x3]  }
  0x11   :  { %v75_v9 = vld [vmem:[#allocation0] sm:$0x3]  }
  0x12   :  { %44 = vrot.lane.b32.xlu0 %v43_v5, %s357_s11  ;;  %v83_v10 = vld [vmem:[#allocation0] sm:$0x3]   ;;  %s383_s11 = smov 4  }
  0x13   :  { %52 = vrot.lane.b32.xlu1 %v51_v6, %s358_s12  ;;  %v91_v11 = vld [vmem:[#allocation0] sm:$0x3]  }
  0x14   :  { %v99_v12 = vld [vmem:[#allocation0] sm:$0x3]  }
  0x15   :  { %v107_v13 = vld [vmem:[#allocation0] sm:$0x3]  }
  0x16   :  { %60 = vrot.lane.b32.xlu0 %v59_v7, %s359_s13  ;;  %v115_v14 = vld [vmem:[#allocation0] sm:$0x3]  }
  0x17   :  { %68 = vrot.lane.b32.xlu1 %v67_v8, %s360_s14  ;;  %v123_v15 = vld [vmem:[#allocation0] sm:$0x3]  }
  0x18   :  { %v131_v16 = vld [vmem:[#allocation0] sm:$0x3]  }
  0x19   :  { %v139_v17 = vld [vmem:[#allocation0] sm:$0x3]  }
  0x1a   :  { %76 = vrot.lane.b32.xlu0 %v75_v9, %s361_s15  ;;  %v147_v18 = vld [vmem:[#allocation0] sm:$0x3]  }
  0x1b   :  { %84 = vrot.lane.b32.xlu1 %v83_v10, %s362_s16  ;;  %v155_v19 = vld [vmem:[#allocation0] sm:$0x3]  }
  0x1c   :  { %v163_v20 = vld [vmem:[#allocation0] sm:$0x3]  }
  0x1d   :  { %v171_v21 = vld [vmem:[#allocation0] sm:$0x3]  }
  0x1e   :  { %92 = vrot.lane.b32.xlu0 %v91_v11, %s363_s17  ;;  %v179_v22 = vld [vmem:[#allocation0] sm:$0x3]  }
  0x1f   :  { %100 = vrot.lane.b32.xlu1 %v99_v12, %s364_s18  ;;  %v187_v23 = vld [vmem:[#allocation0] sm:$0x3]  }
  0x20   :  { %v195_v24 = vld [vmem:[#allocation0] sm:$0x3]  }
  0x21   :  { %v203_v25 = vld [vmem:[#allocation0] sm:$0x3]  }
  0x22   :  { %108 = vrot.lane.b32.xlu0 %v107_v13, %s365_s19  ;;  %v211_v26 = vld [vmem:[#allocation0] sm:$0x3]  }
  0x23   :  { %116 = vrot.lane.b32.xlu1 %v115_v14, %s366_s20  ;;  %v6_v27 = vld [vmem:[#allocation0] sm:$0x3]  }
  0x24   :  { %8 = vst.msk [vmem:[%s654_s1] sm:$0x1] %vm7_vm0, %v6_v27   ;;  %259 = vst.msk [vmem:[%s654_s1 + $0x1f] sm:$0x2] %vm7_vm0, %v6_v27   ;;  %v219_v28 = vld [vmem:[#allocation0] sm:$0x3]  }
  0x25   :  { %v227_v29 = vld [vmem:[#allocation0] sm:$0x3]  }
  0x26   :  { %124 = vrot.lane.b32.xlu0 %v123_v15, %s367_s21  ;;  %v235_v30 = vld [vmem:[#allocation0] sm:$0x3]  }
  0x27   :  { %132 = vrot.lane.b32.xlu1 %v131_v16, %s368_s22  ;;  %v243_v31 = vld [vmem:[#allocation0] sm:$0x3]  }
  0x28   :  { %v251_v32 = vld [vmem:[#allocation0] sm:$0x3]  }
  0x2a   :  { %140 = vrot.lane.b32.xlu0 %v139_v17, %s369_s23 }
  0x2b   :  { %148 = vrot.lane.b32.xlu1 %v147_v18, %s370_s24 }
  0x2e   :  { %156 = vrot.lane.b32.xlu0 %v155_v19, %s371_s25 }
  0x2f   :  { %164 = vrot.lane.b32.xlu1 %v163_v20, %s372_s26 }
  0x32   :  { %172 = vrot.lane.b32.xlu0 %v171_v21, %s373_s27 }
  0x33   :  { %180 = vrot.lane.b32.xlu1 %v179_v22, %s374_s28 }
  0x36   :  { %188 = vrot.lane.b32.xlu0 %v187_v23, %s375_s29 }
  0x37   :  { %196 = vrot.lane.b32.xlu1 %v195_v24, %s376_s30 }
  0x3a   :  { %204 = vrot.lane.b32.xlu0 %v203_v25, %s377_s6 }
  0x3b   :  { %212 = vrot.lane.b32.xlu1 %v211_v26, %s378_s7 }
  0x3e   :  { %220 = vrot.lane.b32.xlu0 %v219_v28, %s379_s0 }
  0x3f   :  { %228 = vrot.lane.b32.xlu1 %v227_v29, %s380_s8 }
  0x42   :  { %236 = vrot.lane.b32.xlu0 %v235_v30, %s381_s9 }
  0x43   :  { %244 = vrot.lane.b32.xlu1 %v243_v31, %s382_s10 }
  0x46   :  { %252 = vrot.lane.b32.xlu0 %v251_v32, %s383_s11 }
  0x7c   :  { %v13_v33 = vpop.permute.xlu0 %12  }
  0x7d   :  { %v29_v34 = vpop.permute.xlu1 %28   ;;  %260 = vst.msk [vmem:[%s654_s1 + $0x1] sm:$0x1] %vm7_vm0, %v13_v33   ;;  %261 = vst.msk [vmem:[%s654_s1 + $0x20] sm:$0x2] %vm7_vm0, %v13_v33  }
  0x7e   :  { %264 = vst.msk [vmem:[%s654_s1 + $0x3] sm:$0x1] %vm7_vm0, %v29_v34   ;;  %265 = vst.msk [vmem:[%s654_s1 + $0x22] sm:$0x2] %vm7_vm0, %v29_v34  }
  0x80   :  { %v21_v35 = vpop.permute.xlu0 %20  }
  0x81   :  { %v37_v36 = vpop.permute.xlu1 %36   ;;  %262 = vst.msk [vmem:[%s654_s1 + $0x2] sm:$0x1] %vm7_vm0, %v21_v35   ;;  %263 = vst.msk [vmem:[%s654_s1 + $0x21] sm:$0x2] %vm7_vm0, %v21_v35  }
  0x82   :  { %266 = vst.msk [vmem:[%s654_s1 + $0x4] sm:$0x1] %vm7_vm0, %v37_v36   ;;  %267 = vst.msk [vmem:[%s654_s1 + $0x23] sm:$0x2] %vm7_vm0, %v37_v36  }
  0x84   :  { %v45_v37 = vpop.permute.xlu0 %44  }
  0x85   :  { %v53_v38 = vpop.permute.xlu1 %52   ;;  %268 = vst.msk [vmem:[%s654_s1 + $0x5] sm:$0x1] %vm7_vm0, %v45_v37   ;;  %269 = vst.msk [vmem:[%s654_s1 + $0x24] sm:$0x2] %vm7_vm0, %v45_v37  }
  0x86   :  { %270 = vst.msk [vmem:[%s654_s1 + $0x6] sm:$0x1] %vm7_vm0, %v53_v38   ;;  %271 = vst.msk [vmem:[%s654_s1 + $0x25] sm:$0x2] %vm7_vm0, %v53_v38  }
  0x88   :  { %v61_v39 = vpop.permute.xlu0 %60  }
  0x89   :  { %v69_v40 = vpop.permute.xlu1 %68   ;;  %272 = vst.msk [vmem:[%s654_s1 + $0x7] sm:$0x1] %vm7_vm0, %v61_v39   ;;  %273 = vst.msk [vmem:[%s654_s1 + $0x26] sm:$0x2] %vm7_vm0, %v61_v39  }
  0x8a   :  { %274 = vst.msk [vmem:[%s654_s1 + $0x8] sm:$0x1] %vm7_vm0, %v69_v40   ;;  %275 = vst.msk [vmem:[%s654_s1 + $0x27] sm:$0x2] %vm7_vm0, %v69_v40  }
  0x8c   :  { %v77_v41 = vpop.permute.xlu0 %76  }
  0x8d   :  { %v85_v42 = vpop.permute.xlu1 %84   ;;  %276 = vst.msk [vmem:[%s654_s1 + $0x9] sm:$0x1] %vm7_vm0, %v77_v41   ;;  %277 = vst.msk [vmem:[%s654_s1 + $0x28] sm:$0x2] %vm7_vm0, %v77_v41  }
  0x8e   :  { %278 = vst.msk [vmem:[%s654_s1 + $0xa] sm:$0x1] %vm7_vm0, %v85_v42   ;;  %279 = vst.msk [vmem:[%s654_s1 + $0x29] sm:$0x2] %vm7_vm0, %v85_v42  }
  0x90   :  { %v93_v43 = vpop.permute.xlu0 %92  }
  0x91   :  { %v101_v44 = vpop.permute.xlu1 %100   ;;  %280 = vst.msk [vmem:[%s654_s1 + $0xb] sm:$0x1] %vm7_vm0, %v93_v43   ;;  %281 = vst.msk [vmem:[%s654_s1 + $0x2a] sm:$0x2] %vm7_vm0, %v93_v43  }
  0x92   :  { %282 = vst.msk [vmem:[%s654_s1 + $0xc] sm:$0x1] %vm7_vm0, %v101_v44   ;;  %283 = vst.msk [vmem:[%s654_s1 + $0x2b] sm:$0x2] %vm7_vm0, %v101_v44  }
  0x94   :  { %v109_v45 = vpop.permute.xlu0 %108  }
  0x95   :  { %v117_v46 = vpop.permute.xlu1 %116   ;;  %284 = vst.msk [vmem:[%s654_s1 + $0xd] sm:$0x1] %vm7_vm0, %v109_v45   ;;  %285 = vst.msk [vmem:[%s654_s1 + $0x2c] sm:$0x2] %vm7_vm0, %v109_v45  }
  0x96   :  { %286 = vst.msk [vmem:[%s654_s1 + $0xe] sm:$0x1] %vm7_vm0, %v117_v46   ;;  %287 = vst.msk [vmem:[%s654_s1 + $0x2d] sm:$0x2] %vm7_vm0, %v117_v46  }
  0x98   :  { %v125_v47 = vpop.permute.xlu0 %124  }
  0x99   :  { %v133_v48 = vpop.permute.xlu1 %132   ;;  %288 = vst.msk [vmem:[%s654_s1 + $0xf] sm:$0x1] %vm7_vm0, %v125_v47   ;;  %289 = vst.msk [vmem:[%s654_s1 + $0x2e] sm:$0x2] %vm7_vm0, %v125_v47  }
  0x9a   :  { %290 = vst.msk [vmem:[%s654_s1 + $0x10] sm:$0x1] %vm7_vm0, %v133_v48   ;;  %291 = vst.msk [vmem:[%s654_s1 + $0x2f] sm:$0x2] %vm7_vm0, %v133_v48  }
  0x9c   :  { %v141_v49 = vpop.permute.xlu0 %140  }
  0x9d   :  { %v149_v50 = vpop.permute.xlu1 %148   ;;  %292 = vst.msk [vmem:[%s654_s1 + $0x11] sm:$0x1] %vm7_vm0, %v141_v49   ;;  %293 = vst.msk [vmem:[%s654_s1 + $0x30] sm:$0x2] %vm7_vm0, %v141_v49  }
  0x9e   :  { %294 = vst.msk [vmem:[%s654_s1 + $0x12] sm:$0x1] %vm7_vm0, %v149_v50   ;;  %295 = vst.msk [vmem:[%s654_s1 + $0x31] sm:$0x2] %vm7_vm0, %v149_v50  }
  0xa0   :  { %v157_v51 = vpop.permute.xlu0 %156  }
  0xa1   :  { %v165_v52 = vpop.permute.xlu1 %164   ;;  %296 = vst.msk [vmem:[%s654_s1 + $0x13] sm:$0x1] %vm7_vm0, %v157_v51   ;;  %297 = vst.msk [vmem:[%s654_s1 + $0x32] sm:$0x2] %vm7_vm0, %v157_v51  }
  0xa2   :  { %298 = vst.msk [vmem:[%s654_s1 + $0x14] sm:$0x1] %vm7_vm0, %v165_v52   ;;  %299 = vst.msk [vmem:[%s654_s1 + $0x33] sm:$0x2] %vm7_vm0, %v165_v52  }
  0xa4   :  { %v173_v53 = vpop.permute.xlu0 %172  }
  0xa5   :  { %v181_v54 = vpop.permute.xlu1 %180   ;;  %300 = vst.msk [vmem:[%s654_s1 + $0x15] sm:$0x1] %vm7_vm0, %v173_v53   ;;  %301 = vst.msk [vmem:[%s654_s1 + $0x34] sm:$0x2] %vm7_vm0, %v173_v53  }
  0xa6   :  { %302 = vst.msk [vmem:[%s654_s1 + $0x16] sm:$0x1] %vm7_vm0, %v181_v54   ;;  %303 = vst.msk [vmem:[%s654_s1 + $0x35] sm:$0x2] %vm7_vm0, %v181_v54  }
  0xa8   :  { %v189_v55 = vpop.permute.xlu0 %188  }
  0xa9   :  { %v197_v56 = vpop.permute.xlu1 %196   ;;  %304 = vst.msk [vmem:[%s654_s1 + $0x17] sm:$0x1] %vm7_vm0, %v189_v55   ;;  %305 = vst.msk [vmem:[%s654_s1 + $0x36] sm:$0x2] %vm7_vm0, %v189_v55  }
  0xaa   :  { %306 = vst.msk [vmem:[%s654_s1 + $0x18] sm:$0x1] %vm7_vm0, %v197_v56   ;;  %307 = vst.msk [vmem:[%s654_s1 + $0x37] sm:$0x2] %vm7_vm0, %v197_v56  }
  0xac   :  { %v205_v57 = vpop.permute.xlu0 %204  }
  0xad   :  { %v213_v58 = vpop.permute.xlu1 %212   ;;  %308 = vst.msk [vmem:[%s654_s1 + $0x19] sm:$0x1] %vm7_vm0, %v205_v57   ;;  %309 = vst.msk [vmem:[%s654_s1 + $0x38] sm:$0x2] %vm7_vm0, %v205_v57  }
  0xae   :  { %310 = vst.msk [vmem:[%s654_s1 + $0x1a] sm:$0x1] %vm7_vm0, %v213_v58   ;;  %311 = vst.msk [vmem:[%s654_s1 + $0x39] sm:$0x2] %vm7_vm0, %v213_v58  }
  0xb0   :  { %v221_v59 = vpop.permute.xlu0 %220  }
  0xb1   :  { %v229_v60 = vpop.permute.xlu1 %228   ;;  %312 = vst.msk [vmem:[%s654_s1 + $0x1b] sm:$0x1] %vm7_vm0, %v221_v59   ;;  %313 = vst.msk [vmem:[%s654_s1 + $0x3a] sm:$0x2] %vm7_vm0, %v221_v59  }
  0xb2   :  { %314 = vst.msk [vmem:[%s654_s1 + $0x1c] sm:$0x1] %vm7_vm0, %v229_v60   ;;  %315 = vst.msk [vmem:[%s654_s1 + $0x3b] sm:$0x2] %vm7_vm0, %v229_v60  }
  0xb4   :  { %v237_v61 = vpop.permute.xlu0 %236  }
  0xb5   :  { %v245_v62 = vpop.permute.xlu1 %244   ;;  %316 = vst.msk [vmem:[%s654_s1 + $0x1d] sm:$0x1] %vm7_vm0, %v237_v61   ;;  %317 = vst.msk [vmem:[%s654_s1 + $0x3c] sm:$0x2] %vm7_vm0, %v237_v61  }
  0xb6   :  { %318 = vst.msk [vmem:[%s654_s1 + $0x1e] sm:$0x1] %vm7_vm0, %v245_v62   ;;  %319 = vst.msk [vmem:[%s654_s1 + $0x3d] sm:$0x2] %vm7_vm0, %v245_v62  }
  0xb8   :  { %v253_v63 = vpop.permute.xlu0 %252  }
  0xb9   :  { %320 = vst.msk [vmem:[%s654_s1 + $0x1f] sm:$0x1] %vm7_vm0, %v253_v63   ;;  %321 = vst.msk [vmem:[%s654_s1 + $0x3e] sm:$0x2] %vm7_vm0, %v253_v63  }

// kernel: _lambda_.8
= control target key start
LH: loop header
LB: loop body
LE: loop exit
PB: predicated region body
PF: predicated region fallthrough
CT: control target
= control target key end

     0   :  { %s4623_s0 = inlined_call_operand.vmem [shape: f32[2,16,128], index: 0, kind: input, shape index: {}]   ;;  %s4624_s1 = inlined_call_operand.vmem [shape: bf16[2,16,16,128], index: 1, kind: input, shape index: {}]   ;;  %s4625_s2 = inlined_call_operand.vmem [shape: bf16[128,512], index: 2, kind: input, shape index: {}]   ;;  %s4626_s3 = inlined_call_operand.vmem [shape: f32[1,512], index: 3, kind: input, shape index: {}]   ;;  %s4627_s4 = inlined_call_operand.vmem [shape: bf16[128,128], index: 4, kind: input, shape index: {}]   ;;  %s4628_s5 = inlined_call_operand.vmem [shape: f32[1,128], index: 5, kind: input, shape index: {}]   ;;  %s4629_s6 = inlined_call_operand.vmem [shape: f32[1,128], index: 6, kind: input, shape index: {}]   ;;  %s4630_s7 = inlined_call_operand.vmem [shape: f32[1,128], index: 7, kind: input, shape index: {}]   ;;  %s4631_s8 = inlined_call_operand.vmem [shape: f32[1,128], index: 8, kind: input, shape index: {}]   ;;  %s4632_s9 = inlined_call_operand.vmem [shape: f32[1,128], index: 9, kind: input, shape index: {}]   ;;  %s4633_s10 = inlined_call_operand.vmem [shape: f32[1,128], index: 10, kind: input, shape index: {}]   ;;  %s4634_s11 = inlined_call_operand.vmem [shape: f32[1,128], index: 11, kind: input, shape index: {}]   ;;  %s4635_s12 = inlined_call_operand.vmem [shape: bf16[128,128], index: 12, kind: input, shape index: {}]   ;;  %s4636_s13 = inlined_call_operand.vmem [shape: f32[1,128], index: 13, kind: input, shape index: {}]   ;;  %s4637_s14 = inlined_call_operand.hbm [shape: f32[2,16,128], index: 14, kind: output, shape index: {0}]   ;;  %s4638_s15 = inlined_call_operand.vmem [shape: bf16[2,16,16,128], index: 15, kind: output, shape index: {1}]   ;;  %s4639_s16 = inlined_call_operand.vmem [shape: f32[2,2,128], index: 16, kind: output, shape index: {2}]  }
   0x1   :  { %4656 = sst [smem:[#allocation18_spill]] %s4623_s0 }
   0x2   :  { %4657 = sst [smem:[#allocation19_spill]] %s4629_s6 }
   0x3   :  { %4658 = sst [smem:[#allocation20_spill]] %s4630_s7 }
   0x4   :  { %4659 = sst [smem:[#allocation21_spill]] %s4632_s9 }
   0x5   :  { %4660 = sst [smem:[#allocation22_spill]] %s4633_s10 }
   0x6   :  { %4661 = sst [smem:[#allocation23_spill]] %s4634_s11 }
   0x7   :  { %4662 = sst [smem:[#allocation24_spill]] %s4635_s12 }
   0x8   :  { %4663 = sst [smem:[#allocation25_spill]] %s4636_s13 }
   0x9   :  { %4664 = sst [smem:[#allocation26_spill]] %s4637_s14 }
   0xa   :  { %22 = vsyncpa [#allocation4], 0 }
   0xb   :  { %24 = vsyncpa [#allocation4 + $0x1], 0  ;;  %s3584_s21 = smov 0   ;;  %s3586_s22 = smov 0  }
   0xc   :  { %s3588_s23 = smov 0   ;;  %s3590_s24 = smov 0  }
   0xd   :  { %s3592_s25 = smov 0   ;;  %s3594_s26 = smov 0  }
   0xe   :  { %s3596_s27 = smov 0   ;;  %s3598_s28 = smov 0  }
   0xf LB: > { %4665 = sst [smem:[#allocation6_spill]] %s3465_s21  ;;  %s2742_s29 = sadd.s32 4294967295, %s3493_s28   ;;  %s3493_s28 = sphi %s3598_s28, %s30_s28   ;;  %s3489_s27 = sphi %s3596_s27, %s4701_s27   ;;  %s3485_s26 = sphi %s3594_s26, %s4700_s26   ;;  %s3481_s25 = sphi %s3592_s25, %s4699_s25   ;;  %s3477_s24 = sphi %s3590_s24, %s4698_s24   ;;  %s3473_s23 = sphi %s3588_s23, %s4697_s23   ;;  %s3469_s22 = sphi %s3586_s22, %s4696_s22   ;;  %s3465_s21 = sphi %s3584_s21, %s4695_s21  }
  0x10   : > { %4666 = sst [smem:[#allocation7_spill]] %s3469_s22  ;;  %s2743_s30 = sadd.s32 4294967294, %s3493_s28  }
  0x11   : > { %4667 = sst [smem:[#allocation8_spill]] %s3473_s23  ;;  %s39_s0 = sadd.s32 1, %s3485_s26 }
  0x12   : > { %4668 = sst [smem:[#allocation9_spill]] %s3481_s25  ;;  %p40_p0 = scmp.ge.s32.totalorder %s39_s0, 2 }
  0x13   : > { %4669 = sst [smem:[#allocation10_spill]] %s3485_s26  ;;  %s42_s17 = sadd.s32 1, %s3489_s27 }
  0x14   : > { %4670 = sst [smem:[#allocation11_spill]] %s3489_s27  ;;  %p367_p1 = scmp.ne.s32.totalorder %s3473_s23, %s3469_s22 }
  0x15   : > { %4671 = sst [smem:[#allocation12_spill]] %s3493_s28  ;;  %p368_p2 = scmp.eq.s32.totalorder %s2742_s29, 3 }
  0x16   : > { %s4703_s0 = smov (%p40_p0, %s39_s0), 0  ;;  %s4705_s17 = smov (!%p40_p0, %s42_s17), %s3489_s27 }
  0x17   : > { %4672 = sst [smem:[#allocation13_spill]] %s4703_s0  ;;  %s353_s18 = ssub.s32 %s3485_s26, %s4703_s0 }
  0x18   : > { %p3635_p3 = por %p368_p2, %p367_p1  ;;  %p44_p4 = scmp.ge.s32.totalorder %s4705_s17, 2 }
  0x19   : > { %p373_p5 = scmp.ne.s32.totalorder %s3469_s22, %s3465_s21  ;;  %p374_p6 = scmp.eq.s32.totalorder %s2743_s30, 3 }
  0x1a   : > { %s4673_s19 = scalar_select %p3635_p3, 1, 0 }
  0x1b   : > { %p2746_p7 = scmp.ge.s32.totalorder %s3493_s28, 1  ;;  %s4707_s17 = smov (%p44_p4, %s4705_s17), 0 }
  0x1c   : > { %4674 = sst [smem:[#allocation14_spill]] %s4673_s19  ;;  %p3644_p8 = por %p374_p6, %p373_p5 }
  0x1d   : > { %4675 = sst [smem:[#allocation15_spill]] %s4707_s17  ;;  %p504_p9 = scmp.lt.s32.totalorder %s3493_s28, 5 }
  0x1e   : > { %s4676_s20 = scalar_select %p3644_p8, 1, 0 }
  0x1f   : > { %s352_s29 = ssub.s32 %s3489_s27, %s4707_s17  ;;  %s357_s14 = sadd.s32 1, %s3473_s23 }
  0x20   : > { %4677 = sst [smem:[#allocation16_spill]] %s4676_s20  ;;  %s354_s13 = sor.u32 %s353_s18, %s352_s29 }
  0x21   : > { %p505_p10 = pnand %p2746_p7, %p504_p9  ;;  %p355_p11 = scmp.eq.s32.totalorder %s354_s13, 0 }
  0x22   : > { %s4652_s30 = sand.u32 (!%p505_p10), 1, %s3469_s22   ;;  %p578_p12 = scmp.lt.s32.totalorder (!%p505_p10), %s3481_s25, 1 }
  0x23   : > { %s3653_s0 = scalar_select %p355_p11, %s3473_s23, %s357_s14  }
  0x24   : > { %508 = sbr.rel (%p505_p10) target bundleno = 1261 (0x4ed), region = 76  ;;  %s3659_s26 = sshll.u32 (!%p505_p10), %s4652_s30, 3 }
  0x25   : > { %4678 = sst [smem:[#allocation17_spill]] %s3653_s0  ;;  %s3662_s20 = sshll.u32 (!%p505_p10), %s3477_s24, 3 }
  0x26   : > { %p586_p13 = scmp.lt.s32.totalorder (!%p505_p10), %s3662_s20, 15  ;;  %s4679_s0 = sld [smem:[#allocation18_spill]] (!%p505_p10) }
  0x27   : > { %p2759_p0 = scmp.ne.s32.totalorder (!%p505_p10), %s3477_s24, 0 }
  0x2b   : > { %s579_s13 = scalar_select %p578_p12, %s3481_s25, 1 }
  0x2c   : > { %s587_s14 = scalar_select %p586_p13, %s3662_s20, 15 }
  0x2d   : > { %s2881_s18 = sshll.u32 %s579_s13, 4  ;;  %s2752_s29 = sshll.u32 %s579_s13, 5  ;;  %v3116_v0 = vld [vmem:[%s4625_s2 + $0x4] ss:$16 sps:$4 sm:$0xff] (!%p2759_p0)   ;;  %v3118_v1 = vld [vmem:[%s4625_s2 + $0xc] ss:$16 sps:$4 sm:$0xff] (!%p2759_p0)   ;;  %v651_v36 = vlaneseq (!%p2759_p0) }
  0x2e   : > { %s3670_s23 = scalar_lea.vmem %s4679_s0, %s2881_s18  ;;  %s2751_s21 = sshll.u32 %s587_s14, 1  ;;  %v3495_v2 = vmov (!%p2759_p0), 0   ;;  %831 = vmatprep.subr.bf16.mxu0 (!%p2759_p0), %v3116_v0  ;;  %v3120_v3 = vld [vmem:[%s4625_s2] ss:$16 sps:$4 sm:$0xff] (!%p2759_p0)   ;;  %v3121_v4 = vld [vmem:[%s4625_s2 + $0x8] ss:$16 sps:$4 sm:$0xff] (!%p2759_p0)   ;;  %874 = vmatprep.subr.bf16.mxu1 (!%p2759_p0), %v3118_v1 }
  0x2f   : > { %s590_s28 = sadd.s32 %s2752_s29, %s2751_s21  ;;  %s2758_s19 = sshll.u32 %s579_s13, 1  ;;  %863 = vmatprep.mubr.bf16.mxu0 (!%p2759_p0), %v3495_v2  ;;  %906 = vmatprep.mubr.bf16.mxu1 (!%p2759_p0), %v3495_v2  ;;  %v3122_v5 = vld [vmem:[%s4625_s2 + $0x24] ss:$16 sps:$4 sm:$0xff] (!%p2759_p0)   ;;  %v3124_v6 = vld [vmem:[%s4625_s2 + $0x2c] ss:$16 sps:$4 sm:$0xff] (!%p2759_p0)   ;;  %v652_v37 = vshrl.u32 (!%p2759_p0), %v651_v36, 7 }
  0x30   : > { %s2753_s30 = sshll.u32 %s590_s28, 2  ;;  %s3675_s6 = scalar_lea.vmem %s4639_s16, %s2758_s19  ;;  %832 = vmatpush1.bf16.msra.mxu0 (!%p2759_p0), %v3120_v3  ;;  %875 = vmatpush1.bf16.msra.mxu1 (!%p2759_p0), %v3121_v4  ;;  %v3126_v7 = vld [vmem:[%s4625_s2 + $0x20] ss:$16 sps:$4 sm:$0xff] (!%p2759_p0)   ;;  %v3127_v8 = vld [vmem:[%s4625_s2 + $0x28] ss:$16 sps:$4 sm:$0xff] (!%p2759_p0)  }
  0x31   : > { %s3680_s25 = scalar_lea.vmem %s4624_s1, %s2753_s30  ;;  %s3685_s27 = scalar_lea.vmem %s4638_s15, %s2753_s30  ;;  %833 = vmatprep.subr.bf16.mxu0 (!%p2759_p0), %v3122_v5  ;;  %876 = vmatprep.subr.bf16.mxu1 (!%p2759_p0), %v3124_v6  ;;  %v3128_v9 = vld [vmem:[%s4625_s2 + $0x44] ss:$16 sps:$4 sm:$0xff] (!%p2759_p0)   ;;  %v3130_v10 = vld [vmem:[%s4625_s2 + $0x4c] ss:$16 sps:$4 sm:$0xff] (!%p2759_p0)   ;;  %v3132_v11 = vld [vmem:[%s4625_s2 + $0x40] ss:$16 sps:$4 sm:$0xff] (!%p2759_p0)  }
  0x32   : > { %s559_s0 = scalar_lea.vmem [#allocation3], %s3659_s26  ;;  %613 = sbr.rel (%p2759_p0) target bundleno = 297 (0x129), region = 80  ;;  %v3133_v12 = vld [vmem:[%s4625_s2 + $0x48] ss:$16 sps:$4 sm:$0xff] (!%p2759_p0)   ;;  %v3134_v13 = vld [vmem:[%s4625_s2 + $0x64] ss:$16 sps:$4 sm:$0xff] (!%p2759_p0)  }
  0x33   : > { %v3136_v14 = vld [vmem:[%s4625_s2 + $0x6c] ss:$16 sps:$4 sm:$0xff] (!%p2759_p0)   ;;  %v3138_v15 = vld [vmem:[%s4625_s2 + $0x60] ss:$16 sps:$4 sm:$0xff] (!%p2759_p0)   ;;  %v3139_v16 = vld [vmem:[%s4625_s2 + $0x68] ss:$16 sps:$4 sm:$0xff] (!%p2759_p0)  }
  0x34   : > { %834 = vmatpush1.bf16.msra.mxu0 (!%p2759_p0), %v3126_v7  ;;  %877 = vmatpush1.bf16.msra.mxu1 (!%p2759_p0), %v3127_v8  ;;  %v3140_v17 = vld [vmem:[%s4625_s2 + $0x84] ss:$16 sps:$4 sm:$0xff] (!%p2759_p0)   ;;  %v3142_v18 = vld [vmem:[%s4625_s2 + $0x8c] ss:$16 sps:$4 sm:$0xff] (!%p2759_p0)   ;;  %v3144_v19 = vld [vmem:[%s4625_s2 + $0x80] ss:$16 sps:$4 sm:$0xff] (!%p2759_p0)  }
  0x35   : > { %835 = vmatprep.subr.bf16.mxu0 (!%p2759_p0), %v3128_v9  ;;  %878 = vmatprep.subr.bf16.mxu1 (!%p2759_p0), %v3130_v10  ;;  %v3145_v20 = vld [vmem:[%s4625_s2 + $0x88] ss:$16 sps:$4 sm:$0xff] (!%p2759_p0)   ;;  %v3146_v21 = vld [vmem:[%s4625_s2 + $0xa4] ss:$16 sps:$4 sm:$0xff] (!%p2759_p0)   ;;  %v3148_v22 = vld [vmem:[%s4625_s2 + $0xac] ss:$16 sps:$4 sm:$0xff] (!%p2759_p0)  }
  0x36   : > { %v3150_v23 = vld [vmem:[%s4625_s2 + $0xa0] ss:$16 sps:$4 sm:$0xff] (!%p2759_p0)   ;;  %v3151_v24 = vld [vmem:[%s4625_s2 + $0xa8] ss:$16 sps:$4 sm:$0xff] (!%p2759_p0)   ;;  %v3152_v25 = vld [vmem:[%s4625_s2 + $0xc4] ss:$16 sps:$4 sm:$0xff] (!%p2759_p0)  }
  0x37   : > { %v3154_v26 = vld [vmem:[%s4625_s2 + $0xcc] ss:$16 sps:$4 sm:$0xff] (!%p2759_p0)   ;;  %v3156_v27 = vld [vmem:[%s4625_s2 + $0xc0] ss:$16 sps:$4 sm:$0xff] (!%p2759_p0)   ;;  %v3157_v28 = vld [vmem:[%s4625_s2 + $0xc8] ss:$16 sps:$4 sm:$0xff] (!%p2759_p0)  }
  0x38   : > { %836 = vmatpush1.bf16.msra.mxu0 (!%p2759_p0), %v3132_v11  ;;  %879 = vmatpush1.bf16.msra.mxu1 (!%p2759_p0), %v3133_v12  ;;  %v3158_v29 = vld [vmem:[%s4625_s2 + $0xe4] ss:$16 sps:$4 sm:$0xff] (!%p2759_p0)   ;;  %v3160_v30 = vld [vmem:[%s4625_s2 + $0xec] ss:$16 sps:$4 sm:$0xff] (!%p2759_p0)   ;;  %v3162_v31 = vld [vmem:[%s4625_s2 + $0xe0] ss:$16 sps:$4 sm:$0xff] (!%p2759_p0)  }
  0x39   : > { %837 = vmatprep.subr.bf16.mxu0 %v3134_v13  ;;  %880 = vmatprep.subr.bf16.mxu1 %v3136_v14  ;;  %v3163_v32 = vld [vmem:[%s4625_s2 + $0xe8] ss:$16 sps:$4 sm:$0xff]   ;;  %v614_v33 = vld [vmem:[%s3670_s23] sm:$0xff]  ;;  %v653_v38 = vsub.s32 0, %v652_v37  ;;  %v661_v39 = vsub.s32 2, %v652_v37  ;;  %v657_v41 = vsub.s32 1, %v652_v37 }
  0x3a   : > { %v615_v34 = vld [vmem:[%s3670_s23 + $0x8] sm:$0xff]  ;;  %v649_v40 = vld [vmem:[%s4626_s3] sm:$0xf]  ;;  %v665_v42 = vsub.s32 3, %v652_v37 }
  0x3b   : > { %v616_v35 = vpack.c.bf16 %v615_v34, %v614_v33  ;;  %v654_v43 = vrot.slane %v649_v40, %v653_v38  ;;  %v662_v44 = vrot.slane %v649_v40, %v661_v39  ;;  %v658_v45 = vrot.slane %v649_v40, %v657_v41 }
  0x3c   : > { %838 = vmatpush1.bf16.msra.mxu0 %v3138_v15  ;;  %881 = vmatpush1.bf16.msra.mxu1 %v3139_v16  ;;  %v666_v46 = vrot.slane %v649_v40, %v665_v42 }
  0x3d   : > { %839 = vmatprep.subr.bf16.mxu0 %v3140_v17  ;;  %882 = vmatprep.subr.bf16.mxu1 %v3142_v18 }
  0x40   : > { %840 = vmatpush1.bf16.msra.mxu0 %v3144_v19  ;;  %883 = vmatpush1.bf16.msra.mxu1 %v3145_v20 }
  0x41   : > { %841 = vmatprep.subr.bf16.mxu0 %v3146_v21  ;;  %884 = vmatprep.subr.bf16.mxu1 %v3148_v22 }
  0x44   : > { %842 = vmatpush1.bf16.msra.mxu0 %v3150_v23  ;;  %885 = vmatpush1.bf16.msra.mxu1 %v3151_v24 }
  0x45   : > { %843 = vmatprep.subr.bf16.mxu0 %v3152_v25  ;;  %886 = vmatprep.subr.bf16.mxu1 %v3154_v26 }
  0x48   : > { %844 = vmatpush1.bf16.msra.mxu0 %v3156_v27  ;;  %887 = vmatpush1.bf16.msra.mxu1 %v3157_v28 }
  0x49   : > { %845 = vmatprep.subr.bf16.mxu0 %v3158_v29  ;;  %888 = vmatprep.subr.bf16.mxu1 %v3160_v30 }
  0x4c   : > { %846 = vmatpush1.bf16.msra.mxu0 %v3162_v31  ;;  %889 = vmatpush1.bf16.msra.mxu1 %v3163_v32 }
  0x4f   : > { %864 = vmatmul.mubr.bf16.vlgmr.msra.gmra.mrb[0].mxu0 %v616_v35  ;;  %907 = vmatmul.mubr.bf16.vlgmr.msra.gmra.mrb[0].mxu1 %v616_v35 }
 0x122   : > { %v865_v47 = vpop.f32.mrb[0].mxu0  ;;  %v908_v48 = vpop.f32.mrb[0].mxu1 }
 0x123   : > { %v866_v49 = vadd.f32 %v865_v47, %v654_v43  ;;  %v909_v50 = vadd.f32 %v908_v48, %v662_v44  ;;  %v867_v51 = vpop.f32.mrb[1].mxu0  ;;  %v910_v52 = vpop.f32.mrb[1].mxu1 }
 0x124   : > { %v868_v53 = vadd.f32 %v867_v51, %v658_v45  ;;  %v911_v54 = vadd.f32 %v910_v52, %v666_v46  ;;  %v869_v55 = vpop.f32.mrb[2].mxu0  ;;  %v912_v56 = vpop.f32.mrb[2].mxu1 }
 0x125   : > { %917 = vst [vmem:[#allocation2] sm:$0xff] %v866_v49  ;;  %919 = vst [vmem:[#allocation2 + $0x10] sm:$0xff] %v909_v50  ;;  %v870_v57 = vadd.f32 %v869_v55, %v654_v43  ;;  %v913_v58 = vadd.f32 %v912_v56, %v662_v44  ;;  %v871_v59 = vpop.f32.mrb[3].mxu0  ;;  %v914_v60 = vpop.f32.mrb[3].mxu1 }
 0x126   : > { %918 = vst [vmem:[#allocation2 + $0x8] sm:$0xff] %v868_v53  ;;  %920 = vst [vmem:[#allocation2 + $0x18] sm:$0xff] %v911_v54  ;;  %v872_v61 = vadd.f32 %v871_v59, %v658_v45  ;;  %v915_v62 = vadd.f32 %v914_v60, %v666_v46 }
 0x127   : > { %921 = vst [vmem:[#allocation2 + $0x20] sm:$0xff] %v870_v57  ;;  %923 = vst [vmem:[#allocation2 + $0x30] sm:$0xff] %v913_v58 }
 0x128   : > { %922 = vst [vmem:[#allocation2 + $0x28] sm:$0xff] %v872_v61  ;;  %924 = vst [vmem:[#allocation2 + $0x38] sm:$0xff] %v915_v62 }
 0x129 PF: > { %v3164_v63 = vld [vmem:[%s4627_s4] sm:$0xff]   ;;  %v3165_v0 = vld [vmem:[%s4627_s4 + $0x8] sm:$0xff]   ;;  %v3166_v1 = vld [vmem:[%s4627_s4 + $0x10] sm:$0xff]   ;;  %s930_s12 = sshra.s32 %s3662_s20, 3  ;;  %v3496_v15 = vmov 1966171168   ;;  %v1190_v17 = vlaneseq  ;;  %s2375_s22 = scalar_lea.vmem %s3670_s23, %s3662_s20 }
 0x12a   : > { %2978 = vmatprep.subr.bf16.mxu0 %v3164_v63  ;;  %v3167_v2 = vld [vmem:[%s4627_s4 + $0x18] sm:$0xff]   ;;  %v937_v3 = vld [vmem:[%s3680_s25] sm:$0xff]   ;;  %v3169_v5 = vld [vmem:[%s4627_s4 + $0x28] sm:$0xff]   ;;  %v1188_v16 = vunpack.c.l.s4 %v3496_v15  ;;  %s3825_s17 = sshll.u32 %s930_s12, 5  ;;  %s4680_s7 = sld [smem:[#allocation21_spill]]  ;;  %vm1483_vm0 = vcmask 1041409  }
 0x12b   : > { %2979 = vmatpush3.bf16.msra.mxu0 %v3164_v63  ;;  %v3168_v4 = vld [vmem:[%s4627_s4 + $0x20] sm:$0xff]   ;;  %2994 = vmatprep.mubr.bf16.mxu0 %v937_v3  ;;  %v3170_v6 = vld [vmem:[%s4627_s4 + $0x30] sm:$0xff]   ;;  %v3171_v7 = vld [vmem:[%s4627_s4 + $0x38] sm:$0xff]   ;;  %v1191_v19 = vshrl.u32 %v1190_v17, 7  ;;  %s934_s19 = scalar_lea.vmem [#allocation2], %s3825_s17  ;;  %vm1485_vm1 = vcmask 1042434  }
 0x12c   : > { %2980 = vmatprep.subr.bf16.mxu0 %v3165_v0  ;;  %v939_v8 = vld [vmem:[%s3680_s25 + $0x8] sm:$0xff]   ;;  %v941_v9 = vld [vmem:[%s3680_s25 + $0x10] sm:$0xff]   ;;  %v943_v10 = vld [vmem:[%s3680_s25 + $0x18] sm:$0xff]   ;;  %v1189_v18 = vunpack.c.0.s8 %v1188_v16  ;;  %vm1487_vm2 = vcmask 1043459   ;;  %vm1489_vm3 = vcmask 1044484   ;;  %vm1491_vm4 = vcmask 1045509  }
 0x12d   : > { %v945_v11 = vld [vmem:[%s3680_s25 + $0x20] sm:$0xff]   ;;  %v947_v12 = vld [vmem:[%s3680_s25 + $0x28] sm:$0xff]   ;;  %v949_v13 = vld [vmem:[%s3680_s25 + $0x30] sm:$0xff]   ;;  %v3834_v25 = vsub.s32 0, %v1191_v19  ;;  %vm1493_vm5 = vcmask 1046534   ;;  %s4681_s9 = sld [smem:[#allocation24_spill]] }
 0x12e   : > { %v951_v14 = vld [vmem:[%s3680_s25 + $0x38] sm:$0xff]   ;;  %v3827_v20 = vsub.s32 %v1189_v18, %v1191_v19  ;;  %v3838_v28 = vld [vmem:[#allocation2 + $0x10] sm:$0xff]  ;;  %v3844_v30 = vld [vmem:[%s4628_s5] ss:$0 sm:$0xff]  ;;  %vm1495_vm6 = vcmask 1047559   ;;  %s4682_s12 = sld [smem:[#allocation22_spill]] }
 0x12f   : > { %2981 = vmatpush3.bf16.msra.mxu0 %v3165_v0  ;;  %v936_v21 = vld [vmem:[%s934_s19 + $0x18] sm:$0xff]  ;;  %v3848_v34 = vld [vmem:[#allocation2 + $0x30] sm:$0xff]  ;;  %s4684_s18 = sld [smem:[#allocation19_spill]]  ;;  %s4686_s28 = sld [smem:[#allocation25_spill]]  ;;  %vm2533_vm7 = vcmask 1040384  }
 0x130   : > { %2982 = vmatprep.subr.bf16.mxu0 %v3166_v1  ;;  %v1193_v22 = vrot.slane %v936_v21, %v3827_v20  ;;  %v1186_v57 = vcombine.high %v936_v21, %v936_v21 }
 0x132   : > { %v1201_v23 = vcombine.high %v1193_v22, %v1193_v22  ;;  %v1209_v26 = vrot.slane %v1193_v22, %v3827_v20  ;;  %v1200_v61 = vrot.slane %v1186_v57, %v3827_v20 }
 0x133   : > { %2983 = vmatpush3.bf16.msra.mxu0 %v3166_v1 }
 0x134   : > { %2984 = vmatprep.subr.bf16.mxu0 %v3167_v2  ;;  %v1223_v24 = vrot.slane %v1201_v23, %v3827_v20  ;;  %v1238_v29 = vrot.slane %v1209_v26, %v3834_v25  ;;  %v1231_v51 = vcombine.high %v1209_v26, %v1209_v26  ;;  %v1216_v21 = vrot.slane %v1200_v61, %v3827_v20 }
 0x136   : > { %v1242_v27 = vrot.slane %v1223_v24, %v3834_v25  ;;  %v1275_v33 = vadd.f32 %v1238_v29, %v3838_v28  ;;  %v1276_v46 = vadd.f32 %v1238_v29, %v3848_v34  ;;  %v1233_v47 = vcombine.high %v1223_v24, %v1223_v24 }
 0x137   : > { %2985 = vmatpush3.bf16.msra.mxu0 %v3167_v2  ;;  %v1246_v58 = vrot.slane %v1231_v51, %v3834_v25  ;;  %v1254_v26 = vrot.slane %v1216_v21, %v3834_v25 }
 0x138   : > { %2986 = vmatprep.subr.bf16.mxu0 %v3168_v4  ;;  %v1277_v31 = vadd.f32 %v1242_v27, %v3838_v28  ;;  %v1278_v41 = vadd.f32 %v1242_v27, %v3848_v34  ;;  %v1250_v54 = vrot.slane %v1233_v47, %v3834_v25 }
 0x13a   : > { %v1282_v60 = vadd.f32 %v1250_v54, %v3848_v34  ;;  %v1281_v0 = vadd.f32 %v1250_v54, %v3838_v28 }
 0x13b   : > { %2987 = vmatpush3.bf16.msra.mxu0 %v3168_v4 }
 0x13c   : > { %2988 = vmatprep.subr.bf16.mxu0 %v3169_v5 }
 0x13f   : > { %2989 = vmatpush3.bf16.msra.mxu0 %v3169_v5 }
 0x140   : > { %2990 = vmatprep.subr.bf16.mxu0 %v3170_v6 }
 0x143   : > { %2991 = vmatpush3.bf16.msra.mxu0 %v3170_v6 }
 0x144   : > { %2992 = vmatprep.subr.bf16.mxu0 %v3171_v7 }
 0x147   : > { %2993 = vmatpush3.bf16.msra.mxu0 %v3171_v7  ;;  %v1280_v7 = vadd.f32 %v1246_v58, %v3848_v34 }
 0x14a   : > { %2995 = vmatmul.mubr.bf16.vlgmr.msra.gmra.mrb[0].mxu0 %v939_v8  ;;  %v1202_v8 = vcombine.high %v1200_v61, %v1200_v61 }
 0x14b   : > { %2998 = vmatprep.mubr.bf16.mxu0 %v941_v9 }
 0x152   : > { %2999 = vmatmul.mubr.bf16.gmra.mrb[4].mxu0 %v943_v10 }
 0x153   : > { %3002 = vmatprep.mubr.bf16.mxu0 %v945_v11 }
 0x15a   : > { %3003 = vmatmul.mubr.bf16.gmra.mrb[8].mxu0 %v947_v12  ;;  %v1279_v12 = vadd.f32 %v1246_v58, %v3838_v28 }
 0x15b   : > { %3006 = vmatprep.mubr.bf16.mxu0 %v949_v13 }
 0x162   : > { %3007 = vmatmul.mubr.bf16.gmra.mrb[12].mxu0 %v951_v14  ;;  %v1230_v14 = vrot.slane %v1202_v8, %v3827_v20 }
 0x164   : > { %v1258_v19 = vrot.slane %v1230_v14, %v3834_v25 }
 0x166   : > { %v1286_v29 = vadd.f32 %v1258_v19, %v3848_v34 }
 0x21d   : > { %v2996_v32 = vpop.f32.mrb[0].mxu0 }
 0x21e   : > { %v1131_v35 = vadd.f32 %v2996_v32, %v3844_v30  ;;  %v1122_v36 = vpop.f32.mrb[1].mxu0  ;;  %v1285_v32 = vadd.f32 %v1258_v19, %v3838_v28 }
 0x21f   : > { %v1123_v37 = vadd.f32 %v3844_v30, %v1122_v36  ;;  %v2997_v38 = vpop.f32.mrb[2].mxu0 }
 0x220   : > { %v3852_v39 = vadd.f32 %v1277_v31, %v1131_v35  ;;  %v1134_v40 = vadd.f32 %v2997_v38, %v3844_v30  ;;  %v1125_v42 = vpop.f32.mrb[3].mxu0 }
 0x221   : > { %v3856_v43 = vadd.f32 %v1275_v33, %v1123_v37  ;;  %v1126_v45 = vadd.f32 %v3844_v30, %v1125_v42  ;;  %v1284_v37 = vadd.f32 %v1254_v26, %v3848_v34 }
 0x222   : > { %1537 = vadd.xlane.f32.xlu1 %v3852_v39  ;;  %v3860_v44 = vadd.f32 %v1278_v41, %v1134_v40  ;;  %v1583_v49 = vmul.f32 %v3852_v39, %v3852_v39  ;;  %v1283_v41 = vadd.f32 %v1254_v26, %v3838_v28 }
 0x223   : > { %1533 = vadd.xlane.f32.xlu0 %v3856_v43  ;;  %v3867_v53 = vadd.f32 %v1276_v46, %v1126_v45  ;;  %v1581_v2 = vmul.f32 %v3856_v43, %v3856_v43  ;;  %v1234_v45 = vcombine.high %v1230_v14, %v1230_v14 }
 0x224   : > { %v1584_v56 = vmul.f32 %v3860_v44, %v3860_v44 }
 0x225   : > { %v3000_v48 = vpop.f32.mrb[4].mxu0  ;;  %v1582_v62 = vmul.f32 %v3867_v53, %v3867_v53  ;;  %v1266_v47 = vrot.slane %v1234_v45, %v3834_v25 }
 0x226   : > { %v1138_v50 = vpop.f32.mrb[5].mxu0  ;;  %1539 = vadd.xlane.f32.xlu1 %v3860_v44  ;;  %v1147_v63 = vadd.f32 %v3000_v48, %v3844_v30  ;;  %v1232_v48 = vcombine.high %v1216_v21, %v1216_v21 }
 0x227   : > { %v3001_v52 = vpop.f32.mrb[6].mxu0  ;;  %1601 = vadd.xlane.f32.xlu0 %v1583_v49  ;;  %v1139_v11 = vadd.f32 %v3844_v30, %v1138_v50  ;;  %v1290_v54 = vadd.f32 %v1266_v47, %v3848_v34  ;;  %v1289_v57 = vadd.f32 %v1266_v47, %v3838_v28 }
 0x228   : > { %v1141_v55 = vpop.f32.mrb[7].mxu0  ;;  %v1150_v59 = vadd.f32 %v3001_v52, %v3844_v30  ;;  %v3887_v10 = vadd.f32 %v1281_v0, %v1147_v63  ;;  %v1262_v51 = vrot.slane %v1232_v48, %v3834_v25 }
 0x229   : > { %v1142_v6 = vadd.f32 %v3844_v30, %v1141_v55  ;;  %v3896_v15 = vadd.f32 %v1279_v12, %v1139_v11 }
 0x22a   : > { %1603 = vadd.xlane.f32.xlu1 %v1584_v56  ;;  %v3883_v5 = vadd.f32 %v1282_v60, %v1150_v59  ;;  %v1587_v24 = vmul.f32 %v3887_v10, %v3887_v10  ;;  %v1288_v60 = vadd.f32 %v1262_v51, %v3848_v34  ;;  %v1287_v63 = vadd.f32 %v1262_v51, %v3838_v28  ;;  %v3983_v51 = vld [vmem:[#allocation2 + $0x28] sm:$0xff] }
 0x22b   : > { %1535 = vadd.xlane.f32.xlu0 %v3867_v53  ;;  %v3893_v13 = vadd.f32 %v1280_v7, %v1142_v6  ;;  %v1585_v33 = vmul.f32 %v3896_v15, %v3896_v15  ;;  %v2814_v6 = vmul.f32 -1.442695, %v3852_v39  ;;  %v2812_v7 = vmul.f32 -1.442695, %v3856_v43 }
 0x22c   : > { %v1588_v23 = vmul.f32 %v3883_v5, %v3883_v5  ;;  %v2818_v8 = vmul.f32 -1.442695, %v3887_v10  ;;  %v2819_v11 = vmul.f32 -1.442695, %v3883_v5 }
 0x22d   : > { %v3004_v1 = vpop.f32.mrb[8].mxu0  ;;  %v1586_v31 = vmul.f32 %v3893_v13, %v3893_v13 }
 0x22e   : > { %v1154_v3 = vpop.f32.mrb[9].mxu0  ;;  %1599 = vadd.xlane.f32.xlu1 %v1582_v62  ;;  %v1163_v20 = vadd.f32 %v3004_v1, %v3844_v30 }
 0x22f   : > { %v3005_v4 = vpop.f32.mrb[10].mxu0  ;;  %1597 = vadd.xlane.f32.xlu0 %v1581_v2  ;;  %v1155_v40 = vadd.f32 %v3844_v30, %v1154_v3  ;;  %v2815_v3 = vmul.f32 -1.442695, %v3860_v44 }
 0x230   : > { %v1157_v9 = vpop.f32.mrb[11].mxu0  ;;  %v1166_v27 = vadd.f32 %v3005_v4, %v3844_v30  ;;  %v3919_v38 = vadd.f32 %v1285_v32, %v1163_v20  ;;  %v2813_v4 = vmul.f32 -1.442695, %v3867_v53 }
 0x231   : > { %v1158_v36 = vadd.f32 %v3844_v30, %v1157_v9  ;;  %v3927_v46 = vadd.f32 %v1283_v41, %v1155_v40  ;;  %3197 = vpow2.f32 %v2815_v3  ;;  %v2816_v9 = vmul.f32 -1.442695, %v3896_v15 }
 0x232   : > { %1547 = vadd.xlane.f32.xlu1 %v3883_v5  ;;  %v3915_v35 = vadd.f32 %v1286_v29, %v1166_v27  ;;  %v1591_v50 = vmul.f32 %v3919_v38, %v3919_v38  ;;  %3199 = vpow2.f32 %v2813_v4 }
 0x233   : > { %1545 = vadd.xlane.f32.xlu0 %v3887_v10  ;;  %v3925_v42 = vadd.f32 %v1284_v37, %v1158_v36  ;;  %v1589_v58 = vmul.f32 %v3927_v46, %v3927_v46  ;;  %3201 = vpow2.f32 %v2814_v6  ;;  %v2820_v27 = vmul.f32 -1.442695, %v3927_v46 }
 0x234   : > { %v1592_v49 = vmul.f32 %v3915_v35, %v3915_v35  ;;  %3203 = vpow2.f32 %v2812_v7 }
 0x235   : > { %v3008_v16 = vpop.f32.mrb[12].mxu0  ;;  %v1590_v55 = vmul.f32 %v3925_v42, %v3925_v42  ;;  %3205 = vpow2.f32 %v2818_v8  ;;  %v2821_v32 = vmul.f32 -1.442695, %v3925_v42 }
 0x236   : > { %v1170_v17 = vpop.f32.mrb[13].mxu0  ;;  %1543 = vadd.xlane.f32.xlu1 %v3893_v13  ;;  %v1179_v56 = vadd.f32 %v3008_v16, %v3844_v30  ;;  %v2817_v16 = vmul.f32 -1.442695, %v3893_v13  ;;  %3207 = vpow2.f32 %v2816_v9 }
 0x237   : > { %v3009_v18 = vpop.f32.mrb[14].mxu0  ;;  %1541 = vadd.xlane.f32.xlu0 %v3896_v15  ;;  %v1171_v62 = vadd.f32 %v3844_v30, %v1170_v17  ;;  %3209 = vpow2.f32 %v2819_v11 }
 0x238   : > { %v1173_v22 = vpop.f32.mrb[15].mxu0  ;;  %v1182_v52 = vadd.f32 %v3009_v18, %v3844_v30  ;;  %v3949_v61 = vadd.f32 %v1289_v57, %v1179_v56  ;;  %3211 = vpow2.f32 %v2817_v16  ;;  %v3987_v57 = vld [vmem:[#allocation2 + $0x8] sm:$0xff] }
 0x239   : > { %v1174_v25 = vadd.f32 %v3844_v30, %v1173_v22  ;;  %v3957_v1 = vadd.f32 %v1287_v63, %v1171_v62 }
 0x23a   : > { %1611 = vadd.xlane.f32.xlu1 %v1588_v23  ;;  %v3945_v59 = vadd.f32 %v1290_v54, %v1182_v52  ;;  %v1595_v2 = vmul.f32 %v3949_v61, %v3949_v61  ;;  %v2826_v62 = vmul.f32 -1.442695, %v3949_v61 }
 0x23b   : > { %1609 = vadd.xlane.f32.xlu0 %v1587_v24  ;;  %v3955_v0 = vadd.f32 %v1288_v60, %v1174_v25  ;;  %v1593_v30 = vmul.f32 %v3957_v1, %v3957_v1  ;;  %v3198_v12 = vpop.eup %3197  ;;  %v2822_v24 = vmul.f32 -1.442695, %v3919_v38 }
 0x23c   : > { %v1596_v28 = vmul.f32 %v3945_v59, %v3945_v59  ;;  %v3200_v14 = vpop.eup %3199  ;;  %v1358_v19 = vadd.f32 1.0, %v3198_v12  ;;  %v2827_v16 = vmul.f32 -1.442695, %v3945_v59 }
 0x23d   : > { %v1594_v34 = vmul.f32 %v3955_v0, %v3955_v0  ;;  %v3202_v17 = vpop.eup %3201  ;;  %v1356_v21 = vadd.f32 1.0, %v3200_v14 }
 0x23e   : > { %1607 = vadd.xlane.f32.xlu1 %v1586_v31  ;;  %v3204_v18 = vpop.eup %3203  ;;  %v1357_v22 = vadd.f32 1.0, %v3202_v17  ;;  %3213 = vrcp.f32 %v1358_v19  ;;  %v2823_v31 = vmul.f32 -1.442695, %v3915_v35  ;;  %v2825_v17 = vmul.f32 -1.442695, %v3955_v0 }
 0x23f   : > { %1605 = vadd.xlane.f32.xlu0 %v1585_v33  ;;  %v1355_v23 = vadd.f32 1.0, %v3204_v18  ;;  %3215 = vrcp.f32 %v1356_v21  ;;  %v3206_v26 = vpop.eup %3205 }
 0x240   : > { %3217 = vrcp.f32 %v1357_v22  ;;  %v3208_v29 = vpop.eup %3207  ;;  %v1361_v36 = vadd.f32 1.0, %v3206_v26 }
 0x241   : > { %3219 = vrcp.f32 %v1355_v23  ;;  %v3210_v20 = vpop.eup %3209  ;;  %v1359_v41 = vadd.f32 1.0, %v3208_v29 }
 0x242   : > { %1555 = vadd.xlane.f32.xlu1 %v3915_v35  ;;  %3221 = vpow2.f32 %v2822_v24  ;;  %v3212_v40 = vpop.eup %3211  ;;  %v1362_v47 = vadd.f32 1.0, %v3210_v20 }
 0x243   : > { %1553 = vadd.xlane.f32.xlu0 %v3919_v38  ;;  %3223 = vpow2.f32 %v2820_v27  ;;  %v1360_v52 = vadd.f32 1.0, %v3212_v40 }
 0x244   : > { %3225 = vpow2.f32 %v2823_v31 }
 0x245   : > { %3227 = vpow2.f32 %v2821_v32 }
 0x246   : > { %1551 = vadd.xlane.f32.xlu1 %v3925_v42  ;;  %3229 = vrcp.f32 %v1361_v36 }
 0x247   : > { %1549 = vadd.xlane.f32.xlu0 %v3927_v46  ;;  %3231 = vrcp.f32 %v1359_v41 }
 0x248   : > { %v3214_v48 = vpop.eup %3213  ;;  %3233 = vrcp.f32 %v1362_v47 }
 0x249   : > { %v1406_v63 = vmul.f32 %v3214_v48, %v3983_v51  ;;  %3235 = vrcp.f32 %v1360_v52 }
 0x24a   : > { %1619 = vadd.xlane.f32.xlu1 %v1592_v49  ;;  %3237 = vpow2.f32 %v2826_v62 }
 0x24b   : > { %1617 = vadd.xlane.f32.xlu0 %v1591_v50  ;;  %v3216_v50 = vpop.eup %3215 }
 0x24c   : > { %v3218_v56 = vpop.eup %3217 }
 0x24d   : > { %v3220_v60 = vpop.eup %3219  ;;  %v1405_v3 = vmul.f32 %v3218_v56, %v3987_v57 }
 0x24e   : > { %1615 = vadd.xlane.f32.xlu1 %v1590_v55  ;;  %v1403_v8 = vmul.f32 %v3220_v60, %v3987_v57  ;;  %v3222_v14 = vpop.eup %3221 }
 0x24f   : > { %1613 = vadd.xlane.f32.xlu0 %v1589_v58  ;;  %v3224_v19 = vpop.eup %3223  ;;  %v1426_v21 = vadd.f32 %v1406_v63, %v1405_v3 }
 0x250   : > { %v3226_v27 = vpop.eup %3225  ;;  %v1363_v41 = vadd.f32 1.0, %v3224_v19 }
 0x251   : > { %v3228_v32 = vpop.eup %3227 }
 0x252   : > { %1563 = vadd.xlane.f32.xlu1 %v3945_v59  ;;  %v3230_v40 = vpop.eup %3229 }
 0x253   : > { %1561 = vadd.xlane.f32.xlu0 %v3949_v61 }
 0x256   : > { %1559 = vadd.xlane.f32.xlu1 %v3955_v0 }
 0x257   : > { %1557 = vadd.xlane.f32.xlu0 %v3957_v1 }
 0x25a   : > { %1623 = vadd.xlane.f32.xlu1 %v1594_v34  ;;  %v1404_v34 = vmul.f32 %v3216_v50, %v3983_v51  ;;  %v1427_v50 = vrot.slane %v1426_v21, 4 }
 0x25b   : > { %1621 = vadd.xlane.f32.xlu0 %v1593_v30  ;;  %v2824_v30 = vmul.f32 -1.442695, %v3957_v1 }
 0x25c   : > { %v1419_v22 = vadd.f32 %v1404_v34, %v1403_v8  ;;  %v1366_v34 = vadd.f32 1.0, %v3226_v27 }
 0x25d   : > { %3239 = vpow2.f32 %v2824_v30 }
 0x25e   : > { %1627 = vadd.xlane.f32.xlu1 %v1596_v28  ;;  %v1420_v52 = vrot.slane %v1419_v22, 4 }
 0x25f   : > { %1625 = vadd.xlane.f32.xlu0 %v1595_v2 }
 0x2af   : > { %v1538_v33 = vpop.xlane.xlu1 %1537 }
 0x2b0   : > { %v1534_v37 = vpop.xlane.xlu0 %1533  ;;  %v3981_v45 = vmul.f32 0.0078125, %v1538_v33  ;;  %v1365_v33 = vadd.f32 1.0, %v3222_v14  ;;  %v1409_v14 = vmul.f32 %v3230_v40, %v3987_v57 }
 0x2b1   : > { %v3999_v9 = vmul.f32 0.0078125, %v1534_v37 }
 0x2b2   : > { %v1647_v58 = vmul.f32 %v3981_v45, %v3981_v45 }
 0x2b3   : > { %v1540_v49 = vpop.xlane.xlu1 %1539  ;;  %v1645_v36 = vmul.f32 %v3999_v9, %v3999_v9 }
 0x2b4   : > { %v3985_v54 = vmul.f32 0.0078125, %v1540_v49  ;;  %v1602_v55 = vpop.xlane.xlu0 %1601  ;;  %v3232_v49 = vpop.eup %3231 }
 0x2b5   : > { %v1631_v25 = vmul.f32 0.0078125, %v1602_v55 }
 0x2b6   : > { %v1648_v4 = vmul.f32 %v3985_v54, %v3985_v54 }
 0x2b7   : > { %v1663_v28 = vsub.f32 %v1631_v25, %v1647_v58  ;;  %v1604_v2 = vpop.xlane.xlu1 %1603  ;;  %v3234_v58 = vpop.eup %3233 }
 0x2b8   : > { %v1632_v6 = vmul.f32 0.0078125, %v1604_v2  ;;  %v1536_v7 = vpop.xlane.xlu0 %1535  ;;  %v3236_v63 = vpop.eup %3235  ;;  %v1410_v19 = vmul.f32 %v3234_v58, %v3983_v51 }
 0x2b9   : > { %v1679_v11 = vmax.f32 %v1663_v28, 0.0  ;;  %v4001_v12 = vmul.f32 0.0078125, %v1536_v7  ;;  %v1364_v28 = vadd.f32 1.0, %v3228_v32  ;;  %v3238_v7 = vpop.eup %3237 }
 0x2ba   : > { %v1664_v18 = vsub.f32 %v1632_v6, %v1648_v4  ;;  %v4009_v4 = vadd.f32 %v1420_v52, %v1419_v22  ;;  %v4011_v6 = vadd.f32 %v1427_v50, %v1426_v21  ;;  %v1695_v21 = vsub.f32 %v3852_v39, %v3981_v45 }
 0x2bb   : > { %v1711_v23 = vadd.f32 1e-05, %v1679_v11  ;;  %v1646_v24 = vmul.f32 %v4001_v12, %v4001_v12  ;;  %v1600_v26 = vpop.xlane.xlu1 %1599  ;;  %v1369_v50 = vadd.f32 1.0, %v3238_v7 }
 0x2bc   : > { %v1680_v29 = vmax.f32 %v1664_v18, 0.0  ;;  %v1630_v31 = vmul.f32 0.0078125, %v1600_v26  ;;  %v1598_v20 = vpop.xlane.xlu0 %1597  ;;  %v1407_v18 = vmul.f32 %v3232_v49, %v3987_v57  ;;  %v4026_v26 = vld [vmem:[%s4631_s8] ss:$0 sm:$0xff]  ;;  %v1422_v27 = vrot.slane %v4009_v4, 2 }
 0x2bd   : > { %3241 = vrsqrt.f32 %v1711_v23  ;;  %v1629_v37 = vmul.f32 0.0078125, %v1598_v20  ;;  %v1408_v23 = vmul.f32 %v3236_v63, %v3983_v51 }
 0x2be   : > { %3243 = vpow2.f32 %v2827_v16  ;;  %v1712_v47 = vadd.f32 1e-05, %v1680_v29  ;;  %v1662_v48 = vsub.f32 %v1630_v31, %v1646_v24  ;;  %v1429_v29 = vrot.slane %v4011_v6, 2 }
 0x2bf   : > { %3245 = vpow2.f32 %v2825_v17  ;;  %v1661_v55 = vsub.f32 %v1629_v37, %v1645_v36  ;;  %v1548_v56 = vpop.xlane.xlu1 %1547  ;;  %v3240_v17 = vpop.eup %3239  ;;  %v1696_v37 = vsub.f32 %v3860_v44, %v3985_v54  ;;  %v1694_v54 = vsub.f32 %v3867_v53, %v4001_v12 }
 0x2c0   : > { %3247 = vrsqrt.f32 %v1712_v47  ;;  %v1678_v25 = vmax.f32 %v1662_v48, 0.0  ;;  %v1546_v60 = vpop.xlane.xlu0 %1545  ;;  %v4013_v8 = vmul.f32 0.0078125, %v1548_v56  ;;  %v4043_v48 = vld [vmem:[%s4680_s7] ss:$0 sm:$0xff]  ;;  %v4046_v56 = vadd.f32 %v1410_v19, %v1409_v14  ;;  %s4685_s7 = sld [smem:[#allocation20_spill]] }
 0x2c1   : > { %3249 = vrcp.f32 %v1365_v33  ;;  %v1677_v62 = vmax.f32 %v1661_v55, 0.0  ;;  %v4016_v16 = vmul.f32 0.0078125, %v1546_v60  ;;  %v1367_v44 = vadd.f32 1.0, %v3240_v17 }
 0x2c2   : > { %3251 = vrcp.f32 %v1363_v41  ;;  %v1710_v30 = vadd.f32 1e-05, %v1678_v25  ;;  %v1652_v20 = vmul.f32 %v4013_v8, %v4013_v8  ;;  %v1693_v12 = vsub.f32 %v3856_v43, %v3999_v9 }
 0x2c3   : > { %v1709_v2 = vadd.f32 1e-05, %v1677_v62  ;;  %v1544_v3 = vpop.xlane.xlu1 %1543  ;;  %v1651_v40 = vmul.f32 %v4016_v16, %v4016_v16 }
 0x2c4   : > { %3253 = vrsqrt.f32 %v1710_v30  ;;  %v1542_v11 = vpop.xlane.xlu0 %1541  ;;  %v4032_v32 = vmul.f32 0.0078125, %v1544_v3 }
 0x2c5   : > { %3255 = vrsqrt.f32 %v1709_v2  ;;  %v4038_v41 = vmul.f32 0.0078125, %v1542_v11 }
 0x2c6   : > { %3257 = vrcp.f32 %v1366_v34  ;;  %v1650_v34 = vmul.f32 %v4032_v32, %v4032_v32 }
 0x2c7   : > { %v3242_v22 = vpop.eup %3241  ;;  %3259 = vrcp.f32 %v1364_v28  ;;  %v1612_v24 = vpop.xlane.xlu1 %1611  ;;  %v1649_v7 = vmul.f32 %v4038_v41, %v4038_v41 }
 0x2c8   : > { %v3244_v31 = vpop.eup %3243  ;;  %v1636_v39 = vmul.f32 0.0078125, %v1612_v24  ;;  %v1610_v45 = vpop.xlane.xlu0 %1609  ;;  %v1743_v33 = vmul.f32 %v3242_v22, %v1695_v21 }
 0x2c9   : > { %v3246_v36 = vpop.eup %3245  ;;  %v1635_v47 = vmul.f32 0.0078125, %v1610_v45 }
 0x2ca   : > { %v3248_v49 = vpop.eup %3247  ;;  %v1668_v52 = vsub.f32 %v1636_v39, %v1652_v20  ;;  %v1765_v55 = vmul.f32 %v4026_v26, %v1743_v33 }
 0x2cb   : > { %v3250_v58 = vpop.eup %3249  ;;  %v1667_v25 = vsub.f32 %v1635_v47, %v1651_v40  ;;  %v1608_v60 = vpop.xlane.xlu1 %1607  ;;  %v1744_v62 = vmul.f32 %v3248_v49, %v1696_v37  ;;  %v4061_v47 = vadd.f32 %v1408_v23, %v1407_v18 }
 0x2cc   : > { %v3252_v63 = vpop.eup %3251  ;;  %v1684_v30 = vmax.f32 %v1668_v52, 0.0  ;;  %v1634_v28 = vmul.f32 0.0078125, %v1608_v60  ;;  %v1606_v2 = vpop.xlane.xlu0 %1605  ;;  %v1787_v3 = vadd.f32 %v4043_v48, %v1765_v55  ;;  %v1370_v55 = vadd.f32 1.0, %v3244_v31 }
 0x2cd   : > { %v1683_v11 = vmax.f32 %v1667_v25, 0.0  ;;  %v1633_v14 = vmul.f32 0.0078125, %v1606_v2  ;;  %v1766_v17 = vmul.f32 %v4026_v26, %v1744_v62  ;;  %v1368_v62 = vadd.f32 1.0, %v3246_v36 }
 0x2ce   : > { %v3254_v53 = vpop.eup %3253  ;;  %v1716_v19 = vadd.f32 1e-05, %v1684_v30  ;;  %v1666_v21 = vsub.f32 %v1634_v28, %v1650_v34  ;;  %v4058_v22 = vmax.f32 %v1787_v3, 0.0  ;;  %v4072_v31 = vadd.f32 %v1429_v29, %v4011_v6 }
 0x2cf   : > { %v3256_v24 = vpop.eup %3255  ;;  %v1715_v20 = vadd.f32 1e-05, %v1683_v11  ;;  %v1665_v39 = vsub.f32 %v1633_v14, %v1649_v7  ;;  %v1556_v45 = vpop.xlane.xlu1 %1555  ;;  %v1788_v33 = vadd.f32 %v4043_v48, %v1766_v17  ;;  %v1742_v37 = vmul.f32 %v3254_v53, %v1694_v54 }
 0x2d0   : > { %v3258_v40 = vpop.eup %3257  ;;  %3261 = vrsqrt.f32 %v1716_v19  ;;  %v1682_v49 = vmax.f32 %v1666_v21, 0.0  ;;  %1823 = vadd.xlane.f32.xlu0 %v4058_v22  ;;  %v1554_v52 = vpop.xlane.xlu0 %1553  ;;  %v1741_v43 = vmul.f32 %v3256_v24, %v1693_v12  ;;  %v4074_v28 = vmul.f32 0.0078125, %v1556_v45 }
 0x2d1   : > { %v3260_v9 = vpop.eup %3259  ;;  %3263 = vrsqrt.f32 %v1715_v20  ;;  %v1681_v25 = vmax.f32 %v1665_v39, 0.0  ;;  %v4064_v60 = vmax.f32 %v1788_v33, 0.0  ;;  %v1764_v54 = vmul.f32 %v4026_v26, %v1742_v37 }
 0x2d2   : > { %3265 = vrcp.f32 %v1369_v50  ;;  %v1714_v34 = vadd.f32 1e-05, %v1682_v49  ;;  %v1763_v30 = vmul.f32 %v4026_v26, %v1741_v43  ;;  %v4082_v2 = vmul.f32 0.0078125, %v1554_v52 }
 0x2d3   : > { %3267 = vrcp.f32 %v1367_v44  ;;  %v1713_v18 = vadd.f32 1e-05, %v1681_v25  ;;  %1825 = vadd.xlane.f32.xlu1 %v4064_v60  ;;  %v1552_v23 = vpop.xlane.xlu1 %1551  ;;  %v1786_v36 = vadd.f32 %v4043_v48, %v1764_v54  ;;  %v4080_v44 = vadd.f32 %v1422_v27, %v4009_v4 }
 0x2d4   : > { %3269 = vrsqrt.f32 %v1714_v34  ;;  %v1550_v50 = vpop.xlane.xlu0 %1549  ;;  %v1785_v3 = vadd.f32 %v4043_v48, %v1763_v30  ;;  %v1441_v7 = vrot.slane %v4046_v56, 4  ;;  %v4089_v29 = vmul.f32 %v3250_v58, %v3987_v57 }
 0x2d5   : > { %3271 = vrcp.f32 %v1370_v55  ;;  %v4086_v6 = vmax.f32 %v1786_v36, 0.0  ;;  %v1434_v11 = vrot.slane %v4061_v47, 4  ;;  %v4093_v14 = vmul.f32 %v3252_v63, %v3987_v57 }
 0x2d6   : > { %3273 = vrcp.f32 %v1368_v62  ;;  %v4095_v4 = vmul.f32 0.0078125, %v1552_v23  ;;  %v4097_v17 = vmax.f32 %v1785_v3, 0.0  ;;  %v1656_v53 = vmul.f32 %v4074_v28, %v4074_v28 }
 0x2d7   : > { %3275 = vrsqrt.f32 %v1713_v18  ;;  %v1620_v27 = vpop.xlane.xlu1 %1619  ;;  %v4101_v12 = vmul.f32 0.0078125, %v1550_v50  ;;  %1821 = vadd.xlane.f32.xlu1 %v4086_v6  ;;  %v1414_v21 = vmul.f32 %v3258_v40, %v3983_v51  ;;  %v1412_v63 = vmul.f32 %v3260_v9, %v3983_v51 }
 0x2d8   : > { %v1640_v19 = vmul.f32 0.0078125, %v1620_v27  ;;  %v1618_v58 = vpop.xlane.xlu0 %1617  ;;  %v1700_v24 = vsub.f32 %v3883_v5, %v4013_v8  ;;  %v1655_v20 = vmul.f32 %v4082_v2, %v4082_v2  ;;  %1819 = vadd.xlane.f32.xlu0 %v4097_v17  ;;  %v1699_v33 = vsub.f32 %v3887_v10, %v4016_v16 }
 0x2d9   : > { %v1639_v39 = vmul.f32 0.0078125, %v1618_v58  ;;  %v1698_v37 = vsub.f32 %v3893_v13, %v4032_v32  ;;  %v1870_v40 = vmul.f32 %v4064_v60, %v4064_v60  ;;  %v1654_v5 = vmul.f32 %v4095_v4, %v4095_v4 }
 0x2da   : > { %v3262_v45 = vpop.eup %3261  ;;  %v1672_v49 = vsub.f32 %v1640_v19, %v1656_v53  ;;  %v1869_v9 = vmul.f32 %v4058_v22, %v4058_v22  ;;  %v1653_v10 = vmul.f32 %v4101_v12, %v4101_v12  ;;  %v1868_v23 = vmul.f32 %v4086_v6, %v4086_v6 }
 0x2db   : > { %v3264_v52 = vpop.eup %3263  ;;  %v1671_v8 = vsub.f32 %v1639_v39, %v1655_v20  ;;  %v1616_v43 = vpop.xlane.xlu1 %1615  ;;  %v1748_v55 = vmul.f32 %v3262_v45, %v1700_v24  ;;  %1889 = vadd.xlane.f32.xlu1 %v1870_v40  ;;  %v1867_v27 = vmul.f32 %v4097_v17, %v4097_v17 }
 0x2dc   : > { %v3266_v25 = vpop.eup %3265  ;;  %v1688_v16 = vmax.f32 %v1672_v49, 0.0  ;;  %v1638_v13 = vmul.f32 0.0078125, %v1616_v43  ;;  %v1614_v32 = vpop.xlane.xlu0 %1613  ;;  %v1747_v62 = vmul.f32 %v3264_v52, %v1699_v33  ;;  %1887 = vadd.xlane.f32.xlu0 %v1869_v9 }
 0x2dd   : > { %v3268_v34 = vpop.eup %3267  ;;  %v1687_v54 = vmax.f32 %v1671_v8, 0.0  ;;  %v1637_v18 = vmul.f32 0.0078125, %v1614_v32  ;;  %v1770_v30 = vmul.f32 %v4026_v26, %v1748_v55  ;;  %v4137_v55 = vadd.f32 %v1414_v21, %v4089_v29 }
 0x2de   : > { %v3270_v50 = vpop.eup %3269  ;;  %v1720_v36 = vadd.f32 1e-05, %v1688_v16  ;;  %v1670_v3 = vsub.f32 %v1638_v13, %v1654_v5  ;;  %v1769_v53 = vmul.f32 %v4026_v26, %v1747_v62  ;;  %v4132_v5 = vadd.f32 %v1434_v11, %v4061_v47 }
 0x2df   : > { %v3272_v19 = vpop.eup %3271  ;;  %v1719_v58 = vadd.f32 1e-05, %v1687_v54  ;;  %v1669_v24 = vsub.f32 %v1637_v18, %v1653_v10  ;;  %v1564_v20 = vpop.xlane.xlu1 %1563  ;;  %v1792_v39 = vadd.f32 %v4043_v48, %v1770_v30  ;;  %v1746_v45 = vmul.f32 %v3270_v50, %v1698_v37  ;;  %1885 = vadd.xlane.f32.xlu1 %v1868_v23 }
 0x2e0   : > { %v3274_v33 = vpop.eup %3273  ;;  %3277 = vrsqrt.f32 %v1720_v36  ;;  %v1686_v49 = vmax.f32 %v1670_v3, 0.0  ;;  %v1562_v40 = vpop.xlane.xlu0 %1561  ;;  %v1791_v52 = vadd.f32 %v4043_v48, %v1769_v53  ;;  %1883 = vadd.xlane.f32.xlu0 %v1867_v27  ;;  %v1697_v37 = vsub.f32 %v3896_v15, %v4038_v41 }
 0x2e1   : > { %v3276_v8 = vpop.eup %3275  ;;  %3279 = vrsqrt.f32 %v1719_v58  ;;  %v1685_v43 = vmax.f32 %v1669_v24, 0.0  ;;  %v4134_v9 = vmax.f32 %v1792_v39, 0.0  ;;  %v4144_v13 = vadd.f32 %v1412_v63, %v4093_v14 }
 0x2e2   : > { %v1718_v10 = vadd.f32 1e-05, %v1686_v49  ;;  %v4141_v16 = vmax.f32 %v1791_v52, 0.0  ;;  %v1768_v32 = vmul.f32 %v4026_v26, %v1746_v45  ;;  %v1415_v62 = vmul.f32 %v3268_v34, %v3987_v57 }
 0x2e3   : > { %v1717_v47 = vadd.f32 1e-05, %v1685_v43  ;;  %v1560_v11 = vpop.xlane.xlu1 %1559  ;;  %v1416_v54 = vmul.f32 %v3274_v33, %v3983_v51  ;;  %1833 = vadd.xlane.f32.xlu1 %v4134_v9  ;;  %v1745_v41 = vmul.f32 %v3276_v8, %v1697_v37  ;;  %v4155_v14 = vadd.f32 %v1441_v7, %v4046_v56 }
 0x2e4   : > { %3281 = vrsqrt.f32 %v1718_v10  ;;  %v4149_v29 = vmul.f32 0.0078125, %v1560_v11  ;;  %v1558_v15 = vpop.xlane.xlu0 %1557  ;;  %1831 = vadd.xlane.f32.xlu0 %v4141_v16  ;;  %v1790_v63 = vadd.f32 %v4043_v48, %v1768_v32  ;;  %v1436_v34 = vrot.slane %v4132_v5, 2 }
 0x2e5   : > { %3283 = vrsqrt.f32 %v1717_v47  ;;  %v4158_v21 = vmul.f32 0.0078125, %v1558_v15  ;;  %v1767_v18 = vmul.f32 %v4026_v26, %v1745_v41  ;;  %v4164_v23 = vmul.f32 %v3266_v25, %v3987_v57 }
 0x2e6   : > { %v1448_v30 = vrot.slane %v4144_v13, 4  ;;  %v1455_v50 = vrot.slane %v4137_v55, 4  ;;  %v4168_v56 = vmul.f32 0.0078125, %v1564_v20  ;;  %v4170_v36 = vmax.f32 %v1790_v63, 0.0 }
 0x2e7   : > { %v1624_v7 = vpop.xlane.xlu1 %1623  ;;  %v1418_v3 = vmul.f32 %v3272_v19, %v3983_v51  ;;  %v4173_v27 = vadd.f32 %v1416_v54, %v1415_v62  ;;  %v4175_v53 = vmul.f32 0.0078125, %v1562_v40  ;;  %v1658_v58 = vmul.f32 %v4149_v29, %v4149_v29 }
 0x2e8   : > { %v1642_v57 = vmul.f32 0.0078125, %v1624_v7  ;;  %v1789_v25 = vadd.f32 %v4043_v48, %v1767_v18  ;;  %v1622_v24 = vpop.xlane.xlu0 %1621  ;;  %v1704_v20 = vsub.f32 %v3915_v35, %v4074_v28  ;;  %v1703_v39 = vsub.f32 %v3919_v38, %v4082_v2  ;;  %1829 = vadd.xlane.f32.xlu1 %v4170_v36 }
 0x2e9   : > { %v1657_v51 = vmul.f32 %v4158_v21, %v4158_v21  ;;  %v1641_v19 = vmul.f32 0.0078125, %v1622_v24  ;;  %v1702_v33 = vsub.f32 %v3925_v42, %v4095_v4  ;;  %v1701_v49 = vsub.f32 %v3927_v46, %v4101_v12 }
 0x2ea   : > { %v3278_v45 = vpop.eup %3277  ;;  %v1674_v40 = vsub.f32 %v1642_v57, %v1658_v58  ;;  %v4191_v52 = vmax.f32 %v1789_v25, 0.0  ;;  %v1660_v38 = vmul.f32 %v4168_v56, %v4168_v56  ;;  %v1874_v8 = vmul.f32 %v4134_v9, %v4134_v9 }
 0x2eb   : > { %v3280_v35 = vpop.eup %3279  ;;  %v1673_v28 = vsub.f32 %v1641_v19, %v1657_v51  ;;  %v1628_v2 = vpop.xlane.xlu1 %1627  ;;  %v1752_v43 = vmul.f32 %v3278_v45, %v1704_v20  ;;  %v1659_v37 = vmul.f32 %v4175_v53, %v4175_v53  ;;  %v1873_v47 = vmul.f32 %v4141_v16, %v4141_v16 }
 0x2ec   : > { %v1690_v42 = vmax.f32 %v1674_v40, 0.0  ;;  %1827 = vadd.xlane.f32.xlu0 %v4191_v52  ;;  %v1644_v46 = vmul.f32 0.0078125, %v1628_v2  ;;  %v1626_v4 = vpop.xlane.xlu0 %1625  ;;  %v1751_v12 = vmul.f32 %v3280_v35, %v1703_v39  ;;  %1897 = vadd.xlane.f32.xlu1 %v1874_v8  ;;  %v1872_v41 = vmul.f32 %v4170_v36, %v4170_v36 }
 0x2ed   : > { %v1689_v10 = vmax.f32 %v1673_v28, 0.0  ;;  %v1643_v11 = vmul.f32 0.0078125, %v1626_v4  ;;  %v1774_v32 = vmul.f32 %v4026_v26, %v1752_v43  ;;  %v1871_v35 = vmul.f32 %v4191_v52, %v4191_v52 }
 0x2ee   : > { %v3282_v62 = vpop.eup %3281  ;;  %v1722_v54 = vadd.f32 1e-05, %v1690_v42  ;;  %v1676_v15 = vsub.f32 %v1644_v46, %v1660_v38  ;;  %v1773_v63 = vmul.f32 %v4026_v26, %v1751_v12  ;;  %v1462_v8 = vrot.slane %v4173_v27, 4 }
 0x2ef   : > { %v3284_v18 = vpop.eup %3283  ;;  %v1721_v7 = vadd.f32 1e-05, %v1689_v10  ;;  %v1675_v58 = vsub.f32 %v1643_v11, %v1659_v37  ;;  %v1796_v57 = vadd.f32 %v4043_v48, %v1774_v32  ;;  %v1750_v25 = vmul.f32 %v3282_v62, %v1702_v33 }
 0x2f0   : > { %3285 = vrsqrt.f32 %v1722_v54  ;;  %v1692_v24 = vmax.f32 %v1676_v15, 0.0  ;;  %1895 = vadd.xlane.f32.xlu0 %v1873_v47  ;;  %v1795_v20 = vadd.f32 %v4043_v48, %v1773_v63  ;;  %v1749_v39 = vmul.f32 %v3284_v18, %v1701_v49  ;;  %1893 = vadd.xlane.f32.xlu1 %v1872_v41 }
 0x2f1   : > { %3287 = vrsqrt.f32 %v1721_v7  ;;  %v1691_v51 = vmax.f32 %v1675_v58, 0.0  ;;  %v4208_v19 = vmax.f32 %v1796_v57, 0.0  ;;  %v1772_v45 = vmul.f32 %v4026_v26, %v1750_v25 }
 0x2f2   : > { %v1724_v40 = vadd.f32 1e-05, %v1692_v24  ;;  %v1771_v38 = vmul.f32 %v4026_v26, %v1749_v39  ;;  %v1468_v33 = vadd.f32 %v1418_v3, %v4164_v23  ;;  %v1449_v49 = vadd.f32 %v1448_v30, %v4144_v13 }
 0x2f3   : > { %v1723_v28 = vadd.f32 1e-05, %v1691_v51  ;;  %v1794_v2 = vadd.f32 %v4043_v48, %v1772_v45  ;;  %v4220_v43 = vmax.f32 %v1795_v20, 0.0  ;;  %v1443_v42 = vrot.slane %v4155_v14, 2 }
 0x2f4   : > { %3289 = vrsqrt.f32 %v1724_v40  ;;  %1891 = vadd.xlane.f32.xlu0 %v1871_v35  ;;  %v1793_v37 = vadd.f32 %v4043_v48, %v1771_v38  ;;  %1841 = vadd.xlane.f32.xlu1 %v4208_v19  ;;  %v1437_v3 = vadd.f32 %v1436_v34, %v4132_v5  ;;  %v1456_v13 = vadd.f32 %v1455_v50, %v4137_v55 }
 0x2f5   : > { %3291 = vrsqrt.f32 %v1723_v28  ;;  %v4225_v23 = vmax.f32 %v1794_v2, 0.0  ;;  %v1469_v30 = vrot.slane %v1468_v33, 4  ;;  %v1450_v46 = vrot.slane %v1449_v49, 2 }
 0x2f6   : > { %v1463_v4 = vadd.f32 %v1462_v8, %v4173_v27  ;;  %v4235_v12 = vmax.f32 %v1793_v37, 0.0  ;;  %v1424_v10 = vrot.slane %v4080_v44, 1  ;;  %v1431_v47 = vrot.slane %v4072_v31, 1 }
 0x2f7   : > { %v1444_v11 = vadd.f32 %v1443_v42, %v4155_v14  ;;  %v1438_v5 = vrot.slane %v1437_v3, 1  ;;  %v1457_v34 = vrot.slane %v1456_v13, 2  ;;  %v1470_v55 = vadd.f32 %v1469_v30, %v1468_v33 }
 0x2f8   : > { %1839 = vadd.xlane.f32.xlu0 %v4220_v43  ;;  %1837 = vadd.xlane.f32.xlu1 %v4225_v23  ;;  %v1706_v27 = vsub.f32 %v3955_v0, %v4149_v29  ;;  %v1878_v62 = vmul.f32 %v4208_v19, %v4208_v19  ;;  %v1451_v54 = vadd.f32 %v1450_v46, %v1449_v49  ;;  %v1464_v15 = vrot.slane %v1463_v4, 2 }
 0x2f9   : > { %v1705_v14 = vsub.f32 %v3957_v1, %v4158_v21  ;;  %v1425_v41 = vadd.f32 %v1424_v10, %v4080_v44  ;;  %v1432_v63 = vadd.f32 %v1431_v47, %v4072_v31  ;;  %v1445_v18 = vrot.slane %v1444_v11, 1 }
 0x2fa   : > { %v3286_v32 = vpop.eup %3285  ;;  %v1708_v7 = vsub.f32 %v3945_v59, %v4168_v56  ;;  %v1439_v29 = vadd.f32 %v1438_v5, %v1437_v3  ;;  %v1458_v58 = vadd.f32 %v1457_v34, %v1456_v13  ;;  %v1707_v25 = vsub.f32 %v3949_v61, %v4175_v53  ;;  %v3181_v34 = vld [vmem:[%s4681_s9] sm:$0xff]  }
 0x2fb   : > { %v3288_v50 = vpop.eup %3287  ;;  %v1754_v0 = vmul.f32 %v3286_v32, %v1706_v27  ;;  %v1877_v1 = vmul.f32 %v4220_v43, %v4220_v43  ;;  %v1471_v24 = vrot.slane %v1470_v55, 2  ;;  %v1876_v31 = vmul.f32 %v4225_v23, %v4225_v23  ;;  %3010 = vmatprep.subr.bf16.mxu1 %v3181_v34 }
 0x2fc   : > { %1835 = vadd.xlane.f32.xlu0 %v4235_v12  ;;  %1905 = vadd.xlane.f32.xlu1 %v1878_v62  ;;  %v1753_v21 = vmul.f32 %v3288_v50, %v1705_v14  ;;  %v1452_v39 = vrot.slane %v1451_v54, 1  ;;  %v1465_v59 = vadd.f32 %v1464_v15, %v1463_v4  ;;  %v1484_v51 = vsel %vm1483_vm0, %v1432_v63, %v1425_v41  ;;  %v3182_v62 = vld [vmem:[%s4681_s9 + $0x8] sm:$0xff]   ;;  %v935_v15 = vld [vmem:[%s934_s19] sm:$0xff]  ;;  %s4683_s19 = sld [smem:[#allocation23_spill]] }
 0x2fd   : > { %v1776_v53 = vmul.f32 %v4026_v26, %v1754_v0  ;;  %v1459_v45 = vrot.slane %v1458_v58, 1  ;;  %v1486_v40 = vsel %vm1485_vm1, %v1439_v29, %v1484_v51  ;;  %v1875_v35 = vmul.f32 %v4235_v12, %v4235_v12  ;;  %3011 = vmatpush3.bf16.msra.mxu1 %v3181_v34  ;;  %v3184_v29 = vld [vmem:[%s4681_s9 + $0x18] sm:$0xff]  }
 0x2fe   : > { %v3290_v57 = vpop.eup %3289  ;;  %v1775_v33 = vmul.f32 %v4026_v26, %v1753_v21  ;;  %v1472_v28 = vadd.f32 %v1471_v24, %v1470_v55  ;;  %v1446_v49 = vadd.f32 %v1445_v18, %v1444_v11  ;;  %v1453_v8 = vadd.f32 %v1452_v39, %v1451_v54  ;;  %3012 = vmatprep.subr.bf16.mxu1 %v3182_v62  ;;  %v3183_v18 = vld [vmem:[%s4681_s9 + $0x10] sm:$0xff]  }
 0x2ff   : > { %v3292_v44 = vpop.eup %3291  ;;  %v1756_v20 = vmul.f32 %v3290_v57, %v1708_v7  ;;  %v1466_v37 = vrot.slane %v1465_v59, 1  ;;  %v1798_v13 = vadd.f32 %v4043_v48, %v1776_v53  ;;  %v1460_v4 = vadd.f32 %v1459_v45, %v1458_v58  ;;  %v3185_v58 = vld [vmem:[%s4681_s9 + $0x20] sm:$0xff]   ;;  %v3186_v57 = vld [vmem:[%s4681_s9 + $0x28] sm:$0xff]  }
 0x300   : > { %1903 = vadd.xlane.f32.xlu0 %v1877_v1  ;;  %v1755_v56 = vmul.f32 %v3292_v44, %v1707_v25  ;;  %1901 = vadd.xlane.f32.xlu1 %v1876_v31  ;;  %v1488_v30 = vsel %vm1487_vm2, %v1446_v49, %v1486_v40  ;;  %v1473_v10 = vrot.slane %v1472_v28, 1  ;;  %v3187_v25 = vld [vmem:[%s4681_s9 + $0x30] sm:$0xff]   ;;  %v3188_v1 = vld [vmem:[%s4681_s9 + $0x38] sm:$0xff]  }
 0x301   : > { %v1778_v61 = vmul.f32 %v4026_v26, %v1756_v20  ;;  %v1467_v47 = vadd.f32 %v1466_v37, %v1465_v59  ;;  %v1490_v11 = vsel %vm1489_vm3, %v1453_v8, %v1488_v30  ;;  %v4277_v5 = vmax.f32 %v1798_v13, 0.0  ;;  %3013 = vmatpush3.bf16.msra.mxu1 %v3182_v62 }
 0x302   : > { %v1777_v38 = vmul.f32 %v4026_v26, %v1755_v56  ;;  %v1797_v26 = vadd.f32 %v4043_v48, %v1775_v33  ;;  %v1492_v55 = vsel %vm1491_vm4, %v1460_v4, %v1490_v11  ;;  %3014 = vmatprep.subr.bf16.mxu1 %v3183_v18 }
 0x303   : > { %v1800_v2 = vadd.f32 %v4043_v48, %v1778_v61  ;;  %v1494_v50 = vsel %vm1493_vm5, %v1467_v47, %v1492_v55  ;;  %v1880_v27 = vmul.f32 %v4277_v5, %v4277_v5 }
 0x304   : > { %1899 = vadd.xlane.f32.xlu0 %v1875_v35  ;;  %v1799_v42 = vadd.f32 %v4043_v48, %v1777_v38  ;;  %v4282_v32 = vmax.f32 %v1797_v26, 0.0  ;;  %v1474_v48 = vadd.f32 %v1473_v10, %v1472_v28 }
 0x305   : > { %v4268_v3 = vmax.f32 %v1800_v2, 0.0  ;;  %3015 = vmatpush3.bf16.msra.mxu1 %v3183_v18 }
 0x306   : > { %v4272_v46 = vmax.f32 %v1799_v42, 0.0  ;;  %v1879_v54 = vmul.f32 %v4282_v32, %v4282_v32  ;;  %v1496_v14 = vsel %vm1495_vm6, %v1474_v48, %v1494_v50  ;;  %3016 = vmatprep.subr.bf16.mxu1 %v3184_v29 }
 0x307   : > { %1849 = vadd.xlane.f32.xlu1 %v4268_v3  ;;  %v1882_v41 = vmul.f32 %v4268_v3, %v4268_v3  ;;  %v4297_v63 = vadd.f32 %v1496_v14, %v935_v15 }
 0x308   : > { %1847 = vadd.xlane.f32.xlu0 %v4272_v46  ;;  %v1881_v7 = vmul.f32 %v4272_v46, %v4272_v46 }
 0x309   : > { %v1505_v0 = vmul.f32 %v4297_v63, %v4297_v63  ;;  %3017 = vmatpush3.bf16.msra.mxu1 %v3184_v29 }
 0x30a   : > { %3018 = vmatprep.subr.bf16.mxu1 %v3185_v58 }
 0x30b   : > { %1845 = vadd.xlane.f32.xlu1 %v4277_v5 }
 0x30c   : > { %1843 = vadd.xlane.f32.xlu0 %v4282_v32 }
 0x30d   : > { %3019 = vmatpush3.bf16.msra.mxu1 %v3185_v58 }
 0x30e   : > { %3020 = vmatprep.subr.bf16.mxu1 %v3186_v57 }
 0x30f   : > { %1909 = vadd.xlane.f32.xlu1 %v1880_v27 }
 0x310   : > { %1907 = vadd.xlane.f32.xlu0 %v1879_v54 }
 0x311   : > { %3021 = vmatpush3.bf16.msra.mxu1 %v3186_v57 }
 0x312   : > { %3022 = vmatprep.subr.bf16.mxu1 %v3187_v25 }
 0x313   : > { %1913 = vadd.xlane.f32.xlu1 %v1882_v41 }
 0x314   : > { %1911 = vadd.xlane.f32.xlu0 %v1881_v7 }
 0x315   : > { %3023 = vmatpush3.bf16.msra.mxu1 %v3187_v25 }
 0x316   : > { %3024 = vmatprep.subr.bf16.mxu1 %v3188_v1 }
 0x317   : > { %1506 = vadd.xlane.f32.xlu1 %v1505_v0 }
 0x318   : > { %1501 = vadd.xlane.f32.xlu0 %v4297_v63 }
 0x319   : > { %3025 = vmatpush3.bf16.msra.mxu1 %v3188_v1 }
 0x35d   : > { %v1824_v24 = vpop.xlane.xlu0 %1823 }
 0x35e   : > { %v1853_v39 = vmul.f32 0.0078125, %v1824_v24  ;;  %v4343_v24 = vld [vmem:[%s4682_s12] ss:$0 sm:$0xff] }
 0x360   : > { %v1826_v21 = vpop.xlane.xlu1 %1825  ;;  %v1933_v45 = vmul.f32 %v1853_v39, %v1853_v39  ;;  %v1981_v57 = vsub.f32 %v4058_v22, %v1853_v39 }
 0x361   : > { %v1854_v31 = vmul.f32 0.0078125, %v1826_v21 }
 0x363   : > { %v1934_v56 = vmul.f32 %v1854_v31, %v1854_v31  ;;  %v1982_v18 = vsub.f32 %v4064_v60, %v1854_v31 }
 0x364   : > { %v1822_v44 = vpop.xlane.xlu1 %1821 }
 0x365   : > { %v1820_v20 = vpop.xlane.xlu0 %1819  ;;  %v4322_v51 = vmul.f32 0.0078125, %v1822_v44 }
 0x366   : > { %v4324_v40 = vmul.f32 0.0078125, %v1820_v20 }
 0x367   : > { %v1932_v2 = vmul.f32 %v4322_v51, %v4322_v51  ;;  %v1980_v22 = vsub.f32 %v4086_v6, %v4322_v51  ;;  %v4359_v6 = vld [vmem:[%s4683_s19] ss:$0 sm:$0xff] }
 0x368   : > { %v1890_v59 = vpop.xlane.xlu1 %1889  ;;  %v1931_v42 = vmul.f32 %v4324_v40, %v4324_v40 }
 0x369   : > { %v1918_v61 = vmul.f32 0.0078125, %v1890_v59  ;;  %v1888_v53 = vpop.xlane.xlu0 %1887 }
 0x36a   : > { %v1917_v35 = vmul.f32 0.0078125, %v1888_v53 }
 0x36b   : > { %v1950_v38 = vsub.f32 %v1918_v61, %v1934_v56 }
 0x36c   : > { %v1949_v33 = vsub.f32 %v1917_v35, %v1933_v45  ;;  %v1886_v28 = vpop.xlane.xlu1 %1885  ;;  %v1979_v35 = vsub.f32 %v4097_v17, %v4324_v40 }
 0x36d   : > { %v1966_v49 = vmax.f32 %v1950_v38, 0.0  ;;  %v1916_v8 = vmul.f32 0.0078125, %v1886_v28  ;;  %v1884_v37 = vpop.xlane.xlu0 %1883 }
 0x36e   : > { %v1965_v13 = vmax.f32 %v1949_v33, 0.0  ;;  %v1915_v30 = vmul.f32 0.0078125, %v1884_v37 }
 0x36f   : > { %v1998_v26 = vadd.f32 1e-05, %v1966_v49  ;;  %v1948_v4 = vsub.f32 %v1916_v8, %v1932_v2 }
 0x370   : > { %v1997_v10 = vadd.f32 1e-05, %v1965_v13  ;;  %v1947_v47 = vsub.f32 %v1915_v30, %v1931_v42  ;;  %v1834_v11 = vpop.xlane.xlu1 %1833 }
 0x371   : > { %3293 = vrsqrt.f32 %v1998_v26  ;;  %v1964_v34 = vmax.f32 %v1948_v4, 0.0  ;;  %v1832_v55 = vpop.xlane.xlu0 %1831  ;;  %v4330_v54 = vmul.f32 0.0078125, %v1834_v11 }
 0x372   : > { %3295 = vrsqrt.f32 %v1997_v10  ;;  %v1963_v48 = vmax.f32 %v1947_v47, 0.0  ;;  %v4332_v14 = vmul.f32 0.0078125, %v1832_v55 }
 0x373   : > { %v1996_v50 = vadd.f32 1e-05, %v1964_v34  ;;  %v1938_v7 = vmul.f32 %v4330_v54, %v4330_v54 }
 0x374   : > { %v1995_v27 = vadd.f32 1e-05, %v1963_v48  ;;  %v1937_v60 = vmul.f32 %v4332_v14, %v4332_v14 }
 0x375   : > { %3297 = vrsqrt.f32 %v1996_v50  ;;  %v1830_v62 = vpop.xlane.xlu1 %1829 }
 0x376   : > { %3299 = vrsqrt.f32 %v1995_v27  ;;  %v4337_v0 = vmul.f32 0.0078125, %v1830_v62 }
 0x378   : > { %v1936_v39 = vmul.f32 %v4337_v0, %v4337_v0 }
 0x379   : > { %v1828_v15 = vpop.xlane.xlu0 %1827  ;;  %v1898_v41 = vpop.xlane.xlu1 %1897 }
 0x37a   : > { %v1922_v29 = vmul.f32 0.0078125, %v1898_v41  ;;  %v4347_v31 = vmul.f32 0.0078125, %v1828_v15 }
 0x37b   : > { %v3294_v58 = vpop.eup %3293 }
 0x37c   : > { %v3296_v25 = vpop.eup %3295  ;;  %v1954_v1 = vsub.f32 %v1922_v29, %v1938_v7  ;;  %v2030_v44 = vmul.f32 %v3294_v58, %v1982_v18  ;;  %v1935_v42 = vmul.f32 %v4347_v31, %v4347_v31 }
 0x37d   : > { %v1896_v21 = vpop.xlane.xlu0 %1895  ;;  %v1894_v59 = vpop.xlane.xlu1 %1893  ;;  %v2029_v56 = vmul.f32 %v3296_v25, %v1981_v57 }
 0x37e   : > { %v1921_v20 = vmul.f32 0.0078125, %v1896_v21  ;;  %v1970_v61 = vmax.f32 %v1954_v1, 0.0  ;;  %v1920_v53 = vmul.f32 0.0078125, %v1894_v59  ;;  %v2052_v37 = vmul.f32 %v4343_v24, %v2030_v44 }
 0x37f   : > { %v3298_v45 = vpop.eup %3297  ;;  %v2051_v33 = vmul.f32 %v4343_v24, %v2029_v56 }
 0x380   : > { %v1953_v38 = vsub.f32 %v1921_v20, %v1937_v60  ;;  %v3300_v28 = vpop.eup %3299  ;;  %v2002_v2 = vadd.f32 1e-05, %v1970_v61  ;;  %v1952_v49 = vsub.f32 %v1920_v53, %v1936_v39  ;;  %v2028_v51 = vmul.f32 %v3298_v45, %v1980_v22 }
 0x381   : > { %v1892_v8 = vpop.xlane.xlu0 %1891  ;;  %v1842_v40 = vpop.xlane.xlu1 %1841  ;;  %v2027_v30 = vmul.f32 %v3300_v28, %v1979_v35  ;;  %v4367_v34 = vadd.f32 %v4359_v6, %v2051_v33  ;;  %v4373_v27 = vadd.f32 %v4359_v6, %v2052_v37  ;;  %v1986_v61 = vsub.f32 %v4134_v9, %v4330_v54 }
 0x382   : > { %v1969_v13 = vmax.f32 %v1953_v38, 0.0  ;;  %v1919_v17 = vmul.f32 0.0078125, %v1892_v8  ;;  %3301 = vrsqrt.f32 %v2002_v2  ;;  %v1968_v26 = vmax.f32 %v1952_v49, 0.0 }
 0x383   : > { %v2050_v4 = vmul.f32 %v4343_v24, %v2028_v51  ;;  %v2049_v11 = vmul.f32 %v4343_v24, %v2027_v30  ;;  %v4378_v18 = vmul.f32 0.0078125, %v1842_v40  ;;  %v2836_v57 = vmul.f32 -1.442695, %v4367_v34 }
 0x384   : > { %v2001_v10 = vadd.f32 1e-05, %v1969_v13  ;;  %v1951_v47 = vsub.f32 %v1919_v17, %v1935_v42  ;;  %v2000_v48 = vadd.f32 1e-05, %v1968_v26  ;;  %v2837_v1 = vmul.f32 -1.442695, %v4373_v27 }
 0x385   : > { %v1840_v55 = vpop.xlane.xlu0 %1839  ;;  %v4370_v50 = vadd.f32 %v4359_v6, %v2050_v4  ;;  %v1838_v15 = vpop.xlane.xlu1 %1837  ;;  %v4376_v41 = vadd.f32 %v4359_v6, %v2049_v11  ;;  %v1942_v60 = vmul.f32 %v4378_v18, %v4378_v18  ;;  %v1985_v33 = vsub.f32 %v4141_v16, %v4332_v14 }
 0x386   : > { %3303 = vrsqrt.f32 %v2001_v10  ;;  %v1967_v62 = vmax.f32 %v1951_v47, 0.0  ;;  %v4384_v21 = vmul.f32 0.0078125, %v1840_v55  ;;  %v4388_v20 = vmul.f32 0.0078125, %v1838_v15 }
 0x387   : > { %3305 = vrsqrt.f32 %v2000_v48  ;;  %v2835_v7 = vmul.f32 -1.442695, %v4370_v50  ;;  %v2834_v58 = vmul.f32 -1.442695, %v4376_v41  ;;  %v1984_v51 = vsub.f32 %v4170_v36, %v4337_v0 }
 0x388   : > { %v1999_v29 = vadd.f32 1e-05, %v1967_v62  ;;  %v1941_v53 = vmul.f32 %v4384_v21, %v4384_v21  ;;  %v1940_v28 = vmul.f32 %v4388_v20, %v4388_v20  ;;  %v1983_v10 = vsub.f32 %v4191_v52, %v4347_v31 }
 0x389   : > { %v1836_v25 = vpop.xlane.xlu0 %1835  ;;  %3307 = vpow2.f32 %v2835_v7  ;;  %v1906_v44 = vpop.xlane.xlu1 %1905 }
 0x38a   : > { %3309 = vrsqrt.f32 %v1999_v29  ;;  %v1926_v59 = vmul.f32 0.0078125, %v1906_v44  ;;  %v4394_v45 = vmul.f32 0.0078125, %v1836_v25 }
 0x38b   : > { %3311 = vpow2.f32 %v2834_v58 }
 0x38c   : > { %3313 = vpow2.f32 %v2836_v57  ;;  %v3302_v56 = vpop.eup %3301  ;;  %v1958_v22 = vsub.f32 %v1926_v59, %v1942_v60  ;;  %v1939_v30 = vmul.f32 %v4394_v45, %v4394_v45 }
 0x38d   : > { %v1904_v39 = vpop.xlane.xlu0 %1903  ;;  %3315 = vpow2.f32 %v2837_v1  ;;  %v1902_v38 = vpop.xlane.xlu1 %1901  ;;  %v2034_v54 = vmul.f32 %v3302_v56, %v1986_v61 }
 0x38e   : > { %v1925_v35 = vmul.f32 0.0078125, %v1904_v39  ;;  %v1974_v2 = vmax.f32 %v1958_v22, 0.0  ;;  %v1924_v49 = vmul.f32 0.0078125, %v1902_v38 }
 0x38f   : > { %v2056_v62 = vmul.f32 %v4343_v24, %v2034_v54 }
 0x390   : > { %v3304_v8 = vpop.eup %3303  ;;  %v1957_v9 = vsub.f32 %v1925_v35, %v1941_v53  ;;  %v2006_v42 = vadd.f32 1e-05, %v1974_v2  ;;  %v1956_v13 = vsub.f32 %v1924_v49, %v1940_v28  ;;  %v1990_v49 = vsub.f32 %v4208_v19, %v4378_v18 }
 0x391   : > { %v3306_v37 = vpop.eup %3305  ;;  %v1900_v17 = vpop.xlane.xlu0 %1899  ;;  %v2033_v40 = vmul.f32 %v3304_v8, %v1985_v33  ;;  %v4413_v39 = vadd.f32 %v4359_v6, %v2056_v62 }
 0x392   : > { %v1973_v16 = vmax.f32 %v1957_v9, 0.0  ;;  %v1923_v14 = vmul.f32 0.0078125, %v1900_v17  ;;  %v2032_v26 = vmul.f32 %v3306_v37, %v1984_v51  ;;  %3317 = vrsqrt.f32 %v2006_v42 }
 0x393   : > { %v3308_v4 = vpop.eup %3307  ;;  %v1972_v47 = vmax.f32 %v1956_v13, 0.0  ;;  %v2055_v36 = vmul.f32 %v4343_v24, %v2033_v40  ;;  %v2841_v18 = vmul.f32 -1.442695, %v4413_v39 }
 0x394   : > { %v3310_v0 = vpop.eup %3309  ;;  %v2005_v11 = vadd.f32 1e-05, %v1973_v16  ;;  %v1955_v48 = vsub.f32 %v1923_v14, %v1939_v30  ;;  %v1850_v55 = vpop.xlane.xlu1 %1849  ;;  %v2136_v58 = vadd.f32 1.0, %v3308_v4  ;;  %v2054_v25 = vmul.f32 %v4343_v24, %v2032_v26 }
 0x395   : > { %v3312_v15 = vpop.eup %3311  ;;  %v2004_v7 = vadd.f32 1e-05, %v1972_v47  ;;  %v1848_v29 = vpop.xlane.xlu0 %1847  ;;  %v2031_v57 = vmul.f32 %v3310_v0, %v1983_v10  ;;  %v4410_v44 = vadd.f32 %v4359_v6, %v2055_v36  ;;  %v4426_v8 = vmul.f32 0.0078125, %v1850_v55 }
 0x396   : > { %v3314_v1 = vpop.eup %3313  ;;  %3319 = vrsqrt.f32 %v2005_v11  ;;  %v1971_v52 = vmax.f32 %v1955_v48, 0.0  ;;  %v2135_v31 = vadd.f32 1.0, %v3312_v15  ;;  %v4421_v28 = vadd.f32 %v4359_v6, %v2054_v25 }
 0x397   : > { %v3316_v60 = vpop.eup %3315  ;;  %3321 = vrsqrt.f32 %v2004_v7  ;;  %v2137_v59 = vadd.f32 1.0, %v3314_v1  ;;  %v2053_v38 = vmul.f32 %v4343_v24, %v2031_v57  ;;  %v2840_v2 = vmul.f32 -1.442695, %v4410_v44 }
 0x398   : > { %v2003_v56 = vadd.f32 1e-05, %v1971_v52  ;;  %v1846_v22 = vpop.xlane.xlu1 %1845  ;;  %3323 = vrcp.f32 %v2135_v31  ;;  %v2138_v35 = vadd.f32 1.0, %v3316_v60  ;;  %v4431_v9 = vmul.f32 0.0078125, %v1848_v29 }
 0x399   : > { %v4415_v61 = vmul.f32 0.0078125, %v1846_v22  ;;  %v1844_v53 = vpop.xlane.xlu0 %1843  ;;  %3325 = vrcp.f32 %v2136_v58  ;;  %v4429_v51 = vadd.f32 %v4359_v6, %v2053_v38  ;;  %v2839_v42 = vmul.f32 -1.442695, %v4421_v28 }
 0x39a   : > { %3327 = vrsqrt.f32 %v2003_v56  ;;  %v4418_v33 = vmul.f32 0.0078125, %v1844_v53  ;;  %v1989_v26 = vsub.f32 %v4220_v43, %v4384_v21  ;;  %v1988_v4 = vsub.f32 %v4225_v23, %v4388_v20 }
 0x39b   : > { %3329 = vrcp.f32 %v2137_v59  ;;  %v1944_v54 = vmul.f32 %v4415_v61, %v4415_v61  ;;  %v2838_v19 = vmul.f32 -1.442695, %v4429_v51  ;;  %v1987_v36 = vsub.f32 %v4235_v12, %v4394_v45 }
 0x39c   : > { %v1910_v37 = vpop.xlane.xlu1 %1909  ;;  %3331 = vrcp.f32 %v2138_v35  ;;  %v3318_v13 = vpop.eup %3317  ;;  %v1943_v30 = vmul.f32 %v4418_v33, %v4418_v33  ;;  %v1946_v62 = vmul.f32 %v4426_v8, %v4426_v8  ;;  %v1945_v20 = vmul.f32 %v4431_v9, %v4431_v9 }
 0x39d   : > { %v1928_v17 = vmul.f32 0.0078125, %v1910_v37  ;;  %v1908_v40 = vpop.xlane.xlu0 %1907  ;;  %3333 = vpow2.f32 %v2840_v2  ;;  %v2038_v14 = vmul.f32 %v3318_v13, %v1990_v49 }
 0x39e   : > { %v1927_v16 = vmul.f32 0.0078125, %v1908_v40  ;;  %3335 = vpow2.f32 %v2839_v42 }
 0x39f   : > { %v1960_v10 = vsub.f32 %v1928_v17, %v1944_v54  ;;  %3337 = vpow2.f32 %v2838_v19  ;;  %v2060_v48 = vmul.f32 %v4343_v24, %v2038_v14 }
 0x3a0   : > { %v3320_v47 = vpop.eup %3319  ;;  %v1959_v0 = vsub.f32 %v1927_v16, %v1943_v30  ;;  %v1914_v11 = vpop.xlane.xlu1 %1913  ;;  %3339 = vpow2.f32 %v2841_v18 }
 0x3a1   : > { %v3322_v55 = vpop.eup %3321  ;;  %v1976_v15 = vmax.f32 %v1960_v10, 0.0  ;;  %v1930_v43 = vmul.f32 0.0078125, %v1914_v11  ;;  %v1912_v21 = vpop.xlane.xlu0 %1911  ;;  %v2037_v7 = vmul.f32 %v3320_v47, %v1989_v26  ;;  %v4453_v52 = vadd.f32 %v4359_v6, %v2060_v48 }
 0x3a2   : > { %v3324_v23 = vpop.eup %3323  ;;  %v1975_v29 = vmax.f32 %v1959_v0, 0.0  ;;  %v1929_v58 = vmul.f32 0.0078125, %v1912_v21  ;;  %v2036_v12 = vmul.f32 %v3322_v55, %v1988_v4 }
 0x3a3   : > { %v3326_v45 = vpop.eup %3325  ;;  %v2008_v57 = vadd.f32 1e-05, %v1976_v15  ;;  %v1962_v25 = vsub.f32 %v1930_v43, %v1946_v62  ;;  %v2183_v1 = vmul.f32 %v3324_v23, %v4376_v41  ;;  %v2059_v22 = vmul.f32 %v4343_v24, %v2037_v7 }
 0x3a4   : > { %v3328_v31 = vpop.eup %3327  ;;  %v2007_v60 = vadd.f32 1e-05, %v1975_v29  ;;  %v1961_v59 = vsub.f32 %v1929_v58, %v1945_v20  ;;  %v2184_v56 = vmul.f32 %v3326_v45, %v4370_v50  ;;  %v1507_v38 = vpop.xlane.xlu1 %1506  ;;  %v2058_v54 = vmul.f32 %v4343_v24, %v2036_v12 }
 0x3a5   : > { %v3330_v53 = vpop.eup %3329  ;;  %3341 = vrsqrt.f32 %v2008_v57  ;;  %v1978_v35 = vmax.f32 %v1962_v25, 0.0  ;;  %v1502_v2 = vpop.xlane.xlu0 %1501  ;;  %v2035_v49 = vmul.f32 %v3328_v31, %v1987_v36  ;;  %v1508_v14 = vmul.f32 0.0078125, %v1507_v38 }
 0x3a6   : > { %v3332_v37 = vpop.eup %3331  ;;  %3343 = vrsqrt.f32 %v2007_v60  ;;  %v1977_v41 = vmax.f32 %v1961_v59, 0.0  ;;  %v2199_v42 = vpack.c.bf16 %v2184_v56, %v2183_v1  ;;  %v4458_v13 = vmul.f32 0.0078125, %v1502_v2 }
 0x3a7   : > { %v3334_v17 = vpop.eup %3333  ;;  %v2010_v40 = vadd.f32 1e-05, %v1978_v35  ;;  %v2185_v50 = vmul.f32 %v3330_v53, %v4367_v34  ;;  %v2186_v19 = vmul.f32 %v3332_v37, %v4373_v27  ;;  %v2057_v18 = vmul.f32 %v4343_v24, %v2035_v49 }
 0x3a8   : > { %v3336_v30 = vpop.eup %3335  ;;  %v2009_v16 = vadd.f32 1e-05, %v1977_v41  ;;  %3026 = vmatprep.mubr.bf16.mxu1 %v2199_v42  ;;  %v1509_v26 = vmul.f32 %v4458_v13, %v4458_v13  ;;  %v2141_v4 = vadd.f32 1.0, %v3334_v17  ;;  %v4469_v48 = vadd.f32 %v4359_v6, %v2058_v54 }
 0x3a9   : > { %v3338_v10 = vpop.eup %3337  ;;  %3345 = vrsqrt.f32 %v2010_v40  ;;  %v2200_v47 = vpack.c.bf16 %v2186_v19, %v2185_v50  ;;  %v2140_v36 = vadd.f32 1.0, %v3336_v30  ;;  %v4466_v0 = vadd.f32 %v4359_v6, %v2057_v18 }
 0x3aa   : > { %v3340_v34 = vpop.eup %3339  ;;  %3347 = vrsqrt.f32 %v2009_v16  ;;  %v1510_v27 = vsub.f32 %v1508_v14, %v1509_v26  ;;  %v2139_v11 = vadd.f32 1.0, %v3338_v10  ;;  %v4473_v15 = vadd.f32 %v4359_v6, %v2059_v22 }
 0x3ab   : > { %3027 = vmatmul.mubr.bf16.vlgmr.msra.gmra.mrb[0].mxu1 %v2200_v47  ;;  %3349 = vrcp.f32 %v2140_v36  ;;  %v2142_v55 = vadd.f32 1.0, %v3340_v34  ;;  %v2842_v62 = vmul.f32 -1.442695, %v4466_v0  ;;  %v2843_v21 = vmul.f32 -1.442695, %v4469_v48  ;;  %v2376_v36 = vld [vmem:[%s2375_s22] sm:$0xff] }
 0x3ac   : > { %v1511_v43 = vmax.f32 %v1510_v27, 0.0  ;;  %3351 = vrcp.f32 %v2139_v11  ;;  %v1992_v7 = vsub.f32 %v4277_v5, %v4415_v61  ;;  %v2844_v20 = vmul.f32 -1.442695, %v4473_v15 }
 0x3ad   : > { %3353 = vrcp.f32 %v2141_v4  ;;  %v1991_v58 = vsub.f32 %v4282_v32, %v4418_v33  ;;  %v2845_v12 = vmul.f32 -1.442695, %v4453_v52  ;;  %v1994_v1 = vsub.f32 %v4268_v3, %v4426_v8 }
 0x3ae   : > { %v1513_v23 = vadd.f32 1e-05, %v1511_v43  ;;  %3355 = vrcp.f32 %v2142_v55  ;;  %v1993_v31 = vsub.f32 %v4272_v46, %v4431_v9  ;;  %v1512_v37 = vsub.f32 %v4297_v63, %v4458_v13  ;;  %v2828_v63 = vld [vmem:[%s4684_s18] ss:$0 sm:$0xff] }
 0x3af   : > { %v3342_v29 = vpop.eup %3341  ;;  %3357 = vpow2.f32 %v2842_v62 }
 0x3b0   : > { %v3344_v45 = vpop.eup %3343  ;;  %3359 = vrsqrt.f32 %v1513_v23  ;;  %v2040_v57 = vmul.f32 %v3342_v29, %v1992_v7 }
 0x3b1   : > { %3361 = vpow2.f32 %v2843_v21  ;;  %v2039_v25 = vmul.f32 %v3344_v45, %v1991_v58 }
 0x3b2   : > { %3363 = vpow2.f32 %v2844_v20  ;;  %v2062_v5 = vmul.f32 %v4343_v24, %v2040_v57 }
 0x3b3   : > { %v3346_v61 = vpop.eup %3345  ;;  %3365 = vpow2.f32 %v2845_v12  ;;  %v2061_v32 = vmul.f32 %v4343_v24, %v2039_v25 }
 0x3b4   : > { %v3348_v33 = vpop.eup %3347  ;;  %v4489_v60 = vadd.f32 %v4359_v6, %v2062_v5  ;;  %v2042_v59 = vmul.f32 %v3346_v61, %v1994_v1 }
 0x3b5   : > { %v3350_v56 = vpop.eup %3349  ;;  %v4492_v22 = vadd.f32 %v4359_v6, %v2061_v32  ;;  %v2041_v3 = vmul.f32 %v3348_v33, %v1993_v31 }
 0x3b6   : > { %v3352_v8 = vpop.eup %3351  ;;  %v2188_v53 = vmul.f32 %v3350_v56, %v4421_v28  ;;  %v2847_v35 = vmul.f32 -1.442695, %v4489_v60  ;;  %v2064_v46 = vmul.f32 %v4343_v24, %v2042_v59 }
 0x3b7   : > { %v3354_v9 = vpop.eup %3353  ;;  %v2187_v38 = vmul.f32 %v3352_v8, %v4429_v51  ;;  %v2846_v2 = vmul.f32 -1.442695, %v4492_v22  ;;  %v2063_v49 = vmul.f32 %v4343_v24, %v2041_v3 }
 0x3b8   : > { %v3356_v54 = vpop.eup %3355  ;;  %v2189_v41 = vmul.f32 %v3354_v9, %v4410_v44  ;;  %3367 = vpow2.f32 %v2847_v35  ;;  %v4504_v28 = vadd.f32 %v4359_v6, %v2064_v46  ;;  %v3391_v35 = vld [vmem:[%s3680_s25] sm:$0xff]  }
 0x3b9   : > { %v3358_v42 = vpop.eup %3357  ;;  %v2201_v17 = vpack.c.bf16 %v2188_v53, %v2187_v38  ;;  %v2190_v40 = vmul.f32 %v3356_v54, %v4413_v39  ;;  %3369 = vpow2.f32 %v2846_v2  ;;  %v2085_v51 = vadd.f32 %v4359_v6, %v2063_v49  ;;  %v2829_v39 = vld [vmem:[%s4685_s7] ss:$0 sm:$0xff] }
 0x3ba   : > { %v3360_v24 = vpop.eup %3359  ;;  %v2143_v13 = vadd.f32 1.0, %v3358_v42  ;;  %v2849_v4 = vmul.f32 -1.442695, %v4504_v28  ;;  %v4529_v53 = vld [vmem:[%s4686_s28] ss:$0 sm:$0xff]  ;;  %v953_v46 = vunpack.c.l.bf16 %v3391_v35  ;;  %v954_v54 = vunpack.c.h.bf16 %v3391_v35 }
 0x3bb   : > { %v3362_v44 = vpop.eup %3361  ;;  %v1515_v50 = vmul.f32 %v3360_v24, %v1512_v37  ;;  %3030 = vmatprep.mubr.bf16.mxu1 %v2201_v17  ;;  %v2202_v19 = vpack.c.bf16 %v2190_v40, %v2189_v41  ;;  %v2848_v18 = vmul.f32 -1.442695, %v2085_v51  ;;  %v3395_v35 = vld [vmem:[%s3680_s25 + $0x20] sm:$0xff]  }
 0x3bc   : > { %v3364_v30 = vpop.eup %3363  ;;  %v2144_v16 = vadd.f32 1.0, %v3362_v44  ;;  %3371 = vrcp.f32 %v2143_v13 }
 0x3bd   : > { %v3366_v14 = vpop.eup %3365  ;;  %v1522_v6 = vmul.f32 %v2828_v63, %v1515_v50  ;;  %3031 = vmatmul.mubr.bf16.gmra.mrb[4].mxu1 %v2202_v19  ;;  %v2145_v26 = vadd.f32 1.0, %v3364_v30  ;;  %3373 = vpow2.f32 %v2848_v18 }
 0x3be   : > { %3375 = vrcp.f32 %v2144_v16  ;;  %v2146_v10 = vadd.f32 1.0, %v3366_v14 }
 0x3bf   : > { %v1529_v47 = vadd.f32 %v2829_v39, %v1522_v6  ;;  %3377 = vrcp.f32 %v2145_v26 }
 0x3c0   : > { %3379 = vrcp.f32 %v2146_v10 }
 0x3c1   : > { %v1530_v34 = vmax.f32 %v1529_v47, 0.0  ;;  %3381 = vpow2.f32 %v2849_v4  ;;  %v3393_v47 = vld [vmem:[%s3680_s25 + $0x10] sm:$0xff]  }
 0x3c2   : > { %v3368_v27 = vpop.eup %3367 }
 0x3c3   : > { %v3370_v11 = vpop.eup %3369  ;;  %v2377_v55 = vadd.f32 %v2376_v36, %v1530_v34  ;;  %v2148_v62 = vadd.f32 1.0, %v3368_v27  ;;  %v957_v36 = vunpack.c.l.bf16 %v3393_v47  ;;  %v3394_v34 = vld [vmem:[%s3680_s25 + $0x18] sm:$0xff]  }
 0x3c4   : > { %v2147_v43 = vadd.f32 1.0, %v3370_v11  ;;  %v959_v27 = vunpack.c.l.bf16 %v3394_v34 }
 0x3c5   : > { %2378 = vst [vmem:[%s559_s0] sm:$0xff] %v2377_v55  ;;  %3383 = vrcp.f32 %v2148_v62  ;;  %v960_v62 = vunpack.c.h.bf16 %v3394_v34 }
 0x3c6   : > { %v3372_v21 = vpop.eup %3371  ;;  %3385 = vrcp.f32 %v2147_v43 }
 0x3c7   : > { %v3374_v7 = vpop.eup %3373  ;;  %v2191_v23 = vmul.f32 %v3372_v21, %v4466_v0 }
 0x3c8   : > { %v3376_v20 = vpop.eup %3375  ;;  %v2149_v29 = vadd.f32 1.0, %v3374_v7  ;;  %v958_v7 = vunpack.c.h.bf16 %v3393_v47  ;;  %v3397_v47 = vld [vmem:[%s3680_s25 + $0x30] sm:$0xff]  }
 0x3c9   : > { %v3378_v58 = vpop.eup %3377  ;;  %v2192_v12 = vmul.f32 %v3376_v20, %v4469_v48 }
 0x3ca   : > { %v3380_v45 = vpop.eup %3379  ;;  %v2193_v57 = vmul.f32 %v3378_v58, %v4473_v15  ;;  %3387 = vrcp.f32 %v2149_v29 }
 0x3cb   : > { %v3382_v25 = vpop.eup %3381  ;;  %v2203_v1 = vpack.c.bf16 %v2192_v12, %v2191_v23  ;;  %v2194_v5 = vmul.f32 %v3380_v45, %v4453_v52 }
 0x3cc   : > { %v2150_v61 = vadd.f32 1.0, %v3382_v25 }
 0x3cd   : > { %3034 = vmatprep.mubr.bf16.mxu1 %v2203_v1  ;;  %v2204_v31 = vpack.c.bf16 %v2194_v5, %v2193_v57 }
 0x3ce   : > { %3389 = vrcp.f32 %v2150_v61 }
 0x3cf   : > { %v3384_v32 = vpop.eup %3383  ;;  %3035 = vmatmul.mubr.bf16.gmra.mrb[8].mxu1 %v2204_v31 }
 0x3d0   : > { %v3386_v0 = vpop.eup %3385  ;;  %v2196_v33 = vmul.f32 %v3384_v32, %v4489_v60  ;;  %v3392_v60 = vld [vmem:[%s3680_s25 + $0x8] sm:$0xff]  }
 0x3d1   : > { %v2195_v48 = vmul.f32 %v3386_v0, %v4492_v22  ;;  %v955_v38 = vunpack.c.l.bf16 %v3392_v60  ;;  %v956_v49 = vunpack.c.h.bf16 %v3392_v60 }
 0x3d3   : > { %v2205_v59 = vpack.c.bf16 %v2196_v33, %v2195_v48 }
 0x3d4   : > { %v3388_v15 = vpop.eup %3387 }
 0x3d5   : > { %3038 = vmatprep.mubr.bf16.mxu1 %v2205_v59  ;;  %v2197_v56 = vmul.f32 %v3388_v15, %v2085_v51 }
 0x3d8   : > { %v3390_v3 = vpop.eup %3389 }
 0x3d9   : > { %v2198_v52 = vmul.f32 %v3390_v3, %v4504_v28 }
 0x3db   : > { %v2206_v8 = vpack.c.bf16 %v2198_v52, %v2197_v56 }
 0x3dd   : > { %3039 = vmatmul.mubr.bf16.gmra.mrb[12].mxu1 %v2206_v8 }
 0x47e   : > { %v3028_v9 = vpop.f32.mrb[0].mxu1 }
 0x47f   : > { %v2321_v22 = vadd.f32 %v3028_v9, %v4529_v53  ;;  %v2312_v2 = vpop.f32.mrb[1].mxu1  ;;  %v3396_v9 = vld [vmem:[%s3680_s25 + $0x28] sm:$0xff]  }
 0x480   : > { %v2313_v37 = vadd.f32 %v4529_v53, %v2312_v2  ;;  %v3029_v41 = vpop.f32.mrb[2].mxu1  ;;  %v963_v60 = vunpack.c.l.bf16 %v3396_v9  ;;  %v964_v2 = vunpack.c.h.bf16 %v3396_v9 }
 0x481   : > { %v2324_v28 = vadd.f32 %v3029_v41, %v4529_v53  ;;  %v2315_v42 = vpop.f32.mrb[3].mxu1  ;;  %v2381_v51 = vadd.f32 %v2321_v22, %v955_v38 }
 0x482   : > { %v2379_v17 = vadd.f32 %v2313_v37, %v953_v46  ;;  %v2316_v40 = vadd.f32 %v4529_v53, %v2315_v42  ;;  %v961_v46 = vunpack.c.l.bf16 %v3395_v35  ;;  %v962_v37 = vunpack.c.h.bf16 %v3395_v35 }
 0x483   : > { %v2382_v24 = vadd.f32 %v2324_v28, %v956_v49  ;;  %v2498_v30 = vmul.f32 %v2381_v51, %v2381_v51 }
 0x484   : > { %v2380_v63 = vadd.f32 %v2316_v40, %v954_v54  ;;  %v2496_v44 = vmul.f32 %v2379_v17, %v2379_v17 }
 0x485   : > { %v2907_v13 = vpack.c.bf16 %v2382_v24, %v2381_v51  ;;  %v2499_v14 = vmul.f32 %v2382_v24, %v2382_v24 }
 0x486   : > { %v2902_v50 = vpack.c.bf16 %v2380_v63, %v2379_v17  ;;  %v2475_v19 = vadd.f32 %v2380_v63, %v2379_v17  ;;  %v2497_v18 = vmul.f32 %v2380_v63, %v2380_v63 }
 0x487   : > { %2939 = vst [vmem:[%s3685_s27 + $0x8] sm:$0xff] %v2907_v13  }
 0x488   : > { %2903 = vst [vmem:[%s3685_s27] sm:$0xff] %v2902_v50   ;;  %v2476_v39 = vadd.f32 %v2475_v19, %v2381_v51  ;;  %v2512_v16 = vadd.f32 %v2497_v18, %v2496_v44 }
 0x48a   : > { %v2513_v6 = vadd.f32 %v2512_v16, %v2498_v30  ;;  %v2477_v26 = vadd.f32 %v2476_v39, %v2382_v24 }
 0x48c   : > { %v2514_v4 = vadd.f32 %v2513_v6, %v2499_v14 }
 0x490   : > { %v3032_v10 = vpop.f32.mrb[4].mxu1 }
 0x491   : > { %v2337_v11 = vadd.f32 %v3032_v10, %v4529_v53  ;;  %v2328_v55 = vpop.f32.mrb[5].mxu1 }
 0x492   : > { %v2329_v43 = vadd.f32 %v4529_v53, %v2328_v55  ;;  %v3033_v21 = vpop.f32.mrb[6].mxu1 }
 0x493   : > { %v2340_v23 = vadd.f32 %v3033_v21, %v4529_v53  ;;  %v2331_v20 = vpop.f32.mrb[7].mxu1  ;;  %v2385_v12 = vadd.f32 %v2337_v11, %v959_v27  ;;  %v3398_v27 = vld [vmem:[%s3680_s25 + $0x38] sm:$0xff]  }
 0x494   : > { %v2383_v29 = vadd.f32 %v2329_v43, %v957_v36  ;;  %v2332_v58 = vadd.f32 %v4529_v53, %v2331_v20  ;;  %v965_v36 = vunpack.c.l.bf16 %v3397_v47  ;;  %v967_v11 = vunpack.c.l.bf16 %v3398_v27 }
 0x495   : > { %v2386_v45 = vadd.f32 %v2340_v23, %v960_v62  ;;  %v2502_v33 = vmul.f32 %v2385_v12, %v2385_v12  ;;  %v968_v43 = vunpack.c.h.bf16 %v3398_v27  ;;  %v966_v23 = vunpack.c.h.bf16 %v3397_v47 }
 0x496   : > { %v2478_v57 = vadd.f32 %v2477_v26, %v2383_v29  ;;  %v2500_v25 = vmul.f32 %v2383_v29, %v2383_v29  ;;  %v2384_v1 = vadd.f32 %v2332_v58, %v958_v7 }
 0x497   : > { %v2917_v5 = vpack.c.bf16 %v2386_v45, %v2385_v12  ;;  %v2503_v15 = vmul.f32 %v2386_v45, %v2386_v45 }
 0x498   : > { %v2515_v61 = vadd.f32 %v2514_v4, %v2500_v25  ;;  %v2912_v31 = vpack.c.bf16 %v2384_v1, %v2383_v29  ;;  %v2479_v32 = vadd.f32 %v2478_v57, %v2384_v1  ;;  %v2501_v0 = vmul.f32 %v2384_v1, %v2384_v1 }
 0x499   : > { %2941 = vst [vmem:[%s3685_s27 + $0x18] sm:$0xff] %v2917_v5  }
 0x49a   : > { %2940 = vst [vmem:[%s3685_s27 + $0x10] sm:$0xff] %v2912_v31   ;;  %v2480_v48 = vadd.f32 %v2479_v32, %v2385_v12  ;;  %v2516_v59 = vadd.f32 %v2515_v61, %v2501_v0 }
 0x49c   : > { %v2517_v56 = vadd.f32 %v2516_v59, %v2502_v33  ;;  %v2481_v3 = vadd.f32 %v2480_v48, %v2386_v45 }
 0x49e   : > { %v2518_v52 = vadd.f32 %v2517_v56, %v2503_v15 }
 0x4a2   : > { %v3036_v8 = vpop.f32.mrb[8].mxu1 }
 0x4a3   : > { %v2353_v38 = vadd.f32 %v3036_v8, %v4529_v53  ;;  %v2344_v22 = vpop.f32.mrb[9].mxu1 }
 0x4a4   : > { %v2345_v49 = vadd.f32 %v4529_v53, %v2344_v22  ;;  %v3037_v54 = vpop.f32.mrb[10].mxu1 }
 0x4a5   : > { %v2356_v41 = vadd.f32 %v3037_v54, %v4529_v53  ;;  %v2347_v28 = vpop.f32.mrb[11].mxu1  ;;  %v2389_v40 = vadd.f32 %v2353_v38, %v963_v60 }
 0x4a6   : > { %v2387_v42 = vadd.f32 %v2345_v49, %v961_v46  ;;  %v2348_v17 = vadd.f32 %v4529_v53, %v2347_v28 }
 0x4a7   : > { %v2390_v51 = vadd.f32 %v2356_v41, %v964_v2  ;;  %v2506_v39 = vmul.f32 %v2389_v40, %v2389_v40 }
 0x4a8   : > { %v2482_v24 = vadd.f32 %v2481_v3, %v2387_v42  ;;  %v2504_v63 = vmul.f32 %v2387_v42, %v2387_v42  ;;  %v2388_v13 = vadd.f32 %v2348_v17, %v962_v37 }
 0x4a9   : > { %v2927_v44 = vpack.c.bf16 %v2390_v51, %v2389_v40  ;;  %v2507_v6 = vmul.f32 %v2390_v51, %v2390_v51 }
 0x4aa   : > { %v2519_v50 = vadd.f32 %v2518_v52, %v2504_v63  ;;  %v2922_v19 = vpack.c.bf16 %v2388_v13, %v2387_v42  ;;  %v2483_v18 = vadd.f32 %v2482_v24, %v2388_v13  ;;  %v2505_v30 = vmul.f32 %v2388_v13, %v2388_v13 }
 0x4ab   : > { %2943 = vst [vmem:[%s3685_s27 + $0x28] sm:$0xff] %v2927_v44   ;;  %v3497_v42 = vmov (!%p2759_p0), 0.0  }
 0x4ac   : > { %2942 = vst [vmem:[%s3685_s27 + $0x20] sm:$0xff] %v2922_v19   ;;  %v2484_v16 = vadd.f32 %v2483_v18, %v2389_v40  ;;  %v2520_v14 = vadd.f32 %v2519_v50, %v2505_v30  ;;  %2538 = vst [vmem:[%s3675_s6] sm:$0x3] (!%p2759_p0), %v3497_v42 }
 0x4ae   : > { %v2521_v26 = vadd.f32 %v2520_v14, %v2506_v39  ;;  %v2485_v4 = vadd.f32 %v2484_v16, %v2390_v51 }
 0x4b0   : > { %v3040_v10 = vpop.f32.mrb[12].mxu1  ;;  %v2522_v34 = vadd.f32 %v2521_v26, %v2507_v6 }
 0x4b1   : > { %v2369_v55 = vadd.f32 %v3040_v10, %v4529_v53  ;;  %v2360_v62 = vpop.f32.mrb[13].mxu1 }
 0x4b2   : > { %v2361_v21 = vadd.f32 %v4529_v53, %v2360_v62  ;;  %v3041_v7 = vpop.f32.mrb[14].mxu1 }
 0x4b3   : > { %v2372_v20 = vadd.f32 %v3041_v7, %v4529_v53  ;;  %v2363_v29 = vpop.f32.mrb[15].mxu1  ;;  %v2393_v45 = vadd.f32 %v2369_v55, %v967_v11 }
 0x4b4   : > { %v2391_v58 = vadd.f32 %v2361_v21, %v965_v36  ;;  %v2364_v12 = vadd.f32 %v4529_v53, %v2363_v29 }
 0x4b5   : > { %v2394_v57 = vadd.f32 %v2372_v20, %v968_v43  ;;  %v2510_v48 = vmul.f32 %v2393_v45, %v2393_v45 }
 0x4b6   : > { %v2486_v25 = vadd.f32 %v2485_v4, %v2391_v58  ;;  %v2508_v1 = vmul.f32 %v2391_v58, %v2391_v58  ;;  %v2392_v5 = vadd.f32 %v2364_v12, %v966_v23 }
 0x4b7   : > { %v2937_v61 = vpack.c.bf16 %v2394_v57, %v2393_v45  ;;  %v2511_v56 = vmul.f32 %v2394_v57, %v2394_v57 }
 0x4b8   : > { %v2523_v31 = vadd.f32 %v2522_v34, %v2508_v1  ;;  %v2932_v32 = vpack.c.bf16 %v2392_v5, %v2391_v58  ;;  %v2487_v0 = vadd.f32 %v2486_v25, %v2392_v5  ;;  %v2509_v33 = vmul.f32 %v2392_v5, %v2392_v5 }
 0x4b9   : > { %2945 = vst [vmem:[%s3685_s27 + $0x38] sm:$0xff] %v2937_v61  }
 0x4ba   : > { %2944 = vst [vmem:[%s3685_s27 + $0x30] sm:$0xff] %v2932_v32   ;;  %v2488_v59 = vadd.f32 %v2487_v0, %v2393_v45  ;;  %v2524_v15 = vadd.f32 %v2523_v31, %v2509_v33 }
 0x4bc   : > { %v2489_v3 = vadd.f32 %v2488_v59, %v2394_v57  ;;  %v2525_v52 = vadd.f32 %v2524_v15, %v2510_v48 }
 0x4be   : > { %v2490_v8 = vrot.slane %v2489_v3, 4  ;;  %v2526_v53 = vadd.f32 %v2525_v52, %v2511_v56 }
 0x4c0   : > { %v2491_v35 = vadd.f32 %v2490_v8, %v2489_v3  ;;  %v2527_v46 = vrot.slane %v2526_v53, 4 }
 0x4c2   : > { %v2492_v9 = vrot.slane %v2491_v35, 2  ;;  %v2528_v60 = vadd.f32 %v2527_v46, %v2526_v53 }
 0x4c4   : > { %v2493_v38 = vadd.f32 %v2492_v9, %v2491_v35  ;;  %v2529_v22 = vrot.slane %v2528_v60, 2 }
 0x4c6   : > { %v2494_v2 = vrot.slane %v2493_v38, 1  ;;  %v2530_v49 = vadd.f32 %v2529_v22, %v2528_v60  ;;  %2537 = sbr.rel (%p2759_p0) target bundleno = 1229 (0x4cd), region = 84 }
 0x4c8   : > { %v2531_v54 = vrot.slane %v2530_v49, 1  ;;  %v2495_v37 = vadd.f32 %v2494_v2, %v2493_v38 }
 0x4ca   : > { %v2532_v41 = vadd.f32 %v2531_v54, %v2530_v49 }
 0x4cc   : > { %v2534_v28 = vsel %vm2533_vm7, %v2495_v37, %v2532_v41 }
 0x4cd PF: > { %s4687_s25 = sld [smem:[#allocation9_spill]]  ;;  %v2539_v17 = vld [vmem:[%s3675_s6] sm:$0x3]  ;;  %s2572_s30 = sshll.u32 %s559_s0, 4  ;;  %s4571_s30 = int_to_ptr.vmem [resolvable:$true] %s2572_s30 }
 0x4ce   : > { %s4688_s27 = sld [smem:[#allocation7_spill]]  ;;  %v2540_v40 = vadd.f32 %v2539_v17, %v2534_v28  ;;  %s4690_s14 = sld [smem:[#allocation26_spill]] }
 0x4cf   : > { %s3399_s7 = scalar_lea.vmem %s4571_s30, 128 }
 0x4d0   : > { %2541 = vst [vmem:[%s3675_s6] sm:$0x3] %v2540_v40  ;;  %p3400_p1 = scmp.ne.s32.totalorder %s4571_s30, %s3399_s7 }
 0x4d2   : > { %p3401_p2 = pnand %p3400_p1, %p3635_p3 }
 0x4d3   : > { %s2877_s11 = sshll.u32 %s4687_s25, 1 }
 0x4d4   : > { %s2568_s12 = sadd.s32 %s3477_s24, %s2877_s11  ;;  %s4691_s29 = sand.u32 1, %s4688_s27  }
 0x4d5   : > { %s2878_s17 = sshll.u32 %s2568_s12, 7  ;;  %s2543_s21 = scalar_lea.sflag [#allocation4], %s4691_s29 }
 0x4d6   : > { %s2570_s18 = scalar_lea.hbm %s4690_s14, %s2878_s17  ;;  %p3402_p4 = pneg %p3401_p2 }
 0x4d7   : > { %s3498_s24 = smov [#allocation3]  }
 0x4d8   : > { %s3403_s26 = sshll.u32 %s3498_s24, 4  ;;  %s3404_s26 = int_to_ptr.vmem [resolvable:$false] %s3403_s26 }
 0x4d9   : > { %s3405_s0 = scalar_lea.vmem %s3404_s26, 256  ;;  %p3406_p5 = scmp.lt.s32.totalorder %s4571_s30, %s3404_s26 }
 0x4da   : > { %p3407_p6 = scmp.lt.s32.totalorder %s3405_s0, %s3399_s7 }
 0x4dc   : > { %p3408_p7 = por %p3407_p6, %p3406_p5 }
 0x4de   : > { %p3409_p9 = pnand %p3408_p7, %p3402_p4 }
 0x4e0   : > { %3412 = shalt.err (!%p3409_p9)
}
 0x4e1   : > { %s3413_s6 = scalar_lea.hbm %s2570_s18, 128  ;;  %s3417_s20 = scalar_lea.hbm %s4690_s14, 512 }
 0x4e2   : > { %p3414_p10 = scmp.ne.s32.totalorder %s2570_s18, %s3413_s6  ;;  %p3418_p13 = scmp.lt.u32.totalorder %s2570_s18, %s4690_s14 }
 0x4e3   : > { %p3419_p0 = scmp.lt.u32.totalorder %s3417_s20, %s3413_s6  ;;  %p3421_p2 = scmp.lt.u32.totalorder %s3413_s6, %s2570_s18 }
 0x4e4   : > { %p3415_p11 = pnand %p3414_p10, %p3635_p3 }
 0x4e5   : > { %p3420_p1 = por %p3419_p0, %p3418_p13 }
 0x4e6   : > { %p3416_p12 = pneg %p3415_p11 }
 0x4e7   : > { %p3422_p5 = por %p3421_p2, %p3420_p1 }
 0x4e9   : > { %p3423_p4 = pnand %p3422_p5, %p3416_p12 }
 0x4eb   : > { %3426 = shalt.err (!%p3423_p4)
}
 0x4ec   : > { %3042 = dma.vmem_to_hbm [thread:$0]  (%p3635_p3), %s4571_s30, 128, %s2570_s18, %s2543_s21  }
 0x4ed PF: > { %s4692_s27 = sld [smem:[#allocation12_spill]]  ;;  %s4693_s11 = sld [smem:[#allocation6_spill]] }
 0x4f3   : > { %p3048_p6 = scmp.ge.s32.totalorder %s4692_s27, 2  ;;  %s2591_s17 = sand.u32 1, %s4693_s11  }
 0x4f4   : > { %s2592_s19 = scalar_lea.sflag [#allocation4], %s2591_s17 }
 0x4f5   : > { %p3045_p7 = pnand %p3048_p6, %p3644_p8 }
 0x4f7   : > { %3460 = dma.done.wait (!%p3045_p7), %s2592_s19, 128  }
 0x4f8   : > { %3462 = vsyncadd (!%p3045_p7), %s2592_s19, 4294967168  ;;  %s30_s28 = sadd.s32 1, %s4692_s27   ;;  %s4695_s21 = sld [smem:[#allocation7_spill]] }
 0x4f9   : > { %p27_p9 = scmp.ge.s32.totalorder %s30_s28, 6   ;;  %s4696_s22 = sld [smem:[#allocation8_spill]] }
 0x4fa   : > { %s4697_s23 = sld [smem:[#allocation17_spill]]  ;;  %s4698_s24 = sld [smem:[#allocation10_spill]] }
 0x4fb   : > { %s4699_s25 = sld [smem:[#allocation11_spill]]  ;;  %s4700_s26 = sld [smem:[#allocation13_spill]] }
 0x4fc   : > { %s4701_s27 = sld [smem:[#allocation15_spill]]  ;;  %29 = sbr.rel (!%p27_p9) target bundleno = 15 (0xf), region = 148 }
 0x503   :  { %2617 = vsyncpa [#allocation4], 1 }
 0x504   :  { %2619 = vsyncpa [#allocation4 + $0x1], 1 }

// kernel: _lambda_.7
= control target key start
LH: loop header
LB: loop body
LE: loop exit
PB: predicated region body
PF: predicated region fallthrough
CT: control target
= control target key end

     0   :  { %s3351_s18 = smov 0   ;;  %s3353_s19 = smov 0   ;;  %s4297_s0 = inlined_call_operand.vmem [shape: f32[2,16,128], index: 0, kind: input, shape index: {}]   ;;  %s4298_s1 = inlined_call_operand.vmem [shape: bf16[2,16,16,128], index: 1, kind: input, shape index: {}]   ;;  %s4299_s2 = inlined_call_operand.vmem [shape: bf16[128,512], index: 2, kind: input, shape index: {}]   ;;  %s4300_s3 = inlined_call_operand.vmem [shape: f32[1,512], index: 3, kind: input, shape index: {}]   ;;  %s4301_s4 = inlined_call_operand.vmem [shape: bf16[128,128], index: 4, kind: input, shape index: {}]   ;;  %s4302_s5 = inlined_call_operand.vmem [shape: f32[1,128], index: 5, kind: input, shape index: {}]   ;;  %s4303_s6 = inlined_call_operand.vmem [shape: f32[1,128], index: 6, kind: input, shape index: {}]   ;;  %s4304_s7 = inlined_call_operand.vmem [shape: f32[1,128], index: 7, kind: input, shape index: {}]   ;;  %s4305_s8 = inlined_call_operand.vmem [shape: f32[1,128], index: 8, kind: input, shape index: {}]   ;;  %s4306_s9 = inlined_call_operand.vmem [shape: f32[1,128], index: 9, kind: input, shape index: {}]   ;;  %s4307_s10 = inlined_call_operand.vmem [shape: f32[1,128], index: 10, kind: input, shape index: {}]   ;;  %s4308_s11 = inlined_call_operand.vmem [shape: f32[1,128], index: 11, kind: input, shape index: {}]   ;;  %s4309_s12 = inlined_call_operand.vmem [shape: bf16[128,128], index: 12, kind: input, shape index: {}]   ;;  %s4310_s13 = inlined_call_operand.vmem [shape: f32[1,128], index: 13, kind: input, shape index: {}]   ;;  %s4311_s14 = inlined_call_operand.vmem [shape: f32[2,16,128], index: 14, kind: output, shape index: {0}]   ;;  %s4312_s15 = inlined_call_operand.vmem [shape: bf16[2,16,16,128], index: 15, kind: output, shape index: {1}]  }
   0x1   :  { %4317 = sst [smem:[#allocation8_spill]] %s4303_s6  ;;  %s3355_s20 = smov 0  }
   0x2   :  { %4318 = sst [smem:[#allocation9_spill]] %s4304_s7  ;;  %s3357_s21 = smov 0  }
   0x3   :  { %4319 = sst [smem:[#allocation10_spill]] %s4306_s9  ;;  %s3359_s22 = smov 0  }
   0x4   :  { %4320 = sst [smem:[#allocation11_spill]] %s4307_s10 }
   0x5   :  { %4321 = sst [smem:[#allocation12_spill]] %s4308_s11 }
   0x6   :  { %4322 = sst [smem:[#allocation13_spill]] %s4309_s12 }
   0x7   :  { %4323 = sst [smem:[#allocation14_spill]] %s4310_s13 }
   0x8 LB: > { %4324 = sst [smem:[#allocation3_spill]] %s3259_s20  ;;  %s35_s23 = sadd.s32 1, %s3259_s20  ;;  %s3267_s22 = sphi %s3359_s22, %s26_s22   ;;  %s3263_s21 = sphi %s3357_s21, %s4341_s21   ;;  %s3259_s20 = sphi %s3355_s20, %s4340_s20   ;;  %s3255_s19 = sphi %s3353_s19, %s4339_s19   ;;  %s3251_s18 = sphi %s3351_s18, %s4338_s18  }
   0x9   : > { %4325 = sst [smem:[#allocation4_spill]] %s3263_s21  ;;  %s38_s24 = sadd.s32 1, %s3263_s21 }
   0xa   : > { %4326 = sst [smem:[#allocation5_spill]] %s3267_s22  ;;  %p36_p0 = scmp.ge.s32.totalorder %s35_s23, 2 }
   0xb   : > { %p2612_p1 = scmp.ge.s32.totalorder %s3267_s22, 1  ;;  %p474_p2 = scmp.lt.s32.totalorder %s3267_s22, 5 }
   0xc   : > { %s4343_s23 = smov (%p36_p0, %s35_s23), 0  ;;  %s4345_s24 = smov (!%p36_p0, %s38_s24), %s3263_s21 }
   0xd   : > { %4327 = sst [smem:[#allocation6_spill]] %s4343_s23  ;;  %p475_p3 = pnand %p2612_p1, %p474_p2 }
   0xe   : > { %p40_p4 = scmp.ge.s32.totalorder %s4345_s24, 2  ;;  %p545_p5 = scmp.lt.s32.totalorder (!%p475_p3), %s3255_s19, 1 }
   0xf   : > { %478 = sbr.rel (%p475_p3) target bundleno = 1189 (0x4a5), region = 76  ;;  %s3384_s25 = sshll.u32 (!%p475_p3), %s3251_s18, 3 }
  0x10   : > { %s4347_s24 = smov (%p40_p4, %s4345_s24), 0  ;;  %p553_p6 = scmp.lt.s32.totalorder (!%p475_p3), %s3384_s25, 15 }
  0x11   : > { %4328 = sst [smem:[#allocation7_spill]] %s4347_s24  ;;  %p563_p7 = scmp.lt.s32.totalorder (!%p475_p3), %s3251_s18, 1 }
  0x12   : > { %p2625_p8 = scmp.ne.s32.totalorder (!%p475_p3), %s3251_s18, 0 }
  0x16   : > { %s4349_s19 = smov (!%p545_p5, %s3255_s19), 1  ;;  %v2946_v0 = vld [vmem:[%s4299_s2 + $0x4] ss:$16 sps:$4 sm:$0xff] (!%p2625_p8)   ;;  %v2948_v1 = vld [vmem:[%s4299_s2 + $0xc] ss:$16 sps:$4 sm:$0xff] (!%p2625_p8)   ;;  %v3269_v2 = vmov (!%p2625_p8), 0   ;;  %v622_v36 = vlaneseq (!%p2625_p8) }
  0x17   : > { %s554_s26 = scalar_select %p553_p6, %s3384_s25, 15 }
  0x18   : > { %s2743_s27 = sshll.u32 %s4349_s19, 4  ;;  %s2617_s28 = sshll.u32 %s4349_s19, 5  ;;  %834 = vmatprep.mubr.bf16.mxu0 (!%p2625_p8), %v3269_v2  ;;  %877 = vmatprep.mubr.bf16.mxu1 (!%p2625_p8), %v3269_v2  ;;  %v2950_v3 = vld [vmem:[%s4299_s2] ss:$16 sps:$4 sm:$0xff] (!%p2625_p8)   ;;  %v2951_v4 = vld [vmem:[%s4299_s2 + $0x8] ss:$16 sps:$4 sm:$0xff] (!%p2625_p8)  }
  0x19   : > { %s3392_s16 = scalar_lea.vmem %s4297_s0, %s2743_s27  ;;  %s2616_s17 = sshll.u32 %s554_s26, 1  ;;  %802 = vmatprep.subr.bf16.mxu0 (!%p2625_p8), %v2946_v0  ;;  %845 = vmatprep.subr.bf16.mxu1 (!%p2625_p8), %v2948_v1  ;;  %v2952_v5 = vld [vmem:[%s4299_s2 + $0x24] ss:$16 sps:$4 sm:$0xff] (!%p2625_p8)   ;;  %v2954_v6 = vld [vmem:[%s4299_s2 + $0x2c] ss:$16 sps:$4 sm:$0xff] (!%p2625_p8)   ;;  %v623_v37 = vshrl.u32 (!%p2625_p8), %v622_v36, 7 }
  0x1a   : > { %s557_s24 = sadd.s32 %s2617_s28, %s2616_s17  ;;  %s2619_s21 = sshll.u32 %s4349_s19, 1  ;;  %803 = vmatpush1.bf16.msra.mxu0 (!%p2625_p8), %v2950_v3  ;;  %846 = vmatpush1.bf16.msra.mxu1 (!%p2625_p8), %v2951_v4  ;;  %v2956_v7 = vld [vmem:[%s4299_s2 + $0x20] ss:$16 sps:$4 sm:$0xff] (!%p2625_p8)   ;;  %v2957_v8 = vld [vmem:[%s4299_s2 + $0x28] ss:$16 sps:$4 sm:$0xff] (!%p2625_p8)  }
  0x1b   : > { %s2618_s23 = sshll.u32 %s557_s24, 2  ;;  %584 = sbr.rel (%p2625_p8) target bundleno = 275 (0x113), region = 80  ;;  %804 = vmatprep.subr.bf16.mxu0 (!%p2625_p8), %v2952_v5  ;;  %847 = vmatprep.subr.bf16.mxu1 (!%p2625_p8), %v2954_v6  ;;  %v2958_v9 = vld [vmem:[%s4299_s2 + $0x44] ss:$16 sps:$4 sm:$0xff] (!%p2625_p8)   ;;  %v2960_v10 = vld [vmem:[%s4299_s2 + $0x4c] ss:$16 sps:$4 sm:$0xff] (!%p2625_p8)  }
  0x1c   : > { %s3397_s13 = scalar_lea.vmem %s4298_s1, %s2618_s23  ;;  %s3402_s11 = scalar_lea.vmem %s4312_s15, %s2618_s23  ;;  %v2962_v11 = vld [vmem:[%s4299_s2 + $0x40] ss:$16 sps:$4 sm:$0xff] (!%p2625_p8)   ;;  %v2963_v12 = vld [vmem:[%s4299_s2 + $0x48] ss:$16 sps:$4 sm:$0xff] (!%p2625_p8)   ;;  %v2964_v13 = vld [vmem:[%s4299_s2 + $0x64] ss:$16 sps:$4 sm:$0xff] (!%p2625_p8)  }
  0x1d   : > { %s564_s10 = scalar_select %p563_p7, %s3251_s18, 1 }
  0x1e   : > { %805 = vmatpush1.bf16.msra.mxu0 (!%p2625_p8), %v2956_v7  ;;  %848 = vmatpush1.bf16.msra.mxu1 (!%p2625_p8), %v2957_v8  ;;  %v2966_v14 = vld [vmem:[%s4299_s2 + $0x6c] ss:$16 sps:$4 sm:$0xff] (!%p2625_p8)   ;;  %v2968_v15 = vld [vmem:[%s4299_s2 + $0x60] ss:$16 sps:$4 sm:$0xff] (!%p2625_p8)   ;;  %v2969_v16 = vld [vmem:[%s4299_s2 + $0x68] ss:$16 sps:$4 sm:$0xff] (!%p2625_p8)  }
  0x1f   : > { %s566_s12 = sadd.s32 %s2619_s21, %s564_s10  ;;  %806 = vmatprep.subr.bf16.mxu0 (!%p2625_p8), %v2958_v9  ;;  %849 = vmatprep.subr.bf16.mxu1 (!%p2625_p8), %v2960_v10  ;;  %v2970_v17 = vld [vmem:[%s4299_s2 + $0x84] ss:$16 sps:$4 sm:$0xff] (!%p2625_p8)   ;;  %v2972_v18 = vld [vmem:[%s4299_s2 + $0x8c] ss:$16 sps:$4 sm:$0xff] (!%p2625_p8)   ;;  %v2974_v19 = vld [vmem:[%s4299_s2 + $0x80] ss:$16 sps:$4 sm:$0xff] (!%p2625_p8)  }
  0x20   : > { %s2620_s9 = sshll.u32 %s566_s12, 3  ;;  %v2975_v20 = vld [vmem:[%s4299_s2 + $0x88] ss:$16 sps:$4 sm:$0xff] (!%p2625_p8)   ;;  %v2976_v21 = vld [vmem:[%s4299_s2 + $0xa4] ss:$16 sps:$4 sm:$0xff] (!%p2625_p8)   ;;  %v624_v38 = vsub.s32 (!%p2625_p8), 0, %v623_v37 }
  0x21   : > { %s3408_s26 = scalar_lea.vmem %s4311_s14, %s2620_s9  ;;  %v2978_v22 = vld [vmem:[%s4299_s2 + $0xac] ss:$16 sps:$4 sm:$0xff] (!%p2625_p8)   ;;  %v2980_v23 = vld [vmem:[%s4299_s2 + $0xa0] ss:$16 sps:$4 sm:$0xff] (!%p2625_p8)   ;;  %v2981_v24 = vld [vmem:[%s4299_s2 + $0xa8] ss:$16 sps:$4 sm:$0xff] (!%p2625_p8)  }
  0x22   : > { %807 = vmatpush1.bf16.msra.mxu0 %v2962_v11  ;;  %850 = vmatpush1.bf16.msra.mxu1 %v2963_v12  ;;  %v2982_v25 = vld [vmem:[%s4299_s2 + $0xc4] ss:$16 sps:$4 sm:$0xff]   ;;  %v2984_v26 = vld [vmem:[%s4299_s2 + $0xcc] ss:$16 sps:$4 sm:$0xff]   ;;  %v2986_v27 = vld [vmem:[%s4299_s2 + $0xc0] ss:$16 sps:$4 sm:$0xff]  }
  0x23   : > { %808 = vmatprep.subr.bf16.mxu0 %v2964_v13  ;;  %851 = vmatprep.subr.bf16.mxu1 %v2966_v14  ;;  %v2987_v28 = vld [vmem:[%s4299_s2 + $0xc8] ss:$16 sps:$4 sm:$0xff]   ;;  %v2988_v29 = vld [vmem:[%s4299_s2 + $0xe4] ss:$16 sps:$4 sm:$0xff]   ;;  %v2990_v30 = vld [vmem:[%s4299_s2 + $0xec] ss:$16 sps:$4 sm:$0xff]  }
  0x24   : > { %v2992_v31 = vld [vmem:[%s4299_s2 + $0xe0] ss:$16 sps:$4 sm:$0xff]   ;;  %v2993_v32 = vld [vmem:[%s4299_s2 + $0xe8] ss:$16 sps:$4 sm:$0xff]   ;;  %v632_v39 = vsub.s32 2, %v623_v37  ;;  %v628_v41 = vsub.s32 1, %v623_v37 }
  0x25   : > { %v585_v33 = vld [vmem:[%s3392_s16] sm:$0xff]  ;;  %v586_v34 = vld [vmem:[%s3392_s16 + $0x8] sm:$0xff]  ;;  %v636_v42 = vsub.s32 3, %v623_v37 }
  0x26   : > { %809 = vmatpush1.bf16.msra.mxu0 %v2968_v15  ;;  %852 = vmatpush1.bf16.msra.mxu1 %v2969_v16  ;;  %v587_v35 = vpack.c.bf16 %v586_v34, %v585_v33  ;;  %v620_v40 = vld [vmem:[%s4300_s3] sm:$0xf] }
  0x27   : > { %810 = vmatprep.subr.bf16.mxu0 %v2970_v17  ;;  %853 = vmatprep.subr.bf16.mxu1 %v2972_v18  ;;  %v625_v43 = vrot.slane %v620_v40, %v624_v38  ;;  %v633_v44 = vrot.slane %v620_v40, %v632_v39  ;;  %v629_v45 = vrot.slane %v620_v40, %v628_v41 }
  0x28   : > { %v637_v46 = vrot.slane %v620_v40, %v636_v42 }
  0x2a   : > { %811 = vmatpush1.bf16.msra.mxu0 %v2974_v19  ;;  %854 = vmatpush1.bf16.msra.mxu1 %v2975_v20 }
  0x2b   : > { %812 = vmatprep.subr.bf16.mxu0 %v2976_v21  ;;  %855 = vmatprep.subr.bf16.mxu1 %v2978_v22 }
  0x2e   : > { %813 = vmatpush1.bf16.msra.mxu0 %v2980_v23  ;;  %856 = vmatpush1.bf16.msra.mxu1 %v2981_v24 }
  0x2f   : > { %814 = vmatprep.subr.bf16.mxu0 %v2982_v25  ;;  %857 = vmatprep.subr.bf16.mxu1 %v2984_v26 }
  0x32   : > { %815 = vmatpush1.bf16.msra.mxu0 %v2986_v27  ;;  %858 = vmatpush1.bf16.msra.mxu1 %v2987_v28 }
  0x33   : > { %816 = vmatprep.subr.bf16.mxu0 %v2988_v29  ;;  %859 = vmatprep.subr.bf16.mxu1 %v2990_v30 }
  0x36   : > { %817 = vmatpush1.bf16.msra.mxu0 %v2992_v31  ;;  %860 = vmatpush1.bf16.msra.mxu1 %v2993_v32 }
  0x39   : > { %835 = vmatmul.mubr.bf16.vlgmr.msra.gmra.mrb[0].mxu0 %v587_v35  ;;  %878 = vmatmul.mubr.bf16.vlgmr.msra.gmra.mrb[0].mxu1 %v587_v35 }
 0x10c   : > { %v836_v47 = vpop.f32.mrb[0].mxu0  ;;  %v879_v48 = vpop.f32.mrb[0].mxu1 }
 0x10d   : > { %v837_v49 = vadd.f32 %v836_v47, %v625_v43  ;;  %v880_v50 = vadd.f32 %v879_v48, %v633_v44  ;;  %v838_v51 = vpop.f32.mrb[1].mxu0  ;;  %v881_v52 = vpop.f32.mrb[1].mxu1 }
 0x10e   : > { %v839_v53 = vadd.f32 %v838_v51, %v629_v45  ;;  %v882_v54 = vadd.f32 %v881_v52, %v637_v46  ;;  %v840_v55 = vpop.f32.mrb[2].mxu0  ;;  %v883_v56 = vpop.f32.mrb[2].mxu1 }
 0x10f   : > { %888 = vst [vmem:[#allocation2] sm:$0xff] %v837_v49  ;;  %890 = vst [vmem:[#allocation2 + $0x10] sm:$0xff] %v880_v50  ;;  %v841_v57 = vadd.f32 %v840_v55, %v625_v43  ;;  %v884_v58 = vadd.f32 %v883_v56, %v633_v44  ;;  %v842_v59 = vpop.f32.mrb[3].mxu0  ;;  %v885_v60 = vpop.f32.mrb[3].mxu1 }
 0x110   : > { %889 = vst [vmem:[#allocation2 + $0x8] sm:$0xff] %v839_v53  ;;  %891 = vst [vmem:[#allocation2 + $0x18] sm:$0xff] %v882_v54  ;;  %v843_v61 = vadd.f32 %v842_v59, %v629_v45  ;;  %v886_v62 = vadd.f32 %v885_v60, %v637_v46 }
 0x111   : > { %892 = vst [vmem:[#allocation2 + $0x20] sm:$0xff] %v841_v57  ;;  %894 = vst [vmem:[#allocation2 + $0x30] sm:$0xff] %v884_v58 }
 0x112   : > { %893 = vst [vmem:[#allocation2 + $0x28] sm:$0xff] %v843_v61  ;;  %895 = vst [vmem:[#allocation2 + $0x38] sm:$0xff] %v886_v62 }
 0x113 PF: > { %v2994_v63 = vld [vmem:[%s4301_s4] sm:$0xff]   ;;  %v2995_v0 = vld [vmem:[%s4301_s4 + $0x8] sm:$0xff]   ;;  %v2996_v1 = vld [vmem:[%s4301_s4 + $0x10] sm:$0xff]   ;;  %s901_s17 = sshra.s32 %s3384_s25, 3  ;;  %v3270_v15 = vmov 1966171168   ;;  %v1161_v17 = vlaneseq  ;;  %s2346_s6 = scalar_lea.vmem %s3392_s16, %s3384_s25 }
 0x114   : > { %2840 = vmatprep.subr.bf16.mxu0 %v2994_v63  ;;  %v2997_v2 = vld [vmem:[%s4301_s4 + $0x18] sm:$0xff]   ;;  %v908_v3 = vld [vmem:[%s3397_s13] sm:$0xff]   ;;  %v2999_v5 = vld [vmem:[%s4301_s4 + $0x28] sm:$0xff]   ;;  %v1159_v16 = vunpack.c.l.s4 %v3270_v15  ;;  %s3545_s29 = sshll.u32 %s901_s17, 5  ;;  %s4329_s9 = sld [smem:[#allocation10_spill]]  ;;  %vm1454_vm0 = vcmask 1041409  }
 0x115   : > { %2841 = vmatpush3.bf16.msra.mxu0 %v2994_v63  ;;  %v2998_v4 = vld [vmem:[%s4301_s4 + $0x20] sm:$0xff]   ;;  %2856 = vmatprep.mubr.bf16.mxu0 %v908_v3  ;;  %v3000_v6 = vld [vmem:[%s4301_s4 + $0x30] sm:$0xff]   ;;  %v3001_v7 = vld [vmem:[%s4301_s4 + $0x38] sm:$0xff]   ;;  %v1162_v19 = vshrl.u32 %v1161_v17, 7  ;;  %s905_s27 = scalar_lea.vmem [#allocation2], %s3545_s29  ;;  %vm1456_vm1 = vcmask 1042434  }
 0x116   : > { %2842 = vmatprep.subr.bf16.mxu0 %v2995_v0  ;;  %v910_v8 = vld [vmem:[%s3397_s13 + $0x8] sm:$0xff]   ;;  %v912_v9 = vld [vmem:[%s3397_s13 + $0x10] sm:$0xff]   ;;  %v914_v10 = vld [vmem:[%s3397_s13 + $0x18] sm:$0xff]   ;;  %v1160_v18 = vunpack.c.0.s8 %v1159_v16  ;;  %vm1458_vm2 = vcmask 1043459   ;;  %vm1460_vm3 = vcmask 1044484   ;;  %vm1462_vm4 = vcmask 1045509  }
 0x117   : > { %v916_v11 = vld [vmem:[%s3397_s13 + $0x20] sm:$0xff]   ;;  %v918_v12 = vld [vmem:[%s3397_s13 + $0x28] sm:$0xff]   ;;  %v920_v13 = vld [vmem:[%s3397_s13 + $0x30] sm:$0xff]   ;;  %v3554_v25 = vsub.s32 0, %v1162_v19  ;;  %vm1464_vm5 = vcmask 1046534   ;;  %s4330_s18 = sld [smem:[#allocation13_spill]] }
 0x118   : > { %v922_v14 = vld [vmem:[%s3397_s13 + $0x38] sm:$0xff]   ;;  %v3547_v20 = vsub.s32 %v1160_v18, %v1162_v19  ;;  %v3558_v28 = vld [vmem:[#allocation2 + $0x10] sm:$0xff]  ;;  %v3564_v30 = vld [vmem:[%s4302_s5] ss:$0 sm:$0xff]  ;;  %vm1466_vm6 = vcmask 1047559   ;;  %s4332_s21 = sld [smem:[#allocation11_spill]] }
 0x119   : > { %2843 = vmatpush3.bf16.msra.mxu0 %v2995_v0  ;;  %v907_v21 = vld [vmem:[%s905_s27 + $0x18] sm:$0xff]  ;;  %v3568_v34 = vld [vmem:[#allocation2 + $0x30] sm:$0xff]  ;;  %s4333_s17 = sld [smem:[#allocation12_spill]]  ;;  %s4334_s19 = sld [smem:[#allocation8_spill]] }
 0x11a   : > { %2844 = vmatprep.subr.bf16.mxu0 %v2996_v1  ;;  %v1164_v22 = vrot.slane %v907_v21, %v3547_v20  ;;  %v1157_v57 = vcombine.high %v907_v21, %v907_v21  ;;  %s4335_s24 = sld [smem:[#allocation9_spill]] }
 0x11c   : > { %v1172_v23 = vcombine.high %v1164_v22, %v1164_v22  ;;  %v1180_v26 = vrot.slane %v1164_v22, %v3547_v20  ;;  %v1171_v61 = vrot.slane %v1157_v57, %v3547_v20 }
 0x11d   : > { %2845 = vmatpush3.bf16.msra.mxu0 %v2996_v1  ;;  %s4331_s23 = smov %s4330_s18 }
 0x11e   : > { %2846 = vmatprep.subr.bf16.mxu0 %v2997_v2  ;;  %v1194_v24 = vrot.slane %v1172_v23, %v3547_v20  ;;  %v1209_v29 = vrot.slane %v1180_v26, %v3554_v25  ;;  %v1202_v51 = vcombine.high %v1180_v26, %v1180_v26  ;;  %v1187_v21 = vrot.slane %v1171_v61, %v3547_v20 }
 0x120   : > { %v1213_v27 = vrot.slane %v1194_v24, %v3554_v25  ;;  %v1246_v33 = vadd.f32 %v1209_v29, %v3558_v28  ;;  %v1247_v46 = vadd.f32 %v1209_v29, %v3568_v34  ;;  %v1204_v47 = vcombine.high %v1194_v24, %v1194_v24 }
 0x121   : > { %2847 = vmatpush3.bf16.msra.mxu0 %v2997_v2  ;;  %v1217_v58 = vrot.slane %v1202_v51, %v3554_v25  ;;  %v1225_v26 = vrot.slane %v1187_v21, %v3554_v25 }
 0x122   : > { %2848 = vmatprep.subr.bf16.mxu0 %v2998_v4  ;;  %v1248_v31 = vadd.f32 %v1213_v27, %v3558_v28  ;;  %v1249_v41 = vadd.f32 %v1213_v27, %v3568_v34  ;;  %v1221_v54 = vrot.slane %v1204_v47, %v3554_v25 }
 0x124   : > { %v1253_v60 = vadd.f32 %v1221_v54, %v3568_v34  ;;  %v1252_v0 = vadd.f32 %v1221_v54, %v3558_v28 }
 0x125   : > { %2849 = vmatpush3.bf16.msra.mxu0 %v2998_v4 }
 0x126   : > { %2850 = vmatprep.subr.bf16.mxu0 %v2999_v5 }
 0x129   : > { %2851 = vmatpush3.bf16.msra.mxu0 %v2999_v5 }
 0x12a   : > { %2852 = vmatprep.subr.bf16.mxu0 %v3000_v6 }
 0x12d   : > { %2853 = vmatpush3.bf16.msra.mxu0 %v3000_v6 }
 0x12e   : > { %2854 = vmatprep.subr.bf16.mxu0 %v3001_v7 }
 0x131   : > { %2855 = vmatpush3.bf16.msra.mxu0 %v3001_v7  ;;  %v1251_v7 = vadd.f32 %v1217_v58, %v3568_v34 }
 0x134   : > { %2857 = vmatmul.mubr.bf16.vlgmr.msra.gmra.mrb[0].mxu0 %v910_v8  ;;  %v1173_v8 = vcombine.high %v1171_v61, %v1171_v61 }
 0x135   : > { %2860 = vmatprep.mubr.bf16.mxu0 %v912_v9 }
 0x13c   : > { %2861 = vmatmul.mubr.bf16.gmra.mrb[4].mxu0 %v914_v10 }
 0x13d   : > { %2864 = vmatprep.mubr.bf16.mxu0 %v916_v11 }
 0x144   : > { %2865 = vmatmul.mubr.bf16.gmra.mrb[8].mxu0 %v918_v12  ;;  %v1250_v12 = vadd.f32 %v1217_v58, %v3558_v28 }
 0x145   : > { %2868 = vmatprep.mubr.bf16.mxu0 %v920_v13 }
 0x14c   : > { %2869 = vmatmul.mubr.bf16.gmra.mrb[12].mxu0 %v922_v14  ;;  %v1201_v14 = vrot.slane %v1173_v8, %v3547_v20 }
 0x14e   : > { %v1229_v19 = vrot.slane %v1201_v14, %v3554_v25 }
 0x150   : > { %v1257_v29 = vadd.f32 %v1229_v19, %v3568_v34 }
 0x207   : > { %v2858_v32 = vpop.f32.mrb[0].mxu0 }
 0x208   : > { %v1102_v35 = vadd.f32 %v2858_v32, %v3564_v30  ;;  %v1093_v36 = vpop.f32.mrb[1].mxu0  ;;  %v1256_v32 = vadd.f32 %v1229_v19, %v3558_v28 }
 0x209   : > { %v1094_v37 = vadd.f32 %v3564_v30, %v1093_v36  ;;  %v2859_v38 = vpop.f32.mrb[2].mxu0 }
 0x20a   : > { %v3572_v39 = vadd.f32 %v1248_v31, %v1102_v35  ;;  %v1105_v40 = vadd.f32 %v2859_v38, %v3564_v30  ;;  %v1096_v42 = vpop.f32.mrb[3].mxu0 }
 0x20b   : > { %v3576_v43 = vadd.f32 %v1246_v33, %v1094_v37  ;;  %v1097_v45 = vadd.f32 %v3564_v30, %v1096_v42  ;;  %v1255_v37 = vadd.f32 %v1225_v26, %v3568_v34 }
 0x20c   : > { %1508 = vadd.xlane.f32.xlu1 %v3572_v39  ;;  %v3580_v44 = vadd.f32 %v1249_v41, %v1105_v40  ;;  %v1554_v49 = vmul.f32 %v3572_v39, %v3572_v39  ;;  %v1254_v41 = vadd.f32 %v1225_v26, %v3558_v28 }
 0x20d   : > { %1504 = vadd.xlane.f32.xlu0 %v3576_v43  ;;  %v3587_v53 = vadd.f32 %v1247_v46, %v1097_v45  ;;  %v1552_v2 = vmul.f32 %v3576_v43, %v3576_v43  ;;  %v1205_v45 = vcombine.high %v1201_v14, %v1201_v14 }
 0x20e   : > { %v1555_v56 = vmul.f32 %v3580_v44, %v3580_v44 }
 0x20f   : > { %v2862_v48 = vpop.f32.mrb[4].mxu0  ;;  %v1553_v62 = vmul.f32 %v3587_v53, %v3587_v53  ;;  %v1237_v47 = vrot.slane %v1205_v45, %v3554_v25 }
 0x210   : > { %v1109_v50 = vpop.f32.mrb[5].mxu0  ;;  %1510 = vadd.xlane.f32.xlu1 %v3580_v44  ;;  %v1118_v63 = vadd.f32 %v2862_v48, %v3564_v30  ;;  %v1203_v48 = vcombine.high %v1187_v21, %v1187_v21 }
 0x211   : > { %v2863_v52 = vpop.f32.mrb[6].mxu0  ;;  %1572 = vadd.xlane.f32.xlu0 %v1554_v49  ;;  %v1110_v11 = vadd.f32 %v3564_v30, %v1109_v50  ;;  %v1261_v54 = vadd.f32 %v1237_v47, %v3568_v34  ;;  %v1260_v57 = vadd.f32 %v1237_v47, %v3558_v28 }
 0x212   : > { %v1112_v55 = vpop.f32.mrb[7].mxu0  ;;  %v1121_v59 = vadd.f32 %v2863_v52, %v3564_v30  ;;  %v3607_v10 = vadd.f32 %v1252_v0, %v1118_v63  ;;  %v1233_v51 = vrot.slane %v1203_v48, %v3554_v25 }
 0x213   : > { %v1113_v6 = vadd.f32 %v3564_v30, %v1112_v55  ;;  %v3616_v15 = vadd.f32 %v1250_v12, %v1110_v11 }
 0x214   : > { %1574 = vadd.xlane.f32.xlu1 %v1555_v56  ;;  %v3603_v5 = vadd.f32 %v1253_v60, %v1121_v59  ;;  %v1558_v24 = vmul.f32 %v3607_v10, %v3607_v10  ;;  %v1259_v60 = vadd.f32 %v1233_v51, %v3568_v34  ;;  %v1258_v63 = vadd.f32 %v1233_v51, %v3558_v28  ;;  %v3703_v51 = vld [vmem:[#allocation2 + $0x28] sm:$0xff] }
 0x215   : > { %1506 = vadd.xlane.f32.xlu0 %v3587_v53  ;;  %v3613_v13 = vadd.f32 %v1251_v7, %v1113_v6  ;;  %v1556_v33 = vmul.f32 %v3616_v15, %v3616_v15  ;;  %v2680_v6 = vmul.f32 -1.442695, %v3572_v39  ;;  %v2678_v7 = vmul.f32 -1.442695, %v3576_v43 }
 0x216   : > { %v1559_v23 = vmul.f32 %v3603_v5, %v3603_v5  ;;  %v2684_v8 = vmul.f32 -1.442695, %v3607_v10  ;;  %v2685_v11 = vmul.f32 -1.442695, %v3603_v5 }
 0x217   : > { %v2866_v1 = vpop.f32.mrb[8].mxu0  ;;  %v1557_v31 = vmul.f32 %v3613_v13, %v3613_v13 }
 0x218   : > { %v1125_v3 = vpop.f32.mrb[9].mxu0  ;;  %1570 = vadd.xlane.f32.xlu1 %v1553_v62  ;;  %v1134_v20 = vadd.f32 %v2866_v1, %v3564_v30 }
 0x219   : > { %v2867_v4 = vpop.f32.mrb[10].mxu0  ;;  %1568 = vadd.xlane.f32.xlu0 %v1552_v2  ;;  %v1126_v40 = vadd.f32 %v3564_v30, %v1125_v3  ;;  %v2681_v3 = vmul.f32 -1.442695, %v3580_v44 }
 0x21a   : > { %v1128_v9 = vpop.f32.mrb[11].mxu0  ;;  %v1137_v27 = vadd.f32 %v2867_v4, %v3564_v30  ;;  %v3639_v38 = vadd.f32 %v1256_v32, %v1134_v20  ;;  %v2679_v4 = vmul.f32 -1.442695, %v3587_v53 }
 0x21b   : > { %v1129_v36 = vadd.f32 %v3564_v30, %v1128_v9  ;;  %v3647_v46 = vadd.f32 %v1254_v41, %v1126_v40  ;;  %3027 = vpow2.f32 %v2681_v3  ;;  %v2682_v9 = vmul.f32 -1.442695, %v3616_v15 }
 0x21c   : > { %1518 = vadd.xlane.f32.xlu1 %v3603_v5  ;;  %v3635_v35 = vadd.f32 %v1257_v29, %v1137_v27  ;;  %v1562_v50 = vmul.f32 %v3639_v38, %v3639_v38  ;;  %3029 = vpow2.f32 %v2679_v4 }
 0x21d   : > { %1516 = vadd.xlane.f32.xlu0 %v3607_v10  ;;  %v3645_v42 = vadd.f32 %v1255_v37, %v1129_v36  ;;  %v1560_v58 = vmul.f32 %v3647_v46, %v3647_v46  ;;  %3031 = vpow2.f32 %v2680_v6  ;;  %v2686_v27 = vmul.f32 -1.442695, %v3647_v46 }
 0x21e   : > { %v1563_v49 = vmul.f32 %v3635_v35, %v3635_v35  ;;  %3033 = vpow2.f32 %v2678_v7 }
 0x21f   : > { %v2870_v16 = vpop.f32.mrb[12].mxu0  ;;  %v1561_v55 = vmul.f32 %v3645_v42, %v3645_v42  ;;  %3035 = vpow2.f32 %v2684_v8  ;;  %v2687_v32 = vmul.f32 -1.442695, %v3645_v42 }
 0x220   : > { %v1141_v17 = vpop.f32.mrb[13].mxu0  ;;  %1514 = vadd.xlane.f32.xlu1 %v3613_v13  ;;  %v1150_v56 = vadd.f32 %v2870_v16, %v3564_v30  ;;  %v2683_v16 = vmul.f32 -1.442695, %v3613_v13  ;;  %3037 = vpow2.f32 %v2682_v9 }
 0x221   : > { %v2871_v18 = vpop.f32.mrb[14].mxu0  ;;  %1512 = vadd.xlane.f32.xlu0 %v3616_v15  ;;  %v1142_v62 = vadd.f32 %v3564_v30, %v1141_v17  ;;  %3039 = vpow2.f32 %v2685_v11 }
 0x222   : > { %v1144_v22 = vpop.f32.mrb[15].mxu0  ;;  %v1153_v52 = vadd.f32 %v2871_v18, %v3564_v30  ;;  %v3669_v61 = vadd.f32 %v1260_v57, %v1150_v56  ;;  %3041 = vpow2.f32 %v2683_v16  ;;  %v3707_v57 = vld [vmem:[#allocation2 + $0x8] sm:$0xff] }
 0x223   : > { %v1145_v25 = vadd.f32 %v3564_v30, %v1144_v22  ;;  %v3677_v1 = vadd.f32 %v1258_v63, %v1142_v62 }
 0x224   : > { %1582 = vadd.xlane.f32.xlu1 %v1559_v23  ;;  %v3665_v59 = vadd.f32 %v1261_v54, %v1153_v52  ;;  %v1566_v2 = vmul.f32 %v3669_v61, %v3669_v61  ;;  %v2692_v62 = vmul.f32 -1.442695, %v3669_v61 }
 0x225   : > { %1580 = vadd.xlane.f32.xlu0 %v1558_v24  ;;  %v3675_v0 = vadd.f32 %v1259_v60, %v1145_v25  ;;  %v1564_v30 = vmul.f32 %v3677_v1, %v3677_v1  ;;  %v3028_v12 = vpop.eup %3027  ;;  %v2688_v24 = vmul.f32 -1.442695, %v3639_v38 }
 0x226   : > { %v1567_v28 = vmul.f32 %v3665_v59, %v3665_v59  ;;  %v3030_v14 = vpop.eup %3029  ;;  %v1329_v19 = vadd.f32 1.0, %v3028_v12  ;;  %v2693_v16 = vmul.f32 -1.442695, %v3665_v59 }
 0x227   : > { %v1565_v34 = vmul.f32 %v3675_v0, %v3675_v0  ;;  %v3032_v17 = vpop.eup %3031  ;;  %v1327_v21 = vadd.f32 1.0, %v3030_v14 }
 0x228   : > { %1578 = vadd.xlane.f32.xlu1 %v1557_v31  ;;  %v3034_v18 = vpop.eup %3033  ;;  %v1328_v22 = vadd.f32 1.0, %v3032_v17  ;;  %3043 = vrcp.f32 %v1329_v19  ;;  %v2689_v31 = vmul.f32 -1.442695, %v3635_v35  ;;  %v2691_v17 = vmul.f32 -1.442695, %v3675_v0 }
 0x229   : > { %1576 = vadd.xlane.f32.xlu0 %v1556_v33  ;;  %v1326_v23 = vadd.f32 1.0, %v3034_v18  ;;  %3045 = vrcp.f32 %v1327_v21  ;;  %v3036_v26 = vpop.eup %3035 }
 0x22a   : > { %3047 = vrcp.f32 %v1328_v22  ;;  %v3038_v29 = vpop.eup %3037  ;;  %v1332_v36 = vadd.f32 1.0, %v3036_v26 }
 0x22b   : > { %3049 = vrcp.f32 %v1326_v23  ;;  %v3040_v20 = vpop.eup %3039  ;;  %v1330_v41 = vadd.f32 1.0, %v3038_v29 }
 0x22c   : > { %1526 = vadd.xlane.f32.xlu1 %v3635_v35  ;;  %3051 = vpow2.f32 %v2688_v24  ;;  %v3042_v40 = vpop.eup %3041  ;;  %v1333_v47 = vadd.f32 1.0, %v3040_v20 }
 0x22d   : > { %1524 = vadd.xlane.f32.xlu0 %v3639_v38  ;;  %3053 = vpow2.f32 %v2686_v27  ;;  %v1331_v52 = vadd.f32 1.0, %v3042_v40 }
 0x22e   : > { %3055 = vpow2.f32 %v2689_v31 }
 0x22f   : > { %3057 = vpow2.f32 %v2687_v32 }
 0x230   : > { %1522 = vadd.xlane.f32.xlu1 %v3645_v42  ;;  %3059 = vrcp.f32 %v1332_v36 }
 0x231   : > { %1520 = vadd.xlane.f32.xlu0 %v3647_v46  ;;  %3061 = vrcp.f32 %v1330_v41 }
 0x232   : > { %v3044_v48 = vpop.eup %3043  ;;  %3063 = vrcp.f32 %v1333_v47 }
 0x233   : > { %v1377_v63 = vmul.f32 %v3044_v48, %v3703_v51  ;;  %3065 = vrcp.f32 %v1331_v52 }
 0x234   : > { %1590 = vadd.xlane.f32.xlu1 %v1563_v49  ;;  %3067 = vpow2.f32 %v2692_v62 }
 0x235   : > { %1588 = vadd.xlane.f32.xlu0 %v1562_v50  ;;  %v3046_v50 = vpop.eup %3045 }
 0x236   : > { %v3048_v56 = vpop.eup %3047 }
 0x237   : > { %v3050_v60 = vpop.eup %3049  ;;  %v1376_v3 = vmul.f32 %v3048_v56, %v3707_v57 }
 0x238   : > { %1586 = vadd.xlane.f32.xlu1 %v1561_v55  ;;  %v1374_v8 = vmul.f32 %v3050_v60, %v3707_v57  ;;  %v3052_v14 = vpop.eup %3051 }
 0x239   : > { %1584 = vadd.xlane.f32.xlu0 %v1560_v58  ;;  %v3054_v19 = vpop.eup %3053  ;;  %v1397_v21 = vadd.f32 %v1377_v63, %v1376_v3 }
 0x23a   : > { %v3056_v27 = vpop.eup %3055  ;;  %v1334_v41 = vadd.f32 1.0, %v3054_v19 }
 0x23b   : > { %v3058_v32 = vpop.eup %3057 }
 0x23c   : > { %1534 = vadd.xlane.f32.xlu1 %v3665_v59  ;;  %v3060_v40 = vpop.eup %3059 }
 0x23d   : > { %1532 = vadd.xlane.f32.xlu0 %v3669_v61 }
 0x240   : > { %1530 = vadd.xlane.f32.xlu1 %v3675_v0 }
 0x241   : > { %1528 = vadd.xlane.f32.xlu0 %v3677_v1 }
 0x244   : > { %1594 = vadd.xlane.f32.xlu1 %v1565_v34  ;;  %v1375_v34 = vmul.f32 %v3046_v50, %v3703_v51  ;;  %v1398_v50 = vrot.slane %v1397_v21, 4 }
 0x245   : > { %1592 = vadd.xlane.f32.xlu0 %v1564_v30  ;;  %v2690_v30 = vmul.f32 -1.442695, %v3677_v1 }
 0x246   : > { %v1390_v22 = vadd.f32 %v1375_v34, %v1374_v8  ;;  %v1337_v34 = vadd.f32 1.0, %v3056_v27 }
 0x247   : > { %3069 = vpow2.f32 %v2690_v30 }
 0x248   : > { %1598 = vadd.xlane.f32.xlu1 %v1567_v28  ;;  %v1391_v52 = vrot.slane %v1390_v22, 4 }
 0x249   : > { %1596 = vadd.xlane.f32.xlu0 %v1566_v2 }
 0x299   : > { %v1509_v33 = vpop.xlane.xlu1 %1508 }
 0x29a   : > { %v1505_v37 = vpop.xlane.xlu0 %1504  ;;  %v3701_v45 = vmul.f32 0.0078125, %v1509_v33  ;;  %v1336_v33 = vadd.f32 1.0, %v3052_v14  ;;  %v1380_v14 = vmul.f32 %v3060_v40, %v3707_v57 }
 0x29b   : > { %v3719_v9 = vmul.f32 0.0078125, %v1505_v37 }
 0x29c   : > { %v1618_v58 = vmul.f32 %v3701_v45, %v3701_v45 }
 0x29d   : > { %v1511_v49 = vpop.xlane.xlu1 %1510  ;;  %v1616_v36 = vmul.f32 %v3719_v9, %v3719_v9 }
 0x29e   : > { %v3705_v54 = vmul.f32 0.0078125, %v1511_v49  ;;  %v1573_v55 = vpop.xlane.xlu0 %1572  ;;  %v3062_v49 = vpop.eup %3061 }
 0x29f   : > { %v1602_v25 = vmul.f32 0.0078125, %v1573_v55 }
 0x2a0   : > { %v1619_v4 = vmul.f32 %v3705_v54, %v3705_v54 }
 0x2a1   : > { %v1634_v28 = vsub.f32 %v1602_v25, %v1618_v58  ;;  %v1575_v2 = vpop.xlane.xlu1 %1574  ;;  %v3064_v58 = vpop.eup %3063 }
 0x2a2   : > { %v1603_v6 = vmul.f32 0.0078125, %v1575_v2  ;;  %v1507_v7 = vpop.xlane.xlu0 %1506  ;;  %v3066_v63 = vpop.eup %3065  ;;  %v1381_v19 = vmul.f32 %v3064_v58, %v3703_v51 }
 0x2a3   : > { %v1650_v11 = vmax.f32 %v1634_v28, 0.0  ;;  %v3721_v12 = vmul.f32 0.0078125, %v1507_v7  ;;  %v1335_v28 = vadd.f32 1.0, %v3058_v32  ;;  %v3068_v7 = vpop.eup %3067 }
 0x2a4   : > { %v1635_v18 = vsub.f32 %v1603_v6, %v1619_v4  ;;  %v3729_v4 = vadd.f32 %v1391_v52, %v1390_v22  ;;  %v3731_v6 = vadd.f32 %v1398_v50, %v1397_v21  ;;  %v1666_v21 = vsub.f32 %v3572_v39, %v3701_v45 }
 0x2a5   : > { %v1682_v23 = vadd.f32 1e-05, %v1650_v11  ;;  %v1617_v24 = vmul.f32 %v3721_v12, %v3721_v12  ;;  %v1571_v26 = vpop.xlane.xlu1 %1570  ;;  %v1340_v50 = vadd.f32 1.0, %v3068_v7 }
 0x2a6   : > { %v1651_v29 = vmax.f32 %v1635_v18, 0.0  ;;  %v1601_v31 = vmul.f32 0.0078125, %v1571_v26  ;;  %v1569_v20 = vpop.xlane.xlu0 %1568  ;;  %v1378_v18 = vmul.f32 %v3062_v49, %v3707_v57  ;;  %v3746_v26 = vld [vmem:[%s4305_s8] ss:$0 sm:$0xff]  ;;  %v1393_v27 = vrot.slane %v3729_v4, 2 }
 0x2a7   : > { %3071 = vrsqrt.f32 %v1682_v23  ;;  %v1600_v37 = vmul.f32 0.0078125, %v1569_v20  ;;  %v1379_v23 = vmul.f32 %v3066_v63, %v3703_v51 }
 0x2a8   : > { %3073 = vpow2.f32 %v2693_v16  ;;  %v1683_v47 = vadd.f32 1e-05, %v1651_v29  ;;  %v1633_v48 = vsub.f32 %v1601_v31, %v1617_v24  ;;  %v1400_v29 = vrot.slane %v3731_v6, 2 }
 0x2a9   : > { %3075 = vpow2.f32 %v2691_v17  ;;  %v1632_v55 = vsub.f32 %v1600_v37, %v1616_v36  ;;  %v1519_v56 = vpop.xlane.xlu1 %1518  ;;  %v3070_v17 = vpop.eup %3069  ;;  %v1667_v37 = vsub.f32 %v3580_v44, %v3705_v54  ;;  %v1665_v54 = vsub.f32 %v3587_v53, %v3721_v12 }
 0x2aa   : > { %3077 = vrsqrt.f32 %v1683_v47  ;;  %v1649_v25 = vmax.f32 %v1633_v48, 0.0  ;;  %v1517_v60 = vpop.xlane.xlu0 %1516  ;;  %v3733_v8 = vmul.f32 0.0078125, %v1519_v56  ;;  %v3763_v48 = vld [vmem:[%s4329_s9] ss:$0 sm:$0xff]  ;;  %v3766_v56 = vadd.f32 %v1381_v19, %v1380_v14 }
 0x2ab   : > { %3079 = vrcp.f32 %v1336_v33  ;;  %v1648_v62 = vmax.f32 %v1632_v55, 0.0  ;;  %v3736_v16 = vmul.f32 0.0078125, %v1517_v60  ;;  %v1338_v44 = vadd.f32 1.0, %v3070_v17 }
 0x2ac   : > { %3081 = vrcp.f32 %v1334_v41  ;;  %v1681_v30 = vadd.f32 1e-05, %v1649_v25  ;;  %v1623_v20 = vmul.f32 %v3733_v8, %v3733_v8  ;;  %v1664_v12 = vsub.f32 %v3576_v43, %v3719_v9 }
 0x2ad   : > { %v1680_v2 = vadd.f32 1e-05, %v1648_v62  ;;  %v1515_v3 = vpop.xlane.xlu1 %1514  ;;  %v1622_v40 = vmul.f32 %v3736_v16, %v3736_v16 }
 0x2ae   : > { %3083 = vrsqrt.f32 %v1681_v30  ;;  %v1513_v11 = vpop.xlane.xlu0 %1512  ;;  %v3752_v32 = vmul.f32 0.0078125, %v1515_v3 }
 0x2af   : > { %3085 = vrsqrt.f32 %v1680_v2  ;;  %v3758_v41 = vmul.f32 0.0078125, %v1513_v11 }
 0x2b0   : > { %3087 = vrcp.f32 %v1337_v34  ;;  %v1621_v34 = vmul.f32 %v3752_v32, %v3752_v32 }
 0x2b1   : > { %v3072_v22 = vpop.eup %3071  ;;  %3089 = vrcp.f32 %v1335_v28  ;;  %v1583_v24 = vpop.xlane.xlu1 %1582  ;;  %v1620_v7 = vmul.f32 %v3758_v41, %v3758_v41 }
 0x2b2   : > { %v3074_v31 = vpop.eup %3073  ;;  %v1607_v39 = vmul.f32 0.0078125, %v1583_v24  ;;  %v1581_v45 = vpop.xlane.xlu0 %1580  ;;  %v1714_v33 = vmul.f32 %v3072_v22, %v1666_v21 }
 0x2b3   : > { %v3076_v36 = vpop.eup %3075  ;;  %v1606_v47 = vmul.f32 0.0078125, %v1581_v45 }
 0x2b4   : > { %v3078_v49 = vpop.eup %3077  ;;  %v1639_v52 = vsub.f32 %v1607_v39, %v1623_v20  ;;  %v1736_v55 = vmul.f32 %v3746_v26, %v1714_v33 }
 0x2b5   : > { %v3080_v58 = vpop.eup %3079  ;;  %v1638_v25 = vsub.f32 %v1606_v47, %v1622_v40  ;;  %v1579_v60 = vpop.xlane.xlu1 %1578  ;;  %v1715_v62 = vmul.f32 %v3078_v49, %v1667_v37  ;;  %v3781_v47 = vadd.f32 %v1379_v23, %v1378_v18 }
 0x2b6   : > { %v3082_v63 = vpop.eup %3081  ;;  %v1655_v30 = vmax.f32 %v1639_v52, 0.0  ;;  %v1605_v28 = vmul.f32 0.0078125, %v1579_v60  ;;  %v1577_v2 = vpop.xlane.xlu0 %1576  ;;  %v1758_v3 = vadd.f32 %v3763_v48, %v1736_v55  ;;  %v1341_v55 = vadd.f32 1.0, %v3074_v31 }
 0x2b7   : > { %v1654_v11 = vmax.f32 %v1638_v25, 0.0  ;;  %v1604_v14 = vmul.f32 0.0078125, %v1577_v2  ;;  %v1737_v17 = vmul.f32 %v3746_v26, %v1715_v62  ;;  %v1339_v62 = vadd.f32 1.0, %v3076_v36 }
 0x2b8   : > { %v3084_v53 = vpop.eup %3083  ;;  %v1687_v19 = vadd.f32 1e-05, %v1655_v30  ;;  %v1637_v21 = vsub.f32 %v1605_v28, %v1621_v34  ;;  %v3778_v22 = vmax.f32 %v1758_v3, 0.0  ;;  %v3792_v31 = vadd.f32 %v1400_v29, %v3731_v6 }
 0x2b9   : > { %v3086_v24 = vpop.eup %3085  ;;  %v1686_v20 = vadd.f32 1e-05, %v1654_v11  ;;  %v1636_v39 = vsub.f32 %v1604_v14, %v1620_v7  ;;  %v1527_v45 = vpop.xlane.xlu1 %1526  ;;  %v1759_v33 = vadd.f32 %v3763_v48, %v1737_v17  ;;  %v1713_v37 = vmul.f32 %v3084_v53, %v1665_v54 }
 0x2ba   : > { %v3088_v40 = vpop.eup %3087  ;;  %3091 = vrsqrt.f32 %v1687_v19  ;;  %v1653_v49 = vmax.f32 %v1637_v21, 0.0  ;;  %1794 = vadd.xlane.f32.xlu0 %v3778_v22  ;;  %v1525_v52 = vpop.xlane.xlu0 %1524  ;;  %v1712_v43 = vmul.f32 %v3086_v24, %v1664_v12  ;;  %v3794_v28 = vmul.f32 0.0078125, %v1527_v45 }
 0x2bb   : > { %v3090_v9 = vpop.eup %3089  ;;  %3093 = vrsqrt.f32 %v1686_v20  ;;  %v1652_v25 = vmax.f32 %v1636_v39, 0.0  ;;  %v3784_v60 = vmax.f32 %v1759_v33, 0.0  ;;  %v1735_v54 = vmul.f32 %v3746_v26, %v1713_v37 }
 0x2bc   : > { %3095 = vrcp.f32 %v1340_v50  ;;  %v1685_v34 = vadd.f32 1e-05, %v1653_v49  ;;  %v1734_v30 = vmul.f32 %v3746_v26, %v1712_v43  ;;  %v3802_v2 = vmul.f32 0.0078125, %v1525_v52 }
 0x2bd   : > { %3097 = vrcp.f32 %v1338_v44  ;;  %v1684_v18 = vadd.f32 1e-05, %v1652_v25  ;;  %1796 = vadd.xlane.f32.xlu1 %v3784_v60  ;;  %v1523_v23 = vpop.xlane.xlu1 %1522  ;;  %v1757_v36 = vadd.f32 %v3763_v48, %v1735_v54  ;;  %v3800_v44 = vadd.f32 %v1393_v27, %v3729_v4 }
 0x2be   : > { %3099 = vrsqrt.f32 %v1685_v34  ;;  %v1521_v50 = vpop.xlane.xlu0 %1520  ;;  %v1756_v3 = vadd.f32 %v3763_v48, %v1734_v30  ;;  %v1412_v7 = vrot.slane %v3766_v56, 4  ;;  %v3809_v29 = vmul.f32 %v3080_v58, %v3707_v57 }
 0x2bf   : > { %3101 = vrcp.f32 %v1341_v55  ;;  %v3806_v6 = vmax.f32 %v1757_v36, 0.0  ;;  %v1405_v11 = vrot.slane %v3781_v47, 4  ;;  %v3813_v14 = vmul.f32 %v3082_v63, %v3707_v57 }
 0x2c0   : > { %3103 = vrcp.f32 %v1339_v62  ;;  %v3815_v4 = vmul.f32 0.0078125, %v1523_v23  ;;  %v3817_v17 = vmax.f32 %v1756_v3, 0.0  ;;  %v1627_v53 = vmul.f32 %v3794_v28, %v3794_v28 }
 0x2c1   : > { %3105 = vrsqrt.f32 %v1684_v18  ;;  %v1591_v27 = vpop.xlane.xlu1 %1590  ;;  %v3821_v12 = vmul.f32 0.0078125, %v1521_v50  ;;  %1792 = vadd.xlane.f32.xlu1 %v3806_v6  ;;  %v1385_v21 = vmul.f32 %v3088_v40, %v3703_v51  ;;  %v1383_v63 = vmul.f32 %v3090_v9, %v3703_v51 }
 0x2c2   : > { %v1611_v19 = vmul.f32 0.0078125, %v1591_v27  ;;  %v1589_v58 = vpop.xlane.xlu0 %1588  ;;  %v1671_v24 = vsub.f32 %v3603_v5, %v3733_v8  ;;  %v1626_v20 = vmul.f32 %v3802_v2, %v3802_v2  ;;  %1790 = vadd.xlane.f32.xlu0 %v3817_v17  ;;  %v1670_v33 = vsub.f32 %v3607_v10, %v3736_v16 }
 0x2c3   : > { %v1610_v39 = vmul.f32 0.0078125, %v1589_v58  ;;  %v1669_v37 = vsub.f32 %v3613_v13, %v3752_v32  ;;  %v1841_v40 = vmul.f32 %v3784_v60, %v3784_v60  ;;  %v1625_v5 = vmul.f32 %v3815_v4, %v3815_v4 }
 0x2c4   : > { %v3092_v45 = vpop.eup %3091  ;;  %v1643_v49 = vsub.f32 %v1611_v19, %v1627_v53  ;;  %v1840_v9 = vmul.f32 %v3778_v22, %v3778_v22  ;;  %v1624_v10 = vmul.f32 %v3821_v12, %v3821_v12  ;;  %v1839_v23 = vmul.f32 %v3806_v6, %v3806_v6 }
 0x2c5   : > { %v3094_v52 = vpop.eup %3093  ;;  %v1642_v8 = vsub.f32 %v1610_v39, %v1626_v20  ;;  %v1587_v43 = vpop.xlane.xlu1 %1586  ;;  %v1719_v55 = vmul.f32 %v3092_v45, %v1671_v24  ;;  %1860 = vadd.xlane.f32.xlu1 %v1841_v40  ;;  %v1838_v27 = vmul.f32 %v3817_v17, %v3817_v17 }
 0x2c6   : > { %v3096_v25 = vpop.eup %3095  ;;  %v1659_v16 = vmax.f32 %v1643_v49, 0.0  ;;  %v1609_v13 = vmul.f32 0.0078125, %v1587_v43  ;;  %v1585_v32 = vpop.xlane.xlu0 %1584  ;;  %v1718_v62 = vmul.f32 %v3094_v52, %v1670_v33  ;;  %1858 = vadd.xlane.f32.xlu0 %v1840_v9 }
 0x2c7   : > { %v3098_v34 = vpop.eup %3097  ;;  %v1658_v54 = vmax.f32 %v1642_v8, 0.0  ;;  %v1608_v18 = vmul.f32 0.0078125, %v1585_v32  ;;  %v1741_v30 = vmul.f32 %v3746_v26, %v1719_v55  ;;  %v3857_v55 = vadd.f32 %v1385_v21, %v3809_v29 }
 0x2c8   : > { %v3100_v50 = vpop.eup %3099  ;;  %v1691_v36 = vadd.f32 1e-05, %v1659_v16  ;;  %v1641_v3 = vsub.f32 %v1609_v13, %v1625_v5  ;;  %v1740_v53 = vmul.f32 %v3746_v26, %v1718_v62  ;;  %v3852_v5 = vadd.f32 %v1405_v11, %v3781_v47 }
 0x2c9   : > { %v3102_v19 = vpop.eup %3101  ;;  %v1690_v58 = vadd.f32 1e-05, %v1658_v54  ;;  %v1640_v24 = vsub.f32 %v1608_v18, %v1624_v10  ;;  %v1535_v20 = vpop.xlane.xlu1 %1534  ;;  %v1763_v39 = vadd.f32 %v3763_v48, %v1741_v30  ;;  %v1717_v45 = vmul.f32 %v3100_v50, %v1669_v37  ;;  %1856 = vadd.xlane.f32.xlu1 %v1839_v23 }
 0x2ca   : > { %v3104_v33 = vpop.eup %3103  ;;  %3107 = vrsqrt.f32 %v1691_v36  ;;  %v1657_v49 = vmax.f32 %v1641_v3, 0.0  ;;  %v1533_v40 = vpop.xlane.xlu0 %1532  ;;  %v1762_v52 = vadd.f32 %v3763_v48, %v1740_v53  ;;  %1854 = vadd.xlane.f32.xlu0 %v1838_v27  ;;  %v1668_v37 = vsub.f32 %v3616_v15, %v3758_v41 }
 0x2cb   : > { %v3106_v8 = vpop.eup %3105  ;;  %3109 = vrsqrt.f32 %v1690_v58  ;;  %v1656_v43 = vmax.f32 %v1640_v24, 0.0  ;;  %v3854_v9 = vmax.f32 %v1763_v39, 0.0  ;;  %v3864_v13 = vadd.f32 %v1383_v63, %v3813_v14 }
 0x2cc   : > { %v1689_v10 = vadd.f32 1e-05, %v1657_v49  ;;  %v3861_v16 = vmax.f32 %v1762_v52, 0.0  ;;  %v1739_v32 = vmul.f32 %v3746_v26, %v1717_v45  ;;  %v1386_v62 = vmul.f32 %v3098_v34, %v3707_v57 }
 0x2cd   : > { %v1688_v47 = vadd.f32 1e-05, %v1656_v43  ;;  %v1531_v11 = vpop.xlane.xlu1 %1530  ;;  %v1387_v54 = vmul.f32 %v3104_v33, %v3703_v51  ;;  %1804 = vadd.xlane.f32.xlu1 %v3854_v9  ;;  %v1716_v41 = vmul.f32 %v3106_v8, %v1668_v37  ;;  %v3875_v14 = vadd.f32 %v1412_v7, %v3766_v56 }
 0x2ce   : > { %3111 = vrsqrt.f32 %v1689_v10  ;;  %v3869_v29 = vmul.f32 0.0078125, %v1531_v11  ;;  %v1529_v15 = vpop.xlane.xlu0 %1528  ;;  %1802 = vadd.xlane.f32.xlu0 %v3861_v16  ;;  %v1761_v63 = vadd.f32 %v3763_v48, %v1739_v32  ;;  %v1407_v34 = vrot.slane %v3852_v5, 2 }
 0x2cf   : > { %3113 = vrsqrt.f32 %v1688_v47  ;;  %v3878_v21 = vmul.f32 0.0078125, %v1529_v15  ;;  %v1738_v18 = vmul.f32 %v3746_v26, %v1716_v41  ;;  %v3884_v23 = vmul.f32 %v3096_v25, %v3707_v57 }
 0x2d0   : > { %v1419_v30 = vrot.slane %v3864_v13, 4  ;;  %v1426_v50 = vrot.slane %v3857_v55, 4  ;;  %v3888_v56 = vmul.f32 0.0078125, %v1535_v20  ;;  %v3890_v36 = vmax.f32 %v1761_v63, 0.0 }
 0x2d1   : > { %v1595_v7 = vpop.xlane.xlu1 %1594  ;;  %v1389_v3 = vmul.f32 %v3102_v19, %v3703_v51  ;;  %v3893_v27 = vadd.f32 %v1387_v54, %v1386_v62  ;;  %v3895_v53 = vmul.f32 0.0078125, %v1533_v40  ;;  %v1629_v58 = vmul.f32 %v3869_v29, %v3869_v29 }
 0x2d2   : > { %v1613_v57 = vmul.f32 0.0078125, %v1595_v7  ;;  %v1760_v25 = vadd.f32 %v3763_v48, %v1738_v18  ;;  %v1593_v24 = vpop.xlane.xlu0 %1592  ;;  %v1675_v20 = vsub.f32 %v3635_v35, %v3794_v28  ;;  %v1674_v39 = vsub.f32 %v3639_v38, %v3802_v2  ;;  %1800 = vadd.xlane.f32.xlu1 %v3890_v36 }
 0x2d3   : > { %v1628_v51 = vmul.f32 %v3878_v21, %v3878_v21  ;;  %v1612_v19 = vmul.f32 0.0078125, %v1593_v24  ;;  %v1673_v33 = vsub.f32 %v3645_v42, %v3815_v4  ;;  %v1672_v49 = vsub.f32 %v3647_v46, %v3821_v12 }
 0x2d4   : > { %v3108_v45 = vpop.eup %3107  ;;  %v1645_v40 = vsub.f32 %v1613_v57, %v1629_v58  ;;  %v3911_v52 = vmax.f32 %v1760_v25, 0.0  ;;  %v1631_v38 = vmul.f32 %v3888_v56, %v3888_v56  ;;  %v1845_v8 = vmul.f32 %v3854_v9, %v3854_v9 }
 0x2d5   : > { %v3110_v35 = vpop.eup %3109  ;;  %v1644_v28 = vsub.f32 %v1612_v19, %v1628_v51  ;;  %v1599_v2 = vpop.xlane.xlu1 %1598  ;;  %v1723_v43 = vmul.f32 %v3108_v45, %v1675_v20  ;;  %v1630_v37 = vmul.f32 %v3895_v53, %v3895_v53  ;;  %v1844_v47 = vmul.f32 %v3861_v16, %v3861_v16 }
 0x2d6   : > { %v1661_v42 = vmax.f32 %v1645_v40, 0.0  ;;  %1798 = vadd.xlane.f32.xlu0 %v3911_v52  ;;  %v1615_v46 = vmul.f32 0.0078125, %v1599_v2  ;;  %v1597_v4 = vpop.xlane.xlu0 %1596  ;;  %v1722_v12 = vmul.f32 %v3110_v35, %v1674_v39  ;;  %1868 = vadd.xlane.f32.xlu1 %v1845_v8  ;;  %v1843_v41 = vmul.f32 %v3890_v36, %v3890_v36 }
 0x2d7   : > { %v1660_v10 = vmax.f32 %v1644_v28, 0.0  ;;  %v1614_v11 = vmul.f32 0.0078125, %v1597_v4  ;;  %v1745_v32 = vmul.f32 %v3746_v26, %v1723_v43  ;;  %v1842_v35 = vmul.f32 %v3911_v52, %v3911_v52 }
 0x2d8   : > { %v3112_v62 = vpop.eup %3111  ;;  %v1693_v54 = vadd.f32 1e-05, %v1661_v42  ;;  %v1647_v15 = vsub.f32 %v1615_v46, %v1631_v38  ;;  %v1744_v63 = vmul.f32 %v3746_v26, %v1722_v12  ;;  %v1433_v8 = vrot.slane %v3893_v27, 4 }
 0x2d9   : > { %v3114_v18 = vpop.eup %3113  ;;  %v1692_v7 = vadd.f32 1e-05, %v1660_v10  ;;  %v1646_v58 = vsub.f32 %v1614_v11, %v1630_v37  ;;  %v1767_v57 = vadd.f32 %v3763_v48, %v1745_v32  ;;  %v1721_v25 = vmul.f32 %v3112_v62, %v1673_v33 }
 0x2da   : > { %3115 = vrsqrt.f32 %v1693_v54  ;;  %v1663_v24 = vmax.f32 %v1647_v15, 0.0  ;;  %1866 = vadd.xlane.f32.xlu0 %v1844_v47  ;;  %v1766_v20 = vadd.f32 %v3763_v48, %v1744_v63  ;;  %v1720_v39 = vmul.f32 %v3114_v18, %v1672_v49  ;;  %1864 = vadd.xlane.f32.xlu1 %v1843_v41 }
 0x2db   : > { %3117 = vrsqrt.f32 %v1692_v7  ;;  %v1662_v51 = vmax.f32 %v1646_v58, 0.0  ;;  %v3928_v19 = vmax.f32 %v1767_v57, 0.0  ;;  %v1743_v45 = vmul.f32 %v3746_v26, %v1721_v25 }
 0x2dc   : > { %v1695_v40 = vadd.f32 1e-05, %v1663_v24  ;;  %v1742_v38 = vmul.f32 %v3746_v26, %v1720_v39  ;;  %v1439_v33 = vadd.f32 %v1389_v3, %v3884_v23  ;;  %v1420_v49 = vadd.f32 %v1419_v30, %v3864_v13 }
 0x2dd   : > { %v1694_v28 = vadd.f32 1e-05, %v1662_v51  ;;  %v1765_v2 = vadd.f32 %v3763_v48, %v1743_v45  ;;  %v3940_v43 = vmax.f32 %v1766_v20, 0.0  ;;  %v1414_v42 = vrot.slane %v3875_v14, 2 }
 0x2de   : > { %3119 = vrsqrt.f32 %v1695_v40  ;;  %1862 = vadd.xlane.f32.xlu0 %v1842_v35  ;;  %v1764_v37 = vadd.f32 %v3763_v48, %v1742_v38  ;;  %1812 = vadd.xlane.f32.xlu1 %v3928_v19  ;;  %v1408_v3 = vadd.f32 %v1407_v34, %v3852_v5  ;;  %v1427_v13 = vadd.f32 %v1426_v50, %v3857_v55 }
 0x2df   : > { %3121 = vrsqrt.f32 %v1694_v28  ;;  %v3945_v23 = vmax.f32 %v1765_v2, 0.0  ;;  %v1440_v30 = vrot.slane %v1439_v33, 4  ;;  %v1421_v46 = vrot.slane %v1420_v49, 2 }
 0x2e0   : > { %v1434_v4 = vadd.f32 %v1433_v8, %v3893_v27  ;;  %v3955_v12 = vmax.f32 %v1764_v37, 0.0  ;;  %v1395_v10 = vrot.slane %v3800_v44, 1  ;;  %v1402_v47 = vrot.slane %v3792_v31, 1 }
 0x2e1   : > { %v1415_v11 = vadd.f32 %v1414_v42, %v3875_v14  ;;  %v1409_v5 = vrot.slane %v1408_v3, 1  ;;  %v1428_v34 = vrot.slane %v1427_v13, 2  ;;  %v1441_v55 = vadd.f32 %v1440_v30, %v1439_v33 }
 0x2e2   : > { %1810 = vadd.xlane.f32.xlu0 %v3940_v43  ;;  %1808 = vadd.xlane.f32.xlu1 %v3945_v23  ;;  %v1677_v27 = vsub.f32 %v3675_v0, %v3869_v29  ;;  %v1849_v62 = vmul.f32 %v3928_v19, %v3928_v19  ;;  %v1422_v54 = vadd.f32 %v1421_v46, %v1420_v49  ;;  %v1435_v15 = vrot.slane %v1434_v4, 2 }
 0x2e3   : > { %v1676_v14 = vsub.f32 %v3677_v1, %v3878_v21  ;;  %v1396_v41 = vadd.f32 %v1395_v10, %v3800_v44  ;;  %v1403_v63 = vadd.f32 %v1402_v47, %v3792_v31  ;;  %v1416_v18 = vrot.slane %v1415_v11, 1 }
 0x2e4   : > { %v3116_v32 = vpop.eup %3115  ;;  %v1679_v7 = vsub.f32 %v3665_v59, %v3888_v56  ;;  %v1410_v29 = vadd.f32 %v1409_v5, %v1408_v3  ;;  %v1429_v58 = vadd.f32 %v1428_v34, %v1427_v13  ;;  %v1678_v25 = vsub.f32 %v3669_v61, %v3895_v53  ;;  %v3011_v34 = vld [vmem:[%s4330_s18] sm:$0xff]  }
 0x2e5   : > { %v3118_v50 = vpop.eup %3117  ;;  %v1725_v0 = vmul.f32 %v3116_v32, %v1677_v27  ;;  %v1848_v1 = vmul.f32 %v3940_v43, %v3940_v43  ;;  %v1442_v24 = vrot.slane %v1441_v55, 2  ;;  %v1847_v31 = vmul.f32 %v3945_v23, %v3945_v23  ;;  %2872 = vmatprep.subr.bf16.mxu1 %v3011_v34 }
 0x2e6   : > { %1806 = vadd.xlane.f32.xlu0 %v3955_v12  ;;  %1876 = vadd.xlane.f32.xlu1 %v1849_v62  ;;  %v1724_v21 = vmul.f32 %v3118_v50, %v1676_v14  ;;  %v1423_v39 = vrot.slane %v1422_v54, 1  ;;  %v1436_v59 = vadd.f32 %v1435_v15, %v1434_v4  ;;  %v1455_v51 = vsel %vm1454_vm0, %v1403_v63, %v1396_v41  ;;  %v3012_v62 = vld [vmem:[%s4331_s23 + $0x8] sm:$0xff]   ;;  %v906_v15 = vld [vmem:[%s905_s27] sm:$0xff] }
 0x2e7   : > { %v1747_v53 = vmul.f32 %v3746_v26, %v1725_v0  ;;  %v1430_v45 = vrot.slane %v1429_v58, 1  ;;  %v1457_v40 = vsel %vm1456_vm1, %v1410_v29, %v1455_v51  ;;  %v1846_v35 = vmul.f32 %v3955_v12, %v3955_v12  ;;  %2873 = vmatpush3.bf16.msra.mxu1 %v3011_v34  ;;  %v3014_v29 = vld [vmem:[%s4331_s23 + $0x18] sm:$0xff]  }
 0x2e8   : > { %v3120_v57 = vpop.eup %3119  ;;  %v1746_v33 = vmul.f32 %v3746_v26, %v1724_v21  ;;  %v1443_v28 = vadd.f32 %v1442_v24, %v1441_v55  ;;  %v1417_v49 = vadd.f32 %v1416_v18, %v1415_v11  ;;  %v1424_v8 = vadd.f32 %v1423_v39, %v1422_v54  ;;  %2874 = vmatprep.subr.bf16.mxu1 %v3012_v62  ;;  %v3013_v18 = vld [vmem:[%s4331_s23 + $0x10] sm:$0xff]  }
 0x2e9   : > { %v3122_v44 = vpop.eup %3121  ;;  %v1727_v20 = vmul.f32 %v3120_v57, %v1679_v7  ;;  %v1437_v37 = vrot.slane %v1436_v59, 1  ;;  %v1769_v13 = vadd.f32 %v3763_v48, %v1747_v53  ;;  %v1431_v4 = vadd.f32 %v1430_v45, %v1429_v58  ;;  %v3015_v58 = vld [vmem:[%s4331_s23 + $0x20] sm:$0xff]   ;;  %v3016_v57 = vld [vmem:[%s4331_s23 + $0x28] sm:$0xff]  }
 0x2ea   : > { %1874 = vadd.xlane.f32.xlu0 %v1848_v1  ;;  %v1726_v56 = vmul.f32 %v3122_v44, %v1678_v25  ;;  %1872 = vadd.xlane.f32.xlu1 %v1847_v31  ;;  %v1459_v30 = vsel %vm1458_vm2, %v1417_v49, %v1457_v40  ;;  %v1444_v10 = vrot.slane %v1443_v28, 1  ;;  %v3017_v25 = vld [vmem:[%s4331_s23 + $0x30] sm:$0xff]   ;;  %v3018_v1 = vld [vmem:[%s4331_s23 + $0x38] sm:$0xff]  }
 0x2eb   : > { %v1749_v61 = vmul.f32 %v3746_v26, %v1727_v20  ;;  %v1438_v47 = vadd.f32 %v1437_v37, %v1436_v59  ;;  %v1461_v11 = vsel %vm1460_vm3, %v1424_v8, %v1459_v30  ;;  %v3997_v5 = vmax.f32 %v1769_v13, 0.0  ;;  %2875 = vmatpush3.bf16.msra.mxu1 %v3012_v62 }
 0x2ec   : > { %v1748_v38 = vmul.f32 %v3746_v26, %v1726_v56  ;;  %v1768_v26 = vadd.f32 %v3763_v48, %v1746_v33  ;;  %v1463_v55 = vsel %vm1462_vm4, %v1431_v4, %v1461_v11  ;;  %2876 = vmatprep.subr.bf16.mxu1 %v3013_v18 }
 0x2ed   : > { %v1771_v2 = vadd.f32 %v3763_v48, %v1749_v61  ;;  %v1465_v50 = vsel %vm1464_vm5, %v1438_v47, %v1463_v55  ;;  %v1851_v27 = vmul.f32 %v3997_v5, %v3997_v5 }
 0x2ee   : > { %1870 = vadd.xlane.f32.xlu0 %v1846_v35  ;;  %v1770_v42 = vadd.f32 %v3763_v48, %v1748_v38  ;;  %v4002_v32 = vmax.f32 %v1768_v26, 0.0  ;;  %v1445_v48 = vadd.f32 %v1444_v10, %v1443_v28 }
 0x2ef   : > { %v3988_v3 = vmax.f32 %v1771_v2, 0.0  ;;  %2877 = vmatpush3.bf16.msra.mxu1 %v3013_v18 }
 0x2f0   : > { %v3992_v46 = vmax.f32 %v1770_v42, 0.0  ;;  %v1850_v54 = vmul.f32 %v4002_v32, %v4002_v32  ;;  %v1467_v14 = vsel %vm1466_vm6, %v1445_v48, %v1465_v50  ;;  %2878 = vmatprep.subr.bf16.mxu1 %v3014_v29 }
 0x2f1   : > { %1820 = vadd.xlane.f32.xlu1 %v3988_v3  ;;  %v1853_v41 = vmul.f32 %v3988_v3, %v3988_v3  ;;  %v4017_v63 = vadd.f32 %v1467_v14, %v906_v15 }
 0x2f2   : > { %1818 = vadd.xlane.f32.xlu0 %v3992_v46  ;;  %v1852_v7 = vmul.f32 %v3992_v46, %v3992_v46 }
 0x2f3   : > { %v1476_v0 = vmul.f32 %v4017_v63, %v4017_v63  ;;  %2879 = vmatpush3.bf16.msra.mxu1 %v3014_v29 }
 0x2f4   : > { %2880 = vmatprep.subr.bf16.mxu1 %v3015_v58 }
 0x2f5   : > { %1816 = vadd.xlane.f32.xlu1 %v3997_v5 }
 0x2f6   : > { %1814 = vadd.xlane.f32.xlu0 %v4002_v32 }
 0x2f7   : > { %2881 = vmatpush3.bf16.msra.mxu1 %v3015_v58 }
 0x2f8   : > { %2882 = vmatprep.subr.bf16.mxu1 %v3016_v57 }
 0x2f9   : > { %1880 = vadd.xlane.f32.xlu1 %v1851_v27 }
 0x2fa   : > { %1878 = vadd.xlane.f32.xlu0 %v1850_v54 }
 0x2fb   : > { %2883 = vmatpush3.bf16.msra.mxu1 %v3016_v57 }
 0x2fc   : > { %2884 = vmatprep.subr.bf16.mxu1 %v3017_v25 }
 0x2fd   : > { %1884 = vadd.xlane.f32.xlu1 %v1853_v41 }
 0x2fe   : > { %1882 = vadd.xlane.f32.xlu0 %v1852_v7 }
 0x2ff   : > { %2885 = vmatpush3.bf16.msra.mxu1 %v3017_v25 }
 0x300   : > { %2886 = vmatprep.subr.bf16.mxu1 %v3018_v1 }
 0x301   : > { %1477 = vadd.xlane.f32.xlu1 %v1476_v0 }
 0x302   : > { %1472 = vadd.xlane.f32.xlu0 %v4017_v63 }
 0x303   : > { %2887 = vmatpush3.bf16.msra.mxu1 %v3018_v1 }
 0x347   : > { %v1795_v24 = vpop.xlane.xlu0 %1794 }
 0x348   : > { %v1824_v39 = vmul.f32 0.0078125, %v1795_v24  ;;  %v4063_v24 = vld [vmem:[%s4332_s21] ss:$0 sm:$0xff] }
 0x34a   : > { %v1797_v21 = vpop.xlane.xlu1 %1796  ;;  %v1904_v45 = vmul.f32 %v1824_v39, %v1824_v39  ;;  %v1952_v57 = vsub.f32 %v3778_v22, %v1824_v39 }
 0x34b   : > { %v1825_v31 = vmul.f32 0.0078125, %v1797_v21 }
 0x34d   : > { %v1905_v56 = vmul.f32 %v1825_v31, %v1825_v31  ;;  %v1953_v18 = vsub.f32 %v3784_v60, %v1825_v31 }
 0x34e   : > { %v1793_v44 = vpop.xlane.xlu1 %1792 }
 0x34f   : > { %v1791_v20 = vpop.xlane.xlu0 %1790  ;;  %v4042_v51 = vmul.f32 0.0078125, %v1793_v44 }
 0x350   : > { %v4044_v40 = vmul.f32 0.0078125, %v1791_v20 }
 0x351   : > { %v1903_v2 = vmul.f32 %v4042_v51, %v4042_v51  ;;  %v1951_v22 = vsub.f32 %v3806_v6, %v4042_v51  ;;  %v4079_v6 = vld [vmem:[%s4333_s17] ss:$0 sm:$0xff] }
 0x352   : > { %v1861_v59 = vpop.xlane.xlu1 %1860  ;;  %v1902_v42 = vmul.f32 %v4044_v40, %v4044_v40 }
 0x353   : > { %v1889_v61 = vmul.f32 0.0078125, %v1861_v59  ;;  %v1859_v53 = vpop.xlane.xlu0 %1858 }
 0x354   : > { %v1888_v35 = vmul.f32 0.0078125, %v1859_v53 }
 0x355   : > { %v1921_v38 = vsub.f32 %v1889_v61, %v1905_v56 }
 0x356   : > { %v1920_v33 = vsub.f32 %v1888_v35, %v1904_v45  ;;  %v1857_v28 = vpop.xlane.xlu1 %1856  ;;  %v1950_v35 = vsub.f32 %v3817_v17, %v4044_v40 }
 0x357   : > { %v1937_v49 = vmax.f32 %v1921_v38, 0.0  ;;  %v1887_v8 = vmul.f32 0.0078125, %v1857_v28  ;;  %v1855_v37 = vpop.xlane.xlu0 %1854 }
 0x358   : > { %v1936_v13 = vmax.f32 %v1920_v33, 0.0  ;;  %v1886_v30 = vmul.f32 0.0078125, %v1855_v37 }
 0x359   : > { %v1969_v26 = vadd.f32 1e-05, %v1937_v49  ;;  %v1919_v4 = vsub.f32 %v1887_v8, %v1903_v2 }
 0x35a   : > { %v1968_v10 = vadd.f32 1e-05, %v1936_v13  ;;  %v1918_v47 = vsub.f32 %v1886_v30, %v1902_v42  ;;  %v1805_v11 = vpop.xlane.xlu1 %1804 }
 0x35b   : > { %3123 = vrsqrt.f32 %v1969_v26  ;;  %v1935_v34 = vmax.f32 %v1919_v4, 0.0  ;;  %v1803_v55 = vpop.xlane.xlu0 %1802  ;;  %v4050_v54 = vmul.f32 0.0078125, %v1805_v11 }
 0x35c   : > { %3125 = vrsqrt.f32 %v1968_v10  ;;  %v1934_v48 = vmax.f32 %v1918_v47, 0.0  ;;  %v4052_v14 = vmul.f32 0.0078125, %v1803_v55 }
 0x35d   : > { %v1967_v50 = vadd.f32 1e-05, %v1935_v34  ;;  %v1909_v7 = vmul.f32 %v4050_v54, %v4050_v54 }
 0x35e   : > { %v1966_v27 = vadd.f32 1e-05, %v1934_v48  ;;  %v1908_v60 = vmul.f32 %v4052_v14, %v4052_v14 }
 0x35f   : > { %3127 = vrsqrt.f32 %v1967_v50  ;;  %v1801_v62 = vpop.xlane.xlu1 %1800 }
 0x360   : > { %3129 = vrsqrt.f32 %v1966_v27  ;;  %v4057_v0 = vmul.f32 0.0078125, %v1801_v62 }
 0x362   : > { %v1907_v39 = vmul.f32 %v4057_v0, %v4057_v0 }
 0x363   : > { %v1799_v15 = vpop.xlane.xlu0 %1798  ;;  %v1869_v41 = vpop.xlane.xlu1 %1868 }
 0x364   : > { %v1893_v29 = vmul.f32 0.0078125, %v1869_v41  ;;  %v4067_v31 = vmul.f32 0.0078125, %v1799_v15 }
 0x365   : > { %v3124_v58 = vpop.eup %3123 }
 0x366   : > { %v3126_v25 = vpop.eup %3125  ;;  %v1925_v1 = vsub.f32 %v1893_v29, %v1909_v7  ;;  %v2001_v44 = vmul.f32 %v3124_v58, %v1953_v18  ;;  %v1906_v42 = vmul.f32 %v4067_v31, %v4067_v31 }
 0x367   : > { %v1867_v21 = vpop.xlane.xlu0 %1866  ;;  %v1865_v59 = vpop.xlane.xlu1 %1864  ;;  %v2000_v56 = vmul.f32 %v3126_v25, %v1952_v57 }
 0x368   : > { %v1892_v20 = vmul.f32 0.0078125, %v1867_v21  ;;  %v1941_v61 = vmax.f32 %v1925_v1, 0.0  ;;  %v1891_v53 = vmul.f32 0.0078125, %v1865_v59  ;;  %v2023_v37 = vmul.f32 %v4063_v24, %v2001_v44 }
 0x369   : > { %v3128_v45 = vpop.eup %3127  ;;  %v2022_v33 = vmul.f32 %v4063_v24, %v2000_v56 }
 0x36a   : > { %v1924_v38 = vsub.f32 %v1892_v20, %v1908_v60  ;;  %v3130_v28 = vpop.eup %3129  ;;  %v1973_v2 = vadd.f32 1e-05, %v1941_v61  ;;  %v1923_v49 = vsub.f32 %v1891_v53, %v1907_v39  ;;  %v1999_v51 = vmul.f32 %v3128_v45, %v1951_v22 }
 0x36b   : > { %v1863_v8 = vpop.xlane.xlu0 %1862  ;;  %v1813_v40 = vpop.xlane.xlu1 %1812  ;;  %v1998_v30 = vmul.f32 %v3130_v28, %v1950_v35  ;;  %v4087_v34 = vadd.f32 %v4079_v6, %v2022_v33  ;;  %v4093_v27 = vadd.f32 %v4079_v6, %v2023_v37  ;;  %v1957_v61 = vsub.f32 %v3854_v9, %v4050_v54 }
 0x36c   : > { %v1940_v13 = vmax.f32 %v1924_v38, 0.0  ;;  %v1890_v17 = vmul.f32 0.0078125, %v1863_v8  ;;  %3131 = vrsqrt.f32 %v1973_v2  ;;  %v1939_v26 = vmax.f32 %v1923_v49, 0.0 }
 0x36d   : > { %v2021_v4 = vmul.f32 %v4063_v24, %v1999_v51  ;;  %v2020_v11 = vmul.f32 %v4063_v24, %v1998_v30  ;;  %v4098_v18 = vmul.f32 0.0078125, %v1813_v40  ;;  %v2702_v57 = vmul.f32 -1.442695, %v4087_v34 }
 0x36e   : > { %v1972_v10 = vadd.f32 1e-05, %v1940_v13  ;;  %v1922_v47 = vsub.f32 %v1890_v17, %v1906_v42  ;;  %v1971_v48 = vadd.f32 1e-05, %v1939_v26  ;;  %v2703_v1 = vmul.f32 -1.442695, %v4093_v27 }
 0x36f   : > { %v1811_v55 = vpop.xlane.xlu0 %1810  ;;  %v4090_v50 = vadd.f32 %v4079_v6, %v2021_v4  ;;  %v1809_v15 = vpop.xlane.xlu1 %1808  ;;  %v4096_v41 = vadd.f32 %v4079_v6, %v2020_v11  ;;  %v1913_v60 = vmul.f32 %v4098_v18, %v4098_v18  ;;  %v1956_v33 = vsub.f32 %v3861_v16, %v4052_v14 }
 0x370   : > { %3133 = vrsqrt.f32 %v1972_v10  ;;  %v1938_v62 = vmax.f32 %v1922_v47, 0.0  ;;  %v4104_v21 = vmul.f32 0.0078125, %v1811_v55  ;;  %v4108_v20 = vmul.f32 0.0078125, %v1809_v15 }
 0x371   : > { %3135 = vrsqrt.f32 %v1971_v48  ;;  %v2701_v7 = vmul.f32 -1.442695, %v4090_v50  ;;  %v2700_v58 = vmul.f32 -1.442695, %v4096_v41  ;;  %v1955_v51 = vsub.f32 %v3890_v36, %v4057_v0 }
 0x372   : > { %v1970_v29 = vadd.f32 1e-05, %v1938_v62  ;;  %v1912_v53 = vmul.f32 %v4104_v21, %v4104_v21  ;;  %v1911_v28 = vmul.f32 %v4108_v20, %v4108_v20  ;;  %v1954_v10 = vsub.f32 %v3911_v52, %v4067_v31 }
 0x373   : > { %v1807_v25 = vpop.xlane.xlu0 %1806  ;;  %3137 = vpow2.f32 %v2701_v7  ;;  %v1877_v44 = vpop.xlane.xlu1 %1876 }
 0x374   : > { %3139 = vrsqrt.f32 %v1970_v29  ;;  %v1897_v59 = vmul.f32 0.0078125, %v1877_v44  ;;  %v4114_v45 = vmul.f32 0.0078125, %v1807_v25 }
 0x375   : > { %3141 = vpow2.f32 %v2700_v58 }
 0x376   : > { %3143 = vpow2.f32 %v2702_v57  ;;  %v3132_v56 = vpop.eup %3131  ;;  %v1929_v22 = vsub.f32 %v1897_v59, %v1913_v60  ;;  %v1910_v30 = vmul.f32 %v4114_v45, %v4114_v45 }
 0x377   : > { %v1875_v39 = vpop.xlane.xlu0 %1874  ;;  %3145 = vpow2.f32 %v2703_v1  ;;  %v1873_v38 = vpop.xlane.xlu1 %1872  ;;  %v2005_v54 = vmul.f32 %v3132_v56, %v1957_v61 }
 0x378   : > { %v1896_v35 = vmul.f32 0.0078125, %v1875_v39  ;;  %v1945_v2 = vmax.f32 %v1929_v22, 0.0  ;;  %v1895_v49 = vmul.f32 0.0078125, %v1873_v38 }
 0x379   : > { %v2027_v62 = vmul.f32 %v4063_v24, %v2005_v54 }
 0x37a   : > { %v3134_v8 = vpop.eup %3133  ;;  %v1928_v9 = vsub.f32 %v1896_v35, %v1912_v53  ;;  %v1977_v42 = vadd.f32 1e-05, %v1945_v2  ;;  %v1927_v13 = vsub.f32 %v1895_v49, %v1911_v28  ;;  %v1961_v49 = vsub.f32 %v3928_v19, %v4098_v18 }
 0x37b   : > { %v3136_v37 = vpop.eup %3135  ;;  %v1871_v17 = vpop.xlane.xlu0 %1870  ;;  %v2004_v40 = vmul.f32 %v3134_v8, %v1956_v33  ;;  %v4133_v39 = vadd.f32 %v4079_v6, %v2027_v62 }
 0x37c   : > { %v1944_v16 = vmax.f32 %v1928_v9, 0.0  ;;  %v1894_v14 = vmul.f32 0.0078125, %v1871_v17  ;;  %v2003_v26 = vmul.f32 %v3136_v37, %v1955_v51  ;;  %3147 = vrsqrt.f32 %v1977_v42 }
 0x37d   : > { %v3138_v4 = vpop.eup %3137  ;;  %v1943_v47 = vmax.f32 %v1927_v13, 0.0  ;;  %v2026_v36 = vmul.f32 %v4063_v24, %v2004_v40  ;;  %v2707_v18 = vmul.f32 -1.442695, %v4133_v39 }
 0x37e   : > { %v3140_v0 = vpop.eup %3139  ;;  %v1976_v11 = vadd.f32 1e-05, %v1944_v16  ;;  %v1926_v48 = vsub.f32 %v1894_v14, %v1910_v30  ;;  %v1821_v55 = vpop.xlane.xlu1 %1820  ;;  %v2107_v58 = vadd.f32 1.0, %v3138_v4  ;;  %v2025_v25 = vmul.f32 %v4063_v24, %v2003_v26 }
 0x37f   : > { %v3142_v15 = vpop.eup %3141  ;;  %v1975_v7 = vadd.f32 1e-05, %v1943_v47  ;;  %v1819_v29 = vpop.xlane.xlu0 %1818  ;;  %v2002_v57 = vmul.f32 %v3140_v0, %v1954_v10  ;;  %v4130_v44 = vadd.f32 %v4079_v6, %v2026_v36  ;;  %v4146_v8 = vmul.f32 0.0078125, %v1821_v55 }
 0x380   : > { %v3144_v1 = vpop.eup %3143  ;;  %3149 = vrsqrt.f32 %v1976_v11  ;;  %v1942_v52 = vmax.f32 %v1926_v48, 0.0  ;;  %v2106_v31 = vadd.f32 1.0, %v3142_v15  ;;  %v4141_v28 = vadd.f32 %v4079_v6, %v2025_v25 }
 0x381   : > { %v3146_v60 = vpop.eup %3145  ;;  %3151 = vrsqrt.f32 %v1975_v7  ;;  %v2108_v59 = vadd.f32 1.0, %v3144_v1  ;;  %v2024_v38 = vmul.f32 %v4063_v24, %v2002_v57  ;;  %v2706_v2 = vmul.f32 -1.442695, %v4130_v44 }
 0x382   : > { %v1974_v56 = vadd.f32 1e-05, %v1942_v52  ;;  %v1817_v22 = vpop.xlane.xlu1 %1816  ;;  %3153 = vrcp.f32 %v2106_v31  ;;  %v2109_v35 = vadd.f32 1.0, %v3146_v60  ;;  %v4151_v9 = vmul.f32 0.0078125, %v1819_v29 }
 0x383   : > { %v4135_v61 = vmul.f32 0.0078125, %v1817_v22  ;;  %v1815_v53 = vpop.xlane.xlu0 %1814  ;;  %3155 = vrcp.f32 %v2107_v58  ;;  %v4149_v51 = vadd.f32 %v4079_v6, %v2024_v38  ;;  %v2705_v42 = vmul.f32 -1.442695, %v4141_v28 }
 0x384   : > { %3157 = vrsqrt.f32 %v1974_v56  ;;  %v4138_v33 = vmul.f32 0.0078125, %v1815_v53  ;;  %v1960_v26 = vsub.f32 %v3940_v43, %v4104_v21  ;;  %v1959_v4 = vsub.f32 %v3945_v23, %v4108_v20 }
 0x385   : > { %3159 = vrcp.f32 %v2108_v59  ;;  %v1915_v54 = vmul.f32 %v4135_v61, %v4135_v61  ;;  %v2704_v19 = vmul.f32 -1.442695, %v4149_v51  ;;  %v1958_v36 = vsub.f32 %v3955_v12, %v4114_v45 }
 0x386   : > { %v1881_v37 = vpop.xlane.xlu1 %1880  ;;  %3161 = vrcp.f32 %v2109_v35  ;;  %v3148_v13 = vpop.eup %3147  ;;  %v1914_v30 = vmul.f32 %v4138_v33, %v4138_v33  ;;  %v1917_v62 = vmul.f32 %v4146_v8, %v4146_v8  ;;  %v1916_v20 = vmul.f32 %v4151_v9, %v4151_v9 }
 0x387   : > { %v1899_v17 = vmul.f32 0.0078125, %v1881_v37  ;;  %v1879_v40 = vpop.xlane.xlu0 %1878  ;;  %3163 = vpow2.f32 %v2706_v2  ;;  %v2009_v14 = vmul.f32 %v3148_v13, %v1961_v49 }
 0x388   : > { %v1898_v16 = vmul.f32 0.0078125, %v1879_v40  ;;  %3165 = vpow2.f32 %v2705_v42 }
 0x389   : > { %v1931_v10 = vsub.f32 %v1899_v17, %v1915_v54  ;;  %3167 = vpow2.f32 %v2704_v19  ;;  %v2031_v48 = vmul.f32 %v4063_v24, %v2009_v14 }
 0x38a   : > { %v3150_v47 = vpop.eup %3149  ;;  %v1930_v0 = vsub.f32 %v1898_v16, %v1914_v30  ;;  %v1885_v11 = vpop.xlane.xlu1 %1884  ;;  %3169 = vpow2.f32 %v2707_v18 }
 0x38b   : > { %v3152_v55 = vpop.eup %3151  ;;  %v1947_v15 = vmax.f32 %v1931_v10, 0.0  ;;  %v1901_v43 = vmul.f32 0.0078125, %v1885_v11  ;;  %v1883_v21 = vpop.xlane.xlu0 %1882  ;;  %v2008_v7 = vmul.f32 %v3150_v47, %v1960_v26  ;;  %v4173_v52 = vadd.f32 %v4079_v6, %v2031_v48 }
 0x38c   : > { %v3154_v23 = vpop.eup %3153  ;;  %v1946_v29 = vmax.f32 %v1930_v0, 0.0  ;;  %v1900_v58 = vmul.f32 0.0078125, %v1883_v21  ;;  %v2007_v12 = vmul.f32 %v3152_v55, %v1959_v4 }
 0x38d   : > { %v3156_v45 = vpop.eup %3155  ;;  %v1979_v57 = vadd.f32 1e-05, %v1947_v15  ;;  %v1933_v25 = vsub.f32 %v1901_v43, %v1917_v62  ;;  %v2154_v1 = vmul.f32 %v3154_v23, %v4096_v41  ;;  %v2030_v22 = vmul.f32 %v4063_v24, %v2008_v7 }
 0x38e   : > { %v3158_v31 = vpop.eup %3157  ;;  %v1978_v60 = vadd.f32 1e-05, %v1946_v29  ;;  %v1932_v59 = vsub.f32 %v1900_v58, %v1916_v20  ;;  %v2155_v56 = vmul.f32 %v3156_v45, %v4090_v50  ;;  %v1478_v38 = vpop.xlane.xlu1 %1477  ;;  %v2029_v54 = vmul.f32 %v4063_v24, %v2007_v12 }
 0x38f   : > { %v3160_v53 = vpop.eup %3159  ;;  %3171 = vrsqrt.f32 %v1979_v57  ;;  %v1949_v35 = vmax.f32 %v1933_v25, 0.0  ;;  %v1473_v2 = vpop.xlane.xlu0 %1472  ;;  %v2006_v49 = vmul.f32 %v3158_v31, %v1958_v36  ;;  %v1479_v14 = vmul.f32 0.0078125, %v1478_v38 }
 0x390   : > { %v3162_v37 = vpop.eup %3161  ;;  %3173 = vrsqrt.f32 %v1978_v60  ;;  %v1948_v41 = vmax.f32 %v1932_v59, 0.0  ;;  %v2170_v42 = vpack.c.bf16 %v2155_v56, %v2154_v1  ;;  %v4178_v13 = vmul.f32 0.0078125, %v1473_v2 }
 0x391   : > { %v3164_v17 = vpop.eup %3163  ;;  %v1981_v40 = vadd.f32 1e-05, %v1949_v35  ;;  %v2156_v50 = vmul.f32 %v3160_v53, %v4087_v34  ;;  %v2157_v19 = vmul.f32 %v3162_v37, %v4093_v27  ;;  %v2028_v18 = vmul.f32 %v4063_v24, %v2006_v49 }
 0x392   : > { %v3166_v30 = vpop.eup %3165  ;;  %v1980_v16 = vadd.f32 1e-05, %v1948_v41  ;;  %2888 = vmatprep.mubr.bf16.mxu1 %v2170_v42  ;;  %v1480_v26 = vmul.f32 %v4178_v13, %v4178_v13  ;;  %v2112_v4 = vadd.f32 1.0, %v3164_v17  ;;  %v4189_v48 = vadd.f32 %v4079_v6, %v2029_v54 }
 0x393   : > { %v3168_v10 = vpop.eup %3167  ;;  %3175 = vrsqrt.f32 %v1981_v40  ;;  %v2171_v47 = vpack.c.bf16 %v2157_v19, %v2156_v50  ;;  %v2111_v36 = vadd.f32 1.0, %v3166_v30  ;;  %v4186_v0 = vadd.f32 %v4079_v6, %v2028_v18 }
 0x394   : > { %v3170_v34 = vpop.eup %3169  ;;  %3177 = vrsqrt.f32 %v1980_v16  ;;  %v1481_v27 = vsub.f32 %v1479_v14, %v1480_v26  ;;  %v2110_v11 = vadd.f32 1.0, %v3168_v10  ;;  %v4193_v15 = vadd.f32 %v4079_v6, %v2030_v22 }
 0x395   : > { %2889 = vmatmul.mubr.bf16.vlgmr.msra.gmra.mrb[0].mxu1 %v2171_v47  ;;  %3179 = vrcp.f32 %v2111_v36  ;;  %v2113_v55 = vadd.f32 1.0, %v3170_v34  ;;  %v2708_v62 = vmul.f32 -1.442695, %v4186_v0  ;;  %v2709_v21 = vmul.f32 -1.442695, %v4189_v48  ;;  %v2347_v36 = vld [vmem:[%s2346_s6] sm:$0xff] }
 0x396   : > { %v1482_v43 = vmax.f32 %v1481_v27, 0.0  ;;  %3181 = vrcp.f32 %v2110_v11  ;;  %v1963_v7 = vsub.f32 %v3997_v5, %v4135_v61  ;;  %v2710_v20 = vmul.f32 -1.442695, %v4193_v15 }
 0x397   : > { %3183 = vrcp.f32 %v2112_v4  ;;  %v1962_v58 = vsub.f32 %v4002_v32, %v4138_v33  ;;  %v2711_v12 = vmul.f32 -1.442695, %v4173_v52  ;;  %v1965_v1 = vsub.f32 %v3988_v3, %v4146_v8 }
 0x398   : > { %v1484_v23 = vadd.f32 1e-05, %v1482_v43  ;;  %3185 = vrcp.f32 %v2113_v55  ;;  %v1964_v31 = vsub.f32 %v3992_v46, %v4151_v9  ;;  %v1483_v37 = vsub.f32 %v4017_v63, %v4178_v13  ;;  %v2694_v63 = vld [vmem:[%s4334_s19] ss:$0 sm:$0xff] }
 0x399   : > { %v3172_v29 = vpop.eup %3171  ;;  %3187 = vpow2.f32 %v2708_v62 }
 0x39a   : > { %v3174_v45 = vpop.eup %3173  ;;  %3189 = vrsqrt.f32 %v1484_v23  ;;  %v2011_v57 = vmul.f32 %v3172_v29, %v1963_v7 }
 0x39b   : > { %3191 = vpow2.f32 %v2709_v21  ;;  %v2010_v25 = vmul.f32 %v3174_v45, %v1962_v58 }
 0x39c   : > { %3193 = vpow2.f32 %v2710_v20  ;;  %v2033_v5 = vmul.f32 %v4063_v24, %v2011_v57 }
 0x39d   : > { %v3176_v61 = vpop.eup %3175  ;;  %3195 = vpow2.f32 %v2711_v12  ;;  %v2032_v32 = vmul.f32 %v4063_v24, %v2010_v25 }
 0x39e   : > { %v3178_v33 = vpop.eup %3177  ;;  %v4209_v60 = vadd.f32 %v4079_v6, %v2033_v5  ;;  %v2013_v59 = vmul.f32 %v3176_v61, %v1965_v1 }
 0x39f   : > { %v3180_v56 = vpop.eup %3179  ;;  %v4212_v22 = vadd.f32 %v4079_v6, %v2032_v32  ;;  %v2012_v3 = vmul.f32 %v3178_v33, %v1964_v31 }
 0x3a0   : > { %v3182_v8 = vpop.eup %3181  ;;  %v2159_v53 = vmul.f32 %v3180_v56, %v4141_v28  ;;  %v2713_v35 = vmul.f32 -1.442695, %v4209_v60  ;;  %v2035_v46 = vmul.f32 %v4063_v24, %v2013_v59 }
 0x3a1   : > { %v3184_v9 = vpop.eup %3183  ;;  %v2158_v38 = vmul.f32 %v3182_v8, %v4149_v51  ;;  %v2712_v2 = vmul.f32 -1.442695, %v4212_v22  ;;  %v2034_v49 = vmul.f32 %v4063_v24, %v2012_v3 }
 0x3a2   : > { %v3186_v54 = vpop.eup %3185  ;;  %v2160_v41 = vmul.f32 %v3184_v9, %v4130_v44  ;;  %3197 = vpow2.f32 %v2713_v35  ;;  %v4224_v28 = vadd.f32 %v4079_v6, %v2035_v46  ;;  %v3221_v35 = vld [vmem:[%s3397_s13] sm:$0xff]  }
 0x3a3   : > { %v3188_v42 = vpop.eup %3187  ;;  %v2172_v17 = vpack.c.bf16 %v2159_v53, %v2158_v38  ;;  %v2161_v40 = vmul.f32 %v3186_v54, %v4133_v39  ;;  %3199 = vpow2.f32 %v2712_v2  ;;  %v2056_v51 = vadd.f32 %v4079_v6, %v2034_v49  ;;  %v2695_v39 = vld [vmem:[%s4335_s24] ss:$0 sm:$0xff] }
 0x3a4   : > { %v3190_v24 = vpop.eup %3189  ;;  %v2114_v13 = vadd.f32 1.0, %v3188_v42  ;;  %v2715_v4 = vmul.f32 -1.442695, %v4224_v28  ;;  %v924_v46 = vunpack.c.l.bf16 %v3221_v35  ;;  %v925_v54 = vunpack.c.h.bf16 %v3221_v35 }
 0x3a5   : > { %v3192_v44 = vpop.eup %3191  ;;  %v1486_v50 = vmul.f32 %v3190_v24, %v1483_v37  ;;  %2892 = vmatprep.mubr.bf16.mxu1 %v2172_v17  ;;  %v2173_v19 = vpack.c.bf16 %v2161_v40, %v2160_v41  ;;  %v2714_v18 = vmul.f32 -1.442695, %v2056_v51 }
 0x3a6   : > { %v3194_v30 = vpop.eup %3193  ;;  %v2115_v16 = vadd.f32 1.0, %v3192_v44  ;;  %3201 = vrcp.f32 %v2114_v13 }
 0x3a7   : > { %v3196_v14 = vpop.eup %3195  ;;  %v1493_v6 = vmul.f32 %v2694_v63, %v1486_v50  ;;  %2893 = vmatmul.mubr.bf16.gmra.mrb[4].mxu1 %v2173_v19  ;;  %v2116_v26 = vadd.f32 1.0, %v3194_v30  ;;  %3203 = vpow2.f32 %v2714_v18  ;;  %v3223_v19 = vld [vmem:[%s3397_s13 + $0x18] sm:$0xff]  }
 0x3a8   : > { %3205 = vrcp.f32 %v2115_v16  ;;  %v2117_v10 = vadd.f32 1.0, %v3196_v14  ;;  %v930_v18 = vunpack.c.l.bf16 %v3223_v19  ;;  %v931_v16 = vunpack.c.h.bf16 %v3223_v19  ;;  %v3224_v14 = vld [vmem:[%s3397_s13 + $0x10] sm:$0xff]  }
 0x3a9   : > { %v1500_v47 = vadd.f32 %v2695_v39, %v1493_v6  ;;  %3207 = vrcp.f32 %v2116_v26  ;;  %v928_v6 = vunpack.c.l.bf16 %v3224_v14 }
 0x3aa   : > { %3209 = vrcp.f32 %v2117_v10  ;;  %v929_v10 = vunpack.c.h.bf16 %v3224_v14 }
 0x3ab   : > { %v1501_v34 = vmax.f32 %v1500_v47, 0.0  ;;  %3211 = vpow2.f32 %v2715_v4 }
 0x3ac   : > { %v3198_v27 = vpop.eup %3197 }
 0x3ad   : > { %v3200_v11 = vpop.eup %3199  ;;  %v2348_v55 = vadd.f32 %v2347_v36, %v1501_v34  ;;  %v2119_v62 = vadd.f32 1.0, %v3198_v27 }
 0x3ae   : > { %v2118_v43 = vadd.f32 1.0, %v3200_v11 }
 0x3af   : > { %2349 = vst [vmem:[%s3408_s26] sm:$0xff] %v2348_v55  ;;  %3213 = vrcp.f32 %v2119_v62  ;;  %s4336_s26 = sld [smem:[#allocation14_spill]] }
 0x3b0   : > { %v3202_v21 = vpop.eup %3201  ;;  %3215 = vrcp.f32 %v2118_v43 }
 0x3b1   : > { %v3204_v7 = vpop.eup %3203  ;;  %v2162_v23 = vmul.f32 %v3202_v21, %v4186_v0 }
 0x3b2   : > { %v3206_v20 = vpop.eup %3205  ;;  %v2120_v29 = vadd.f32 1.0, %v3204_v7 }
 0x3b3   : > { %v3208_v58 = vpop.eup %3207  ;;  %v2163_v12 = vmul.f32 %v3206_v20, %v4189_v48 }
 0x3b4   : > { %v3210_v45 = vpop.eup %3209  ;;  %v2164_v57 = vmul.f32 %v3208_v58, %v4193_v15  ;;  %3217 = vrcp.f32 %v2120_v29 }
 0x3b5   : > { %v3212_v25 = vpop.eup %3211  ;;  %v2174_v1 = vpack.c.bf16 %v2163_v12, %v2162_v23  ;;  %v2165_v5 = vmul.f32 %v3210_v45, %v4173_v52  ;;  %v4248_v53 = vld [vmem:[%s4336_s26] ss:$0 sm:$0xff]  ;;  %v3225_v23 = vld [vmem:[%s3397_s13 + $0x28] sm:$0xff]  }
 0x3b6   : > { %v2121_v61 = vadd.f32 1.0, %v3212_v25  ;;  %v934_v20 = vunpack.c.l.bf16 %v3225_v23  ;;  %v935_v12 = vunpack.c.h.bf16 %v3225_v23  ;;  %v3226_v45 = vld [vmem:[%s3397_s13 + $0x20] sm:$0xff]  }
 0x3b7   : > { %2896 = vmatprep.mubr.bf16.mxu1 %v2174_v1  ;;  %v2175_v31 = vpack.c.bf16 %v2165_v5, %v2164_v57  ;;  %v932_v57 = vunpack.c.l.bf16 %v3226_v45  ;;  %v933_v5 = vunpack.c.h.bf16 %v3226_v45 }
 0x3b8   : > { %3219 = vrcp.f32 %v2121_v61 }
 0x3b9   : > { %v3214_v32 = vpop.eup %3213  ;;  %2897 = vmatmul.mubr.bf16.gmra.mrb[8].mxu1 %v2175_v31 }
 0x3ba   : > { %v3216_v0 = vpop.eup %3215  ;;  %v2167_v33 = vmul.f32 %v3214_v32, %v4209_v60  ;;  %v3222_v60 = vld [vmem:[%s3397_s13 + $0x8] sm:$0xff]  }
 0x3bb   : > { %v2166_v48 = vmul.f32 %v3216_v0, %v4212_v22  ;;  %v926_v38 = vunpack.c.l.bf16 %v3222_v60  ;;  %v927_v49 = vunpack.c.h.bf16 %v3222_v60  ;;  %v3228_v60 = vld [vmem:[%s3397_s13 + $0x30] sm:$0xff]  }
 0x3bd   : > { %v2176_v59 = vpack.c.bf16 %v2167_v33, %v2166_v48 }
 0x3be   : > { %v3218_v15 = vpop.eup %3217 }
 0x3bf   : > { %2900 = vmatprep.mubr.bf16.mxu1 %v2176_v59  ;;  %v2168_v56 = vmul.f32 %v3218_v15, %v2056_v51 }
 0x3c2   : > { %v3220_v3 = vpop.eup %3219 }
 0x3c3   : > { %v2169_v52 = vmul.f32 %v3220_v3, %v4224_v28 }
 0x3c5   : > { %v2177_v8 = vpack.c.bf16 %v2169_v52, %v2168_v56  ;;  %v3227_v52 = vld [vmem:[%s3397_s13 + $0x38] sm:$0xff]  }
 0x3c7   : > { %2901 = vmatmul.mubr.bf16.gmra.mrb[12].mxu1 %v2177_v8  ;;  %v938_v8 = vunpack.c.l.bf16 %v3227_v52 }
 0x468   : > { %v2890_v9 = vpop.f32.mrb[0].mxu1 }
 0x469   : > { %v2292_v22 = vadd.f32 %v2890_v9, %v4248_v53  ;;  %v2283_v2 = vpop.f32.mrb[1].mxu1  ;;  %v939_v9 = vunpack.c.h.bf16 %v3227_v52 }
 0x46a   : > { %v2284_v37 = vadd.f32 %v4248_v53, %v2283_v2  ;;  %v2891_v41 = vpop.f32.mrb[2].mxu1 }
 0x46b   : > { %v2295_v28 = vadd.f32 %v2891_v41, %v4248_v53  ;;  %v2286_v42 = vpop.f32.mrb[3].mxu1  ;;  %v2352_v51 = vadd.f32 %v2292_v22, %v926_v38  ;;  %v936_v38 = vunpack.c.l.bf16 %v3228_v60 }
 0x46c   : > { %v2350_v17 = vadd.f32 %v2284_v37, %v924_v46  ;;  %v2287_v40 = vadd.f32 %v4248_v53, %v2286_v42 }
 0x46d   : > { %v2353_v24 = vadd.f32 %v2295_v28, %v927_v49  ;;  %v937_v49 = vunpack.c.h.bf16 %v3228_v60 }
 0x46e   : > { %v2351_v63 = vadd.f32 %v2287_v40, %v925_v54 }
 0x46f   : > { %v2769_v13 = vpack.c.bf16 %v2353_v24, %v2352_v51 }
 0x470   : > { %v2764_v44 = vpack.c.bf16 %v2351_v63, %v2350_v17 }
 0x471   : > { %2801 = vst [vmem:[%s3402_s11 + $0x8] sm:$0xff] %v2769_v13  }
 0x472   : > { %2765 = vst [vmem:[%s3402_s11] sm:$0xff] %v2764_v44  }
 0x47a   : > { %v2894_v50 = vpop.f32.mrb[4].mxu1 }
 0x47b   : > { %v2308_v30 = vadd.f32 %v2894_v50, %v4248_v53  ;;  %v2299_v39 = vpop.f32.mrb[5].mxu1 }
 0x47c   : > { %v2300_v26 = vadd.f32 %v4248_v53, %v2299_v39  ;;  %v2895_v4 = vpop.f32.mrb[6].mxu1 }
 0x47d   : > { %v2311_v47 = vadd.f32 %v2895_v4, %v4248_v53  ;;  %v2302_v36 = vpop.f32.mrb[7].mxu1  ;;  %v2356_v27 = vadd.f32 %v2308_v30, %v930_v18 }
 0x47e   : > { %v2303_v34 = vadd.f32 %v4248_v53, %v2302_v36  ;;  %v2354_v55 = vadd.f32 %v2300_v26, %v928_v6 }
 0x47f   : > { %v2357_v11 = vadd.f32 %v2311_v47, %v931_v16 }
 0x480   : > { %v2355_v62 = vadd.f32 %v2303_v34, %v929_v10 }
 0x481   : > { %v2779_v43 = vpack.c.bf16 %v2357_v11, %v2356_v27 }
 0x482   : > { %v2774_v21 = vpack.c.bf16 %v2355_v62, %v2354_v55 }
 0x483   : > { %2803 = vst [vmem:[%s3402_s11 + $0x18] sm:$0xff] %v2779_v43  }
 0x484   : > { %2802 = vst [vmem:[%s3402_s11 + $0x10] sm:$0xff] %v2774_v21  }
 0x48c   : > { %v2898_v7 = vpop.f32.mrb[8].mxu1 }
 0x48d   : > { %v2324_v29 = vadd.f32 %v2898_v7, %v4248_v53  ;;  %v2315_v58 = vpop.f32.mrb[9].mxu1 }
 0x48e   : > { %v2316_v25 = vadd.f32 %v4248_v53, %v2315_v58  ;;  %v2899_v1 = vpop.f32.mrb[10].mxu1 }
 0x48f   : > { %v2327_v61 = vadd.f32 %v2899_v1, %v4248_v53  ;;  %v2318_v31 = vpop.f32.mrb[11].mxu1  ;;  %v2360_v0 = vadd.f32 %v2324_v29, %v934_v20 }
 0x490   : > { %v2319_v32 = vadd.f32 %v4248_v53, %v2318_v31  ;;  %v2358_v48 = vadd.f32 %v2316_v25, %v932_v57 }
 0x491   : > { %v2361_v33 = vadd.f32 %v2327_v61, %v935_v12 }
 0x492   : > { %v2359_v59 = vadd.f32 %v2319_v32, %v933_v5 }
 0x493   : > { %v2789_v15 = vpack.c.bf16 %v2361_v33, %v2360_v0 }
 0x494   : > { %v2784_v56 = vpack.c.bf16 %v2359_v59, %v2358_v48 }
 0x495   : > { %2805 = vst [vmem:[%s3402_s11 + $0x28] sm:$0xff] %v2789_v15  }
 0x496   : > { %2804 = vst [vmem:[%s3402_s11 + $0x20] sm:$0xff] %v2784_v56  }
 0x49a   : > { %v2902_v3 = vpop.f32.mrb[12].mxu1 }
 0x49b   : > { %v2340_v35 = vadd.f32 %v2902_v3, %v4248_v53  ;;  %v2331_v46 = vpop.f32.mrb[13].mxu1 }
 0x49c   : > { %v2332_v22 = vadd.f32 %v4248_v53, %v2331_v46  ;;  %v2903_v2 = vpop.f32.mrb[14].mxu1 }
 0x49d   : > { %v2343_v54 = vadd.f32 %v2903_v2, %v4248_v53  ;;  %v2334_v37 = vpop.f32.mrb[15].mxu1  ;;  %v2364_v28 = vadd.f32 %v2340_v35, %v938_v8 }
 0x49e   : > { %v2335_v41 = vadd.f32 %v4248_v53, %v2334_v37  ;;  %v2362_v17 = vadd.f32 %v2332_v22, %v936_v38 }
 0x49f   : > { %v2365_v42 = vadd.f32 %v2343_v54, %v939_v9 }
 0x4a0   : > { %v2363_v40 = vadd.f32 %v2335_v41, %v937_v49 }
 0x4a1   : > { %v2799_v51 = vpack.c.bf16 %v2365_v42, %v2364_v28 }
 0x4a2   : > { %v2794_v24 = vpack.c.bf16 %v2363_v40, %v2362_v17 }
 0x4a3   : > { %2807 = vst [vmem:[%s3402_s11 + $0x38] sm:$0xff] %v2799_v51  }
 0x4a4   : > { %2806 = vst [vmem:[%s3402_s11 + $0x30] sm:$0xff] %v2794_v24  }
 0x4a5 PF: > { %s4337_s13 = sld [smem:[#allocation5_spill]]  ;;  %s4338_s18 = sld [smem:[#allocation3_spill]] }
 0x4a6   : > { %s4339_s19 = sld [smem:[#allocation4_spill]]  ;;  %s4340_s20 = sld [smem:[#allocation6_spill]] }
 0x4a7   : > { %s4341_s21 = sld [smem:[#allocation7_spill]] }
 0x4ab   : > { %s26_s22 = sadd.s32 1, %s4337_s13  }
 0x4ac   : > { %p23_p9 = scmp.ge.s32.totalorder %s26_s22, 6  }
 0x4ae   :  { %25 = sbr.rel (!%p23_p9) target bundleno = 8 (0x8), region = 127 }

// kernel: _lambda_.6
= control target key start
LH: loop header
LB: loop body
LE: loop exit
PB: predicated region body
PF: predicated region fallthrough
CT: control target
= control target key end

     0   :  { %s5628_s30 = smov 0   ;;  %s5630_s20 = smov 0   ;;  %s8198_s0 = inlined_call_operand.vmem [shape: f32[2,16,128], index: 0, kind: input, shape index: {}]   ;;  %s8199_s1 = inlined_call_operand.vmem [shape: f32[2,16,16], index: 1, kind: input, shape index: {}]   ;;  %s8200_s2 = inlined_call_operand.vmem [shape: f32[1,128], index: 2, kind: input, shape index: {}]   ;;  %s8201_s3 = inlined_call_operand.vmem [shape: f32[1,128], index: 3, kind: input, shape index: {}]   ;;  %s8202_s4 = inlined_call_operand.vmem [shape: bf16[128,128], index: 4, kind: input, shape index: {}]   ;;  %s8203_s5 = inlined_call_operand.vmem [shape: f32[1,128], index: 5, kind: input, shape index: {}]   ;;  %s8204_s6 = inlined_call_operand.vmem [shape: bf16[128,512], index: 6, kind: input, shape index: {}]   ;;  %s8205_s7 = inlined_call_operand.vmem [shape: f32[1,512], index: 7, kind: input, shape index: {}]   ;;  %s8206_s8 = inlined_call_operand.vmem [shape: bf16[128,128], index: 8, kind: input, shape index: {}]   ;;  %s8207_s9 = inlined_call_operand.vmem [shape: f32[1,128], index: 9, kind: input, shape index: {}]   ;;  %s8208_s10 = inlined_call_operand.vmem [shape: f32[1,128], index: 10, kind: input, shape index: {}]   ;;  %s8209_s11 = inlined_call_operand.vmem [shape: f32[1,128], index: 11, kind: input, shape index: {}]   ;;  %s8210_s12 = inlined_call_operand.vmem [shape: f32[1,128], index: 12, kind: input, shape index: {}]   ;;  %s8211_s13 = inlined_call_operand.vmem [shape: f32[1,128], index: 13, kind: input, shape index: {}]   ;;  %s8212_s14 = inlined_call_operand.vmem [shape: f32[1,128], index: 14, kind: input, shape index: {}]   ;;  %s8213_s15 = inlined_call_operand.vmem [shape: f32[1,128], index: 15, kind: input, shape index: {}]   ;;  %s8214_s16 = inlined_call_operand.vmem [shape: bf16[128,128], index: 16, kind: input, shape index: {}]   ;;  %s8215_s17 = inlined_call_operand.vmem [shape: f32[1,128], index: 17, kind: input, shape index: {}]   ;;  %s8216_s18 = inlined_call_operand.vmem [shape: f32[2,16,128], index: 18, kind: output, shape index: {0}]   ;;  %s8217_s19 = inlined_call_operand.vmem [shape: bf16[2,16,16,128], index: 19, kind: output, shape index: {1}]  }
   0x1   :  { %8295 = sst [smem:[#allocation32_spill]] %s8198_s0  ;;  %s5626_s0 = smov 0  }
   0x2   :  { %8296 = sst [smem:[#allocation33_spill]] %s8199_s1  ;;  %s5632_s21 = smov 0  }
   0x3   :  { %8297 = sst [smem:[#allocation34_spill]] %s8200_s2  ;;  %s5634_s1 = smov 0  }
   0x4   :  { %8298 = sst [smem:[#allocation35_spill]] %s8201_s3 }
   0x5   :  { %8299 = sst [smem:[#allocation36_spill]] %s8208_s10 }
   0x6   :  { %8300 = sst [smem:[#allocation37_spill]] %s8209_s11 }
   0x7   :  { %8301 = sst [smem:[#allocation38_spill]] %s8210_s12 }
   0x8   :  { %8302 = sst [smem:[#allocation39_spill]] %s8211_s13 }
   0x9   :  { %8303 = sst [smem:[#allocation40_spill]] %s8212_s14 }
   0xa   :  { %8304 = sst [smem:[#allocation41_spill]] %s8213_s15 }
   0xb   :  { %8305 = sst [smem:[#allocation42_spill]] %s8214_s16 }
   0xc   :  { %8306 = sst [smem:[#allocation43_spill]] %s8215_s17 }
   0xd LB: > { %8307 = sst [smem:[#allocation3_spill]] %s5508_s20  ;;  %s39_s22 = sadd.s32 1, %s5508_s20  ;;  %s5516_s1 = sphi %s5634_s1, %s30_s1   ;;  %s5512_s21 = sphi %s5632_s21, %s8466_s21   ;;  %s5508_s20 = sphi %s5630_s20, %s8465_s20   ;;  %s5504_s30 = sphi %s5628_s30, %s8464_s30   ;;  %s5500_s0 = sphi %s5626_s0, %s8463_s0  }
   0xe   : > { %8308 = sst [smem:[#allocation4_spill]] %s5512_s21  ;;  %s42_s2 = sadd.s32 1, %s5512_s21 }
   0xf   : > { %8309 = sst [smem:[#allocation5_spill]] %s5516_s1  ;;  %p40_p0 = scmp.ge.s32.totalorder %s39_s22, 2 }
  0x10   : > { %p4612_p1 = scmp.ge.s32.totalorder %s5516_s1, 1  ;;  %p571_p2 = scmp.lt.s32.totalorder %s5516_s1, 5 }
  0x11   : > { %s8468_s22 = smov (%p40_p0, %s39_s22), 0  ;;  %s8470_s2 = smov (!%p40_p0, %s42_s2), %s5512_s21 }
  0x12   : > { %8310 = sst [smem:[#allocation6_spill]] %s8468_s22  ;;  %p572_p3 = pnand %p4612_p1, %p571_p2 }
  0x13   : > { %p44_p4 = scmp.ge.s32.totalorder %s8470_s2, 2 }
  0x14   : > { %575 = sbr.rel (%p572_p3) target bundleno = 1899 (0x76b), region = 92 }
  0x15   : > { %s8472_s2 = smov (%p44_p4, %s8470_s2), 0 }
  0x16   : > { %8311 = sst [smem:[#allocation7_spill]] %s8472_s2 }
  0x1b   : > { %p648_p5 = scmp.lt.s32.totalorder %s5504_s30, 1  ;;  %p655_p6 = scmp.lt.s32.totalorder %s5500_s0, 1 }
  0x1c   : > { %s5660_s23 = sshll.u32 %s5500_s0, 3  ;;  %s8312_s28 = sld [smem:[#allocation32_spill]] }
  0x1d   : > { %s8474_s30 = smov (!%p648_p5, %s5504_s30), 1  ;;  %p672_p7 = scmp.lt.s32.totalorder %s5660_s23, 15 }
  0x1e   : > { %s656_s24 = scalar_select %p655_p6, %s5500_s0, 1 }
  0x1f   : > { %s4808_s25 = sshll.u32 %s8474_s30, 4  ;;  %s4615_s3 = sshll.u32 %s8474_s30, 1 }
  0x20   : > { %s658_s2 = sadd.s32 %s4615_s3, %s656_s24  ;;  %s8313_s1 = sld [smem:[#allocation33_spill]] }
  0x21   : > { %s4616_s22 = sshll.u32 %s658_s2, 3  ;;  %s4621_s16 = sshll.u32 %s8474_s30, 5 }
  0x22   : > { %s5666_s29 = scalar_lea.vmem %s8312_s28, %s4808_s25  ;;  %s5677_s15 = scalar_lea.vmem %s8216_s18, %s4616_s22 }
  0x23   : > { %s673_s14 = scalar_select %p672_p7, %s5660_s23, 15 }
  0x24   : > { %p4623_p8 = scmp.ne.s32.totalorder %s5500_s0, 0 }
  0x25   : > { %s4620_s13 = sshll.u32 %s673_s14, 1  ;;  %v5145_v0 = vld [vmem:[%s8204_s6 + $0x4] ss:$16 sps:$4 sm:$0xff] (!%p4623_p8)   ;;  %v5147_v1 = vld [vmem:[%s8204_s6 + $0xc] ss:$16 sps:$4 sm:$0xff] (!%p4623_p8)   ;;  %v5518_v2 = vmov (!%p4623_p8), 0   ;;  %v722_v36 = vlaneseq (!%p4623_p8) }
  0x26   : > { %s5672_s17 = scalar_lea.vmem %s8313_s1, %s4616_s22  ;;  %s676_s12 = sadd.s32 %s4621_s16, %s4620_s13  ;;  %934 = vmatprep.mubr.bf16.mxu0 (!%p4623_p8), %v5518_v2  ;;  %977 = vmatprep.mubr.bf16.mxu1 (!%p4623_p8), %v5518_v2  ;;  %v5149_v3 = vld [vmem:[%s8204_s6] ss:$16 sps:$4 sm:$0xff] (!%p4623_p8)   ;;  %v5150_v4 = vld [vmem:[%s8204_s6 + $0x8] ss:$16 sps:$4 sm:$0xff] (!%p4623_p8)   ;;  %v5151_v5 = vld [vmem:[%s8204_s6 + $0x24] ss:$16 sps:$4 sm:$0xff] (!%p4623_p8)  }
  0x27   : > { %s4622_s26 = sshll.u32 %s676_s12, 2  ;;  %684 = sbr.rel (%p4623_p8) target bundleno = 289 (0x121), region = 96  ;;  %902 = vmatprep.subr.bf16.mxu0 (!%p4623_p8), %v5145_v0  ;;  %945 = vmatprep.subr.bf16.mxu1 (!%p4623_p8), %v5147_v1  ;;  %v5153_v6 = vld [vmem:[%s8204_s6 + $0x2c] ss:$16 sps:$4 sm:$0xff] (!%p4623_p8)   ;;  %v5155_v7 = vld [vmem:[%s8204_s6 + $0x20] ss:$16 sps:$4 sm:$0xff] (!%p4623_p8)  }
  0x28   : > { %s5683_s2 = scalar_lea.vmem %s8217_s19, %s4622_s26  ;;  %903 = vmatpush1.bf16.msra.mxu0 (!%p4623_p8), %v5149_v3  ;;  %946 = vmatpush1.bf16.msra.mxu1 (!%p4623_p8), %v5150_v4  ;;  %v5156_v8 = vld [vmem:[%s8204_s6 + $0x28] ss:$16 sps:$4 sm:$0xff] (!%p4623_p8)   ;;  %v5157_v9 = vld [vmem:[%s8204_s6 + $0x44] ss:$16 sps:$4 sm:$0xff] (!%p4623_p8)   ;;  %v5159_v10 = vld [vmem:[%s8204_s6 + $0x4c] ss:$16 sps:$4 sm:$0xff] (!%p4623_p8)  }
  0x29   : > { %904 = vmatprep.subr.bf16.mxu0 (!%p4623_p8), %v5151_v5  ;;  %947 = vmatprep.subr.bf16.mxu1 (!%p4623_p8), %v5153_v6  ;;  %v5161_v11 = vld [vmem:[%s8204_s6 + $0x40] ss:$16 sps:$4 sm:$0xff] (!%p4623_p8)   ;;  %v5162_v12 = vld [vmem:[%s8204_s6 + $0x48] ss:$16 sps:$4 sm:$0xff] (!%p4623_p8)   ;;  %v5163_v13 = vld [vmem:[%s8204_s6 + $0x64] ss:$16 sps:$4 sm:$0xff] (!%p4623_p8)  }
  0x2a   : > { %v5165_v14 = vld [vmem:[%s8204_s6 + $0x6c] ss:$16 sps:$4 sm:$0xff] (!%p4623_p8)   ;;  %v5167_v15 = vld [vmem:[%s8204_s6 + $0x60] ss:$16 sps:$4 sm:$0xff] (!%p4623_p8)   ;;  %v5168_v16 = vld [vmem:[%s8204_s6 + $0x68] ss:$16 sps:$4 sm:$0xff] (!%p4623_p8)  }
  0x2b   : > { %v5169_v17 = vld [vmem:[%s8204_s6 + $0x84] ss:$16 sps:$4 sm:$0xff] (!%p4623_p8)   ;;  %v5171_v18 = vld [vmem:[%s8204_s6 + $0x8c] ss:$16 sps:$4 sm:$0xff] (!%p4623_p8)   ;;  %v5173_v19 = vld [vmem:[%s8204_s6 + $0x80] ss:$16 sps:$4 sm:$0xff] (!%p4623_p8)  }
  0x2c   : > { %905 = vmatpush1.bf16.msra.mxu0 (!%p4623_p8), %v5155_v7  ;;  %948 = vmatpush1.bf16.msra.mxu1 (!%p4623_p8), %v5156_v8  ;;  %v5174_v20 = vld [vmem:[%s8204_s6 + $0x88] ss:$16 sps:$4 sm:$0xff] (!%p4623_p8)   ;;  %v5175_v21 = vld [vmem:[%s8204_s6 + $0xa4] ss:$16 sps:$4 sm:$0xff] (!%p4623_p8)   ;;  %v5177_v22 = vld [vmem:[%s8204_s6 + $0xac] ss:$16 sps:$4 sm:$0xff] (!%p4623_p8)  }
  0x2d   : > { %906 = vmatprep.subr.bf16.mxu0 (!%p4623_p8), %v5157_v9  ;;  %949 = vmatprep.subr.bf16.mxu1 (!%p4623_p8), %v5159_v10  ;;  %v5179_v23 = vld [vmem:[%s8204_s6 + $0xa0] ss:$16 sps:$4 sm:$0xff] (!%p4623_p8)   ;;  %v5180_v24 = vld [vmem:[%s8204_s6 + $0xa8] ss:$16 sps:$4 sm:$0xff] (!%p4623_p8)   ;;  %v5181_v25 = vld [vmem:[%s8204_s6 + $0xc4] ss:$16 sps:$4 sm:$0xff] (!%p4623_p8)  }
  0x2e   : > { %v5183_v26 = vld [vmem:[%s8204_s6 + $0xcc] ss:$16 sps:$4 sm:$0xff]   ;;  %v5185_v27 = vld [vmem:[%s8204_s6 + $0xc0] ss:$16 sps:$4 sm:$0xff]   ;;  %v5186_v28 = vld [vmem:[%s8204_s6 + $0xc8] ss:$16 sps:$4 sm:$0xff]  }
  0x2f   : > { %v5187_v29 = vld [vmem:[%s8204_s6 + $0xe4] ss:$16 sps:$4 sm:$0xff]   ;;  %v5189_v30 = vld [vmem:[%s8204_s6 + $0xec] ss:$16 sps:$4 sm:$0xff]   ;;  %v5191_v31 = vld [vmem:[%s8204_s6 + $0xe0] ss:$16 sps:$4 sm:$0xff]  }
  0x30   : > { %907 = vmatpush1.bf16.msra.mxu0 %v5161_v11  ;;  %950 = vmatpush1.bf16.msra.mxu1 %v5162_v12  ;;  %v5192_v32 = vld [vmem:[%s8204_s6 + $0xe8] ss:$16 sps:$4 sm:$0xff]   ;;  %v685_v33 = vld [vmem:[%s5666_s29] sm:$0xff]  ;;  %v723_v37 = vshrl.u32 %v722_v36, 7 }
  0x31   : > { %908 = vmatprep.subr.bf16.mxu0 %v5163_v13  ;;  %951 = vmatprep.subr.bf16.mxu1 %v5165_v14  ;;  %v686_v34 = vld [vmem:[%s5666_s29 + $0x8] sm:$0xff]  ;;  %v720_v40 = vld [vmem:[%s8205_s7] sm:$0xf] }
  0x32   : > { %v687_v35 = vpack.c.bf16 %v686_v34, %v685_v33  ;;  %v724_v38 = vsub.s32 0, %v723_v37  ;;  %v732_v39 = vsub.s32 2, %v723_v37  ;;  %v728_v41 = vsub.s32 1, %v723_v37 }
  0x33   : > { %v736_v42 = vsub.s32 3, %v723_v37 }
  0x34   : > { %909 = vmatpush1.bf16.msra.mxu0 %v5167_v15  ;;  %952 = vmatpush1.bf16.msra.mxu1 %v5168_v16  ;;  %v725_v43 = vrot.slane %v720_v40, %v724_v38  ;;  %v733_v44 = vrot.slane %v720_v40, %v732_v39  ;;  %v729_v45 = vrot.slane %v720_v40, %v728_v41 }
  0x35   : > { %910 = vmatprep.subr.bf16.mxu0 %v5169_v17  ;;  %953 = vmatprep.subr.bf16.mxu1 %v5171_v18  ;;  %v737_v46 = vrot.slane %v720_v40, %v736_v42 }
  0x38   : > { %911 = vmatpush1.bf16.msra.mxu0 %v5173_v19  ;;  %954 = vmatpush1.bf16.msra.mxu1 %v5174_v20 }
  0x39   : > { %912 = vmatprep.subr.bf16.mxu0 %v5175_v21  ;;  %955 = vmatprep.subr.bf16.mxu1 %v5177_v22 }
  0x3c   : > { %913 = vmatpush1.bf16.msra.mxu0 %v5179_v23  ;;  %956 = vmatpush1.bf16.msra.mxu1 %v5180_v24 }
  0x3d   : > { %914 = vmatprep.subr.bf16.mxu0 %v5181_v25  ;;  %957 = vmatprep.subr.bf16.mxu1 %v5183_v26 }
  0x40   : > { %915 = vmatpush1.bf16.msra.mxu0 %v5185_v27  ;;  %958 = vmatpush1.bf16.msra.mxu1 %v5186_v28 }
  0x41   : > { %916 = vmatprep.subr.bf16.mxu0 %v5187_v29  ;;  %959 = vmatprep.subr.bf16.mxu1 %v5189_v30 }
  0x44   : > { %917 = vmatpush1.bf16.msra.mxu0 %v5191_v31  ;;  %960 = vmatpush1.bf16.msra.mxu1 %v5192_v32 }
  0x47   : > { %935 = vmatmul.mubr.bf16.vlgmr.msra.gmra.mrb[0].mxu0 %v687_v35  ;;  %978 = vmatmul.mubr.bf16.vlgmr.msra.gmra.mrb[0].mxu1 %v687_v35 }
 0x11a   : > { %v936_v47 = vpop.f32.mrb[0].mxu0  ;;  %v979_v48 = vpop.f32.mrb[0].mxu1 }
 0x11b   : > { %v937_v49 = vadd.f32 %v936_v47, %v725_v43  ;;  %v980_v50 = vadd.f32 %v979_v48, %v733_v44  ;;  %v938_v51 = vpop.f32.mrb[1].mxu0  ;;  %v981_v52 = vpop.f32.mrb[1].mxu1 }
 0x11c   : > { %v939_v53 = vadd.f32 %v938_v51, %v729_v45  ;;  %v982_v54 = vadd.f32 %v981_v52, %v737_v46  ;;  %v940_v55 = vpop.f32.mrb[2].mxu0  ;;  %v983_v56 = vpop.f32.mrb[2].mxu1 }
 0x11d   : > { %988 = vst [vmem:[#allocation2] sm:$0xff] %v937_v49  ;;  %990 = vst [vmem:[#allocation2 + $0x10] sm:$0xff] %v980_v50  ;;  %v941_v57 = vadd.f32 %v940_v55, %v725_v43  ;;  %v984_v58 = vadd.f32 %v983_v56, %v733_v44  ;;  %v942_v59 = vpop.f32.mrb[3].mxu0  ;;  %v985_v60 = vpop.f32.mrb[3].mxu1 }
 0x11e   : > { %989 = vst [vmem:[#allocation2 + $0x8] sm:$0xff] %v939_v53  ;;  %991 = vst [vmem:[#allocation2 + $0x18] sm:$0xff] %v982_v54  ;;  %v943_v61 = vadd.f32 %v942_v59, %v729_v45  ;;  %v986_v62 = vadd.f32 %v985_v60, %v737_v46 }
 0x11f   : > { %992 = vst [vmem:[#allocation2 + $0x20] sm:$0xff] %v941_v57  ;;  %994 = vst [vmem:[#allocation2 + $0x30] sm:$0xff] %v984_v58 }
 0x120   : > { %993 = vst [vmem:[#allocation2 + $0x28] sm:$0xff] %v943_v61  ;;  %995 = vst [vmem:[#allocation2 + $0x38] sm:$0xff] %v986_v62 }
 0x121 PF: > { %v1009_v63 = vlaneseq  ;;  %v1008_v1 = vld [vmem:[%s5672_s17] sm:$0xff]  ;;  %s8316_s3 = sld [smem:[#allocation34_spill]]  ;;  %s8317_s25 = sld [smem:[#allocation35_spill]]  ;;  %v8246_v51 = vmov 683565275  }
 0x122   : > { %v8232_v53 = vmov 2475754826   ;;  %v8230_v55 = vmov 2131351028   ;;  %v8234_v57 = vmov 2102212464  }
 0x123   : > { %v5787_v0 = vshrl.u32 %v1009_v63, 7  ;;  %v8238_v62 = vmov 920167782   ;;  %s1001_s11 = sshra.s32 %s5660_s23, 3  ;;  %s8446_s1 = sld [smem:[#allocation38_spill]] }
 0x124   : > { %s7468_s12 = sshll.u32 %s1001_s11, 5  ;;  %s8447_s24 = sld [smem:[#allocation39_spill]] }
 0x125   : > { %8314 = vst [vmem:[#allocation8_spill] sm:$0xff] %v5787_v0  ;;  %v1022_v2 = vsub.s32 1, %v5787_v0  ;;  %v5792_v3 = vsub.s32 0, %v5787_v0  ;;  %v1033_v4 = vsub.s32 2, %v5787_v0  ;;  %v1044_v5 = vsub.s32 3, %v5787_v0  ;;  %s1005_s13 = scalar_lea.vmem [#allocation2], %s7468_s12 }
 0x126   : > { %v1055_v6 = vsub.s32 4, %v5787_v0  ;;  %v1066_v7 = vsub.s32 5, %v5787_v0  ;;  %v1077_v14 = vsub.s32 6, %v5787_v0  ;;  %v1088_v16 = vsub.s32 7, %v5787_v0  ;;  %s8450_s27 = sld [smem:[#allocation42_spill]]  ;;  %s8451_s20 = sld [smem:[#allocation40_spill]] }
 0x127   : > { %8315 = vst [vmem:[#allocation9_spill] sm:$0xff] %v5792_v3  ;;  %v1023_v8 = vrot.slane %v1008_v1, %v1022_v2  ;;  %v1012_v9 = vrot.slane %v1008_v1, %v5792_v3  ;;  %v1034_v10 = vrot.slane %v1008_v1, %v1033_v4  ;;  %v1045_v11 = vrot.slane %v1008_v1, %v1044_v5  ;;  %v5804_v18 = vld [vmem:[%s8316_s3] ss:$0 sm:$0xff]  ;;  %s8452_s11 = sld [smem:[#allocation41_spill]]  ;;  %s8453_s14 = sld [smem:[#allocation36_spill]] }
 0x128   : > { %v1056_v12 = vrot.slane %v1008_v1, %v1055_v6  ;;  %v1067_v13 = vrot.slane %v1008_v1, %v1066_v7  ;;  %v1078_v15 = vrot.slane %v1008_v1, %v1077_v14  ;;  %v1089_v17 = vrot.slane %v1008_v1, %v1088_v16  ;;  %v5809_v19 = vld [vmem:[%s8317_s25] ss:$0 sm:$0xff]  ;;  %s8454_s30 = sld [smem:[#allocation37_spill]] }
 0x129   : > { %1025 = vbcast.lane.b32.xlu1 %v1023_v8, 256  ;;  %1014 = vbcast.lane.b32.xlu0 %v1012_v9, 256  ;;  %v8236_v4 = vmov 1326507024  }
 0x12d   : > { %1029 = vbcast.lane.b32.xlu1 %v1023_v8, 264  ;;  %1018 = vbcast.lane.b32.xlu0 %v1012_v9, 264 }
 0x131   : > { %1040 = vbcast.lane.b32.xlu1 %v1034_v10, 264  ;;  %1036 = vbcast.lane.b32.xlu0 %v1034_v10, 256 }
 0x135   : > { %1051 = vbcast.lane.b32.xlu1 %v1045_v11, 264  ;;  %1047 = vbcast.lane.b32.xlu0 %v1045_v11, 256 }
 0x139   : > { %1062 = vbcast.lane.b32.xlu1 %v1056_v12, 264  ;;  %1058 = vbcast.lane.b32.xlu0 %v1056_v12, 256 }
 0x13d   : > { %1073 = vbcast.lane.b32.xlu1 %v1067_v13, 264  ;;  %1069 = vbcast.lane.b32.xlu0 %v1067_v13, 256 }
 0x141   : > { %1084 = vbcast.lane.b32.xlu1 %v1078_v15, 264  ;;  %1080 = vbcast.lane.b32.xlu0 %v1078_v15, 256 }
 0x145   : > { %1095 = vbcast.lane.b32.xlu1 %v1089_v17, 264  ;;  %1091 = vbcast.lane.b32.xlu0 %v1089_v17, 256 }
 0x19b   : > { %v1026_v20 = vpop.permute.xlu1 %1025  ;;  %v1015_v25 = vpop.permute.xlu0 %1014 }
 0x19c   : > { %v1106_v21 = vmul.f32 %v5804_v18, %v1026_v20  ;;  %v1104_v29 = vmul.f32 %v5804_v18, %v1015_v25 }
 0x19e   : > { %v5813_v22 = vadd.f32 %v5809_v19, %v1106_v21  ;;  %v5827_v37 = vadd.f32 %v5809_v19, %v1104_v29 }
 0x19f   : > { %v1030_v23 = vpop.permute.xlu1 %1029 }
 0x1a0   : > { %8318 = vst [vmem:[#allocation10_spill] sm:$0xff] %v5813_v22  ;;  %v1354_v24 = vand.u32 2139095040, %v5813_v22  ;;  %v1107_v26 = vmul.f32 %v5804_v18, %v1030_v23  ;;  %v8229_v28 = vand.u32 2147483647, %v5813_v22  ;;  %v1146_v46 = vand.u32 2139095040, %v5827_v37 }
 0x1a2   : > { %v1355_v27 = vshrl.u32 %v1354_v24, 23  ;;  %v5820_v30 = vadd.f32 %v5809_v19, %v1107_v26  ;;  %v1358_v36 = vand.u32 8388607, %v8229_v28 }
 0x1a3   : > { %v1041_v34 = vpop.permute.xlu1 %1040 }
 0x1a4   : > { %8319 = vst [vmem:[#allocation11_spill] sm:$0xff] %v5820_v30  ;;  %v4669_v31 = vadd.s32 4294967169, %v1355_v27  ;;  %v8228_v32 = vand.u32 2147483647, %v5820_v30  ;;  %v1458_v33 = vand.u32 2139095040, %v5820_v30  ;;  %v1109_v40 = vmul.f32 %v5804_v18, %v1041_v34 }
 0x1a5   : > { %v1359_v44 = vor.u32 8388608, %v1358_v36 }
 0x1a6   : > { %v1361_v35 = vadd.s32 1, %v4669_v31  ;;  %v1459_v38 = vshrl.u32 %v1458_v33, 23  ;;  %v1462_v39 = vand.u32 8388607, %v8228_v32  ;;  %v5834_v50 = vadd.f32 %v5809_v19, %v1109_v40 }
 0x1a7   : > { %v1399_v24 = vshll.u32 %v1359_v44, 8 }
 0x1a8   : > { %vm1362_vm0 = vcmp.gt.s32.totalorder %v1361_v35, 0  ;;  %v4673_v42 = vadd.s32 4294967169, %v1459_v38  ;;  %v1463_v48 = vor.u32 8388608, %v1462_v39  ;;  %8320 = vst [vmem:[#allocation12_spill] sm:$0xff] %v5834_v50  ;;  %v1666_v40 = vand.u32 2139095040, %v5834_v50 }
 0x1a9   : > { %v1363_v41 = vsel %vm1362_vm0, %v1361_v35, 0 }
 0x1aa   : > { %v1365_v43 = vand.u32 31, %v1363_v41  ;;  %v1364_v45 = vshrl.u32 %v1363_v41, 5  ;;  %v1465_v49 = vadd.s32 1, %v4673_v42  ;;  %v5854_v39 = vshll.u32 %v1463_v48, 8 }
 0x1ac   : > { %v1366_v47 = vsub.s32 32, %v1365_v43  ;;  %v1368_v52 = vshll.u32 %v8246_v51, %v1365_v43  ;;  %v1371_v54 = vshll.u32 %v8232_v53, %v1365_v43  ;;  %v1374_v56 = vshll.u32 %v8230_v55, %v1365_v43 }
 0x1ad   : > { %v1377_v58 = vshll.u32 %v8234_v57, %v1365_v43  ;;  %v1380_v63 = vshll.u32 %v8238_v62, %v1365_v43  ;;  %vm1383_vm1 = vcmp.lt.s32.totalorder %v1364_v45, 1  ;;  %vm1385_vm2 = vcmp.lt.s32.totalorder %v1364_v45, 3 }
 0x1ae   : > { %v1369_v59 = vshrl.u32 %v8232_v53, %v1366_v47  ;;  %v1372_v60 = vshrl.u32 %v8230_v55, %v1366_v47  ;;  %v1375_v61 = vshrl.u32 %v8234_v57, %v1366_v47  ;;  %v1367_v1 = vshrl.u32 %v8246_v51, %v1366_v47 }
 0x1af   : > { %v1378_v2 = vshrl.u32 %v8238_v62, %v1366_v47  ;;  %v1381_v5 = vshrl.u32 %v8236_v4, %v1366_v47  ;;  %vm1386_vm3 = vcmp.lt.s32.totalorder %v1364_v45, 4  ;;  %vm1466_vm4 = vcmp.gt.s32.totalorder %v1465_v49, 0 }
 0x1b0   : > { %v1370_v6 = vor.u32 %v1369_v59, %v1368_v52  ;;  %v1373_v7 = vor.u32 %v1372_v60, %v1371_v54  ;;  %v1376_v8 = vor.u32 %v1375_v61, %v1374_v56  ;;  %v1467_v20 = vsel %vm1466_vm4, %v1465_v49, 0 }
 0x1b1   : > { %v1379_v9 = vor.u32 %v1378_v2, %v1377_v58  ;;  %v1382_v10 = vor.u32 %v1381_v5, %v1380_v63  ;;  %vm1384_vm5 = vcmp.lt.s32.totalorder %v1364_v45, 2  ;;  %v1469_v29 = vand.u32 31, %v1467_v20 }
 0x1b2   : > { %v1387_v11 = vsel %vm1383_vm1, %v1367_v1, %v1370_v6  ;;  %v1388_v12 = vsel %vm1386_vm3, %v1376_v8, 2102212464  ;;  %v1391_v13 = vsel %vm1383_vm1, %v1370_v6, %v1373_v7  ;;  %v1395_v14 = vsel %vm1383_vm1, %v1373_v7, %v1376_v8 }
 0x1b3   : > { %v1389_v15 = vsel %vm1385_vm2, %v1373_v7, %v1388_v12  ;;  %v1392_v16 = vsel %vm1386_vm3, %v1379_v9, 920167782  ;;  %v1396_v17 = vsel %vm1386_vm3, %v1382_v10, 1326507024  ;;  %v1468_v36 = vshrl.u32 %v1467_v20, 5 }
 0x1b4   : > { %v1393_v21 = vsel %vm1385_vm2, %v1376_v8, %v1392_v16  ;;  %v1397_v23 = vsel %vm1385_vm2, %v1379_v9, %v1396_v17  ;;  %v1390_v25 = vsel %vm1384_vm5, %v1387_v11, %v1389_v15  ;;  %v1470_v38 = vsub.s32 32, %v1469_v29 }
 0x1b5   : > { %v1394_v26 = vsel %vm1384_vm5, %v1391_v13, %v1393_v21  ;;  %v1398_v27 = vsel %vm1384_vm5, %v1395_v14, %v1397_v23  ;;  %v1406_v41 = vmul.u32 %v1399_v24, %v1390_v25  ;;  %v1472_v42 = vshll.u32 %v8246_v51, %v1469_v29  ;;  %v1019_v14 = vpop.permute.xlu0 %1018 }
 0x1b6   : > { %v5847_v31 = vmul.u32.u64.low %v1399_v24, %v1398_v27  ;;  %v5848_v33 = vmul.u32.u64.high %v1399_v24, %v1398_v27, %v5847_v31  ;;  %v5850_v34 = vmul.u32.u64.low %v1399_v24, %v1394_v26  ;;  %v5851_v35 = vmul.u32.u64.high %v1399_v24, %v1394_v26, %v5850_v34 }
 0x1b7   : > { %v1475_v43 = vshll.u32 %v8232_v53, %v1469_v29  ;;  %v1478_v44 = vshll.u32 %v8230_v55, %v1469_v29  ;;  %v1473_v45 = vshrl.u32 %v8232_v53, %v1470_v38  ;;  %v1476_v47 = vshrl.u32 %v8230_v55, %v1470_v38 }
 0x1b8   : > { %v1479_v49 = vshrl.u32 %v8234_v57, %v1470_v38  ;;  %v1481_v52 = vshll.u32 %v8234_v57, %v1469_v29  ;;  %vm1408_vm6 = vc.u32 %v5848_v33, %v5850_v34  ;;  %v1409_v48 = vadd.s32 1, %v5851_v35 }
 0x1b9   : > { %v1482_v54 = vshrl.u32 %v8238_v62, %v1470_v38  ;;  %v1484_v56 = vshll.u32 %v8238_v62, %v1469_v29  ;;  %v1474_v58 = vor.u32 %v1473_v45, %v1472_v42  ;;  %v1477_v59 = vor.u32 %v1476_v47, %v1475_v43 }
 0x1ba   : > { %v1480_v60 = vor.u32 %v1479_v49, %v1478_v44  ;;  %v1485_v61 = vshrl.u32 %v8236_v4, %v1470_v38  ;;  %v1410_v63 = vsel %vm1408_vm6, %v1409_v48, %v5851_v35  ;;  %vm1487_vm7 = vcmp.lt.s32.totalorder %v1468_v36, 1  ;;  %v1037_v49 = vpop.permute.xlu0 %1036 }
 0x1bb   : > { %v1483_v1 = vor.u32 %v1482_v54, %v1481_v52  ;;  %vm1490_vm8 = vcmp.lt.s32.totalorder %v1468_v36, 4  ;;  %v1411_v2 = vadd.s32 %v1410_v63, %v1406_v41  ;;  %v1471_v5 = vshrl.u32 %v8246_v51, %v1470_v38 }
 0x1bc   : > { %v1486_v6 = vor.u32 %v1485_v61, %v1484_v56  ;;  %v1492_v7 = vsel %vm1490_vm8, %v1480_v60, 2102212464  ;;  %vm1489_vm9 = vcmp.lt.s32.totalorder %v1468_v36, 3  ;;  %v1495_v8 = vsel %vm1487_vm7, %v1474_v58, %v1477_v59 }
 0x1bd   : > { %v1496_v9 = vsel %vm1490_vm8, %v1483_v1, 920167782  ;;  %v1499_v10 = vsel %vm1487_vm7, %v1477_v59, %v1480_v60  ;;  %v1412_v11 = vadd.s32 536870912, %v1411_v2  ;;  %vm1488_vm10 = vcmp.lt.s32.totalorder %v1468_v36, 2 }
 0x1be   : > { %v1497_v12 = vsel %vm1489_vm9, %v1480_v60, %v1496_v9  ;;  %v1500_v13 = vsel %vm1490_vm8, %v1486_v6, 1326507024  ;;  %v1491_v15 = vsel %vm1487_vm7, %v1471_v5, %v1474_v58  ;;  %v1493_v16 = vsel %vm1489_vm9, %v1477_v59, %v1492_v7 }
 0x1bf   : > { %v1498_v17 = vsel %vm1488_vm10, %v1495_v8, %v1497_v12  ;;  %v1501_v20 = vsel %vm1489_vm9, %v1483_v1, %v1500_v13  ;;  %v5873_v21 = vshrl.u32 %v1412_v11, 30  ;;  %v1105_v29 = vmul.f32 %v5804_v18, %v1019_v14 }
 0x1c0   : > { %v1502_v23 = vsel %vm1488_vm10, %v1499_v10, %v1501_v20  ;;  %v5877_v24 = vmul.u32.u64.low %v5854_v39, %v1498_v17  ;;  %v5878_v25 = vmul.u32.u64.high %v5854_v39, %v1498_v17, %v5877_v24  ;;  %v1667_v31 = vshrl.u32 %v1666_v40, 23 }
 0x1c1   : > { %8321 = vst [vmem:[#allocation13_spill] sm:$0xff] %v5873_v21  ;;  %v5882_v26 = vmul.u32.u64.low %v5854_v39, %v1502_v23  ;;  %v5883_v27 = vmul.u32.u64.high %v5854_v39, %v1502_v23, %v5882_v26  ;;  %v1414_v35 = vshll.u32 %v5873_v21, 30  ;;  %v1147_v38 = vshrl.u32 %v1146_v46, 23 }
 0x1c2   : > { %v1494_v41 = vsel %vm1488_vm10, %v1491_v15, %v1493_v16  ;;  %v4681_v42 = vadd.s32 4294967169, %v1667_v31  ;;  %v1513_v44 = vadd.s32 1, %v5878_v25  ;;  %v5897_v47 = vadd.f32 %v5809_v19, %v1105_v29  ;;  %v1052_v31 = vpop.permute.xlu1 %1051 }
 0x1c3   : > { %v5890_v43 = vsub.s32 %v1411_v2, %v1414_v35  ;;  %v1510_v45 = vmul.u32 %v5854_v39, %v1494_v41  ;;  %vm1512_vm11 = vc.u32 %v5883_v27, %v5877_v24  ;;  %v4661_v46 = vadd.s32 4294967169, %v1147_v38 }
 0x1c4   : > { %v1673_v40 = vadd.s32 1, %v4681_v42  ;;  %v1514_v36 = vsel %vm1512_vm11, %v1513_v44, %v5878_v25  ;;  %v8225_v48 = vand.u32 2147483647, %v5834_v50  ;;  %v1108_v58 = vmul.f32 %v5804_v18, %v1037_v49 }
 0x1c5   : > { %v1417_v52 = vsub.s32 0, %v5890_v43  ;;  %v1515_v54 = vadd.s32 %v1514_v36, %v1510_v45  ;;  %v1153_v61 = vadd.s32 1, %v4661_v46  ;;  %v1250_v63 = vand.u32 2139095040, %v5897_v47 }
 0x1c6   : > { %vm1674_vm12 = vcmp.gt.s32.totalorder %v1673_v40, 0  ;;  %v1670_v1 = vand.u32 8388607, %v8225_v48  ;;  %v5913_v11 = vadd.f32 %v5809_v19, %v1108_v58 }
 0x1c7   : > { %v4670_v56 = vmin.u32 %v1417_v52, %v5890_v43  ;;  %v1675_v39 = vsel %vm1674_vm12, %v1673_v40, 0  ;;  %v1516_v59 = vadd.s32 536870912, %v1515_v54  ;;  %vm1154_vm13 = vcmp.gt.s32.totalorder %v1153_v61, 0 }
 0x1c8   : > { %v1677_v60 = vand.u32 31, %v1675_v39  ;;  %v1676_v9 = vshrl.u32 %v1675_v39, 5  ;;  %8323 = vst [vmem:[#allocation15_spill] sm:$0xff] %v5913_v11  ;;  %v1671_v38 = vor.u32 8388608, %v1670_v1  ;;  %v1562_v41 = vand.u32 2139095040, %v5913_v11 }
 0x1c9   : > { %v5907_v2 = vshrl.u32 %v1516_v59, 30  ;;  %v1419_v8 = vclz %v4670_v56  ;;  %v1155_v40 = vsel %vm1154_vm13, %v1153_v61, 0  ;;  %v1251_v49 = vshrl.u32 %v1250_v63, 23 }
 0x1ca   : > { %v1678_v5 = vsub.s32 32, %v1677_v60  ;;  %v1680_v6 = vshll.u32 %v8246_v51, %v1677_v60  ;;  %v1683_v7 = vshll.u32 %v8232_v53, %v1677_v60  ;;  %v1686_v10 = vshll.u32 %v8230_v55, %v1677_v60 }
 0x1cb   : > { %8322 = vst [vmem:[#allocation14_spill] sm:$0xff] %v5907_v2  ;;  %v1518_v12 = vshll.u32 %v5907_v2, 30  ;;  %v1689_v15 = vshll.u32 %v8234_v57, %v1677_v60  ;;  %v1692_v20 = vshll.u32 %v8238_v62, %v1677_v60  ;;  %v4671_v35 = vadd.s32 4294967294, %v1419_v8 }
 0x1cc   : > { %v1681_v13 = vshrl.u32 %v8232_v53, %v1678_v5  ;;  %v1684_v14 = vshrl.u32 %v8230_v55, %v1678_v5  ;;  %v1687_v16 = vshrl.u32 %v8234_v57, %v1678_v5  ;;  %v1690_v17 = vshrl.u32 %v8238_v62, %v1678_v5 }
 0x1cd   : > { %v5922_v23 = vsub.s32 %v1515_v54, %v1518_v12  ;;  %v1693_v29 = vshrl.u32 %v8236_v4, %v1678_v5  ;;  %vm1695_vm14 = vcmp.lt.s32.totalorder %v1676_v9, 1  ;;  %vm1697_vm15 = vcmp.lt.s32.totalorder %v1676_v9, 3 }
 0x1ce   : > { %v1682_v25 = vor.u32 %v1681_v13, %v1680_v6  ;;  %v1685_v26 = vor.u32 %v1684_v14, %v1683_v7  ;;  %v1688_v44 = vor.u32 %v1687_v16, %v1686_v10  ;;  %v1691_v45 = vor.u32 %v1690_v17, %v1689_v15 }
 0x1cf   : > { %v1521_v42 = vsub.s32 0, %v5922_v23  ;;  %v1111_v52 = vmul.f32 %v5804_v18, %v1052_v31  ;;  %v1694_v46 = vor.u32 %v1693_v29, %v1692_v20  ;;  %vm1696_vm0 = vcmp.lt.s32.totalorder %v1676_v9, 2 }
 0x1d0   : > { %vm1698_vm1 = vcmp.lt.s32.totalorder %v1676_v9, 4  ;;  %v1703_v36 = vsel %vm1695_vm14, %v1682_v25, %v1685_v26  ;;  %vm4672_vm2 = vcmp.lt.s32.totalorder %v4671_v35, 0  ;;  %v1679_v54 = vshrl.u32 %v8246_v51, %v1678_v5 }
 0x1d1   : > { %v1704_v56 = vsel %vm1698_vm1, %v1691_v45, 920167782  ;;  %v1563_v39 = vshrl.u32 %v1562_v41, 23  ;;  %v4674_v58 = vmin.u32 %v1521_v42, %v5922_v23  ;;  %v1700_v59 = vsel %vm1698_vm1, %v1688_v44, 2102212464  ;;  %v1048_v42 = vpop.permute.xlu0 %1047 }
 0x1d2   : > { %v1705_v60 = vsel %vm1697_vm15, %v1688_v44, %v1704_v56  ;;  %v1711_v61 = vshll.u32 %v1671_v38, 8  ;;  %v4665_v63 = vadd.s32 4294967169, %v1251_v49  ;;  %v1707_v6 = vsel %vm1695_vm14, %v1685_v26, %v1688_v44 }
 0x1d3   : > { %v1706_v1 = vsel %vm1696_vm0, %v1703_v36, %v1705_v60  ;;  %v8227_v7 = vand.u32 2147483647, %v5913_v11  ;;  %v5936_v8 = vsel %vm4672_vm2, 0, %v4671_v35  ;;  %v1708_v10 = vsel %vm1698_vm1, %v1694_v46, 1326507024 }
 0x1d4   : > { %v5938_v12 = vmul.u32.u64.low %v1711_v61, %v1706_v1  ;;  %v5939_v5 = vmul.u32.u64.high %v1711_v61, %v1706_v1, %v5938_v12  ;;  %v1699_v13 = vsel %vm1695_vm14, %v1679_v54, %v1682_v25  ;;  %v1701_v14 = vsel %vm1697_vm15, %v1685_v26, %v1700_v59 }
 0x1d5   : > { %v1709_v15 = vsel %vm1697_vm15, %v1691_v45, %v1708_v10  ;;  %v4677_v16 = vadd.s32 4294967169, %v1563_v39  ;;  %v1523_v17 = vclz %v4674_v58  ;;  %v5947_v29 = vadd.f32 %v5809_v19, %v1111_v52 }
 0x1d6   : > { %v1710_v20 = vsel %vm1696_vm0, %v1707_v6, %v1709_v15  ;;  %v1427_v38 = vsub.s32 4294967266, %v5936_v8  ;;  %v5953_v41 = vshrl.u32 %v1155_v40, 5  ;;  %v1702_v25 = vsel %vm1696_vm0, %v1699_v13, %v1701_v14 }
 0x1d7   : > { %v5949_v31 = vmul.u32.u64.low %v1711_v61, %v1710_v20  ;;  %v5950_v35 = vmul.u32.u64.high %v1711_v61, %v1710_v20, %v5949_v31  ;;  %v1721_v26 = vadd.s32 1, %v5939_v5  ;;  %v5957_v44 = vand.u32 31, %v1155_v40 }
 0x1d8   : > { %v5959_v45 = vadd.s32 1, %v4665_v63  ;;  %v1566_v49 = vand.u32 8388607, %v8227_v7  ;;  %v1569_v52 = vadd.s32 1, %v4677_v16  ;;  %v1407_v46 = vadd.s32 %v5850_v34, %v5848_v33 }
 0x1d9   : > { %v1423_v36 = vsub.s32 32, %v5936_v8  ;;  %v4675_v54 = vadd.s32 4294967294, %v1523_v17  ;;  %v1874_v9 = vand.u32 2139095040, %v5947_v29  ;;  %v1718_v56 = vmul.u32 %v1711_v61, %v1702_v25 }
 0x1da   : > { %vm1720_vm3 = vc.u32 %v5950_v35, %v5938_v12  ;;  %vm1570_vm4 = vcmp.gt.s32.totalorder %v1569_v52, 0  ;;  %v5970_v40 = vmul.f32 %v5804_v18, %v1048_v42  ;;  %v1428_v39 = vadd.s32 127, %v1427_v38 }
 0x1db   : > { %v5974_v58 = vadd.s32 %v5877_v24, %v5883_v27  ;;  %v1722_v33 = vsel %vm1720_vm3, %v1721_v26, %v5939_v5  ;;  %v1571_v34 = vsel %vm1570_vm4, %v1569_v52, 0  ;;  %v1424_v59 = vshll.u32 %v5890_v43, %v5936_v8 }
 0x1dc   : > { %v1723_v60 = vadd.s32 %v1722_v33, %v1718_v56  ;;  %v1567_v61 = vor.u32 8388608, %v1566_v49  ;;  %v1573_v63 = vand.u32 31, %v1571_v34  ;;  %v1425_v1 = vshrl.u32 %v1407_v46, %v1423_v36 }
 0x1dd   : > { %vm4676_vm5 = vcmp.lt.s32.totalorder %v4675_v54, 0  ;;  %v1572_v6 = vshrl.u32 %v1571_v34, 5  ;;  %v1875_v10 = vshrl.u32 %v1874_v9, 23  ;;  %v1429_v27 = vshll.u32 %v1428_v39, 23 }
 0x1de   : > { %v1724_v13 = vadd.s32 536870912, %v1723_v60  ;;  %v1574_v14 = vsub.s32 32, %v1573_v63  ;;  %v1576_v15 = vshll.u32 %v8246_v51, %v1573_v63  ;;  %v1579_v24 = vshll.u32 %v8232_v53, %v1573_v63 }
 0x1df   : > { %v1582_v5 = vshll.u32 %v8230_v55, %v1573_v63  ;;  %v1585_v16 = vshll.u32 %v8234_v57, %v1573_v63  ;;  %v1588_v43 = vshll.u32 %v8238_v62, %v1573_v63  ;;  %v5984_v8 = vsel %vm4676_vm5, 0, %v4675_v54 }
 0x1e0   : > { %vm1258_vm6 = vcmp.gt.s32.totalorder %v5959_v45, 0  ;;  %v5987_v17 = vshrl.u32 %v1724_v13, 30  ;;  %v1577_v20 = vshrl.u32 %v8232_v53, %v1574_v14  ;;  %v1580_v31 = vshrl.u32 %v8230_v55, %v1574_v14 }
 0x1e1   : > { %v1583_v38 = vshrl.u32 %v8234_v57, %v1574_v14  ;;  %v1586_v25 = vshrl.u32 %v8238_v62, %v1574_v14  ;;  %v1589_v26 = vshrl.u32 %v8236_v4, %v1574_v14  ;;  %v4689_v42 = vadd.s32 4294967169, %v1875_v10 }
 0x1e2   : > { %8324 = vst [vmem:[#allocation16_spill] sm:$0xff] %v5987_v17  ;;  %v1726_v49 = vshll.u32 %v5987_v17, 30  ;;  %v1578_v52 = vor.u32 %v1577_v20, %v1576_v15  ;;  %v1581_v46 = vor.u32 %v1580_v31, %v1579_v24  ;;  %vm1591_vm7 = vcmp.lt.s32.totalorder %v1572_v6, 1 }
 0x1e3   : > { %v1575_v36 = vshrl.u32 %v8246_v51, %v1574_v14  ;;  %v1584_v54 = vor.u32 %v1583_v38, %v1582_v5  ;;  %v1587_v9 = vor.u32 %v1586_v25, %v1585_v16  ;;  %v1590_v56 = vor.u32 %v1589_v26, %v1588_v43 }
 0x1e4   : > { %v5996_v39 = vor.u32 %v1425_v1, %v1424_v59  ;;  %v5998_v33 = vsub.s32 %v1723_v60, %v1726_v49  ;;  %vm1593_vm8 = vcmp.lt.s32.totalorder %v1572_v6, 3  ;;  %vm1594_vm9 = vcmp.lt.s32.totalorder %v1572_v6, 4 }
 0x1e5   : > { %v6000_v34 = vor.u32 4788187, %v1429_v27  ;;  %vm1592_vm10 = vcmp.lt.s32.totalorder %v1572_v6, 2  ;;  %v1596_v63 = vsel %vm1594_vm9, %v1584_v54, 2102212464  ;;  %v1599_v10 = vsel %vm1591_vm7, %v1578_v52, %v1581_v46 }
 0x1e6   : > { %v1527_v13 = vsub.s32 32, %v5984_v8  ;;  %v1600_v15 = vsel %vm1594_vm9, %v1587_v9, 920167782  ;;  %v1603_v14 = vsel %vm1591_vm7, %v1581_v46, %v1584_v54  ;;  %v1607_v24 = vshll.u32 %v1567_v61, 8 }
 0x1e7   : > { %v1595_v5 = vsel %vm1591_vm7, %v1575_v36, %v1578_v52  ;;  %v1601_v59 = vsel %vm1593_vm8, %v1584_v54, %v1600_v15  ;;  %v1604_v60 = vsel %vm1594_vm9, %v1590_v56, 1326507024  ;;  %v1881_v1 = vadd.s32 1, %v4689_v42 }
 0x1e8   : > { %v1729_v16 = vsub.s32 0, %v5998_v33  ;;  %v1597_v27 = vsel %vm1593_vm8, %v1581_v46, %v1596_v63  ;;  %v1602_v43 = vsel %vm1592_vm10, %v1599_v10, %v1601_v59  ;;  %v1605_v20 = vsel %vm1593_vm8, %v1587_v9, %v1604_v60 }
 0x1e9   : > { %v1606_v31 = vsel %vm1592_vm10, %v1603_v14, %v1605_v20  ;;  %v6012_v38 = vmul.u32.u64.low %v1607_v24, %v1602_v43  ;;  %v6013_v25 = vmul.u32.u64.high %v1607_v24, %v1602_v43, %v6012_v38  ;;  %vm1882_vm11 = vcmp.gt.s32.totalorder %v1881_v1, 0 }
 0x1ea   : > { %v6016_v61 = vmul.u32.u64.low %v1607_v24, %v1606_v31  ;;  %v6017_v26 = vmul.u32.u64.high %v1607_v24, %v1606_v31, %v6016_v61  ;;  %v8224_v42 = vand.u32 2147483647, %v5947_v29  ;;  %v1883_v49 = vsel %vm1882_vm11, %v1881_v1, 0 }
 0x1eb   : > { %v6023_v52 = vsel %vm1258_vm6, %v5959_v45, 0  ;;  %v1598_v46 = vsel %vm1592_vm10, %v1595_v5, %v1597_v27  ;;  %v1885_v36 = vand.u32 31, %v1883_v49  ;;  %v6028_v54 = vadd.f32 %v5809_v19, %v5970_v40 }
 0x1ec   : > { %v1433_v9 = vcvt.s32.f32 %v5996_v39  ;;  %v1529_v56 = vshrl.u32 %v5974_v58, %v1527_v13  ;;  %v1531_v63 = vsub.s32 4294967266, %v5984_v8  ;;  %v4682_v10 = vmin.u32 %v1729_v16, %v5998_v33 }
 0x1ed   : > { %v1431_v15 = vand.u32 2147483647, %v6000_v34  ;;  %v1528_v45 = vshll.u32 %v5922_v23, %v5984_v8  ;;  %v1617_v6 = vadd.s32 1, %v6013_v25  ;;  %v1886_v14 = vsub.s32 32, %v1885_v36 }
 0x1ee   : > { %v1614_v5 = vmul.u32 %v1607_v24, %v1598_v46  ;;  %vm1616_vm12 = vc.u32 %v6017_v26, %v6012_v38  ;;  %v1878_v40 = vand.u32 8388607, %v8224_v42  ;;  %v1888_v58 = vshll.u32 %v8246_v51, %v1885_v36 }
 0x1ef   : > { %v1618_v13 = vsel %vm1616_vm12, %v1617_v6, %v6013_v25  ;;  %v1889_v59 = vshrl.u32 %v8232_v53, %v1886_v14  ;;  %v1891_v34 = vshll.u32 %v8232_v53, %v1885_v36  ;;  %v1894_v23 = vshll.u32 %v8230_v55, %v1885_v36 }
 0x1f0   : > { %v6047_v8 = vor.u32 %v1529_v56, %v1528_v45  ;;  %v1532_v60 = vadd.s32 127, %v1531_v63  ;;  %v1731_v24 = vclz %v4682_v10  ;;  %v1619_v1 = vadd.s32 %v1618_v13, %v1614_v5 }
 0x1f1   : > { %v1884_v16 = vshrl.u32 %v1883_v49, 5  ;;  %v1892_v27 = vshrl.u32 %v8230_v55, %v1886_v14  ;;  %v1895_v43 = vshrl.u32 %v8234_v57, %v1886_v14  ;;  %v1897_v20 = vshll.u32 %v8234_v57, %v1885_v36 }
 0x1f2   : > { %v1620_v31 = vadd.s32 536870912, %v1619_v1  ;;  %v1890_v25 = vor.u32 %v1889_v59, %v1888_v58  ;;  %v1898_v61 = vshrl.u32 %v8238_v62, %v1886_v14  ;;  %v1770_v46 = vand.u32 2139095040, %v6028_v54 }
 0x1f3   : > { %v1893_v6 = vor.u32 %v1892_v27, %v1891_v34  ;;  %v1896_v42 = vor.u32 %v1895_v43, %v1894_v23  ;;  %v1900_v56 = vshll.u32 %v8238_v62, %v1885_v36  ;;  %v1901_v63 = vshrl.u32 %v8236_v4, %v1886_v14 }
 0x1f4   : > { %v1533_v10 = vshll.u32 %v1532_v60, 23  ;;  %v6056_v49 = vshrl.u32 %v1620_v31, 30  ;;  %v1879_v45 = vor.u32 8388608, %v1878_v40  ;;  %v1899_v5 = vor.u32 %v1898_v61, %v1897_v20 }
 0x1f5   : > { %v4683_v13 = vadd.s32 4294967294, %v1731_v24  ;;  %v1902_v48 = vor.u32 %v1901_v63, %v1900_v56  ;;  %vm1903_vm13 = vcmp.lt.s32.totalorder %v1884_v16, 1  ;;  %vm1905_vm14 = vcmp.lt.s32.totalorder %v1884_v16, 3 }
 0x1f6   : > { %8325 = vst [vmem:[#allocation17_spill] sm:$0xff] %v6056_v49  ;;  %v1622_v58 = vshll.u32 %v6056_v49, 30  ;;  %v1887_v59 = vshrl.u32 %v8246_v51, %v1886_v14  ;;  %vm1904_vm15 = vcmp.lt.s32.totalorder %v1884_v16, 2  ;;  %vm1906_vm0 = vcmp.lt.s32.totalorder %v1884_v16, 4 }
 0x1f7   : > { %v1908_v34 = vsel %vm1906_vm0, %v1896_v42, 2102212464  ;;  %v1911_v36 = vsel %vm1903_vm13, %v1890_v25, %v1893_v6  ;;  %v1912_v23 = vsel %vm1906_vm0, %v1899_v5, 920167782  ;;  %v1771_v27 = vshrl.u32 %v1770_v46, 23 }
 0x1f8   : > { %v1534_v60 = vor.u32 4788187, %v1533_v10  ;;  %v6061_v43 = vsub.s32 %v1619_v1, %v1622_v58  ;;  %v1913_v40 = vsel %vm1905_vm14, %v1896_v42, %v1912_v23  ;;  %v1919_v24 = vshll.u32 %v1879_v45, 8 }
 0x1f9   : > { %vm4684_vm1 = vcmp.lt.s32.totalorder %v4683_v13, 0  ;;  %v1914_v20 = vsel %vm1904_vm15, %v1911_v36, %v1913_v40  ;;  %v1915_v31 = vsel %vm1903_vm13, %v1893_v6, %v1896_v42  ;;  %v1916_v61 = vsel %vm1906_vm0, %v1902_v48, 1326507024 }
 0x1fa   : > { %v1625_v14 = vsub.s32 0, %v6061_v43  ;;  %v1907_v56 = vsel %vm1903_vm13, %v1887_v59, %v1890_v25  ;;  %v1909_v63 = vsel %vm1905_vm14, %v1893_v6, %v1908_v34  ;;  %v1917_v46 = vsel %vm1905_vm14, %v1899_v5, %v1916_v61  ;;  %v1059_v61 = vpop.permute.xlu0 %1058 }
 0x1fb   : > { %v1918_v1 = vsel %vm1904_vm15, %v1915_v31, %v1917_v46  ;;  %v6071_v10 = vmul.u32.u64.low %v1919_v24, %v1914_v20  ;;  %v6072_v58 = vmul.u32.u64.high %v1919_v24, %v1914_v20, %v6071_v10  ;;  %v4685_v45 = vadd.s32 4294967169, %v1771_v27 }
 0x1fc   : > { %v6075_v23 = vsel %vm4684_vm1, 0, %v4683_v13  ;;  %v4678_v42 = vmin.u32 %v1625_v14, %v6061_v43  ;;  %v6078_v48 = vmul.u32.u64.low %v1919_v24, %v1918_v1  ;;  %v6079_v36 = vmul.u32.u64.high %v1919_v24, %v1918_v1, %v6078_v48 }
 0x1fd   : > { %v6083_v25 = vmul.f32 %v1433_v9, %v1431_v15  ;;  %v6086_v6 = vsub.s32 32, %v5957_v44  ;;  %v1910_v5 = vsel %vm1904_vm15, %v1907_v56, %v1909_v63  ;;  %v1777_v59 = vadd.s32 1, %v4685_v45  ;;  %v1063_v15 = vpop.permute.xlu1 %1062 }
 0x1fe   : > { %v1535_v34 = vand.u32 2147483647, %v1534_v60  ;;  %v6090_v27 = vshrl.u32 %v6023_v52, 5  ;;  %v6093_v13 = vand.u32 31, %v6023_v52  ;;  %v8226_v40 = vand.u32 2147483647, %v6028_v54 }
 0x1ff   : > { %v1739_v20 = vsub.s32 4294967266, %v6075_v23  ;;  %v1627_v39 = vclz %v4678_v42  ;;  %v1929_v9 = vadd.s32 1, %v6072_v58  ;;  %vm1778_vm2 = vcmp.gt.s32.totalorder %v1777_v59, 0 }
 0x200   : > { %8326 = vst [vmem:[#allocation18_spill] sm:$0xff] %v6090_v27  ;;  %v1537_v16 = vcvt.s32.f32 %v6047_v8  ;;  %v1926_v31 = vmul.u32 %v1919_v24, %v1910_v5  ;;  %vm1928_vm3 = vc.u32 %v6079_v36, %v6071_v10  ;;  %v1779_v60 = vsel %vm1778_vm2, %v1777_v59, 0 }
 0x201   : > { %v1719_v14 = vadd.s32 %v5938_v12, %v5950_v35  ;;  %v1930_v56 = vsel %vm1928_vm3, %v1929_v9, %v6072_v58  ;;  %v1781_v63 = vand.u32 31, %v1779_v60  ;;  %v1774_v8 = vand.u32 8388607, %v8226_v40 }
 0x202   : > { %v6105_v46 = vmul.f32 %v1537_v16, %v1535_v34  ;;  %v1931_v1 = vadd.s32 %v1930_v56, %v1926_v31  ;;  %v1113_v24 = vmul.f32 %v5804_v18, %v1063_v15  ;;  %v1740_v45 = vadd.s32 127, %v1739_v20 }
 0x203   : > { %v4679_v42 = vadd.s32 4294967294, %v1627_v39  ;;  %v1782_v48 = vsub.s32 32, %v1781_v63  ;;  %v6111_v5 = vmul.f32 %v5804_v18, %v1059_v61  ;;  %v1735_v59 = vsub.s32 32, %v6075_v23 }
 0x204   : > { %v1932_v12 = vadd.s32 536870912, %v1931_v1  ;;  %v1784_v35 = vshll.u32 %v8246_v51, %v1781_v63  ;;  %v1787_v58 = vshll.u32 %v8232_v53, %v1781_v63  ;;  %v1780_v34 = vshrl.u32 %v1779_v60, 5 }
 0x205   : > { %v1785_v9 = vshrl.u32 %v8232_v53, %v1782_v48  ;;  %v1788_v16 = vshrl.u32 %v8230_v55, %v1782_v48  ;;  %v1790_v15 = vshll.u32 %v8230_v55, %v1781_v63  ;;  %v1736_v20 = vshll.u32 %v5998_v33, %v6075_v23 }
 0x206   : > { %v6121_v39 = vshrl.u32 %v1932_v12, 30  ;;  %v1791_v31 = vshrl.u32 %v8234_v57, %v1782_v48  ;;  %v6125_v61 = vadd.f32 %v5809_v19, %v1113_v24  ;;  %v1741_v56 = vshll.u32 %v1740_v45, 23 }
 0x207   : > { %vm4680_vm4 = vcmp.lt.s32.totalorder %v4679_v42, 0  ;;  %v1793_v60 = vshll.u32 %v8234_v57, %v1781_v63  ;;  %v1794_v40 = vshrl.u32 %v8238_v62, %v1782_v48  ;;  %v1786_v32 = vor.u32 %v1785_v9, %v1784_v35 }
 0x208   : > { %8327 = vst [vmem:[#allocation19_spill] sm:$0xff] %v6121_v39  ;;  %v1934_v7 = vshll.u32 %v6121_v39, 30  ;;  %v1789_v28 = vor.u32 %v1788_v16, %v1787_v58  ;;  %v1792_v55 = vor.u32 %v1791_v31, %v1790_v15  ;;  %v1796_v33 = vshll.u32 %v8238_v62, %v1781_v63 }
 0x209   : > { %v1795_v53 = vor.u32 %v1794_v40, %v1793_v60  ;;  %v1797_v23 = vshrl.u32 %v8236_v4, %v1782_v48  ;;  %vm1799_vm5 = vcmp.lt.s32.totalorder %v1780_v34, 1  ;;  %v1737_v12 = vshrl.u32 %v1719_v14, %v1735_v59 }
 0x20a   : > { %v6132_v24 = vsub.s32 %v1931_v1, %v1934_v7  ;;  %v1775_v45 = vor.u32 8388608, %v1774_v8  ;;  %v2082_v52 = vand.u32 2139095040, %v6125_v61  ;;  %vm1353_vm6 = vcmp.lt.s32.totalorder %v5813_v22, 0 }
 0x20b   : > { %v6137_v57 = vsel %vm4680_vm4, 0, %v4679_v42  ;;  %v1798_v35 = vor.u32 %v1797_v23, %v1796_v33  ;;  %vm1801_vm7 = vcmp.lt.s32.totalorder %v1780_v34, 3  ;;  %vm1802_vm8 = vcmp.lt.s32.totalorder %v1780_v34, 4 }
 0x20c   : > { %v1742_v40 = vor.u32 4788187, %v1741_v56  ;;  %v1783_v63 = vshrl.u32 %v8246_v51, %v1782_v48  ;;  %vm1800_vm9 = vcmp.lt.s32.totalorder %v1780_v34, 2  ;;  %v1807_v58 = vsel %vm1799_vm5, %v1786_v32, %v1789_v28 }
 0x20d   : > { %v1804_v14 = vsel %vm1802_vm8, %v1792_v55, 2102212464  ;;  %v1808_v7 = vsel %vm1802_vm8, %v1795_v53, 920167782  ;;  %v1811_v1 = vsel %vm1799_vm5, %v1789_v28, %v1792_v55  ;;  %v1812_v8 = vsel %vm1802_vm8, %v1798_v35, 1326507024 }
 0x20e   : > { %vm1457_vm10 = vcmp.lt.s32.totalorder %v5820_v30, 0  ;;  %v1635_v59 = vsub.s32 4294967266, %v6137_v57  ;;  %v1937_v42 = vsub.s32 0, %v6132_v24  ;;  %v1809_v9 = vsel %vm1801_vm7, %v1792_v55, %v1808_v7 }
 0x20f   : > { %v1815_v16 = vshll.u32 %v1775_v45, 8  ;;  %v1810_v15 = vsel %vm1800_vm9, %v1807_v58, %v1809_v9  ;;  %v1813_v48 = vsel %vm1801_vm7, %v1795_v53, %v1812_v8  ;;  %v8240_v31 = vand.u32 2147483647, %v6125_v61 }
 0x210   : > { %v2083_v56 = vshrl.u32 %v2082_v52, 23  ;;  %v1631_v60 = vsub.s32 32, %v6137_v57  ;;  %v1803_v33 = vsel %vm1799_vm5, %v1783_v63, %v1786_v32  ;;  %v1805_v23 = vsel %vm1801_vm7, %v1789_v28, %v1804_v14 }
 0x211   : > { %v1814_v35 = vsel %vm1800_vm9, %v1811_v1, %v1813_v48  ;;  %v6156_v55 = vmul.u32.u64.low %v1815_v16, %v1810_v15  ;;  %v6157_v45 = vmul.u32.u64.high %v1815_v16, %v1810_v15, %v6156_v55  ;;  %v6161_v53 = vsub.s32 32, %v6093_v13 }
 0x212   : > { %v6153_v4 = vmul.u32.u64.low %v1815_v16, %v1814_v35  ;;  %v6154_v62 = vmul.u32.u64.high %v1815_v16, %v1814_v35, %v6153_v4  ;;  %v1636_v58 = vadd.s32 127, %v1635_v59  ;;  %v4690_v52 = vmin.u32 %v1937_v42, %v6132_v24 }
 0x213   : > { %v4697_v7 = vadd.s32 4294967169, %v2083_v56  ;;  %v1539_v32 = vxor.u32 2147483648, %v6105_v46  ;;  %v1738_v63 = vor.u32 %v1737_v12, %v1736_v20  ;;  %v1615_v28 = vadd.s32 %v6012_v38, %v6017_v26 }
 0x214   : > { %v1806_v14 = vsel %vm1800_vm9, %v1803_v33, %v1805_v23  ;;  %v8328_v4 = vxor.u32 2147483648, %v6083_v25  ;;  %v2086_v8 = vand.u32 8388607, %v8240_v31  ;;  %v6179_v42 = vadd.f32 %v5809_v19, %v6111_v5 }
 0x215   : > { %v2089_v59 = vadd.s32 1, %v4697_v7  ;;  %v1743_v20 = vand.u32 2147483647, %v1742_v40  ;;  %v1633_v12 = vshrl.u32 %v1615_v28, %v1631_v60  ;;  %vm1824_vm11 = vc.u32 %v6154_v62, %v6156_v55 }
 0x216   : > { %v6173_v1 = vsel %vm1353_vm6, %v8328_v4, %v6083_v25  ;;  %v1825_v38 = vadd.s32 1, %v6157_v45  ;;  %v1637_v26 = vshll.u32 %v1636_v58, 23  ;;  %v1939_v34 = vclz %v4690_v52  ;;  %v1074_v25 = vpop.permute.xlu1 %1073 }
 0x217   : > { %8329 = vst [vmem:[#allocation20_spill] sm:$0xff] %v6173_v1  ;;  %v1822_v9 = vmul.u32 %v1815_v16, %v1806_v14  ;;  %vm2090_vm12 = vcmp.gt.s32.totalorder %v2089_v59, 0  ;;  %v6187_v15 = vsel %vm1457_vm10, %v1539_v32, %v6105_v46  ;;  %v1745_v48 = vcvt.s32.f32 %v1738_v63 }
 0x218   : > { %8330 = vst [vmem:[#allocation21_spill] sm:$0xff] %v6187_v15  ;;  %v1826_v19 = vsel %vm1824_vm11, %v1825_v38, %v6157_v45  ;;  %v2091_v5 = vsel %vm2090_vm12, %v2089_v59, 0  ;;  %v1632_v40 = vshll.u32 %v6061_v43, %v6137_v57  ;;  %v2087_v60 = vor.u32 8388608, %v2086_v8 }
 0x219   : > { %v1827_v56 = vadd.s32 %v1826_v19, %v1822_v9  ;;  %v1978_v33 = vand.u32 2139095040, %v6179_v42  ;;  %v6193_v23 = vmul.f32 %v1745_v48, %v1743_v20  ;;  %v2092_v16 = vshrl.u32 %v2091_v5, 5 }
 0x21a   : > { %v2093_v35 = vand.u32 31, %v2091_v5  ;;  %v6196_v58 = vmul.f32 %v5804_v18, %v1074_v25  ;;  %v6198_v46 = vor.u32 %v1633_v12, %v1632_v40  ;;  %v6200_v52 = vor.u32 4788187, %v1637_v26 }
 0x21b   : > { %v4691_v45 = vadd.s32 4294967294, %v1939_v34  ;;  %v1828_v7 = vadd.s32 536870912, %v1827_v56  ;;  %v8331_v43 = vmov 2475754826   ;;  %v8332_v28 = vmov 2131351028  }
 0x21c   : > { %v2094_v32 = vsub.s32 32, %v2093_v35  ;;  %v2096_v57 = vshll.u32 %v8246_v51, %v2093_v35  ;;  %v2099_v63 = vshll.u32 %v8331_v43, %v2093_v35  ;;  %v2102_v14 = vshll.u32 %v8332_v28, %v2093_v35 }
 0x21d   : > { %v6205_v4 = vshrl.u32 %v1828_v7, 30  ;;  %v8334_v8 = vmov 2102212464   ;;  %v6208_v20 = vshll.u32 %v2087_v60, 8  ;;  %v1979_v18 = vshrl.u32 %v1978_v33, 23 }
 0x21e   : > { %v2105_v59 = vshll.u32 %v8334_v8, %v2093_v35  ;;  %v2097_v12 = vshrl.u32 %v8331_v43, %v2094_v32  ;;  %v2100_v38 = vshrl.u32 %v8332_v28, %v2094_v32  ;;  %v2103_v26 = vshrl.u32 %v8334_v8, %v2094_v32 }
 0x21f   : > { %8333 = vst [vmem:[#allocation22_spill] sm:$0xff] %v6205_v4  ;;  %vm2111_vm13 = vcmp.lt.s32.totalorder %v2092_v16, 1  ;;  %v1830_v34 = vshll.u32 %v6205_v4, 30  ;;  %v2095_v9 = vshrl.u32 %v8246_v51, %v2094_v32  ;;  %v8335_v25 = vmov 920167782  }
 0x220   : > { %v2106_v48 = vshrl.u32 %v8335_v25, %v2094_v32  ;;  %v2108_v19 = vshll.u32 %v8335_v25, %v2093_v35  ;;  %v2098_v5 = vor.u32 %v2097_v12, %v2096_v57  ;;  %v2101_v40 = vor.u32 %v2100_v38, %v2099_v63 }
 0x221   : > { %v2104_v60 = vor.u32 %v2103_v26, %v2102_v14  ;;  %v8336_v7 = vmov 1326507024   ;;  %vm4692_vm14 = vcmp.lt.s32.totalorder %v4691_v45, 0  ;;  %v6218_v31 = vsub.s32 %v1827_v56, %v1830_v34 }
 0x222   : > { %v2109_v33 = vshrl.u32 %v8336_v7, %v2094_v32  ;;  %v2107_v3 = vor.u32 %v2106_v48, %v2105_v59  ;;  %v4693_v0 = vadd.s32 4294967169, %v1979_v18  ;;  %vm2112_vm15 = vcmp.lt.s32.totalorder %v2092_v16, 2 }
 0x223   : > { %vm2113_vm0 = vcmp.lt.s32.totalorder %v2092_v16, 3  ;;  %vm2114_vm1 = vcmp.lt.s32.totalorder %v2092_v16, 4  ;;  %v1833_v51 = vsub.s32 0, %v6218_v31  ;;  %v2115_v4 = vsel %vm2111_vm13, %v2095_v9, %v2098_v5 }
 0x224   : > { %v2110_v39 = vor.u32 %v2109_v33, %v2108_v19  ;;  %v2116_v17 = vsel %vm2114_vm1, %v2104_v60, 2102212464  ;;  %v2119_v35 = vsel %vm2111_vm13, %v2098_v5, %v2101_v40  ;;  %v2120_v63 = vsel %vm2114_vm1, %v2107_v3, 920167782  ;;  %v1070_v5 = vpop.permute.xlu0 %1069 }
 0x225   : > { %v2117_v57 = vsel %vm2113_vm0, %v2101_v40, %v2116_v17  ;;  %v2123_v32 = vsel %vm2111_vm13, %v2101_v40, %v2104_v60  ;;  %v1639_v14 = vand.u32 2147483647, %v6200_v52  ;;  %v4686_v59 = vmin.u32 %v1833_v51, %v6218_v31 }
 0x226   : > { %v2124_v56 = vsel %vm2114_vm1, %v2110_v39, 1326507024  ;;  %v2121_v18 = vsel %vm2113_vm0, %v2104_v60, %v2120_v63  ;;  %v8252_v12 = vand.u32 2147483647, %v6179_v42  ;;  %v6230_v38 = vsel %vm4692_vm14, 0, %v4691_v45 }
 0x227   : > { %v2122_v26 = vsel %vm2112_vm15, %v2119_v35, %v2121_v18  ;;  %v2125_v34 = vsel %vm2113_vm0, %v2107_v3, %v2124_v56  ;;  %v1985_v17 = vadd.s32 1, %v4693_v0  ;;  %v2118_v9 = vsel %vm2112_vm15, %v2115_v4, %v2117_v57 }
 0x228   : > { %v2126_v39 = vsel %vm2112_vm15, %v2123_v32, %v2125_v34  ;;  %v6237_v52 = vmul.u32.u64.low %v6208_v20, %v2122_v26  ;;  %v6238_v48 = vmul.u32.u64.high %v6208_v20, %v2122_v26, %v6237_v52  ;;  %v1641_v51 = vcvt.s32.f32 %v6198_v46  ;;  %v6260_v32 = vld [vmem:[%s8316_s3] ss:$0 sm:$0xff] }
 0x229   : > { %v6243_v19 = vmul.u32.u64.low %v6208_v20, %v2126_v39  ;;  %v6244_v45 = vmul.u32.u64.high %v6208_v20, %v2126_v39, %v6243_v19  ;;  %vm1986_vm2 = vcmp.gt.s32.totalorder %v1985_v17, 0  ;;  %v1943_v3 = vsub.s32 32, %v6230_v38 }
 0x22a   : > { %v1835_v0 = vclz %v4686_v59  ;;  %v1982_v16 = vand.u32 8388607, %v8252_v12  ;;  %v1987_v4 = vsel %vm1986_vm2, %v1985_v17, 0  ;;  %v1947_v60 = vsub.s32 4294967266, %v6230_v38 }
 0x22b   : > { %v2134_v33 = vmul.u32 %v6208_v20, %v2118_v9  ;;  %v1989_v46 = vand.u32 31, %v1987_v4  ;;  %v6252_v35 = vmul.f32 %v1641_v51, %v1639_v14  ;;  %v1927_v57 = vadd.s32 %v6071_v10, %v6079_v36  ;;  %v6272_v10 = vld [vmem:[%s8317_s25] ss:$0 sm:$0xff] }
 0x22c   : > { %v2137_v63 = vadd.s32 1, %v6238_v48  ;;  %v6263_v56 = vmul.f32 %v6260_v32, %v1070_v5  ;;  %vm2136_vm3 = vc.u32 %v6244_v45, %v6237_v52  ;;  %v6276_v36 = vadd.f32 %v6272_v10, %v6196_v58 }
 0x22d   : > { %v1990_v20 = vsub.s32 32, %v1989_v46  ;;  %v6278_v14 = vshrl.u32 %v1927_v57, %v1943_v3  ;;  %v4687_v18 = vadd.s32 4294967294, %v1835_v0  ;;  %v1983_v34 = vor.u32 8388608, %v1982_v16 }
 0x22e   : > { %v2138_v26 = vsel %vm2136_vm3, %v2137_v63, %v6238_v48  ;;  %v6281_v17 = vadd.s32 127, %v1947_v60  ;;  %v8337_v39 = vmov 683565275   ;;  %v1988_v5 = vshrl.u32 %v1987_v4, 5 }
 0x22f   : > { %v2139_v9 = vadd.s32 %v2138_v26, %v2134_v33  ;;  %v1992_v51 = vshll.u32 %v8337_v39, %v1989_v46  ;;  %v1993_v19 = vshrl.u32 %v8331_v43, %v1990_v20  ;;  %v1995_v12 = vshll.u32 %v8331_v43, %v1989_v46 }
 0x230   : > { %v1996_v59 = vshrl.u32 %v8332_v28, %v1990_v20  ;;  %v1998_v0 = vshll.u32 %v8332_v28, %v1989_v46  ;;  %v1999_v48 = vshrl.u32 %v8334_v8, %v1990_v20  ;;  %v2290_v16 = vand.u32 2139095040, %v6276_v36 }
 0x231   : > { %v2140_v3 = vadd.s32 536870912, %v2139_v9  ;;  %vm4688_vm4 = vcmp.lt.s32.totalorder %v4687_v18, 0  ;;  %v1994_v60 = vor.u32 %v1993_v19, %v1992_v51  ;;  %v2001_v33 = vshll.u32 %v8334_v8, %v1989_v46 }
 0x232   : > { %v6292_v57 = vshll.u32 %v1983_v34, 8  ;;  %vm1665_vm5 = vcmp.lt.s32.totalorder %v5834_v50, 0  ;;  %v1997_v63 = vor.u32 %v1996_v59, %v1995_v12  ;;  %v2002_v26 = vshrl.u32 %v8335_v25, %v1990_v20 }
 0x233   : > { %v6295_v4 = vshrl.u32 %v2140_v3, 30  ;;  %v2004_v58 = vshll.u32 %v8335_v25, %v1989_v46  ;;  %v1991_v40 = vshrl.u32 %v8337_v39, %v1990_v20  ;;  %v2000_v49 = vor.u32 %v1999_v48, %v1998_v0 }
 0x234   : > { %v2005_v15 = vshrl.u32 %v8336_v7, %v1990_v20  ;;  %vm2007_vm7 = vcmp.lt.s32.totalorder %v1988_v5, 1  ;;  %v2003_v19 = vor.u32 %v2002_v26, %v2001_v33  ;;  %vm2009_vm8 = vcmp.lt.s32.totalorder %v1988_v5, 3 }
 0x235   : > { %8338 = vst [vmem:[#allocation23_spill] sm:$0xff] %v6295_v4  ;;  %v2142_v51 = vshll.u32 %v6295_v4, 30  ;;  %v2291_v34 = vshrl.u32 %v2290_v16, 23  ;;  %v6303_v2 = vsel %vm4688_vm4, 0, %v4687_v18  ;;  %vm2008_vm9 = vcmp.lt.s32.totalorder %v1988_v5, 2 }
 0x236   : > { %v2006_v3 = vor.u32 %v2005_v15, %v2004_v58  ;;  %vm2010_vm11 = vcmp.lt.s32.totalorder %v1988_v5, 4  ;;  %v2015_v59 = vsel %vm2007_vm7, %v1994_v60, %v1997_v63  ;;  %v2011_v20 = vsel %vm2007_vm7, %v1991_v40, %v1994_v60  ;;  %v5193_v15 = vld [vmem:[%s8202_s4] sm:$0xff]   ;;  %v5194_v5 = vld [vmem:[%s8202_s4 + $0x8] sm:$0xff]  }
 0x237   : > { %v6305_v12 = vsub.s32 %v2139_v9, %v2142_v51  ;;  %v2012_v46 = vsel %vm2010_vm11, %v2000_v49, 2102212464  ;;  %v2016_v0 = vsel %vm2010_vm11, %v2003_v19, 920167782  ;;  %v2019_v16 = vsel %vm2007_vm7, %v1997_v63, %v2000_v49  ;;  %4921 = vmatprep.subr.bf16.mxu0 %v5193_v15 }
 0x238   : > { %v2013_v48 = vsel %vm2009_vm8, %v1997_v63, %v2012_v46  ;;  %v2017_v33 = vsel %vm2009_vm8, %v2000_v49, %v2016_v0  ;;  %v1843_v18 = vsub.s32 4294967266, %v6303_v2  ;;  %v2020_v26 = vsel %vm2010_vm11, %v2006_v3, 1326507024  ;;  %4922 = vmatpush3.bf16.msra.mxu0 %v5193_v15  ;;  %v1085_v15 = vpop.permute.xlu1 %1084 }
 0x239   : > { %v2145_v9 = vsub.s32 0, %v6305_v12  ;;  %v2018_v58 = vsel %vm2008_vm9, %v2015_v59, %v2017_v33  ;;  %v1949_v51 = vshll.u32 %v6281_v17, 23  ;;  %v2021_v40 = vsel %vm2009_vm8, %v2003_v19, %v2020_v26  ;;  %4923 = vmatprep.subr.bf16.mxu0 %v5194_v5 }
 0x23a   : > { %v6321_v60 = vmul.u32.u64.low %v6292_v57, %v2018_v58  ;;  %v6322_v46 = vmul.u32.u64.high %v6292_v57, %v2018_v58, %v6321_v60  ;;  %v2014_v63 = vsel %vm2008_vm9, %v2011_v20, %v2013_v48  ;;  %v2022_v0 = vsel %vm2008_vm9, %v2019_v16, %v2021_v40 }
 0x23b   : > { %v4698_v49 = vmin.u32 %v2145_v9, %v6305_v12  ;;  %v4705_v4 = vadd.s32 4294967169, %v2291_v34  ;;  %v8339_v3 = vxor.u32 2147483648, %v6193_v23  ;;  %v1839_v19 = vsub.s32 32, %v6303_v2 }
 0x23c   : > { %v6337_v59 = vmul.u32.u64.low %v6292_v57, %v2022_v0  ;;  %v6338_v33 = vmul.u32.u64.high %v6292_v57, %v2022_v0, %v6337_v59  ;;  %v8341_v20 = vshll.u32 %v6132_v24, %v6230_v38  ;;  %v6350_v9 = vor.u32 4788187, %v1949_v51  ;;  %4924 = vmatpush3.bf16.msra.mxu0 %v5194_v5 }
 0x23d   : > { %v6333_v17 = vsel %vm1665_vm5, %v8339_v3, %v6193_v23  ;;  %v1844_v23 = vadd.s32 127, %v1843_v18  ;;  %v2297_v16 = vadd.s32 1, %v4705_v4  ;;  %v1823_v58 = vadd.s32 %v6156_v55, %v6154_v62  ;;  %v5197_v59 = vld [vmem:[%s8202_s4 + $0x20] sm:$0xff]  }
 0x23e   : > { %8340 = vst [vmem:[#allocation24_spill] sm:$0xff] %v6333_v17  ;;  %v6348_v48 = vor.u32 %v6278_v14, %v8341_v20  ;;  %v2030_v26 = vmul.u32 %v6292_v57, %v2014_v63  ;;  %v2033_v40 = vadd.s32 1, %v6322_v46  ;;  %v2147_v0 = vclz %v4698_v49  ;;  %v5195_v57 = vld [vmem:[%s8202_s4 + $0x10] sm:$0xff]  }
 0x23f   : > { %v8342_v3 = vand.u32 2147483647, %v6276_v36  ;;  %vm2298_vm12 = vcmp.gt.s32.totalorder %v2297_v16, 0  ;;  %v6360_v38 = vadd.f32 %v6272_v10, %v6263_v56  ;;  %v1841_v14 = vshrl.u32 %v1823_v58, %v1839_v19  ;;  %4925 = vmatprep.subr.bf16.mxu0 %v5195_v57 }
 0x240   : > { %vm2032_vm13 = vc.u32 %v6338_v33, %v6321_v60  ;;  %v2299_v62 = vsel %vm2298_vm12, %v2297_v16, 0  ;;  %v6365_v55 = vmul.f32 %v6260_v32, %v1085_v15  ;;  %v1845_v18 = vshll.u32 %v1844_v23, 23  ;;  %4926 = vmatpush3.bf16.msra.mxu0 %v5195_v57 }
 0x241   : > { %v2294_v24 = vand.u32 8388607, %v8342_v3  ;;  %v2034_v51 = vsel %vm2032_vm13, %v2033_v40, %v6322_v46  ;;  %v2301_v56 = vand.u32 31, %v2299_v62  ;;  %v1840_v63 = vshll.u32 %v6218_v31, %v6303_v2  ;;  %v5196_v2 = vld [vmem:[%s8202_s4 + $0x18] sm:$0xff]  }
 0x242   : > { %v2035_v19 = vadd.s32 %v2034_v51, %v2030_v26  ;;  %v4699_v5 = vadd.s32 4294967294, %v2147_v0  ;;  %v2186_v15 = vand.u32 2139095040, %v6360_v38  ;;  %v6384_v31 = vor.u32 4788187, %v1845_v18  ;;  %4927 = vmatprep.subr.bf16.mxu0 %v5196_v2 }
 0x243   : > { %v2295_v20 = vor.u32 8388608, %v2294_v24  ;;  %v2302_v16 = vsub.s32 32, %v2301_v56  ;;  %v6377_v58 = vor.u32 %v1841_v14, %v1840_v63  ;;  %v2304_v46 = vshll.u32 %v8337_v39, %v2301_v56 }
 0x244   : > { %v2036_v23 = vadd.s32 536870912, %v2035_v19  ;;  %v2307_v40 = vshll.u32 %v8331_v43, %v2301_v56  ;;  %v2300_v26 = vshrl.u32 %v2299_v62, 5  ;;  %v2310_v3 = vshll.u32 %v8332_v28, %v2301_v56  ;;  %4928 = vmatpush3.bf16.msra.mxu0 %v5196_v2 }
 0x245   : > { %v2305_v0 = vshrl.u32 %v8331_v43, %v2302_v16  ;;  %v2308_v14 = vshrl.u32 %v8332_v28, %v2302_v16  ;;  %v2311_v57 = vshrl.u32 %v8334_v8, %v2302_v16  ;;  %v2313_v51 = vshll.u32 %v8334_v8, %v2301_v56  ;;  %4929 = vmatprep.subr.bf16.mxu0 %v5197_v59 }
 0x246   : > { %v6388_v24 = vshrl.u32 %v2036_v23, 30  ;;  %vm4700_vm14 = vcmp.lt.s32.totalorder %v4699_v5, 0  ;;  %v2314_v63 = vshrl.u32 %v8335_v25, %v2302_v16  ;;  %v6394_v34 = vshll.u32 %v2295_v20, 8 }
 0x247   : > { %v2187_v18 = vshrl.u32 %v2186_v15, 23  ;;  %vm1561_vm15 = vcmp.lt.s32.totalorder %v5913_v11, 0  ;;  %v2306_v23 = vor.u32 %v2305_v0, %v2304_v46  ;;  %v2309_v4 = vor.u32 %v2308_v14, %v2307_v40 }
 0x248   : > { %8343 = vst [vmem:[#allocation25_spill] sm:$0xff] %v6388_v24  ;;  %v2038_v62 = vshll.u32 %v6388_v24, 30  ;;  %v2316_v49 = vshll.u32 %v8335_v25, %v2301_v56  ;;  %v2303_v17 = vshrl.u32 %v8337_v39, %v2302_v16  ;;  %v2312_v50 = vor.u32 %v2311_v57, %v2310_v3  ;;  %4930 = vmatpush3.bf16.msra.mxu0 %v5197_v59 }
 0x249   : > { %v2315_v30 = vor.u32 %v2314_v63, %v2313_v51  ;;  %v2317_v20 = vshrl.u32 %v8336_v7, %v2302_v16  ;;  %v6404_v15 = vsel %vm4700_vm14, 0, %v4699_v5  ;;  %vm2319_vm0 = vcmp.lt.s32.totalorder %v2300_v26, 1  ;;  %v5198_v5 = vld [vmem:[%s8202_s4 + $0x28] sm:$0xff]  }
 0x24a   : > { %v6406_v2 = vsub.s32 %v2035_v19, %v2038_v62  ;;  %vm2321_vm1 = vcmp.lt.s32.totalorder %v2300_v26, 3  ;;  %vm2320_vm2 = vcmp.lt.s32.totalorder %v2300_v26, 2  ;;  %vm2322_vm3 = vcmp.lt.s32.totalorder %v2300_v26, 4  ;;  %4931 = vmatprep.subr.bf16.mxu0 %v5198_v5 }
 0x24b   : > { %v2318_v46 = vor.u32 %v2317_v20, %v2316_v49  ;;  %v4701_v56 = vadd.s32 4294967169, %v2187_v18  ;;  %v2324_v0 = vsel %vm2322_vm3, %v2312_v50, 2102212464  ;;  %v2327_v3 = vsel %vm2319_vm0, %v2306_v23, %v2309_v4 }
 0x24c   : > { %v2041_v40 = vsub.s32 0, %v6406_v2  ;;  %v2328_v14 = vsel %vm2322_vm3, %v2315_v30, 920167782  ;;  %v2323_v19 = vsel %vm2319_vm0, %v2303_v17, %v2306_v23  ;;  %v2325_v16 = vsel %vm2321_vm1, %v2309_v4, %v2324_v0  ;;  %4932 = vmatpush3.bf16.msra.mxu0 %v5198_v5 }
 0x24d   : > { %v2329_v49 = vsel %vm2321_vm1, %v2312_v50, %v2328_v14  ;;  %v2331_v57 = vsel %vm2319_vm0, %v2309_v4, %v2312_v50  ;;  %v2332_v63 = vsel %vm2322_vm3, %v2318_v46, 1326507024  ;;  %v8344_v18 = vand.u32 2147483647, %v6360_v38 }
 0x24e   : > { %v4694_v59 = vmin.u32 %v2041_v40, %v6406_v2  ;;  %v2330_v51 = vsel %vm2320_vm2, %v2327_v3, %v2329_v49  ;;  %v8345_v20 = vand.u32 2147483647, %v6350_v9  ;;  %v8346_v24 = vcvt.s32.f32 %v6348_v48  ;;  %v5199_v48 = vld [vmem:[%s8202_s4 + $0x30] sm:$0xff]  }
 0x24f   : > { %v2190_v62 = vand.u32 8388607, %v8344_v18  ;;  %v2333_v23 = vsel %vm2321_vm1, %v2315_v30, %v2332_v63  ;;  %v6429_v0 = vmul.u32.u64.low %v6394_v34, %v2330_v51  ;;  %v6430_v50 = vmul.u32.u64.high %v6394_v34, %v2330_v51, %v6429_v0  ;;  %4933 = vmatprep.subr.bf16.mxu0 %v5199_v48 }
 0x250   : > { %v6425_v17 = vmul.f32 %v8346_v24, %v8345_v20  ;;  %v2155_v4 = vsub.s32 4294967266, %v6404_v15  ;;  %v2326_v46 = vsel %vm2320_vm2, %v2323_v19, %v2325_v16  ;;  %v2334_v40 = vsel %vm2320_vm2, %v2331_v57, %v2333_v23  ;;  %4934 = vmatpush3.bf16.msra.mxu0 %v5199_v48 }
 0x251   : > { %v2193_v3 = vadd.s32 1, %v4701_v56  ;;  %v8347_v30 = vxor.u32 2147483648, %v6252_v35  ;;  %v1847_v24 = vand.u32 2147483647, %v6384_v31  ;;  %v1849_v26 = vcvt.s32.f32 %v6377_v58 }
 0x252   : > { %v6448_v14 = vmul.u32.u64.low %v6394_v34, %v2334_v40  ;;  %v6449_v5 = vmul.u32.u64.high %v6394_v34, %v2334_v40, %v6448_v14  ;;  %v2043_v56 = vclz %v4694_v59  ;;  %v2191_v19 = vor.u32 8388608, %v2190_v62  ;;  %v5200_v59 = vld [vmem:[%s8202_s4 + $0x38] sm:$0xff]  }
 0x253   : > { %v6444_v9 = vsel %vm1561_vm15, %v8347_v30, %v6252_v35  ;;  %vm2194_vm4 = vcmp.gt.s32.totalorder %v2193_v3, 0  ;;  %v2342_v16 = vmul.u32 %v6394_v34, %v2326_v46  ;;  %v2345_v49 = vadd.s32 1, %v6430_v50  ;;  %4935 = vmatprep.subr.bf16.mxu0 %v5200_v59 }
 0x254   : > { %8348 = vst [vmem:[#allocation26_spill] sm:$0xff] %v6444_v9  ;;  %v2195_v57 = vsel %vm2194_vm4, %v2193_v3, 0  ;;  %v6456_v35 = vadd.f32 %v6272_v10, %v6365_v55  ;;  %v2151_v51 = vsub.s32 32, %v6404_v15  ;;  %v2156_v63 = vadd.s32 127, %v2155_v4  ;;  %4936 = vmatpush3.bf16.msra.mxu0 %v5200_v59 }
 0x255   : > { %v2197_v58 = vand.u32 31, %v2195_v57  ;;  %v6463_v18 = vmul.f32 %v1849_v26, %v1847_v24  ;;  %v2135_v34 = vadd.s32 %v6237_v52, %v6244_v45  ;;  %vm2344_vm7 = vc.u32 %v6449_v5, %v6429_v0 }
 0x256   : > { %8349 = vst [vmem:[#allocation27_spill] sm:$0xff] %v6456_v35  ;;  %v2152_v62 = vshll.u32 %v6305_v12, %v6404_v15  ;;  %v4695_v20 = vadd.s32 4294967294, %v2043_v56  ;;  %v2346_v23 = vsel %vm2344_vm7, %v2345_v49, %v6430_v50  ;;  %v6473_v4 = vshll.u32 %v2191_v19, 8 }
 0x257   : > { %v2347_v46 = vadd.s32 %v2346_v23, %v2342_v16  ;;  %v2198_v40 = vsub.s32 32, %v2197_v58  ;;  %v2200_v3 = vshll.u32 %v8337_v39, %v2197_v58  ;;  %v2203_v52 = vshll.u32 %v8331_v43, %v2197_v58 }
 0x258   : > { %v2153_v45 = vshrl.u32 %v2135_v34, %v2151_v51  ;;  %v2157_v48 = vshll.u32 %v2156_v63, 23  ;;  %v2206_v30 = vshll.u32 %v8332_v28, %v2197_v58  ;;  %v2209_v24 = vshll.u32 %v8334_v8, %v2197_v58 }
 0x259   : > { %v2348_v12 = vadd.s32 536870912, %v2347_v46  ;;  %v2196_v15 = vshrl.u32 %v2195_v57, 5  ;;  %v2201_v50 = vshrl.u32 %v8331_v43, %v2198_v40  ;;  %v2204_v14 = vshrl.u32 %v8332_v28, %v2198_v40 }
 0x25a   : > { %vm4696_vm8 = vcmp.lt.s32.totalorder %v4695_v20, 0  ;;  %v2199_v26 = vshrl.u32 %v8337_v39, %v2198_v40  ;;  %v2207_v56 = vshrl.u32 %v8334_v8, %v2198_v40  ;;  %v2210_v19 = vshrl.u32 %v8335_v25, %v2198_v40 }
 0x25b   : > { %v6484_v16 = vshrl.u32 %v2348_v12, 30  ;;  %v2202_v49 = vor.u32 %v2201_v50, %v2200_v3  ;;  %v2205_v51 = vor.u32 %v2204_v14, %v2203_v52  ;;  %v2212_v63 = vshll.u32 %v8335_v25, %v2197_v58 }
 0x25c   : > { %v6487_v59 = vor.u32 4788187, %v2157_v48  ;;  %v2208_v57 = vor.u32 %v2207_v56, %v2206_v30  ;;  %v2211_v34 = vor.u32 %v2210_v19, %v2209_v24  ;;  %v2498_v23 = vand.u32 2139095040, %v6456_v35 }
 0x25d   : > { %8350 = vst [vmem:[#allocation28_spill] sm:$0xff] %v6484_v16  ;;  %v2046_v31 = vsel %vm4696_vm8, 0, %v4695_v20  ;;  %v2350_v55 = vshll.u32 %v6484_v16, 30  ;;  %v2213_v9 = vshrl.u32 %v8336_v7, %v2198_v40  ;;  %vm2215_vm9 = vcmp.lt.s32.totalorder %v2196_v15, 1  ;;  %v1081_v16 = vpop.permute.xlu0 %1080 }
 0x25e   : > { %vm2216_vm11 = vcmp.lt.s32.totalorder %v2196_v15, 2  ;;  %vm2217_vm12 = vcmp.lt.s32.totalorder %v2196_v15, 3  ;;  %vm2218_vm13 = vcmp.lt.s32.totalorder %v2196_v15, 4  ;;  %v2219_v12 = vsel %vm2215_vm9, %v2199_v26, %v2202_v49 }
 0x25f   : > { %v6492_v3 = vsub.s32 %v2347_v46, %v2350_v55  ;;  %v2214_v52 = vor.u32 %v2213_v9, %v2212_v63  ;;  %v2220_v58 = vsel %vm2218_vm13, %v2208_v57, 2102212464  ;;  %v2223_v48 = vsel %vm2215_vm9, %v2202_v49, %v2205_v51 }
 0x260   : > { %v2221_v30 = vsel %vm2217_vm12, %v2205_v51, %v2220_v58  ;;  %v2224_v24 = vsel %vm2218_vm13, %v2211_v34, 920167782  ;;  %v2227_v50 = vsel %vm2215_vm9, %v2205_v51, %v2208_v57  ;;  %v2499_v14 = vshrl.u32 %v2498_v23, 23 }
 0x261   : > { %v2047_v20 = vsub.s32 32, %v2046_v31  ;;  %v2353_v56 = vsub.s32 0, %v6492_v3  ;;  %v2225_v40 = vsel %vm2217_vm12, %v2208_v57, %v2224_v24  ;;  %v2228_v19 = vsel %vm2218_vm13, %v2214_v52, 1326507024 }
 0x262   : > { %v2051_v11 = vsub.s32 4294967266, %v2046_v31  ;;  %v2222_v26 = vsel %vm2216_vm11, %v2219_v12, %v2221_v30  ;;  %v2226_v55 = vsel %vm2216_vm11, %v2223_v48, %v2225_v40  ;;  %v2229_v9 = vsel %vm2217_vm12, %v2211_v34, %v2228_v19  ;;  %v1096_v30 = vpop.permute.xlu1 %1095 }
 0x263   : > { %v4706_v46 = vmin.u32 %v2353_v56, %v6492_v3  ;;  %v2230_v49 = vsel %vm2216_vm11, %v2227_v50, %v2229_v9  ;;  %v6503_v51 = vmul.u32.u64.low %v6473_v4, %v2226_v55  ;;  %v6504_v63 = vmul.u32.u64.high %v6473_v4, %v2226_v55, %v6503_v51 }
 0x264   : > { %v6508_v57 = vmul.u32.u64.low %v6473_v4, %v2230_v49  ;;  %v6509_v23 = vmul.u32.u64.high %v6473_v4, %v2230_v49, %v6508_v57  ;;  %v4713_v52 = vadd.s32 4294967169, %v2499_v14  ;;  %v1116_v12 = vmul.f32 %v6260_v32, %v1081_v16 }
 0x265   : > { %v6513_v48 = vor.u32 %v2153_v45, %v2152_v62  ;;  %v2031_v15 = vadd.s32 %v6321_v60, %v6338_v33  ;;  %v2355_v34 = vclz %v4706_v46  ;;  %v2238_v50 = vmul.u32 %v6473_v4, %v2222_v26 }
 0x266   : > { %v8351_v56 = vand.u32 2147483647, %v6456_v35  ;;  %v2505_v19 = vadd.s32 1, %v4713_v52  ;;  %v6521_v55 = vadd.s32 127, %v2051_v11  ;;  %v2241_v62 = vadd.s32 1, %v6504_v63 }
 0x267   : > { %v2049_v14 = vshrl.u32 %v2031_v15, %v2047_v20  ;;  %v4707_v16 = vadd.s32 4294967294, %v2355_v34  ;;  %vm2240_vm14 = vc.u32 %v6509_v23, %v6503_v51  ;;  %v6527_v60 = vadd.f32 %v6272_v10, %v1116_v12 }
 0x268   : > { %v2502_v40 = vand.u32 8388607, %v8351_v56  ;;  %vm2506_vm0 = vcmp.gt.s32.totalorder %v2505_v19, 0  ;;  %v6530_v33 = vmul.f32 %v6260_v32, %v1096_v30  ;;  %v2048_v4 = vshll.u32 %v6406_v2, %v2046_v31 }
 0x269   : > { %vm4708_vm1 = vcmp.lt.s32.totalorder %v4707_v16, 0  ;;  %v2242_v45 = vsel %vm2240_vm14, %v2241_v62, %v6504_v63  ;;  %v2507_v11 = vsel %vm2506_vm0, %v2505_v19, 0  ;;  %v6536_v20 = vadd.s32 %v6429_v0, %v6449_v5 }
 0x26a   : > { %v2243_v26 = vadd.s32 %v2242_v45, %v2238_v50  ;;  %v2503_v9 = vor.u32 8388608, %v2502_v40  ;;  %v2509_v46 = vand.u32 31, %v2507_v11  ;;  %v6538_v49 = vor.u32 %v2049_v14, %v2048_v4 }
 0x26b   : > { %v2053_v57 = vshll.u32 %v6521_v55, 23  ;;  %v6541_v52 = vsel %vm4708_vm1, 0, %v4707_v16  ;;  %v2508_v34 = vshrl.u32 %v2507_v11, 5  ;;  %v2394_v30 = vand.u32 2139095040, %v6527_v60 }
 0x26c   : > { %v2244_v2 = vadd.s32 536870912, %v2243_v26  ;;  %v2510_v31 = vsub.s32 32, %v2509_v46  ;;  %v2512_v63 = vshll.u32 %v8337_v39, %v2509_v46  ;;  %v2515_v15 = vshll.u32 %v8331_v43, %v2509_v46 }
 0x26d   : > { %v2518_v0 = vshll.u32 %v8332_v28, %v2509_v46  ;;  %v2521_v5 = vshll.u32 %v8334_v8, %v2509_v46  ;;  %v2363_v50 = vsub.s32 4294967266, %v6541_v52  ;;  %v6557_v62 = vshll.u32 %v2503_v9, 8 }
 0x26e   : > { %v6550_v56 = vshrl.u32 %v2244_v2, 30  ;;  %v2513_v40 = vshrl.u32 %v8331_v43, %v2510_v31  ;;  %v2516_v19 = vshrl.u32 %v8332_v28, %v2510_v31  ;;  %v2511_v14 = vshrl.u32 %v8337_v39, %v2510_v31 }
 0x26f   : > { %v2519_v55 = vshrl.u32 %v8334_v8, %v2510_v31  ;;  %v2522_v16 = vshrl.u32 %v8335_v25, %v2510_v31  ;;  %v2524_v58 = vshll.u32 %v8335_v25, %v2509_v46  ;;  %v2395_v12 = vshrl.u32 %v2394_v30, 23 }
 0x270   : > { %v2246_v4 = vshll.u32 %v6550_v56, 30  ;;  %v2514_v45 = vor.u32 %v2513_v40, %v2512_v63  ;;  %v2517_v11 = vor.u32 %v2516_v19, %v2515_v15  ;;  %v8352_v21 = vand.u32 2147483647, %v6527_v60 }
 0x271   : > { %v2520_v2 = vor.u32 %v2519_v55, %v2518_v0  ;;  %v2523_v24 = vor.u32 %v2522_v16, %v2521_v5  ;;  %v2364_v22 = vadd.s32 127, %v2363_v50  ;;  %v2525_v35 = vshrl.u32 %v8336_v7, %v2510_v31 }
 0x272   : > { %v2398_v1 = vand.u32 8388607, %v8352_v21  ;;  %v6563_v27 = vsub.s32 %v2243_v26, %v2246_v4  ;;  %vm2527_vm2 = vcmp.lt.s32.totalorder %v2508_v34, 1  ;;  %vm2528_vm3 = vcmp.lt.s32.totalorder %v2508_v34, 2 }
 0x273   : > { %vm2529_vm4 = vcmp.lt.s32.totalorder %v2508_v34, 3  ;;  %vm2530_vm7 = vcmp.lt.s32.totalorder %v2508_v34, 4  ;;  %v2531_v9 = vsel %vm2527_vm2, %v2511_v14, %v2514_v45  ;;  %v2526_v15 = vor.u32 %v2525_v35, %v2524_v58 }
 0x274   : > { %v2249_v63 = vsub.s32 0, %v6563_v27  ;;  %v2532_v46 = vsel %vm2530_vm7, %v2520_v2, 2102212464  ;;  %v2535_v0 = vsel %vm2527_vm2, %v2514_v45, %v2517_v11  ;;  %v2536_v30 = vsel %vm2530_vm7, %v2523_v24, 920167782 }
 0x275   : > { %v2533_v5 = vsel %vm2529_vm4, %v2517_v11, %v2532_v46  ;;  %v2539_v40 = vsel %vm2527_vm2, %v2517_v11, %v2520_v2  ;;  %v4709_v21 = vadd.s32 4294967169, %v2395_v12  ;;  %v2359_v26 = vsub.s32 32, %v6541_v52 }
 0x276   : > { %v4702_v50 = vmin.u32 %v2249_v63, %v6563_v27  ;;  %v2537_v31 = vsel %vm2529_vm4, %v2520_v2, %v2536_v30  ;;  %v2540_v19 = vsel %vm2530_vm7, %v2526_v15, 1326507024  ;;  %v2365_v55 = vshll.u32 %v2364_v22, 23 }
 0x277   : > { %v2534_v14 = vsel %vm2528_vm3, %v2531_v9, %v2533_v5  ;;  %v2538_v16 = vsel %vm2528_vm3, %v2535_v0, %v2537_v31  ;;  %v2541_v35 = vsel %vm2529_vm4, %v2523_v24, %v2540_v19  ;;  %v6580_v11 = vor.u32 4788187, %v2053_v57  ;;  %v1092_v5 = vpop.permute.xlu0 %1091 }
 0x278   : > { %v2251_v58 = vclz %v4702_v50  ;;  %v2542_v4 = vsel %vm2528_vm3, %v2539_v40, %v2541_v35  ;;  %v6576_v45 = vmul.u32.u64.low %v6557_v62, %v2538_v16  ;;  %v6577_v12 = vmul.u32.u64.high %v6557_v62, %v2538_v16, %v6576_v45 }
 0x279   : > { %v6583_v2 = vmul.u32.u64.low %v6557_v62, %v2542_v4  ;;  %v6584_v63 = vmul.u32.u64.high %v6557_v62, %v2542_v4, %v6583_v2  ;;  %v2401_v22 = vadd.s32 1, %v4709_v21  ;;  %v2161_v9 = vcvt.s32.f32 %v6513_v48 }
 0x27a   : > { %v2361_v15 = vshrl.u32 %v6536_v20, %v2359_v26  ;;  %v4703_v24 = vadd.s32 4294967294, %v2251_v58  ;;  %v6590_v34 = vadd.f32 %v6272_v10, %v6530_v33  ;;  %v6592_v46 = vor.u32 4788187, %v2365_v55 }
 0x27b   : > { %v2550_v0 = vmul.u32 %v6557_v62, %v2534_v14  ;;  %v2399_v57 = vor.u32 8388608, %v2398_v1  ;;  %vm2402_vm8 = vcmp.gt.s32.totalorder %v2401_v22, 0  ;;  %v2360_v30 = vshll.u32 %v6492_v3, %v6541_v52 }
 0x27c   : > { %vm4704_vm9 = vcmp.lt.s32.totalorder %v4703_v24, 0  ;;  %v2553_v48 = vadd.s32 1, %v6577_v12  ;;  %v2403_v40 = vsel %vm2402_vm8, %v2401_v22, 0  ;;  %v8353_v20 = vand.u32 2147483647, %v6487_v59 }
 0x27d   : > { %vm2552_vm11 = vc.u32 %v6584_v63, %v6576_v45  ;;  %v6606_v1 = vor.u32 %v2361_v15, %v2360_v30  ;;  %v2239_v3 = vadd.s32 %v6503_v51, %v6509_v23  ;;  %v6612_v62 = vmul.f32 %v6260_v32, %v1092_v5 }
 0x27e   : > { %v6600_v21 = vmul.f32 %v2161_v9, %v8353_v20  ;;  %v2554_v52 = vsel %vm2552_vm11, %v2553_v48, %v6577_v12  ;;  %v2367_v59 = vand.u32 2147483647, %v6592_v46  ;;  %v6615_v50 = vsel %vm4704_vm9, 0, %v4703_v24 }
 0x27f   : > { %v2555_v31 = vadd.s32 %v2554_v52, %v2550_v0  ;;  %v2405_v19 = vand.u32 31, %v2403_v40  ;;  %v2404_v55 = vshrl.u32 %v2403_v40, 5  ;;  %v6617_v14 = vshll.u32 %v2399_v57, 8 }
 0x280   : > { %v2706_v35 = vand.u32 2139095040, %v6590_v34  ;;  %v2255_v4 = vsub.s32 32, %v6615_v50  ;;  %v2259_v12 = vsub.s32 4294967266, %v6615_v50  ;;  %vm1873_vm0 = vcmp.lt.s32.totalorder %v5947_v29, 0 }
 0x281   : > { %v2556_v58 = vadd.s32 536870912, %v2555_v31  ;;  %v2406_v51 = vsub.s32 32, %v2405_v19  ;;  %v2408_v23 = vshll.u32 %v8337_v39, %v2405_v19  ;;  %v2411_v32 = vshll.u32 %v8331_v43, %v2405_v19 }
 0x282   : > { %v2414_v2 = vshll.u32 %v8332_v28, %v2405_v19  ;;  %v2417_v22 = vshll.u32 %v8334_v8, %v2405_v19  ;;  %vm2423_vm12 = vcmp.lt.s32.totalorder %v2404_v55, 1  ;;  %vm2426_vm13 = vcmp.lt.s32.totalorder %v2404_v55, 4 }
 0x283   : > { %v6627_v9 = vshrl.u32 %v2556_v58, 30  ;;  %v2407_v15 = vshrl.u32 %v8337_v39, %v2406_v51  ;;  %v2409_v24 = vshrl.u32 %v8331_v43, %v2406_v51  ;;  %v2412_v46 = vshrl.u32 %v8332_v28, %v2406_v51 }
 0x284   : > { %v2415_v0 = vshrl.u32 %v8334_v8, %v2406_v51  ;;  %v2418_v57 = vshrl.u32 %v8335_v25, %v2406_v51  ;;  %v2420_v40 = vshll.u32 %v8335_v25, %v2405_v19  ;;  %v2421_v58 = vshrl.u32 %v8336_v7, %v2406_v51 }
 0x285   : > { %8354 = vst [vmem:[#allocation29_spill] sm:$0xff] %v6627_v9  ;;  %v2558_v5 = vshll.u32 %v6627_v9, 30  ;;  %v2410_v30 = vor.u32 %v2409_v24, %v2408_v23  ;;  %v2413_v48 = vor.u32 %v2412_v46, %v2411_v32  ;;  %vm2425_vm14 = vcmp.lt.s32.totalorder %v2404_v55, 3 }
 0x286   : > { %v2416_v20 = vor.u32 %v2415_v0, %v2414_v2  ;;  %v2419_v52 = vor.u32 %v2418_v57, %v2417_v22  ;;  %vm1769_vm1 = vcmp.lt.s32.totalorder %v6028_v54, 0  ;;  %vm2424_vm2 = vcmp.lt.s32.totalorder %v2404_v55, 2 }
 0x287   : > { %v6639_v16 = vsub.s32 %v2555_v31, %v2558_v5  ;;  %v2427_v26 = vsel %vm2423_vm12, %v2407_v15, %v2410_v30  ;;  %v2431_v33 = vsel %vm2423_vm12, %v2410_v30, %v2413_v48  ;;  %v2422_v23 = vor.u32 %v2421_v58, %v2420_v40 }
 0x288   : > { %v2428_v32 = vsel %vm2426_vm13, %v2416_v20, 2102212464  ;;  %v2432_v19 = vsel %vm2426_vm13, %v2419_v52, 920167782  ;;  %v2707_v2 = vshrl.u32 %v2706_v35, 23  ;;  %v2435_v31 = vsel %vm2423_vm12, %v2413_v48, %v2416_v20 }
 0x289   : > { %v2561_v51 = vsub.s32 0, %v6639_v16  ;;  %v2429_v22 = vsel %vm2425_vm14, %v2413_v48, %v2428_v32  ;;  %v2433_v24 = vsel %vm2425_vm14, %v2416_v20, %v2432_v19  ;;  %v2257_v46 = vshrl.u32 %v2239_v3, %v2255_v4 }
 0x28a   : > { %v2260_v0 = vadd.s32 127, %v2259_v12  ;;  %v2434_v15 = vsel %vm2424_vm2, %v2431_v33, %v2433_v24  ;;  %v2436_v57 = vsel %vm2426_vm13, %v2422_v23, 1326507024  ;;  %v2369_v58 = vcvt.s32.f32 %v6606_v1 }
 0x28b   : > { %v4714_v5 = vmin.u32 %v2561_v51, %v6639_v16  ;;  %v2437_v30 = vsel %vm2425_vm14, %v2419_v52, %v2436_v57  ;;  %v6654_v35 = vmul.u32.u64.low %v6617_v14, %v2434_v15  ;;  %v6655_v40 = vmul.u32.u64.high %v6617_v14, %v2434_v15, %v6654_v35 }
 0x28c   : > { %v2430_v32 = vsel %vm2424_vm2, %v2427_v26, %v2429_v22  ;;  %v2438_v3 = vsel %vm2424_vm2, %v2435_v31, %v2437_v30  ;;  %v4721_v4 = vadd.s32 4294967169, %v2707_v2  ;;  %v2256_v33 = vshll.u32 %v6563_v27, %v6615_v50 }
 0x28d   : > { %v2563_v12 = vclz %v4714_v5  ;;  %v6664_v48 = vmul.u32.u64.low %v6617_v14, %v2438_v3  ;;  %v6665_v20 = vmul.u32.u64.high %v6617_v14, %v2438_v3, %v6664_v48  ;;  %v8355_v52 = vand.u32 2147483647, %v6580_v11 }
 0x28e   : > { %v8356_v23 = vcvt.s32.f32 %v6538_v49  ;;  %v6673_v1 = vmul.f32 %v2369_v58, %v2367_v59  ;;  %v8357_v26 = vand.u32 2147483647, %v6590_v34  ;;  %v2713_v2 = vadd.s32 1, %v4721_v4 }
 0x28f   : > { %v6677_v51 = vor.u32 %v2257_v46, %v2256_v33  ;;  %v2261_v27 = vshll.u32 %v2260_v0, 23  ;;  %v2446_v50 = vmul.u32 %v6617_v14, %v2430_v32  ;;  %v2449_v22 = vadd.s32 1, %v6655_v40 }
 0x290   : > { %v6671_v19 = vmul.f32 %v8356_v23, %v8355_v52  ;;  %v2710_v55 = vand.u32 8388607, %v8357_v26  ;;  %v8358_v11 = vxor.u32 2147483648, %v6425_v17  ;;  %v8359_v59 = vxor.u32 2147483648, %v6463_v18 }
 0x291   : > { %v4715_v31 = vadd.s32 4294967294, %v2563_v12  ;;  %vm2714_vm3 = vcmp.gt.s32.totalorder %v2713_v2, 0  ;;  %vm2448_vm4 = vc.u32 %v6665_v20, %v6654_v35  ;;  %v6700_v0 = vadd.f32 %v6272_v10, %v6612_v62 }
 0x292   : > { %v6686_v49 = vsel %vm1873_vm0, %v8358_v11, %v6425_v17  ;;  %v6693_v24 = vsel %vm1769_vm1, %v8359_v59, %v6463_v18  ;;  %v2715_v46 = vsel %vm2714_vm3, %v2713_v2, 0  ;;  %v2450_v57 = vsel %vm2448_vm4, %v2449_v22, %v6655_v40 }
 0x293   : > { %v2717_v18 = vand.u32 31, %v2715_v46  ;;  %v6705_v5 = vor.u32 4788187, %v2261_v27  ;;  %v2265_v30 = vcvt.s32.f32 %v6677_v51  ;;  %v2451_v58 = vadd.s32 %v2450_v57, %v2446_v50 }
 0x294   : > { %v2711_v32 = vor.u32 8388608, %v2710_v55  ;;  %vm4716_vm7 = vcmp.lt.s32.totalorder %v4715_v31, 0  ;;  %v2602_v40 = vand.u32 2139095040, %v6700_v0  ;;  %v2716_v48 = vshrl.u32 %v2715_v46, 5 }
 0x295   : > { %v2718_v3 = vsub.s32 32, %v2717_v18  ;;  %v2720_v4 = vshll.u32 %v8337_v39, %v2717_v18  ;;  %v2723_v10 = vshll.u32 %v8331_v43, %v2717_v18  ;;  %v2452_v62 = vadd.s32 536870912, %v2451_v58 }
 0x296   : > { %v2726_v33 = vshll.u32 %v8332_v28, %v2717_v18  ;;  %v2729_v12 = vshll.u32 %v8334_v8, %v2717_v18  ;;  %v6716_v55 = vsel %vm4716_vm7, 0, %v4715_v31  ;;  %v2732_v11 = vshll.u32 %v8335_v25, %v2717_v18 }
 0x297   : > { %v2721_v52 = vshrl.u32 %v8331_v43, %v2718_v3  ;;  %v2724_v23 = vshrl.u32 %v8332_v28, %v2718_v3  ;;  %v2727_v26 = vshrl.u32 %v8334_v8, %v2718_v3  ;;  %v6718_v2 = vshrl.u32 %v2452_v62, 30 }
 0x298   : > { %v2719_v51 = vshrl.u32 %v8337_v39, %v2718_v3  ;;  %v2730_v27 = vshrl.u32 %v8335_v25, %v2718_v3  ;;  %v6723_v59 = vshll.u32 %v2711_v32, 8  ;;  %vm2081_vm8 = vcmp.lt.s32.totalorder %v6125_v61, 0 }
 0x299   : > { %8360 = vst [vmem:[#allocation30_spill] sm:$0xff] %v6718_v2  ;;  %v2722_v50 = vor.u32 %v2721_v52, %v2720_v4  ;;  %v2725_v22 = vor.u32 %v2724_v23, %v2723_v10  ;;  %v2454_v46 = vshll.u32 %v6718_v2, 30  ;;  %v2728_v57 = vor.u32 %v2727_v26, %v2726_v33  ;;  %v5201_v2 = vld [vmem:[%s8206_s8] sm:$0xff]  }
 0x29a   : > { %v2731_v15 = vor.u32 %v2730_v27, %v2729_v12  ;;  %v2603_v31 = vshrl.u32 %v2602_v40, 23  ;;  %vm1977_vm9 = vcmp.lt.s32.totalorder %v6179_v42, 0  ;;  %v2571_v62 = vsub.s32 4294967266, %v6716_v55  ;;  %4953 = vmatprep.subr.bf16.mxu1 %v5201_v2 }
 0x29b   : > { %v2733_v17 = vshrl.u32 %v8336_v7, %v2718_v3  ;;  %vm2735_vm11 = vcmp.lt.s32.totalorder %v2716_v48, 1  ;;  %vm2737_vm12 = vcmp.lt.s32.totalorder %v2716_v48, 3  ;;  %vm8285_vm13 = vcmp.lt.s32.totalorder %v6276_v36, 0  ;;  %4954 = vmatpush3.bf16.msra.mxu1 %v5201_v2 }
 0x29c   : > { %v6731_v18 = vsub.s32 %v2451_v58, %v2454_v46  ;;  %vm2736_vm14 = vcmp.lt.s32.totalorder %v2716_v48, 2  ;;  %vm2738_vm2 = vcmp.lt.s32.totalorder %v2716_v48, 4  ;;  %v2739_v32 = vsel %vm2735_vm11, %v2719_v51, %v2722_v50 }
 0x29d   : > { %v2734_v4 = vor.u32 %v2733_v17, %v2732_v11  ;;  %v2740_v10 = vsel %vm2738_vm2, %v2728_v57, 2102212464  ;;  %v2743_v33 = vsel %vm2735_vm11, %v2722_v50, %v2725_v22  ;;  %v2744_v12 = vsel %vm2738_vm2, %v2731_v15, 920167782 }
 0x29e   : > { %v2263_v40 = vand.u32 2147483647, %v6705_v5  ;;  %v2457_v52 = vsub.s32 0, %v6731_v18  ;;  %v2741_v3 = vsel %vm2737_vm12, %v2725_v22, %v2740_v10  ;;  %v2745_v23 = vsel %vm2737_vm12, %v2728_v57, %v2744_v12 }
 0x29f   : > { %v2746_v58 = vsel %vm2736_vm14, %v2743_v33, %v2745_v23  ;;  %v2747_v26 = vsel %vm2735_vm11, %v2725_v22, %v2728_v57  ;;  %v2748_v27 = vsel %vm2738_vm2, %v2734_v4, 1326507024  ;;  %v8276_v51 = vand.u32 2147483647, %v6700_v0 }
 0x2a0   : > { %v2567_v17 = vsub.s32 32, %v6716_v55  ;;  %v2572_v11 = vadd.s32 127, %v2571_v62  ;;  %v2742_v50 = vsel %vm2736_vm14, %v2739_v32, %v2741_v3  ;;  %v2749_v5 = vsel %vm2737_vm12, %v2731_v15, %v2748_v27 }
 0x2a1   : > { %v2750_v46 = vsel %vm2736_vm14, %v2747_v26, %v2749_v5  ;;  %v6747_v10 = vmul.u32.u64.low %v6723_v59, %v2746_v58  ;;  %v6748_v14 = vmul.u32.u64.high %v6723_v59, %v2746_v58, %v6747_v10  ;;  %v4717_v33 = vadd.s32 4294967169, %v2603_v31 }
 0x2a2   : > { %v2551_v22 = vadd.s32 %v6576_v45, %v6584_v63  ;;  %v4710_v57 = vmin.u32 %v2457_v52, %v6731_v18  ;;  %v6755_v4 = vmul.u32.u64.low %v6723_v59, %v2750_v46  ;;  %v6756_v62 = vmul.u32.u64.high %v6723_v59, %v2750_v46, %v6755_v4 }
 0x2a3   : > { %v8361_v15 = vxor.u32 2147483648, %v6600_v21  ;;  %v6765_v32 = vmul.f32 %v2265_v30, %v2263_v40  ;;  %v2609_v12 = vadd.s32 1, %v4717_v33  ;;  %v8277_v31 = vand.u32 2147483647, %v5827_v37 }
 0x2a4   : > { %v8362_v45 = vxor.u32 2147483648, %v6671_v19  ;;  %v2569_v52 = vshrl.u32 %v2551_v22, %v2567_v17  ;;  %v2573_v3 = vshll.u32 %v2572_v11, 23  ;;  %v2758_v23 = vmul.u32 %v6723_v59, %v2742_v50 }
 0x2a5   : > { %v6763_v48 = vsel %vm2081_vm8, %v8361_v15, %v6600_v21  ;;  %v8363_v21 = vxor.u32 2147483648, %v6673_v1  ;;  %v2761_v40 = vadd.s32 1, %v6748_v14  ;;  %v2606_v58 = vand.u32 8388607, %v8276_v51 }
 0x2a6   : > { %v6773_v63 = vsel %vm1977_vm9, %v8362_v45, %v6671_v19  ;;  %vm2610_vm3 = vcmp.gt.s32.totalorder %v2609_v12, 0  ;;  %v2568_v19 = vshll.u32 %v6639_v16, %v6716_v55  ;;  %v2459_v26 = vclz %v4710_v57 }
 0x2a7   : > { %v6781_v30 = vsel %vm8285_vm13, %v8363_v21, %v6673_v1  ;;  %vm2760_vm4 = vc.u32 %v6756_v62, %v6747_v10  ;;  %v2611_v59 = vsel %vm2610_vm3, %v2609_v12, 0  ;;  %v6794_v11 = vand.u32 8388607, %v8277_v31 }
 0x2a8   : > { %v2762_v17 = vsel %vm2760_vm4, %v2761_v40, %v6748_v14  ;;  %v2613_v1 = vand.u32 31, %v2611_v59  ;;  %v6796_v50 = vor.u32 %v2569_v52, %v2568_v19  ;;  %v6798_v5 = vor.u32 4788187, %v2573_v3 }
 0x2a9   : > { %v6802_v16 = vadd.s32 %v6654_v35, %v6665_v20  ;;  %v2763_v55 = vadd.s32 %v2762_v17, %v2758_v23  ;;  %v2607_v46 = vor.u32 8388608, %v2606_v58  ;;  %v4711_v57 = vadd.s32 4294967294, %v2459_v26 }
 0x2aa   : > { %v2614_v33 = vsub.s32 32, %v2613_v1  ;;  %v2616_v22 = vshll.u32 %v8337_v39, %v2613_v1  ;;  %v2619_v14 = vshll.u32 %v8331_v43, %v2613_v1  ;;  %v2622_v15 = vshll.u32 %v8332_v28, %v2613_v1 }
 0x2ab   : > { %v2764_v4 = vadd.s32 536870912, %v2763_v55  ;;  %v2625_v12 = vshll.u32 %v8334_v8, %v2613_v1  ;;  %v2612_v45 = vshrl.u32 %v2611_v59, 5  ;;  %v2577_v20 = vcvt.s32.f32 %v6796_v50 }
 0x2ac   : > { %v2617_v52 = vshrl.u32 %v8331_v43, %v2614_v33  ;;  %v2620_v3 = vshrl.u32 %v8332_v28, %v2614_v33  ;;  %v2623_v35 = vshrl.u32 %v8334_v8, %v2614_v33  ;;  %v2615_v21 = vshrl.u32 %v8337_v39, %v2614_v33 }
 0x2ad   : > { %v6812_v23 = vshrl.u32 %v2764_v4, 30  ;;  %v2626_v40 = vshrl.u32 %v8335_v25, %v2614_v33  ;;  %v2575_v58 = vand.u32 2147483647, %v6798_v5  ;;  %v2628_v59 = vshll.u32 %v8335_v25, %v2613_v1 }
 0x2ae   : > { %v2618_v19 = vor.u32 %v2617_v52, %v2616_v22  ;;  %v2621_v26 = vor.u32 %v2620_v3, %v2619_v14  ;;  %v2624_v51 = vor.u32 %v2623_v35, %v2622_v15  ;;  %v2647_v27 = vshll.u32 %v2607_v46, 8 }
 0x2af   : > { %8364 = vst [vmem:[#allocation31_spill] sm:$0xff] %v6812_v23  ;;  %v2766_v17 = vshll.u32 %v6812_v23, 30  ;;  %v2627_v31 = vor.u32 %v2626_v40, %v2625_v12  ;;  %vm4712_vm7 = vcmp.lt.s32.totalorder %v4711_v57, 0  ;;  %v2629_v50 = vshrl.u32 %v8336_v7, %v2614_v33 }
 0x2b0   : > { %vm2631_vm11 = vcmp.lt.s32.totalorder %v2612_v45, 1  ;;  %vm2633_vm12 = vcmp.lt.s32.totalorder %v2612_v45, 3  ;;  %vm2632_vm14 = vcmp.lt.s32.totalorder %v2612_v45, 2  ;;  %vm2634_vm2 = vcmp.lt.s32.totalorder %v2612_v45, 4 }
 0x2b1   : > { %v6820_v4 = vsub.s32 %v2763_v55, %v2766_v17  ;;  %v2635_v9 = vsel %vm2631_vm11, %v2615_v21, %v2618_v19  ;;  %v2630_v5 = vor.u32 %v2629_v50, %v2628_v59  ;;  %v2636_v22 = vsel %vm2634_vm2, %v2624_v51, 2102212464 }
 0x2b2   : > { %v2639_v14 = vsel %vm2631_vm11, %v2618_v19, %v2621_v26  ;;  %v2640_v52 = vsel %vm2634_vm2, %v2627_v31, 920167782  ;;  %v6822_v1 = vsel %vm4712_vm7, 0, %v4711_v57  ;;  %v2637_v46 = vsel %vm2633_vm12, %v2621_v26, %v2636_v22 }
 0x2b3   : > { %v2769_v15 = vsub.s32 0, %v6820_v4  ;;  %v2641_v12 = vsel %vm2633_vm12, %v2624_v51, %v2640_v52  ;;  %v2643_v3 = vsel %vm2631_vm11, %v2621_v26, %v2624_v51  ;;  %v2644_v55 = vsel %vm2634_vm2, %v2630_v5, 1326507024 }
 0x2b4   : > { %v2642_v33 = vsel %vm2632_vm14, %v2639_v14, %v2641_v12  ;;  %v1160_v35 = vshll.u32 %v8337_v39, %v5957_v44  ;;  %v2638_v40 = vsel %vm2632_vm14, %v2635_v9, %v2637_v46  ;;  %v2645_v57 = vsel %vm2633_vm12, %v2627_v31, %v2644_v55 }
 0x2b5   : > { %v4722_v21 = vmin.u32 %v2769_v15, %v6820_v4  ;;  %v1161_v19 = vshrl.u32 %v8331_v43, %v6086_v6  ;;  %v2467_v59 = vsub.s32 4294967266, %v6822_v1  ;;  %v2646_v17 = vsel %vm2632_vm14, %v2643_v3, %v2645_v57 }
 0x2b6   : > { %v6837_v50 = vmul.u32.u64.low %v2647_v27, %v2642_v33  ;;  %v6838_v22 = vmul.u32.u64.high %v2647_v27, %v2642_v33, %v6837_v50  ;;  %v6841_v26 = vmul.u32.u64.low %v2647_v27, %v2646_v17  ;;  %v6842_v5 = vmul.u32.u64.high %v2647_v27, %v2646_v17, %v6841_v26 }
 0x2b7   : > { %v2771_v51 = vclz %v4722_v21  ;;  %v1163_v9 = vshll.u32 %v8331_v43, %v5957_v44  ;;  %v2463_v31 = vsub.s32 32, %v6822_v1  ;;  %v2654_v14 = vmul.u32 %v2647_v27, %v2638_v40 }
 0x2b8   : > { %v1164_v52 = vshrl.u32 %v8332_v28, %v6086_v6  ;;  %v1167_v45 = vshrl.u32 %v8334_v8, %v6086_v6  ;;  %v1166_v46 = vshll.u32 %v8332_v28, %v5957_v44  ;;  %v1170_v12 = vshrl.u32 %v8335_v25, %v6086_v6 }
 0x2b9   : > { %v4723_v15 = vadd.s32 4294967294, %v2771_v51  ;;  %v1173_v33 = vshrl.u32 %v8336_v7, %v6086_v6  ;;  %v2468_v3 = vadd.s32 127, %v2467_v59  ;;  %v2657_v55 = vadd.s32 1, %v6838_v22 }
 0x2ba   : > { %v1169_v27 = vshll.u32 %v8334_v8, %v5957_v44  ;;  %v1172_v21 = vshll.u32 %v8335_v25, %v5957_v44  ;;  %v6862_v40 = vmul.f32 %v2577_v20, %v2575_v58  ;;  %vm2656_vm3 = vc.u32 %v6842_v5, %v6837_v50  ;;  %v5202_v44 = vld [vmem:[%s8206_s8 + $0x8] sm:$0xff]  }
 0x2bb   : > { %v1162_v57 = vor.u32 %v1161_v19, %v1160_v35  ;;  %v1168_v17 = vor.u32 %v1167_v45, %v1166_v46  ;;  %v2658_v51 = vsel %vm2656_vm3, %v2657_v55, %v6838_v22  ;;  %v1165_v26 = vor.u32 %v1164_v52, %v1163_v9  ;;  %4955 = vmatprep.subr.bf16.mxu1 %v5202_v44 }
 0x2bc   : > { %v1171_v23 = vor.u32 %v1170_v12, %v1169_v27  ;;  %v1174_v59 = vor.u32 %v1173_v33, %v1172_v21  ;;  %vm8288_vm4 = vcmp.lt.s32.totalorder %v6360_v38, 0  ;;  %vm4724_vm7 = vcmp.lt.s32.totalorder %v4723_v15, 0  ;;  %4956 = vmatpush3.bf16.msra.mxu1 %v5202_v44 }
 0x2bd   : > { %v2659_v20 = vadd.s32 %v2658_v51, %v2654_v14  ;;  %v1151_v58 = vor.u32 8388608, %v6794_v11  ;;  %v1159_v35 = vshrl.u32 %v8337_v39, %v6086_v6  ;;  %v2464_v19 = vshll.u32 %v6731_v18, %v6822_v1  ;;  %v5203_v18 = vld [vmem:[%s8206_s8 + $0x10] sm:$0xff]  }
 0x2be   : > { %v2465_v22 = vshrl.u32 %v6802_v16, %v2463_v31  ;;  %v2469_v9 = vshll.u32 %v2468_v3, 23  ;;  %vm1178_vm11 = vcmp.lt.s32.totalorder %v5953_v41, 4  ;;  %vm1175_vm12 = vcmp.lt.s32.totalorder %v5953_v41, 1  ;;  %4957 = vmatprep.subr.bf16.mxu1 %v5203_v18 }
 0x2bf   : > { %v2660_v52 = vadd.s32 536870912, %v2659_v20  ;;  %vm1176_vm14 = vcmp.lt.s32.totalorder %v5953_v41, 2  ;;  %v1180_v14 = vsel %vm1178_vm11, %v1168_v17, 2102212464  ;;  %v6883_v11 = vsel %vm4724_vm7, 0, %v4723_v15 }
 0x2c0   : > { %v1183_v45 = vsel %vm1175_vm12, %v1162_v57, %v1165_v26  ;;  %v1184_v6 = vsel %vm1178_vm11, %v1171_v23, 920167782  ;;  %v1188_v46 = vsel %vm1178_vm11, %v1174_v59, 1326507024  ;;  %vm1177_vm2 = vcmp.lt.s32.totalorder %v5953_v41, 3  ;;  %4958 = vmatpush3.bf16.msra.mxu1 %v5203_v18 }
 0x2c1   : > { %v6888_v16 = vshrl.u32 %v2660_v52, 30  ;;  %v1179_v1 = vsel %vm1175_vm12, %v1159_v35, %v1162_v57  ;;  %v1187_v31 = vsel %vm1175_vm12, %v1165_v26, %v1168_v17  ;;  %v1181_v12 = vsel %vm1177_vm2, %v1165_v26, %v1180_v14 }
 0x2c2   : > { %v1185_v33 = vsel %vm1177_vm2, %v1168_v17, %v1184_v6  ;;  %v1189_v3 = vsel %vm1177_vm2, %v1171_v23, %v1188_v46  ;;  %v1191_v2 = vshll.u32 %v1151_v58, 8  ;;  %v6891_v15 = vor.u32 %v2465_v22, %v2464_v19  ;;  %v5204_v23 = vld [vmem:[%s8206_s8 + $0x18] sm:$0xff]  }
 0x2c3   : > { %v6893_v55 = vor.u32 4788187, %v2469_v9  ;;  %v2662_v27 = vshll.u32 %v6888_v16, 30  ;;  %v1186_v21 = vsel %vm1176_vm14, %v1183_v45, %v1185_v33  ;;  %v2775_v51 = vsub.s32 32, %v6883_v11  ;;  %4959 = vmatprep.subr.bf16.mxu1 %v5204_v23 }
 0x2c4   : > { %v1190_v57 = vsel %vm1176_vm14, %v1187_v31, %v1189_v3  ;;  %v6901_v59 = vmul.u32.u64.low %v1191_v2, %v1186_v21  ;;  %v6902_v26 = vmul.u32.u64.high %v1191_v2, %v1186_v21, %v6901_v59  ;;  %v1182_v58 = vsel %vm1176_vm14, %v1179_v1, %v1181_v12  ;;  %4960 = vmatpush3.bf16.msra.mxu1 %v5204_v23 }
 0x2c5   : > { %v6908_v17 = vsub.s32 %v2659_v20, %v2662_v27  ;;  %v6912_v44 = vmul.u32.u64.low %v1191_v2, %v1190_v57  ;;  %v6913_v35 = vmul.u32.u64.high %v1191_v2, %v1190_v57, %v6912_v44  ;;  %v8365_v19 = vxor.u32 2147483648, %v6765_v32 }
 0x2c6   : > { %v2759_v9 = vadd.s32 %v6747_v10, %v6756_v62  ;;  %v2779_v52 = vsub.s32 4294967266, %v6883_v11  ;;  %v1247_v20 = vand.u32 2147483647, %v5897_v47  ;;  %v2579_v41 = vxor.u32 2147483648, %v6862_v40  ;;  %v5205_v62 = vld [vmem:[%s8206_s8 + $0x20] sm:$0xff]  }
 0x2c7   : > { %v6920_v22 = vsel %vm8288_vm4, %v8365_v19, %v6765_v32  ;;  %v2471_v14 = vand.u32 2147483647, %v6893_v55  ;;  %v2473_v45 = vcvt.s32.f32 %v6891_v15  ;;  %v2665_v6 = vsub.s32 0, %v6908_v17  ;;  %4961 = vmatprep.subr.bf16.mxu1 %v5205_v62 }
 0x2c8   : > { %v2776_v32 = vshll.u32 %v6820_v4, %v6883_v11  ;;  %v2777_v46 = vshrl.u32 %v2759_v9, %v2775_v51  ;;  %v1198_v1 = vmul.u32 %v1191_v2, %v1182_v58  ;;  %v1201_v10 = vadd.s32 1, %v6902_v26  ;;  %4962 = vmatpush3.bf16.msra.mxu1 %v5205_v62 }
 0x2c9   : > { %v4718_v31 = vmin.u32 %v2665_v6, %v6908_v17  ;;  %vm1200_vm3 = vc.u32 %v6913_v35, %v6901_v59  ;;  %v1265_v18 = vshrl.u32 %v8331_v43, %v6161_v53  ;;  %v1268_v4 = vshrl.u32 %v8332_v28, %v6161_v53  ;;  %v8366_v6 = vld [vmem:[#allocation27_spill] sm:$0xff] }
 0x2ca   : > { %v2780_v11 = vadd.s32 127, %v2779_v52  ;;  %v1202_v12 = vsel %vm1200_vm3, %v1201_v10, %v6902_v26  ;;  %v1254_v33 = vand.u32 8388607, %v1247_v20  ;;  %v1264_v3 = vshll.u32 %v8337_v39, %v6093_v13  ;;  %v8367_v10 = vld [vmem:[#allocation18_spill] sm:$0xff] }
 0x2cb   : > { %v2667_v2 = vclz %v4718_v31  ;;  %v1203_v15 = vadd.s32 %v1202_v12, %v1198_v1  ;;  %v1267_v55 = vshll.u32 %v8331_v43, %v6093_v13  ;;  %v1271_v27 = vshrl.u32 %v8334_v8, %v6161_v53  ;;  %v5206_v43 = vld [vmem:[%s8206_s8 + $0x28] sm:$0xff]  }
 0x2cc   : > { %v1270_v21 = vshll.u32 %v8332_v28, %v6093_v13  ;;  %v1273_v51 = vshll.u32 %v8334_v8, %v6093_v13  ;;  %v1274_v57 = vshrl.u32 %v8335_v25, %v6161_v53  ;;  %v1277_v26 = vshrl.u32 %v8336_v7, %v6161_v53  ;;  %4963 = vmatprep.subr.bf16.mxu1 %v5206_v43 }
 0x2cd   : > { %v4719_v58 = vadd.s32 4294967294, %v2667_v2  ;;  %v1204_v44 = vadd.s32 536870912, %v1203_v15  ;;  %v1266_v23 = vor.u32 %v1265_v18, %v1264_v3  ;;  %v1269_v19 = vor.u32 %v1268_v4, %v1267_v55  ;;  %4964 = vmatpush3.bf16.msra.mxu1 %v5206_v43 }
 0x2ce   : > { %v2781_v9 = vshll.u32 %v2780_v11, 23  ;;  %v1272_v28 = vor.u32 %v1271_v27, %v1270_v21  ;;  %v1275_v52 = vor.u32 %v1274_v57, %v1273_v51  ;;  %v1276_v8 = vshll.u32 %v8335_v25, %v6093_v13 }
 0x2cf   : > { %vm8284_vm7 = vcmp.lt.s32.totalorder %v8366_v6, 0  ;;  %vm4720_vm11 = vcmp.lt.s32.totalorder %v4719_v58, 0  ;;  %v6966_v1 = vshrl.u32 %v1204_v44, 30  ;;  %v1255_v7 = vor.u32 8388608, %v1254_v33 }
 0x2d0   : > { %vm1282_vm12 = vcmp.lt.s32.totalorder %v8367_v10, 4  ;;  %v2670_v31 = vsel %vm4720_vm11, 0, %v4719_v58  ;;  %v1278_v12 = vor.u32 %v1277_v26, %v1276_v8  ;;  %vm1279_vm14 = vcmp.lt.s32.totalorder %v8367_v10, 1 }
 0x2d1   : > { %v1288_v18 = vsel %vm1282_vm12, %v1275_v52, 920167782  ;;  %v2675_v4 = vsub.s32 4294967266, %v2670_v31  ;;  %v1206_v13 = vshll.u32 %v6966_v1, 30  ;;  %vm1281_vm2 = vcmp.lt.s32.totalorder %v8367_v10, 3 }
 0x2d2   : > { %v1287_v25 = vsel %vm1279_vm14, %v1266_v23, %v1269_v19  ;;  %v6976_v11 = vmul.f32 %v2473_v45, %v2471_v14  ;;  %v6978_v33 = vor.u32 %v2777_v46, %v2776_v32  ;;  %v1263_v62 = vshrl.u32 %v8337_v39, %v6161_v53 }
 0x2d3   : > { %v1289_v3 = vsel %vm1281_vm2, %v1272_v28, %v1288_v18  ;;  %v2676_v2 = vadd.s32 127, %v2675_v4  ;;  %v6984_v55 = vsub.s32 %v1203_v15, %v1206_v13  ;;  %vm1280_vm3 = vcmp.lt.s32.totalorder %v8367_v10, 2 }
 0x2d4   : > { %v1284_v27 = vsel %vm1282_vm12, %v1272_v28, 2102212464  ;;  %v1290_v14 = vsel %vm1280_vm3, %v1287_v25, %v1289_v3  ;;  %v1291_v45 = vsel %vm1279_vm14, %v1269_v19, %v1272_v28  ;;  %v1292_v53 = vsel %vm1282_vm12, %v1278_v12, 1326507024 }
 0x2d5   : > { %v1295_v39 = vshll.u32 %v1255_v7, 8  ;;  %v6995_v32 = vor.u32 4788187, %v2781_v9  ;;  %v2671_v46 = vsub.s32 32, %v2670_v31  ;;  %v1209_v15 = vsub.s32 0, %v6984_v55 }
 0x2d6   : > { %v1283_v21 = vsel %vm1279_vm14, %v1263_v62, %v1266_v23  ;;  %v1285_v51 = vsel %vm1281_vm2, %v1269_v19, %v1284_v27  ;;  %v1293_v57 = vsel %vm1281_vm2, %v1275_v52, %v1292_v53  ;;  %v2677_v58 = vshll.u32 %v2676_v2, 23  ;;  %v8375_v2 = vld [vmem:[#allocation20_spill] sm:$0xff]  ;;  %v8376_v53 = vld [vmem:[#allocation13_spill] sm:$0xff] }
 0x2d7   : > { %v7004_v26 = vmul.u32.u64.low %v1295_v39, %v1290_v14  ;;  %v7005_v43 = vmul.u32.u64.high %v1295_v39, %v1290_v14, %v7004_v26  ;;  %vm1145_vm11 = vcmp.lt.s32.totalorder %v5827_v37, 0  ;;  %v4662_v44 = vmin.u32 %v1209_v15, %v6984_v55 }
 0x2d8   : > { %v1294_v9 = vsel %vm1280_vm3, %v1291_v45, %v1293_v57  ;;  %v7017_v23 = vsel %vm8284_vm7, %v2579_v41, %v6862_v40  ;;  %v2655_v19 = vadd.s32 %v6837_v50, %v6842_v5  ;;  %v2475_v8 = vxor.u32 2147483648, %v6976_v11  ;;  %v8368_v41 = vld [vmem:[#allocation10_spill] sm:$0xff] }
 0x2d9   : > { %v7021_v28 = vmul.u32.u64.low %v1295_v39, %v1294_v9  ;;  %v7022_v52 = vmul.u32.u64.high %v1295_v39, %v1294_v9, %v7021_v28  ;;  %v2785_v7 = vcvt.s32.f32 %v6978_v33  ;;  %v1211_v12 = vclz %v4662_v44 }
 0x2da   : > { %v1286_v18 = vsel %vm1280_vm3, %v1283_v21, %v1285_v51  ;;  %v2783_v4 = vand.u32 2147483647, %v6995_v32  ;;  %v2673_v13 = vshrl.u32 %v2655_v19, %v2671_v46  ;;  %v1305_v40 = vadd.s32 1, %v7005_v43  ;;  %v8381_v19 = vld [vmem:[#allocation14_spill] sm:$0xff] }
 0x2db   : > { %v8369_v25 = vand.u32 2147483647, %v8368_v41  ;;  %v2678_v5 = vor.u32 4788187, %v2677_v58  ;;  %v8372_v62 = vand.u32 2147483647, %v5827_v37  ;;  %v2672_v14 = vshll.u32 %v6908_v17, %v2670_v31 }
 0x2dc   : > { %v4663_v10 = vadd.s32 4294967294, %v1211_v12  ;;  %v1229_v3 = vsub.s32 4, %v6966_v1  ;;  %v1302_v45 = vmul.u32 %v1295_v39, %v1286_v18  ;;  %vm1304_vm2 = vc.u32 %v7022_v52, %v7004_v26 }
 0x2dd   : > { %vm7032_vm12 = vcmp.le.f32.partialorder %v8369_v25, 0.7853982  ;;  %vm7038_vm14 = vcmp.le.f32.partialorder %v8372_v62, 0.7853982  ;;  %v1437_v32 = vsub.s32 4, %v8376_v53  ;;  %v1199_v46 = vadd.s32 %v6901_v59, %v6913_v35  ;;  %v8377_v35 = vld [vmem:[#allocation11_spill] sm:$0xff] }
 0x2de   : > { %v1439_v27 = vsel %vm7032_vm12, %v8368_v41, %v8375_v2  ;;  %vm4664_vm3 = vcmp.lt.s32.totalorder %v4663_v10, 0  ;;  %vm1249_vm7 = vcmp.lt.s32.totalorder %v5897_v47, 0  ;;  %v1306_v15 = vsel %vm1304_vm2, %v1305_v40, %v7005_v43 }
 0x2df   : > { %v2674_v21 = vor.u32 %v2673_v13, %v2672_v14  ;;  %v1214_v51 = vsel %vm4664_vm3, 0, %v4663_v10  ;;  %v1307_v57 = vadd.s32 %v1306_v15, %v1302_v45  ;;  %5218 = vcosq.f32 %v1439_v27 }
 0x2e0   : > { %v2679_v58 = vand.u32 2147483647, %v2678_v5  ;;  %v1215_v17 = vsub.s32 32, %v1214_v51  ;;  %v1219_v31 = vsub.s32 4294967266, %v1214_v51  ;;  %v1230_v39 = vsel %vm1145_vm11, %v1229_v3, %v6966_v1  ;;  %v8382_v1 = vld [vmem:[#allocation21_spill] sm:$0xff] }
 0x2e1   : > { %v1308_v44 = vadd.s32 536870912, %v1307_v57  ;;  %v1438_v59 = vsel %vm1353_vm6, %v1437_v32, %v8376_v53  ;;  %v8378_v9 = vand.u32 2147483647, %v8377_v35  ;;  %v1541_v28 = vsub.s32 4, %v8381_v19 }
 0x2e2   : > { %vm8287_vm2 = vcmp.lt.s32.totalorder %v6527_v60, 0  ;;  %v1216_v12 = vshll.u32 %v6984_v55, %v1214_v51  ;;  %v1217_v18 = vshrl.u32 %v1199_v46, %v1215_v17  ;;  %v1220_v13 = vadd.s32 127, %v1219_v31  ;;  %v8383_v51 = vld [vmem:[#allocation17_spill] sm:$0xff] }
 0x2e3   : > { %vm7063_vm13 = vcmp.le.f32.partialorder %v8378_v9, 0.7853982  ;;  %v2681_v25 = vcvt.s32.f32 %v2674_v21  ;;  %v1309_v5 = vshrl.u32 %v1308_v44, 30  ;;  %5220 = vsinq.f32 %v1439_v27 }
 0x2e4   : > { %v1543_v40 = vsel %vm7063_vm13, %v8377_v35, %v8382_v1  ;;  %v1542_v62 = vsel %vm1457_vm10, %v1541_v28, %v8381_v19  ;;  %v1218_v10 = vor.u32 %v1217_v18, %v1216_v12  ;;  %v1221_v3 = vshll.u32 %v1220_v13, 23  ;;  %v8390_v19 = vld [vmem:[#allocation26_spill] sm:$0xff] }
 0x2e5   : > { %v1440_v2 = vsel %vm7032_vm12, 0, %v1438_v59  ;;  %5222 = vcosq.f32 %v1543_v40  ;;  %vm8286_vm6 = vcmp.lt.s32.totalorder %v6700_v0, 0  ;;  %v1232_v55 = vsel %vm7038_vm14, 0, %v1230_v39  ;;  %v8384_v59 = vld [vmem:[#allocation15_spill] sm:$0xff] }
 0x2e6   : > { %v1310_v14 = vshll.u32 %v1309_v5, 30  ;;  %v1333_v45 = vsub.s32 4, %v1309_v5  ;;  %5224 = vsinq.f32 %v1543_v40  ;;  %v7082_v53 = vmul.f32 %v2785_v7, %v2783_v4  ;;  %v8391_v7 = vld [vmem:[#allocation16_spill] sm:$0xff] }
 0x2e7   : > { %v2682_v27 = vmul.f32 %v2681_v25, %v2679_v58  ;;  %v1222_v32 = vor.u32 4788187, %v1221_v3  ;;  %v1544_v46 = vsel %vm7063_vm13, 0, %v1542_v62  ;;  %v1444_v21 = vadd.s32 3, %v1440_v2 }
 0x2e8   : > { %v7086_v15 = vsub.s32 %v1307_v57, %v1310_v14  ;;  %v1334_v50 = vsel %vm1249_vm7, %v1333_v45, %v1309_v5  ;;  %v1645_v17 = vsub.s32 4, %v8383_v51  ;;  %v1225_v39 = vcvt.s32.f32 %v1218_v10  ;;  %v8408_v57 = vld [vmem:[#allocation25_spill] sm:$0xff] }
 0x2e9   : > { %v1223_v31 = vand.u32 2147483647, %v1222_v32  ;;  %v1236_v44 = vadd.s32 3, %v1232_v55  ;;  %v8385_v9 = vand.u32 2147483647, %v8384_v59  ;;  %v5219_v4 = vpop.eup %5218  ;;  %v1548_v43 = vadd.s32 3, %v1544_v46 }
 0x2ea   : > { %vm7099_vm13 = vcmp.le.f32.partialorder %v1247_v20, 0.7853982  ;;  %v1313_v58 = vsub.s32 0, %v7086_v15  ;;  %v2683_v12 = vxor.u32 2147483648, %v2682_v27  ;;  %v1646_v20 = vsel %vm1561_vm15, %v1645_v17, %v8383_v51 }
 0x2eb   : > { %vm7093_vm10 = vcmp.le.f32.partialorder %v8385_v9, 0.7853982  ;;  %v1226_v18 = vmul.f32 %v1225_v39, %v1223_v31  ;;  %v1336_v13 = vsel %vm7099_vm13, 0, %v1334_v50  ;;  %v7118_v1 = vsel %vm8287_vm2, %v2475_v8, %v6976_v11 }
 0x2ec   : > { %v1647_v28 = vsel %vm7093_vm10, %v8384_v59, %v8390_v19  ;;  %v2787_v40 = vxor.u32 2147483648, %v7082_v53  ;;  %v4666_v25 = vmin.u32 %v1313_v58, %v7086_v15  ;;  %v1445_v5 = vand.u32 3, %v1444_v21 }
 0x2ed   : > { %v1227_v62 = vxor.u32 2147483648, %v1226_v18  ;;  %v7122_v10 = vand.u32 3, %v1236_v44  ;;  %v1451_v3 = vxor.u32 2147483648, %v5219_v4  ;;  %5226 = vcosq.f32 %v1647_v28  ;;  %v5221_v2 = vpop.eup %5220 }
 0x2ee   : > { %v1315_v55 = vclz %v4666_v25  ;;  %v1340_v14 = vadd.s32 3, %v1336_v13  ;;  %v7124_v45 = vand.u32 3, %v1548_v43  ;;  %v1648_v32 = vsel %vm7093_vm10, 0, %v1646_v20 }
 0x2ef   : > { %v5223_v11 = vpop.eup %5222  ;;  %v7130_v8 = vsel %vm8286_vm6, %v2683_v12, %v2682_v27  ;;  %v1228_v46 = vsel %vm1145_vm11, %v1227_v62, %v1226_v18  ;;  %v1303_v50 = vadd.s32 %v7004_v26, %v7022_v52  ;;  %5228 = vsinq.f32 %v1647_v28  ;;  %v8392_v18 = vld [vmem:[#allocation12_spill] sm:$0xff] }
 0x2f0   : > { %v5225_v21 = vpop.eup %5224  ;;  %v1231_v51 = vsel %vm7038_vm14, %v5827_v37, %v1228_v46  ;;  %v4667_v17 = vadd.s32 4294967294, %v1315_v55  ;;  %vm1446_vm15 = vcmp.lt.s32.totalorder %v1445_v5, 2  ;;  %vm1447_vm12 = vcmp.eq.s32.totalorder %v1445_v5, 0 }
 0x2f1   : > { %vm1450_vm3 = vcmp.eq.s32.totalorder %v1445_v5, 2  ;;  %5230 = vcosq.f32 %v1231_v51  ;;  %v1448_v31 = vxor.u32 2147483648, %v5221_v2  ;;  %v1652_v39 = vadd.s32 3, %v1648_v32 }
 0x2f2   : > { %v1452_v27 = vsel %vm1450_vm3, %v1451_v3, %v5221_v2  ;;  %5232 = vsinq.f32 %v1231_v51  ;;  %vm4668_vm10 = vcmp.lt.s32.totalorder %v4667_v17, 0  ;;  %v7139_v44 = vand.u32 3, %v1340_v14  ;;  %v8396_v2 = vld [vmem:[#allocation24_spill] sm:$0xff] }
 0x2f3   : > { %vm1550_vm11 = vcmp.lt.s32.totalorder %v7124_v45, 2  ;;  %v1318_v26 = vsel %vm4668_vm10, 0, %v4667_v17  ;;  %v1552_v52 = vxor.u32 2147483648, %v5225_v21  ;;  %v1555_v9 = vxor.u32 2147483648, %v5223_v11 }
 0x2f4   : > { %v1749_v33 = vsub.s32 4, %v8391_v7  ;;  %v1319_v58 = vsub.s32 32, %v1318_v26  ;;  %v1323_v43 = vsub.s32 4294967266, %v1318_v26  ;;  %vm1443_vm14 = vweird.f32 %v8368_v41 }
 0x2f5   : > { %vm1551_vm6 = vcmp.eq.s32.totalorder %v7124_v45, 0  ;;  %vm1554_vm3 = vcmp.eq.s32.totalorder %v7124_v45, 2  ;;  %v1320_v19 = vshll.u32 %v7086_v15, %v1318_v26  ;;  %v1449_v28 = vsel %vm1447_vm12, %v5219_v4, %v1448_v31 }
 0x2f6   : > { %vm1547_vm2 = vweird.f32 %v8377_v35  ;;  %v1653_v12 = vand.u32 3, %v1652_v39  ;;  %v8393_v13 = vand.u32 2147483647, %v8392_v18  ;;  %v1321_v25 = vshrl.u32 %v1303_v50, %v1319_v58 }
 0x2f7   : > { %v1324_v62 = vadd.s32 127, %v1323_v43  ;;  %v1750_v3 = vsel %vm1665_vm5, %v1749_v33, %v8391_v7  ;;  %v5227_v4 = vpop.eup %5226  ;;  %v1553_v55 = vsel %vm1551_vm6, %v5223_v11, %v1552_v52  ;;  %v1556_v14 = vsel %vm1554_vm3, %v1555_v9, %v5225_v21  ;;  %v8400_v21 = vld [vmem:[#allocation22_spill] sm:$0xff] }
 0x2f8   : > { %vm7151_vm10 = vcmp.le.f32.partialorder %v8393_v13, 0.7853982  ;;  %vm1239_vm12 = vcmp.eq.s32.totalorder %v7122_v10, 0  ;;  %vm1242_vm4 = vcmp.eq.s32.totalorder %v7122_v10, 2  ;;  %v1322_v46 = vor.u32 %v1321_v25, %v1320_v19 }
 0x2f9   : > { %v1751_v15 = vsel %vm7151_vm10, %v8392_v18, %v8396_v2  ;;  %v1752_v32 = vsel %vm7151_vm10, 0, %v1750_v3  ;;  %v1325_v50 = vshll.u32 %v1324_v62, 23  ;;  %v1659_v51 = vxor.u32 2147483648, %v5227_v4  ;;  %v5229_v17 = vpop.eup %5228 }
 0x2fa   : > { %5234 = vcosq.f32 %v1751_v15  ;;  %v1453_v31 = vsel %vm1446_vm15, %v1449_v28, %v1452_v27  ;;  %v1756_v39 = vadd.s32 3, %v1752_v32  ;;  %v8397_v26 = vand.u32 2147483647, %v6028_v54 }
 0x2fb   : > { %5236 = vsinq.f32 %v1751_v15  ;;  %v1853_v52 = vsub.s32 4, %v8400_v21  ;;  %v1326_v9 = vor.u32 4788187, %v1325_v50  ;;  %v1656_v7 = vxor.u32 2147483648, %v5229_v17  ;;  %v5231_v58 = vpop.eup %5230 }
 0x2fc   : > { %vm7169_vm5 = vcmp.le.f32.partialorder %v8397_v26, 0.7853982  ;;  %vm1658_vm6 = vcmp.eq.s32.totalorder %v1653_v12, 2  ;;  %vm1238_vm15 = vcmp.lt.s32.totalorder %v7122_v10, 2  ;;  %v1329_v5 = vcvt.s32.f32 %v1322_v46  ;;  %v5233_v19 = vpop.eup %5232 }
 0x2fd   : > { %v1855_v33 = vsel %vm7169_vm5, %v6028_v54, %v6693_v24  ;;  %v1557_v27 = vsel %vm1550_vm11, %v1553_v55, %v1556_v14  ;;  %vm1655_vm3 = vcmp.eq.s32.totalorder %v1653_v12, 0  ;;  %v1660_v43 = vsel %vm1658_vm6, %v1659_v51, %v5229_v17  ;;  %v8404_v14 = vld [vmem:[#allocation19_spill] sm:$0xff] }
 0x2fe   : > { %v1327_v28 = vand.u32 2147483647, %v1326_v9  ;;  %v1657_v13 = vsel %vm1655_vm3, %v5227_v4, %v1656_v7  ;;  %v1757_v20 = vand.u32 3, %v1756_v39  ;;  %v1854_v25 = vsel %vm1769_vm1, %v1853_v52, %v8400_v21  ;;  %v8412_v4 = vld [vmem:[#allocation23_spill] sm:$0xff] }
 0x2ff   : > { %v1240_v62 = vxor.u32 2147483648, %v5233_v19  ;;  %v1243_v3 = vxor.u32 2147483648, %v5231_v58  ;;  %v7186_v24 = vsel %vm1443_vm14, nan, %v1453_v31  ;;  %5238 = vcosq.f32 %v1855_v33 }
 0x300   : > { %v1330_v2 = vmul.f32 %v1329_v5, %v1327_v28  ;;  %v7190_v45 = vsel %vm1547_vm2, nan, %v1557_v27  ;;  %vm1654_vm11 = vcmp.lt.s32.totalorder %v1653_v12, 2  ;;  %v8401_v15 = vand.u32 2147483647, %v5947_v29 }
 0x301   : > { %vm1235_vm1 = vweird.f32 %v5827_v37  ;;  %v1661_v55 = vsel %vm1654_vm11, %v1657_v13, %v1660_v43  ;;  %v1856_v41 = vsel %vm7169_vm5, 0, %v1854_v25  ;;  %5240 = vsinq.f32 %v1855_v33 }
 0x302   : > { %vm7194_vm10 = vcmp.le.f32.partialorder %v8401_v15, 0.7853982  ;;  %v1957_v32 = vsub.s32 4, %v8404_v14  ;;  %v1331_v46 = vxor.u32 2147483648, %v1330_v2  ;;  %vm1758_vm14 = vcmp.lt.s32.totalorder %v1757_v20, 2 }
 0x303   : > { %vm1759_vm2 = vcmp.eq.s32.totalorder %v1757_v20, 0  ;;  %v1959_v35 = vsel %vm7194_vm10, %v5947_v29, %v6686_v49  ;;  %v1241_v50 = vsel %vm1239_vm12, %v5231_v58, %v1240_v62  ;;  %v1244_v51 = vsel %vm1242_vm4, %v1243_v3, %v5233_v19 }
 0x304   : > { %v5235_v12 = vpop.eup %5234  ;;  %v1958_v17 = vsel %vm1873_vm0, %v1957_v32, %v8404_v14  ;;  %5242 = vcosq.f32 %v1959_v35  ;;  %v1332_v39 = vsel %vm1249_vm7, %v1331_v46, %v1330_v2  ;;  %vm1762_vm4 = vcmp.eq.s32.totalorder %v1757_v20, 2 }
 0x305   : > { %v5237_v31 = vpop.eup %5236  ;;  %v1763_v26 = vxor.u32 2147483648, %v5235_v12  ;;  %v1960_v49 = vsel %vm7194_vm10, 0, %v1958_v17  ;;  %5244 = vsinq.f32 %v1959_v35  ;;  %v1335_v11 = vsel %vm7099_vm13, %v5897_v47, %v1332_v39 }
 0x306   : > { %v1760_v21 = vxor.u32 2147483648, %v5237_v31  ;;  %v1860_v52 = vadd.s32 3, %v1856_v41  ;;  %v1245_v9 = vsel %vm1238_vm15, %v1241_v50, %v1244_v51  ;;  %5246 = vcosq.f32 %v1335_v11 }
 0x307   : > { %v1764_v7 = vsel %vm1762_vm4, %v1763_v26, %v5237_v31  ;;  %v1964_v33 = vadd.s32 3, %v1960_v49  ;;  %5248 = vsinq.f32 %v1335_v11  ;;  %v8405_v5 = vand.u32 2147483647, %v6179_v42 }
 0x308   : > { %v1761_v58 = vsel %vm1759_vm2, %v5235_v12, %v1760_v21  ;;  %v2061_v43 = vsub.s32 4, %v8408_v57  ;;  %v2808_v19 = vpack.c.bf16 %v7190_v45, %v7186_v24  ;;  %vm1651_vm7 = vweird.f32 %v8384_v59 }
 0x309   : > { %vm7225_vm0 = vcmp.le.f32.partialorder %v8405_v5, 0.7853982  ;;  %v1765_v10 = vsel %vm1758_vm14, %v1761_v58, %v1764_v7  ;;  %v5239_v13 = vpop.eup %5238  ;;  %vm1755_vm13 = vweird.f32 %v8392_v18  ;;  %v1861_v25 = vand.u32 3, %v1860_v52 }
 0x30a   : > { %v2063_v28 = vsel %vm7225_vm0, %v6179_v42, %v6773_v63  ;;  %v2062_v62 = vsel %vm1977_vm9, %v2061_v43, %v8408_v57  ;;  %v7244_v3 = vsel %vm1235_vm1, nan, %v1245_v9  ;;  %vm1346_vm12 = vcmp.eq.s32.totalorder %v7139_v44, 2 }
 0x30b   : > { %5250 = vcosq.f32 %v2063_v28  ;;  %v7247_v59 = vsel %vm1651_vm7, nan, %v1661_v55  ;;  %v7249_v20 = vsel %vm1755_vm13, nan, %v1765_v10  ;;  %v1965_v63 = vand.u32 3, %v1964_v33  ;;  %v5241_v2 = vpop.eup %5240 }
 0x30c   : > { %vm1343_vm5 = vcmp.eq.s32.totalorder %v7139_v44, 0  ;;  %v2064_v18 = vsel %vm7225_vm0, 0, %v2062_v62  ;;  %5252 = vsinq.f32 %v2063_v28  ;;  %v8409_v15 = vand.u32 2147483647, %v6125_v61 }
 0x30d   : > { %v2165_v41 = vsub.s32 4, %v8412_v4  ;;  %vm1342_vm6 = vcmp.lt.s32.totalorder %v7139_v44, 2  ;;  %v1864_v55 = vxor.u32 2147483648, %v5241_v2  ;;  %v1867_v14 = vxor.u32 2147483648, %v5239_v13 }
 0x30e   : > { %vm7256_vm9 = vcmp.le.f32.partialorder %v8409_v15, 0.7853982  ;;  %v2068_v32 = vadd.s32 3, %v2064_v18  ;;  %v5243_v35 = vpop.eup %5242  ;;  %vm1339_vm15 = vweird.f32 %v5897_v47  ;;  %vm1862_vm3 = vcmp.lt.s32.totalorder %v1861_v25, 2 }
 0x30f   : > { %v2167_v46 = vsel %vm7256_vm9, %v6125_v61, %v6763_v48  ;;  %vm1863_vm11 = vcmp.eq.s32.totalorder %v1861_v25, 0  ;;  %v2166_v12 = vsel %vm2081_vm8, %v2165_v41, %v8412_v4  ;;  %v5245_v50 = vpop.eup %5244  ;;  %v2809_v51 = vpack.c.bf16 %v7249_v20, %v7247_v59 }
 0x310   : > { %5254 = vcosq.f32 %v2167_v46  ;;  %vm1866_vm10 = vcmp.eq.s32.totalorder %v1861_v25, 2  ;;  %v1971_v17 = vxor.u32 2147483648, %v5243_v35  ;;  %v2168_v31 = vsel %vm7256_vm9, 0, %v2166_v12  ;;  %v5247_v26 = vpop.eup %5246  ;;  %v8420_v12 = vld [vmem:[#allocation28_spill] sm:$0xff] }
 0x311   : > { %vm1966_vm1 = vcmp.lt.s32.totalorder %v1965_v63, 2  ;;  %v1968_v48 = vxor.u32 2147483648, %v5245_v50  ;;  %v2069_v39 = vand.u32 3, %v2068_v32  ;;  %5256 = vsinq.f32 %v2167_v46  ;;  %v5249_v52 = vpop.eup %5248 }
 0x312   : > { %vm1859_vm14 = vweird.f32 %v6028_v54  ;;  %v1865_v49 = vsel %vm1863_vm11, %v5239_v13, %v1864_v55  ;;  %v1868_v11 = vsel %vm1866_vm10, %v1867_v14, %v5241_v2  ;;  %vm1970_vm8 = vcmp.eq.s32.totalorder %v1965_v63, 2 }
 0x313   : > { %v2172_v21 = vadd.s32 3, %v2168_v31  ;;  %v1347_v9 = vxor.u32 2147483648, %v5247_v26  ;;  %vm1967_vm2 = vcmp.eq.s32.totalorder %v1965_v63, 0  ;;  %v1972_v7 = vsel %vm1970_vm8, %v1971_v17, %v5245_v50 }
 0x314   : > { %v8413_v33 = vand.u32 2147483647, %v6360_v38  ;;  %v1344_v5 = vxor.u32 2147483648, %v5249_v52  ;;  %vm1963_vm0 = vweird.f32 %v5947_v29  ;;  %v1969_v27 = vsel %vm1967_vm2, %v5243_v35, %v1968_v48 }
 0x315   : > { %v2269_v57 = vsub.s32 4, %v6550_v56  ;;  %v5251_v10 = vpop.eup %5250  ;;  %v1348_v28 = vsel %vm1346_vm12, %v1347_v9, %v5249_v52  ;;  %v1869_v13 = vsel %vm1862_vm3, %v1865_v49, %v1868_v11  ;;  %vm2067_vm7 = vweird.f32 %v6179_v42 }
 0x316   : > { %vm7277_vm4 = vcmp.le.f32.partialorder %v8413_v33, 0.7853982  ;;  %vm2070_vm13 = vcmp.lt.s32.totalorder %v2069_v39, 2  ;;  %vm2071_vm9 = vcmp.eq.s32.totalorder %v2069_v39, 0  ;;  %v1345_v62 = vsel %vm1343_vm5, %v5247_v26, %v1344_v5  ;;  %v5253_v15 = vpop.eup %5252  ;;  %v8427_v5 = vld [vmem:[#allocation29_spill] sm:$0xff] }
 0x317   : > { %v2271_v43 = vsel %vm7277_vm4, %v6360_v38, %v6920_v22  ;;  %vm2074_vm11 = vcmp.eq.s32.totalorder %v2069_v39, 2  ;;  %v2075_v2 = vxor.u32 2147483648, %v5251_v10  ;;  %v2173_v18 = vand.u32 3, %v2172_v21 }
 0x318   : > { %v1349_v22 = vsel %vm1342_vm6, %v1345_v62, %v1348_v28  ;;  %v1973_v37 = vsel %vm1966_vm1, %v1969_v27, %v1972_v7  ;;  %vm2171_vm12 = vweird.f32 %v6125_v61  ;;  %vm8416_vm3 = vcmp.lt.s32.totalorder %v6360_v38, 0 }
 0x319   : > { %v2270_v25 = vsel %vm8416_vm3, %v2269_v57, %v6550_v56  ;;  %5258 = vcosq.f32 %v2271_v43  ;;  %v1350_v4 = vsel %vm1339_vm15, nan, %v1349_v22  ;;  %v2072_v41 = vxor.u32 2147483648, %v5253_v15 }
 0x31a   : > { %v2076_v55 = vsel %vm2074_vm11, %v2075_v2, %v5253_v15  ;;  %v2272_v14 = vsel %vm7277_vm4, 0, %v2270_v25  ;;  %v5255_v32 = vpop.eup %5254  ;;  %v2807_v44 = vpack.c.bf16 %v1350_v4, %v7244_v3  ;;  %5260 = vsinq.f32 %v2271_v43 }
 0x31b   : > { %v2276_v63 = vadd.s32 3, %v2272_v14  ;;  %v8417_v46 = vand.u32 2147483647, %v6276_v36  ;;  %v2073_v56 = vsel %vm2071_vm9, %v5251_v10, %v2072_v41  ;;  %v2179_v47 = vxor.u32 2147483648, %v5255_v32  ;;  %v5257_v31 = vpop.eup %5256 }
 0x31c   : > { %v2373_v50 = vsub.s32 4, %v8420_v12  ;;  %4937 = vmatprep.mubr.bf16.mxu0 %v2807_v44  ;;  %v1870_v3 = vsel %vm1859_vm14, nan, %v1869_v13  ;;  %v2077_v48 = vsel %vm2070_vm13, %v2073_v56, %v2076_v55  ;;  %vm2178_vm6 = vcmp.eq.s32.totalorder %v2173_v18, 2 }
 0x31d   : > { %vm7307_vm5 = vcmp.le.f32.partialorder %v8417_v46, 0.7853982  ;;  %4938 = vmatmul.mubr.bf16.vlgmr.msra.gmra.mrb[0].mxu0 %v2808_v19  ;;  %v2176_v26 = vxor.u32 2147483648, %v5257_v31  ;;  %v2180_v49 = vsel %vm2178_vm6, %v2179_v47, %v5257_v31  ;;  %v2277_v11 = vand.u32 3, %v2276_v63 }
 0x31e   : > { %v2375_v17 = vsel %vm7307_vm5, %v6276_v36, %v6781_v30  ;;  %vm8421_vm15 = vcmp.lt.s32.totalorder %v6276_v36, 0  ;;  %4941 = vmatprep.mubr.bf16.mxu0 %v2809_v51  ;;  %v1974_v54 = vsel %vm1963_vm0, nan, %v1973_v37  ;;  %vm2174_vm10 = vcmp.lt.s32.totalorder %v2173_v18, 2  ;;  %v8425_v51 = vld [vmem:[#allocation30_spill] sm:$0xff] }
 0x31f   : > { %5262 = vcosq.f32 %v2375_v17  ;;  %v2374_v30 = vsel %vm8421_vm15, %v2373_v50, %v8420_v12  ;;  %vm2175_vm1 = vcmp.eq.s32.totalorder %v2173_v18, 0  ;;  %vm2705_vm14 = vcmp.lt.s32.totalorder %v6590_v34, 0 }
 0x320   : > { %v2376_v24 = vsel %vm7307_vm5, 0, %v2374_v30  ;;  %v2078_v45 = vsel %vm2067_vm7, nan, %v2077_v48  ;;  %v2177_v19 = vsel %vm2175_vm1, %v5255_v32, %v2176_v26  ;;  %5264 = vsinq.f32 %v2375_v17  ;;  %v8437_v26 = vld [vmem:[#allocation31_spill] sm:$0xff] }
 0x321   : > { %v8422_v39 = vand.u32 2147483647, %v6527_v60  ;;  %v2181_v29 = vsel %vm2174_vm10, %v2177_v19, %v2180_v49  ;;  %v2380_v20 = vadd.s32 3, %v2376_v24  ;;  %v2477_v21 = vsub.s32 4, %v8425_v51 }
 0x322   : > { %v2810_v9 = vpack.c.bf16 %v1974_v54, %v1870_v3  ;;  %v2182_v42 = vsel %vm2171_vm12, nan, %v2181_v29  ;;  %vm2278_vm2 = vcmp.lt.s32.totalorder %v2277_v11, 2  ;;  %vm8426_vm4 = vcmp.lt.s32.totalorder %v6527_v60, 0 }
 0x323   : > { %vm7338_vm8 = vcmp.le.f32.partialorder %v8422_v39, 0.7853982  ;;  %v5259_v7 = vpop.eup %5258  ;;  %v2811_v33 = vpack.c.bf16 %v2182_v42, %v2078_v45  ;;  %v2478_v58 = vsel %vm8426_vm4, %v2477_v21, %v8425_v51  ;;  %v2581_v27 = vsub.s32 4, %v8427_v5 }
 0x324   : > { %v2479_v52 = vsel %vm7338_vm8, %v6527_v60, %v7118_v1  ;;  %vm2279_vm0 = vcmp.eq.s32.totalorder %v2277_v11, 0  ;;  %vm2282_vm7 = vcmp.eq.s32.totalorder %v2277_v11, 2  ;;  %v2283_v57 = vxor.u32 2147483648, %v5259_v7  ;;  %v5261_v43 = vpop.eup %5260 }
 0x325   : > { %5266 = vcosq.f32 %v2479_v52  ;;  %v8428_v1 = vand.u32 2147483647, %v8366_v6  ;;  %v2381_v61 = vand.u32 3, %v2380_v20  ;;  %v2480_v10 = vsel %vm7338_vm8, 0, %v2478_v58  ;;  %4942 = vmatmul.mubr.bf16.gmra.mrb[4].mxu0 %v2810_v9 }
 0x326   : > { %5268 = vsinq.f32 %v2479_v52  ;;  %vm8429_vm9 = vcmp.lt.s32.totalorder %v8366_v6, 0  ;;  %v2280_v62 = vxor.u32 2147483648, %v5261_v43  ;;  %v2284_v2 = vsel %vm2282_vm7, %v2283_v57, %v5261_v43  ;;  %4945 = vmatprep.mubr.bf16.mxu0 %v2811_v33 }
 0x327   : > { %vm2496_vm13 = vcmp.le.f32.partialorder %v8428_v1, 0.7853982  ;;  %v2582_v28 = vsel %vm8429_vm9, %v2581_v27, %v8427_v5  ;;  %v2484_v18 = vadd.s32 3, %v2480_v10  ;;  %v8430_v25 = vand.u32 2147483647, %v6700_v0 }
 0x328   : > { %v2583_v13 = vsel %vm2496_vm13, %v8366_v6, %v7017_v23  ;;  %v2584_v15 = vsel %vm2496_vm13, 0, %v2582_v28  ;;  %v2685_v41 = vsub.s32 4, %v6888_v16  ;;  %v2281_v55 = vsel %vm2279_vm0, %v5259_v7, %v2280_v62 }
 0x329   : > { %v5263_v22 = vpop.eup %5262  ;;  %5270 = vcosq.f32 %v2583_v13  ;;  %v2588_v37 = vadd.s32 3, %v2584_v15  ;;  %vm7364_vm11 = vcmp.le.f32.partialorder %v8430_v25, 0.7853982  ;;  %v2485_v14 = vand.u32 3, %v2484_v18 }
 0x32a   : > { %v2387_v23 = vxor.u32 2147483648, %v5263_v22  ;;  %5272 = vsinq.f32 %v2583_v13  ;;  %v2788_v32 = vsel %vm2705_vm14, %v2787_v40, %v7082_v53  ;;  %v2285_v44 = vsel %vm2278_vm2, %v2281_v55, %v2284_v2  ;;  %v5265_v35 = vpop.eup %5264  ;;  %v5207_v55 = vld [vmem:[%s8206_s8 + $0x30] sm:$0xff]  }
 0x32b   : > { %vm8433_vm12 = vcmp.lt.s32.totalorder %v6700_v0, 0  ;;  %v2687_v46 = vsel %vm7364_vm11, %v6700_v0, %v7130_v8  ;;  %vm2275_vm3 = vweird.f32 %v6360_v38  ;;  %vm2379_vm5 = vweird.f32 %v6276_v36  ;;  %4965 = vmatprep.subr.bf16.mxu1 %v5207_v55 }
 0x32c   : > { %v2686_v63 = vsel %vm8433_vm12, %v2685_v41, %v6888_v16  ;;  %vm2382_vm6 = vcmp.lt.s32.totalorder %v2381_v61, 2  ;;  %vm2386_vm15 = vcmp.eq.s32.totalorder %v2381_v61, 2  ;;  %vm2383_vm10 = vcmp.eq.s32.totalorder %v2381_v61, 0  ;;  %4966 = vmatpush3.bf16.msra.mxu1 %v5207_v55 }
 0x32d   : > { %v2384_v53 = vxor.u32 2147483648, %v5265_v35  ;;  %v2388_v40 = vsel %vm2386_vm15, %v2387_v23, %v5265_v35  ;;  %v2589_v56 = vand.u32 3, %v2588_v37  ;;  %v2286_v12 = vsel %vm2275_vm3, nan, %v2285_v44 }
 0x32e   : > { %vm2487_vm1 = vcmp.eq.s32.totalorder %v2485_v14, 0  ;;  %v2688_v16 = vsel %vm7364_vm11, 0, %v2686_v63  ;;  %5274 = vcosq.f32 %v2687_v46  ;;  %vm2490_vm8 = vcmp.eq.s32.totalorder %v2485_v14, 2 }
 0x32f   : > { %v5267_v47 = vpop.eup %5266  ;;  %v2385_v8 = vsel %vm2383_vm10, %v5263_v22, %v2384_v53  ;;  %5276 = vsinq.f32 %v2687_v46  ;;  %v8434_v3 = vand.u32 2147483647, %v6590_v34  ;;  %v2789_v49 = vsub.s32 4, %v8437_v26 }
 0x330   : > { %v5269_v50 = vpop.eup %5268  ;;  %v2491_v17 = vxor.u32 2147483648, %v5267_v47  ;;  %v2389_v38 = vsel %vm2382_vm6, %v2385_v8, %v2388_v40  ;;  %v2692_v54 = vadd.s32 3, %v2688_v16  ;;  %vm2486_vm4 = vcmp.lt.s32.totalorder %v2485_v14, 2 }
 0x331   : > { %v2488_v31 = vxor.u32 2147483648, %v5269_v50  ;;  %vm7390_vm2 = vcmp.le.f32.partialorder %v8434_v3, 0.7853982  ;;  %v2390_v11 = vsel %vm2379_vm5, nan, %v2389_v38  ;;  %v2790_v39 = vsel %vm2705_vm14, %v2789_v49, %v8437_v26 }
 0x332   : > { %v2492_v30 = vsel %vm2490_vm8, %v2491_v17, %v5269_v50  ;;  %v2791_v24 = vsel %vm7390_vm2, %v6590_v34, %v2788_v32  ;;  %v2812_v45 = vpack.c.bf16 %v2390_v11, %v2286_v12  ;;  %v2792_v51 = vsel %vm7390_vm2, 0, %v2790_v39 }
 0x333   : > { %v2489_v19 = vsel %vm2487_vm1, %v5267_v47, %v2488_v31  ;;  %5278 = vcosq.f32 %v2791_v24  ;;  %v5271_v59 = vpop.eup %5270  ;;  %vm2483_vm0 = vweird.f32 %v6527_v60  ;;  %vm2594_vm7 = vcmp.eq.s32.totalorder %v2589_v56, 2 }
 0x334   : > { %v5273_v29 = vpop.eup %5272  ;;  %4946 = vmatmul.mubr.bf16.gmra.mrb[8].mxu0 %v2812_v45  ;;  %v2493_v36 = vsel %vm2486_vm4, %v2489_v19, %v2492_v30  ;;  %v2595_v20 = vxor.u32 2147483648, %v5271_v59  ;;  %5280 = vsinq.f32 %v2791_v24  ;;  %vm2591_vm13 = vcmp.eq.s32.totalorder %v2589_v56, 0 }
 0x335   : > { %v2592_v21 = vxor.u32 2147483648, %v5273_v29  ;;  %v2693_v9 = vand.u32 3, %v2692_v54  ;;  %v2796_v42 = vadd.s32 3, %v2792_v51  ;;  %v2494_v7 = vsel %vm2483_vm0, nan, %v2493_v36 }
 0x336   : > { %v2596_v52 = vsel %vm2594_vm7, %v2595_v20, %v5273_v29  ;;  %vm2590_vm14 = vcmp.lt.s32.totalorder %v2589_v56, 2  ;;  %vm2587_vm9 = vweird.f32 %v8366_v6  ;;  %vm2691_vm6 = vweird.f32 %v6700_v0  ;;  %v5208_v0 = vld [vmem:[%s8206_s8 + $0x38] sm:$0xff]  }
 0x337   : > { %v2593_v33 = vsel %vm2591_vm13, %v5271_v59, %v2592_v21  ;;  %vm2698_vm11 = vcmp.eq.s32.totalorder %v2693_v9, 2  ;;  %v2797_v60 = vand.u32 3, %v2796_v42  ;;  %vm2695_vm12 = vcmp.eq.s32.totalorder %v2693_v9, 0  ;;  %4967 = vmatprep.subr.bf16.mxu1 %v5208_v0 }
 0x338   : > { %v5275_v58 = vpop.eup %5274  ;;  %v2597_v5 = vsel %vm2590_vm14, %v2593_v33, %v2596_v52  ;;  %vm2694_vm3 = vcmp.lt.s32.totalorder %v2693_v9, 2  ;;  %vm2795_vm1 = vweird.f32 %v6590_v34  ;;  %4968 = vmatpush3.bf16.msra.mxu1 %v5208_v0  ;;  %v4725_v34 = vld [vmem:[%s8203_s5] ss:$0 sm:$0xff]  ;;  %vm3457_vm8 = vcmask 1041409  }
 0x339   : > { %v5277_v27 = vpop.eup %5276  ;;  %v2598_v57 = vsel %vm2587_vm9, nan, %v2597_v5  ;;  %v2699_v1 = vxor.u32 2147483648, %v5275_v58  ;;  %vm2802_vm5 = vcmp.eq.s32.totalorder %v2797_v60, 2  ;;  %vm2799_vm15 = vcmp.eq.s32.totalorder %v2797_v60, 0 }
 0x33a   : > { %v2813_v43 = vpack.c.bf16 %v2598_v57, %v2494_v7  ;;  %v2696_v61 = vxor.u32 2147483648, %v5277_v27  ;;  %vm2798_vm10 = vcmp.lt.s32.totalorder %v2797_v60, 2  ;;  %v8444_v57 = vld [vmem:[#allocation8_spill] sm:$0xff]  ;;  %vm3459_vm2 = vcmask 1042434  }
 0x33b   : > { %v2700_v10 = vsel %vm2698_vm11, %v2699_v1, %v5277_v27  ;;  %vm3461_vm4 = vcmask 1043459   ;;  %vm3463_vm0 = vcmask 1044484   ;;  %vm3465_vm7 = vcmask 1045509  }
 0x33c   : > { %4949 = vmatprep.mubr.bf16.mxu0 %v2813_v43  ;;  %v2697_v13 = vsel %vm2695_vm12, %v5275_v58, %v2696_v61  ;;  %v5525_v58 = vmov 1966171168   ;;  %v1007_v43 = vld [vmem:[%s1005_s13 + $0x18] sm:$0xff]  ;;  %vm3467_vm13 = vcmask 1046534   ;;  %vm3469_vm14 = vcmask 1047559  }
 0x33d   : > { %v5279_v28 = vpop.eup %5278  ;;  %v2701_v18 = vsel %vm2694_vm3, %v2697_v13, %v2700_v10  ;;  %v3162_v5 = vunpack.c.l.s4 %v5525_v58  ;;  %v8445_v13 = vld [vmem:[#allocation9_spill] sm:$0xff] }
 0x33e   : > { %v2803_v62 = vxor.u32 2147483648, %v5279_v28  ;;  %v5281_v2 = vpop.eup %5280  ;;  %v2702_v22 = vsel %vm2691_vm6, nan, %v2701_v18 }
 0x33f   : > { %v2800_v15 = vxor.u32 2147483648, %v5281_v2  ;;  %v3163_v27 = vunpack.c.0.s8 %v3162_v5 }
 0x340   : > { %v2804_v6 = vsel %vm2802_vm5, %v2803_v62, %v5281_v2  ;;  %v7480_v2 = vld [vmem:[#allocation2 + $0x10] sm:$0xff] }
 0x341   : > { %v2801_v37 = vsel %vm2799_vm15, %v5279_v28, %v2800_v15  ;;  %v7471_v1 = vsub.s32 %v3163_v27, %v8444_v57  ;;  %v7486_v15 = vld [vmem:[%s8207_s9] ss:$0 sm:$0xff] }
 0x342   : > { %v2805_v25 = vsel %vm2798_vm10, %v2801_v37, %v2804_v6 }
 0x343   : > { %v2806_v4 = vsel %vm2795_vm1, nan, %v2805_v25  ;;  %v3167_v61 = vrot.slane %v1007_v43, %v7471_v1 }
 0x344   : > { %v2814_v41 = vpack.c.bf16 %v2806_v4, %v2702_v22 }
 0x345   : > { %v3175_v60 = vcombine.high %v3167_v61, %v3167_v61  ;;  %v3183_v28 = vrot.slane %v3167_v61, %v7471_v1 }
 0x346   : > { %4950 = vmatmul.mubr.bf16.gmra.mrb[12].mxu0 %v2814_v41  ;;  %v7491_v41 = vld [vmem:[#allocation2 + $0x30] sm:$0xff] }
 0x347   : > { %v3197_v10 = vrot.slane %v3175_v60, %v7471_v1  ;;  %v3212_v18 = vrot.slane %v3183_v28, %v8445_v13 }
 0x349   : > { %v3216_v62 = vrot.slane %v3197_v10, %v8445_v13  ;;  %v3249_v37 = vadd.f32 %v3212_v18, %v7480_v2 }
 0x34b   : > { %v3251_v6 = vadd.f32 %v3216_v62, %v7480_v2 }
 0x3f0   : > { %v4939_v23 = vpop.f32.mrb[0].mxu0 }
 0x3f1   : > { %v2920_v14 = vpop.f32.mrb[1].mxu0  ;;  %v7425_v53 = vadd.f32 %v4939_v23, %v4725_v34 }
 0x3f2   : > { %v4940_v32 = vpop.f32.mrb[2].mxu0  ;;  %v7421_v46 = vadd.f32 %v4725_v34, %v2920_v14 }
 0x3f3   : > { %v7419_v44 = vadd.f32 %v4940_v32, %v4725_v34  ;;  %v2923_v63 = vpop.f32.mrb[3].mxu0 }
 0x3f4   : > { %v7423_v35 = vadd.f32 %v4725_v34, %v2923_v63  ;;  %v3252_v63 = vadd.f32 %v3216_v62, %v7491_v41 }
 0x3f5   : > { %v2984_v56 = vpack.c.bf16 %v7419_v44, %v7425_v53 }
 0x3f6   : > { %v2983_v40 = vpack.c.bf16 %v7423_v35, %v7421_v46 }
 0x3f8   : > { %v4943_v47 = vpop.f32.mrb[4].mxu0  ;;  %4969 = vmatprep.mubr.bf16.mxu1 %v2983_v40  ;;  %v3207_v40 = vcombine.high %v3197_v10, %v3197_v10 }
 0x3f9   : > { %v2936_v12 = vpop.f32.mrb[5].mxu0  ;;  %4970 = vmatmul.mubr.bf16.vlgmr.msra.gmra.mrb[0].mxu1 %v2984_v56  ;;  %v7437_v31 = vadd.f32 %v4943_v47, %v4725_v34  ;;  %v3250_v47 = vadd.f32 %v3212_v18, %v7491_v41 }
 0x3fa   : > { %v4944_v16 = vpop.f32.mrb[6].mxu0  ;;  %v7433_v17 = vadd.f32 %v4725_v34, %v2936_v12 }
 0x3fb   : > { %v7431_v50 = vadd.f32 %v4944_v16, %v4725_v34  ;;  %v2939_v8 = vpop.f32.mrb[7].mxu0 }
 0x3fc   : > { %v7435_v38 = vadd.f32 %v4725_v34, %v2939_v8 }
 0x3fd   : > { %v2986_v48 = vpack.c.bf16 %v7431_v50, %v7437_v31 }
 0x3fe   : > { %v2985_v3 = vpack.c.bf16 %v7435_v38, %v7433_v17 }
 0x400   : > { %4973 = vmatprep.mubr.bf16.mxu1 %v2985_v3 }
 0x401   : > { %4974 = vmatmul.mubr.bf16.gmra.mrb[4].mxu1 %v2986_v48  ;;  %v3224_v48 = vrot.slane %v3207_v40, %v8445_v13 }
 0x403   : > { %v3256_v58 = vadd.f32 %v3224_v48, %v7491_v41 }
 0x407   : > { %v4947_v26 = vpop.f32.mrb[8].mxu0 }
 0x408   : > { %v2952_v49 = vpop.f32.mrb[9].mxu0  ;;  %v7449_v19 = vadd.f32 %v4947_v26, %v4725_v34 }
 0x409   : > { %v4948_v11 = vpop.f32.mrb[10].mxu0  ;;  %v7445_v24 = vadd.f32 %v4725_v34, %v2952_v49 }
 0x40a   : > { %v7443_v30 = vadd.f32 %v4948_v11, %v4725_v34  ;;  %v2955_v54 = vpop.f32.mrb[11].mxu0  ;;  %v3205_v11 = vcombine.high %v3183_v28, %v3183_v28 }
 0x40b   : > { %8438 = vst [vmem:[#allocation27_spill] sm:$0xff] %v7445_v24  ;;  %v7447_v45 = vadd.f32 %v4725_v34, %v2955_v54 }
 0x40c   : > { %v2988_v59 = vpack.c.bf16 %v7443_v30, %v7449_v19 }
 0x40d   : > { %8439 = vst [vmem:[#allocation18_spill] sm:$0xff] %v7447_v45  ;;  %v2987_v39 = vpack.c.bf16 %v7447_v45, %v7445_v24 }
 0x40f   : > { %4977 = vmatprep.mubr.bf16.mxu1 %v2987_v39  ;;  %v3160_v39 = vcombine.high %v1007_v43, %v1007_v43 }
 0x410   : > { %4978 = vmatmul.mubr.bf16.gmra.mrb[8].mxu1 %v2988_v59 }
 0x419   : > { %v4951_v29 = vpop.f32.mrb[12].mxu0 }
 0x41a   : > { %v2968_v36 = vpop.f32.mrb[13].mxu0  ;;  %v7461_v42 = vadd.f32 %v4951_v29, %v4725_v34  ;;  %v3255_v29 = vadd.f32 %v3224_v48, %v7480_v2 }
 0x41b   : > { %v4952_v20 = vpop.f32.mrb[14].mxu0  ;;  %v7457_v52 = vadd.f32 %v4725_v34, %v2968_v36 }
 0x41c   : > { %v7455_v51 = vadd.f32 %v4952_v20, %v4725_v34  ;;  %v2971_v21 = vpop.f32.mrb[15].mxu0  ;;  %8443 = vst [vmem:[#allocation11_spill] sm:$0xff] %v7461_v42  ;;  %v3220_v20 = vrot.slane %v3205_v11, %v8445_v13 }
 0x41d   : > { %8441 = vst [vmem:[#allocation20_spill] sm:$0xff] %v7457_v52  ;;  %v7459_v9 = vadd.f32 %v4725_v34, %v2971_v21  ;;  %v3174_v21 = vrot.slane %v3160_v39, %v7471_v1 }
 0x41e   : > { %8440 = vst [vmem:[#allocation10_spill] sm:$0xff] %v7455_v51  ;;  %v2990_v33 = vpack.c.bf16 %v7455_v51, %v7461_v42  ;;  %v3253_v43 = vadd.f32 %v3220_v20, %v7480_v2  ;;  %v3254_v28 = vadd.f32 %v3220_v20, %v7491_v41 }
 0x41f   : > { %8442 = vst [vmem:[#allocation13_spill] sm:$0xff] %v7459_v9  ;;  %v2989_v7 = vpack.c.bf16 %v7459_v9, %v7457_v52  ;;  %v3176_v61 = vcombine.high %v3174_v21, %v3174_v21 }
 0x421   : > { %4981 = vmatprep.mubr.bf16.mxu1 %v2989_v7 }
 0x422   : > { %4982 = vmatmul.mubr.bf16.gmra.mrb[12].mxu1 %v2990_v33 }
 0x4cc   : > { %v4971_v22 = vpop.f32.mrb[0].mxu1 }
 0x4cd   : > { %v3105_v25 = vadd.f32 %v4971_v22, %v7486_v15  ;;  %v3096_v4 = vpop.f32.mrb[1].mxu1 }
 0x4ce   : > { %v3097_v55 = vadd.f32 %v7486_v15, %v3096_v4  ;;  %v4972_v0 = vpop.f32.mrb[2].mxu1 }
 0x4cf   : > { %v7494_v23 = vadd.f32 %v3251_v6, %v3105_v25  ;;  %v3099_v34 = vpop.f32.mrb[3].mxu1  ;;  %v3108_v32 = vadd.f32 %v4972_v0, %v7486_v15 }
 0x4d0   : > { %v7496_v14 = vadd.f32 %v3249_v37, %v3097_v55  ;;  %v3100_v56 = vadd.f32 %v7486_v15, %v3099_v34  ;;  %v3204_v37 = vrot.slane %v3176_v61, %v7471_v1  ;;  %v3190_v55 = vrot.slane %v3174_v21, %v7471_v1 }
 0x4d1   : > { %3511 = vadd.xlane.f32.xlu1 %v7494_v23  ;;  %v3557_v12 = vmul.f32 %v7494_v23, %v7494_v23  ;;  %v7506_v16 = vadd.f32 %v3252_v63, %v3108_v32 }
 0x4d2   : > { %3507 = vadd.xlane.f32.xlu0 %v7496_v14  ;;  %v7510_v49 = vadd.f32 %v3250_v47, %v3100_v56  ;;  %v3555_v7 = vmul.f32 %v7496_v14, %v7496_v14  ;;  %v3232_v0 = vrot.slane %v3204_v37, %v8445_v13  ;;  %v3228_v32 = vrot.slane %v3190_v55, %v8445_v13 }
 0x4d3   : > { %v3558_v59 = vmul.f32 %v7506_v16, %v7506_v16  ;;  %v3208_v48 = vcombine.high %v3204_v37, %v3204_v37 }
 0x4d4   : > { %v4975_v8 = vpop.f32.mrb[4].mxu1  ;;  %v3556_v5 = vmul.f32 %v7510_v49, %v7510_v49  ;;  %v3259_v1 = vadd.f32 %v3232_v0, %v7480_v2 }
 0x4d5   : > { %v3112_v3 = vpop.f32.mrb[5].mxu1  ;;  %3575 = vadd.xlane.f32.xlu1 %v3557_v12  ;;  %v3121_v36 = vadd.f32 %v4975_v8, %v7486_v15  ;;  %v3257_v12 = vadd.f32 %v3228_v32, %v7480_v2 }
 0x4d6   : > { %v4976_v26 = vpop.f32.mrb[6].mxu1  ;;  %3513 = vadd.xlane.f32.xlu0 %v7506_v16  ;;  %v3113_v57 = vadd.f32 %v7486_v15, %v3112_v3 }
 0x4d7   : > { %v3115_v54 = vpop.f32.mrb[7].mxu1  ;;  %v3124_v33 = vadd.f32 %v4976_v26, %v7486_v15  ;;  %v7525_v27 = vadd.f32 %v3255_v29, %v3121_v36  ;;  %v3206_v36 = vcombine.high %v3190_v55, %v3190_v55 }
 0x4d8   : > { %v3116_v10 = vadd.f32 %v7486_v15, %v3115_v54  ;;  %v7535_v22 = vadd.f32 %v3253_v43, %v3113_v57  ;;  %v3260_v54 = vadd.f32 %v3232_v0, %v7491_v41 }
 0x4d9   : > { %3509 = vadd.xlane.f32.xlu1 %v7510_v49  ;;  %v7529_v60 = vadd.f32 %v3256_v58, %v3124_v33  ;;  %v3561_v34 = vmul.f32 %v7525_v27, %v7525_v27  ;;  %v3258_v33 = vadd.f32 %v3228_v32, %v7491_v41  ;;  %v3236_v61 = vrot.slane %v3206_v36, %v8445_v13 }
 0x4da   : > { %3577 = vadd.xlane.f32.xlu0 %v3558_v59  ;;  %v7538_v4 = vadd.f32 %v3254_v28, %v3116_v10  ;;  %v3559_v56 = vmul.f32 %v7535_v22, %v7535_v22  ;;  %v3240_v59 = vrot.slane %v3208_v48, %v8445_v13  ;;  %v4747_v48 = vmul.f32 -1.442695, %v7535_v22 }
 0x4db   : > { %v3562_v63 = vmul.f32 %v7529_v60, %v7529_v60 }
 0x4dc   : > { %v3560_v8 = vmul.f32 %v7538_v4, %v7538_v4  ;;  %v3263_v43 = vadd.f32 %v3240_v59, %v7480_v2  ;;  %v3264_v55 = vadd.f32 %v3240_v59, %v7491_v41  ;;  %v4748_v59 = vmul.f32 -1.442695, %v7538_v4 }
 0x4dd   : > { %3571 = vadd.xlane.f32.xlu1 %v3555_v7 }
 0x4de   : > { %3573 = vadd.xlane.f32.xlu0 %v3556_v5 }
 0x4e1   : > { %3519 = vadd.xlane.f32.xlu1 %v7525_v27 }
 0x4e2   : > { %3521 = vadd.xlane.f32.xlu0 %v7529_v60 }
 0x4e3   : > { %v4979_v62 = vpop.f32.mrb[8].mxu1 }
 0x4e4   : > { %v3128_v18 = vpop.f32.mrb[9].mxu1  ;;  %v3137_v40 = vadd.f32 %v4979_v62, %v7486_v15 }
 0x4e5   : > { %v4980_v6 = vpop.f32.mrb[10].mxu1  ;;  %3515 = vadd.xlane.f32.xlu1 %v7535_v22  ;;  %v3129_v47 = vadd.f32 %v7486_v15, %v3128_v18 }
 0x4e6   : > { %v3131_v25 = vpop.f32.mrb[11].mxu1  ;;  %3517 = vadd.xlane.f32.xlu0 %v7538_v4  ;;  %v7557_v3 = vadd.f32 %v3259_v1, %v3137_v40  ;;  %v3140_v11 = vadd.f32 %v4980_v6, %v7486_v15  ;;  %v3261_v6 = vadd.f32 %v3236_v61, %v7480_v2 }
 0x4e7   : > { %v7559_v26 = vadd.f32 %v3257_v12, %v3129_v47  ;;  %v3132_v7 = vadd.f32 %v7486_v15, %v3131_v25  ;;  %v4744_v47 = vmul.f32 -1.442695, %v7510_v49  ;;  %v4745_v12 = vmul.f32 -1.442695, %v7494_v23 }
 0x4e8   : > { %v3565_v20 = vmul.f32 %v7557_v3, %v7557_v3  ;;  %v7568_v21 = vadd.f32 %v3260_v54, %v3140_v11  ;;  %v4750_v54 = vmul.f32 -1.442695, %v7529_v60 }
 0x4e9   : > { %3583 = vadd.xlane.f32.xlu1 %v3561_v34  ;;  %v3563_v10 = vmul.f32 %v7559_v26, %v7559_v26  ;;  %v7578_v28 = vadd.f32 %v3258_v33, %v3132_v7 }
 0x4ea   : > { %3585 = vadd.xlane.f32.xlu0 %v3562_v63  ;;  %v3566_v37 = vmul.f32 %v7568_v21, %v7568_v21  ;;  %v3262_v63 = vadd.f32 %v3236_v61, %v7491_v41  ;;  %v4746_v41 = vmul.f32 -1.442695, %v7506_v16 }
 0x4eb   : > { %v3564_v0 = vmul.f32 %v7578_v28, %v7578_v28 }
 0x4ec   : > { %5282 = vpow2.f32 %v4746_v41 }
 0x4ed   : > { %3579 = vadd.xlane.f32.xlu1 %v3559_v56  ;;  %5284 = vpow2.f32 %v4744_v47 }
 0x4ee   : > { %3581 = vadd.xlane.f32.xlu0 %v3560_v8  ;;  %v4743_v8 = vmul.f32 -1.442695, %v7496_v14  ;;  %5286 = vpow2.f32 %v4745_v12  ;;  %v7626_v12 = vld [vmem:[#allocation2 + $0x8] sm:$0xff] }
 0x4f0   : > { %5288 = vpow2.f32 %v4743_v8 }
 0x4f1   : > { %3527 = vadd.xlane.f32.xlu1 %v7557_v3  ;;  %5290 = vpow2.f32 %v4747_v48 }
 0x4f2   : > { %3523 = vadd.xlane.f32.xlu0 %v7559_v26  ;;  %5292 = vpow2.f32 %v4750_v54 }
 0x4f3   : > { %5294 = vpow2.f32 %v4748_v59  ;;  %v4751_v59 = vmul.f32 -1.442695, %v7559_v26 }
 0x4f5   : > { %v4983_v39 = vpop.f32.mrb[12].mxu1  ;;  %3591 = vadd.xlane.f32.xlu1 %v3565_v20 }
 0x4f6   : > { %v3144_v29 = vpop.f32.mrb[13].mxu1  ;;  %3529 = vadd.xlane.f32.xlu0 %v7568_v21  ;;  %v3153_v57 = vadd.f32 %v4983_v39, %v7486_v15  ;;  %v5283_v11 = vpop.eup %5282 }
 0x4f7   : > { %v4984_v58 = vpop.f32.mrb[14].mxu1  ;;  %v3145_v18 = vadd.f32 %v7486_v15, %v3144_v29  ;;  %v5285_v39 = vpop.eup %5284  ;;  %v3332_v20 = vadd.f32 1.0, %v5283_v11 }
 0x4f8   : > { %v3147_v5 = vpop.f32.mrb[15].mxu1  ;;  %v7581_v62 = vadd.f32 %v3263_v43, %v3153_v57  ;;  %v3156_v25 = vadd.f32 %v4984_v58, %v7486_v15  ;;  %v5287_v29 = vpop.eup %5286  ;;  %v3330_v7 = vadd.f32 1.0, %v5285_v39 }
 0x4f9   : > { %3587 = vadd.xlane.f32.xlu1 %v3563_v10  ;;  %v7588_v13 = vadd.f32 %v3261_v6, %v3145_v18  ;;  %v3148_v32 = vadd.f32 %v7486_v15, %v3147_v5  ;;  %v3331_v33 = vadd.f32 1.0, %v5287_v29  ;;  %5296 = vrcp.f32 %v3332_v20 }
 0x4fa   : > { %3525 = vadd.xlane.f32.xlu0 %v7578_v28  ;;  %v7597_v34 = vadd.f32 %v3264_v55, %v3156_v25  ;;  %v3569_v40 = vmul.f32 %v7581_v62, %v7581_v62  ;;  %v5289_v36 = vpop.eup %5288  ;;  %5298 = vrcp.f32 %v3330_v7  ;;  %v4749_v5 = vmul.f32 -1.442695, %v7525_v27 }
 0x4fb   : > { %v3567_v2 = vmul.f32 %v7588_v13, %v7588_v13  ;;  %v7604_v1 = vadd.f32 %v3262_v63, %v3148_v32  ;;  %v3329_v58 = vadd.f32 1.0, %v5289_v36  ;;  %5300 = vrcp.f32 %v3331_v33  ;;  %v5291_v57 = vpop.eup %5290 }
 0x4fc   : > { %v3570_v15 = vmul.f32 %v7597_v34, %v7597_v34  ;;  %v5293_v61 = vpop.eup %5292  ;;  %v4753_v10 = vmul.f32 -1.442695, %v7557_v3  ;;  %v3333_v25 = vadd.f32 1.0, %v5291_v57 }
 0x4fd   : > { %3535 = vadd.xlane.f32.xlu1 %v7581_v62  ;;  %v3568_v56 = vmul.f32 %v7604_v1, %v7604_v1  ;;  %5302 = vrcp.f32 %v3329_v58 }
 0x4fe   : > { %3593 = vadd.xlane.f32.xlu0 %v3566_v37  ;;  %v5295_v37 = vpop.eup %5294  ;;  %5304 = vpow2.f32 %v4749_v5 }
 0x4ff   : > { %5306 = vpow2.f32 %v4753_v10 }
 0x500   : > { %5308 = vrcp.f32 %v3333_v25 }
 0x501   : > { %3531 = vadd.xlane.f32.xlu1 %v7588_v13 }
 0x502   : > { %3589 = vadd.xlane.f32.xlu0 %v3564_v0  ;;  %v7622_v0 = vld [vmem:[#allocation2 + $0x28] sm:$0xff] }
 0x503   : > { %v5297_v55 = vpop.eup %5296 }
 0x504   : > { %v5299_v63 = vpop.eup %5298  ;;  %v3380_v11 = vmul.f32 %v5297_v55, %v7622_v0 }
 0x505   : > { %3595 = vadd.xlane.f32.xlu1 %v3567_v2  ;;  %v3336_v2 = vadd.f32 1.0, %v5293_v61  ;;  %v5301_v47 = vpop.eup %5300  ;;  %v3378_v39 = vmul.f32 %v5299_v63, %v7622_v0 }
 0x506   : > { %3537 = vadd.xlane.f32.xlu0 %v7597_v34  ;;  %v3379_v36 = vmul.f32 %v5301_v47, %v7626_v12 }
 0x507   : > { %v5303_v48 = vpop.eup %5302  ;;  %5310 = vrcp.f32 %v3336_v2 }
 0x508   : > { %v3377_v58 = vmul.f32 %v5303_v48, %v7626_v12  ;;  %v3400_v61 = vadd.f32 %v3380_v11, %v3379_v36 }
 0x509   : > { %3599 = vadd.xlane.f32.xlu1 %v3569_v40  ;;  %v3334_v40 = vadd.f32 1.0, %v5295_v37  ;;  %v5305_v37 = vpop.eup %5304 }
 0x50a   : > { %3533 = vadd.xlane.f32.xlu0 %v7604_v1  ;;  %v3393_v25 = vadd.f32 %v3378_v39, %v3377_v58  ;;  %v5307_v47 = vpop.eup %5306  ;;  %v3335_v48 = vadd.f32 1.0, %v5305_v37  ;;  %v4752_v39 = vmul.f32 -1.442695, %v7578_v28  ;;  %v4757_v37 = vmul.f32 -1.442695, %v7581_v62 }
 0x50b   : > { %5312 = vrcp.f32 %v3334_v40  ;;  %v5309_v58 = vpop.eup %5308 }
 0x50e   : > { %3597 = vadd.xlane.f32.xlu0 %v3568_v56 }
 0x512   : > { %3601 = vadd.xlane.f32.xlu0 %v3570_v15 }
 0x55e   : > { %v3512_v43 = vpop.xlane.xlu1 %3511 }
 0x55f   : > { %v7620_v18 = vmul.f32 0.0078125, %v3512_v43  ;;  %v3508_v6 = vpop.xlane.xlu0 %3507 }
 0x560   : > { %v7634_v20 = vmul.f32 0.0078125, %v3508_v6 }
 0x561   : > { %v3621_v56 = vmul.f32 %v7620_v18, %v7620_v18 }
 0x562   : > { %v3576_v32 = vpop.xlane.xlu1 %3575  ;;  %v3619_v6 = vmul.f32 %v7634_v20, %v7634_v20 }
 0x563   : > { %v3605_v15 = vmul.f32 0.0078125, %v3576_v32  ;;  %v3514_v41 = vpop.xlane.xlu0 %3513  ;;  %v4754_v32 = vmul.f32 -1.442695, %v7568_v21 }
 0x564   : > { %v7628_v8 = vmul.f32 0.0078125, %v3514_v41 }
 0x565   : > { %v3637_v54 = vsub.f32 %v3605_v15, %v3621_v56 }
 0x566   : > { %v3510_v29 = vpop.xlane.xlu1 %3509  ;;  %v3622_v5 = vmul.f32 %v7628_v8, %v7628_v8 }
 0x567   : > { %v3653_v7 = vmax.f32 %v3637_v54, 0.0  ;;  %v3578_v33 = vpop.xlane.xlu0 %3577  ;;  %v7639_v57 = vmul.f32 0.0078125, %v3510_v29  ;;  %v3401_v54 = vrot.slane %v3400_v61, 4 }
 0x568   : > { %v3606_v43 = vmul.f32 0.0078125, %v3578_v33  ;;  %v3394_v33 = vrot.slane %v3393_v25, 4 }
 0x569   : > { %v3685_v10 = vadd.f32 1e-05, %v3653_v7  ;;  %v3620_v56 = vmul.f32 %v7639_v57, %v7639_v57 }
 0x56a   : > { %v3638_v55 = vsub.f32 %v3606_v43, %v3622_v5  ;;  %v3572_v2 = vpop.xlane.xlu1 %3571 }
 0x56b   : > { %5314 = vrsqrt.f32 %v3685_v10  ;;  %v3603_v63 = vmul.f32 0.0078125, %v3572_v2  ;;  %v3574_v40 = vpop.xlane.xlu0 %3573  ;;  %v3339_v10 = vadd.f32 1.0, %v5307_v47 }
 0x56c   : > { %5316 = vpow2.f32 %v4751_v59  ;;  %v3654_v15 = vmax.f32 %v3638_v55, 0.0  ;;  %v3604_v41 = vmul.f32 0.0078125, %v3574_v40  ;;  %v5311_v59 = vpop.eup %5310 }
 0x56d   : > { %v3635_v11 = vsub.f32 %v3603_v63, %v3619_v6  ;;  %5318 = vpow2.f32 %v4754_v32  ;;  %v5313_v55 = vpop.eup %5312  ;;  %v7648_v63 = vadd.f32 %v3401_v54, %v3400_v61  ;;  %v7653_v32 = vmul.f32 %v5309_v58, %v7626_v12 }
 0x56e   : > { %v3686_v29 = vadd.f32 1e-05, %v3654_v15  ;;  %v3636_v36 = vsub.f32 %v3604_v41, %v3620_v56  ;;  %v3520_v7 = vpop.xlane.xlu1 %3519  ;;  %v7650_v15 = vadd.f32 %v3394_v33, %v3393_v25  ;;  %v4755_v41 = vmul.f32 -1.442695, %v7588_v13 }
 0x56f   : > { %v3651_v5 = vmax.f32 %v3635_v11, 0.0  ;;  %v3522_v43 = vpop.xlane.xlu0 %3521  ;;  %v7656_v47 = vmul.f32 0.0078125, %v3520_v7  ;;  %v3669_v61 = vsub.f32 %v7494_v23, %v7620_v18  ;;  %v4756_v58 = vmul.f32 -1.442695, %v7604_v1 }
 0x570   : > { %5320 = vrsqrt.f32 %v3686_v29  ;;  %v3652_v2 = vmax.f32 %v3636_v36, 0.0  ;;  %v7663_v54 = vmul.f32 0.0078125, %v3522_v43  ;;  %v4758_v29 = vmul.f32 -1.442695, %v7597_v34  ;;  %v7672_v36 = vld [vmem:[%s8446_s1] ss:$0 sm:$0xff]  ;;  %s4349_s1 = scalar_lea.vmem %s5666_s29, %s5660_s23 }
 0x571   : > { %5322 = vrcp.f32 %v3335_v48  ;;  %v3683_v6 = vadd.f32 1e-05, %v3651_v5  ;;  %v7659_v48 = vmul.f32 %v5311_v59, %v7622_v0  ;;  %v3625_v43 = vmul.f32 %v7656_v47, %v7656_v47  ;;  %s8455_s29 = sld [smem:[#allocation43_spill]] }
 0x572   : > { %5324 = vpow2.f32 %v4752_v39  ;;  %v3684_v40 = vadd.f32 1e-05, %v3652_v2  ;;  %v3516_v56 = vpop.xlane.xlu1 %3515  ;;  %v7666_v39 = vmul.f32 %v5313_v55, %v7622_v0  ;;  %v7684_v55 = vld [vmem:[%s8447_s24] ss:$0 sm:$0xff]  ;;  %v3667_v5 = vsub.f32 %v7496_v14, %v7634_v20 }
 0x573   : > { %5326 = vrsqrt.f32 %v3683_v6  ;;  %v3518_v11 = vpop.xlane.xlu0 %3517  ;;  %v7679_v59 = vmul.f32 0.0078125, %v3516_v56  ;;  %v3670_v56 = vsub.f32 %v7506_v16, %v7628_v8 }
 0x574   : > { %5328 = vrcp.f32 %v3339_v10  ;;  %v7688_v6 = vmul.f32 0.0078125, %v3518_v11 }
 0x575   : > { %v5315_v25 = vpop.eup %5314  ;;  %5330 = vpow2.f32 %v4757_v37  ;;  %v3626_v37 = vmul.f32 %v7663_v54, %v7663_v54 }
 0x576   : > { %v5317_v33 = vpop.eup %5316  ;;  %5332 = vrsqrt.f32 %v3684_v40  ;;  %v3584_v23 = vpop.xlane.xlu1 %3583  ;;  %v3717_v18 = vmul.f32 %v5315_v25, %v3669_v61  ;;  %v3624_v16 = vmul.f32 %v7688_v6, %v7688_v6 }
 0x577   : > { %5334 = vpow2.f32 %v4755_v41  ;;  %v3609_v10 = vmul.f32 0.0078125, %v3584_v23  ;;  %v3586_v2 = vpop.xlane.xlu0 %3585  ;;  %v5319_v61 = vpop.eup %5318  ;;  %v3337_v25 = vadd.f32 1.0, %v5317_v33 }
 0x578   : > { %v3610_v40 = vmul.f32 0.0078125, %v3586_v2  ;;  %v3739_v41 = vmul.f32 %v7672_v36, %v3717_v18  ;;  %5336 = vpow2.f32 %v4758_v29  ;;  %v3623_v18 = vmul.f32 %v7679_v59, %v7679_v59 }
 0x579   : > { %v3641_v23 = vsub.f32 %v3609_v10, %v3625_v43  ;;  %5338 = vpow2.f32 %v4756_v58  ;;  %v3340_v20 = vadd.f32 1.0, %v5319_v61 }
 0x57a   : > { %v5321_v7 = vpop.eup %5320  ;;  %v3642_v9 = vsub.f32 %v3610_v40, %v3626_v37  ;;  %v3580_v52 = vpop.xlane.xlu1 %3579  ;;  %v3761_v11 = vadd.f32 %v7684_v55, %v3739_v41  ;;  %5340 = vrcp.f32 %v3337_v25 }
 0x57b   : > { %v5323_v51 = vpop.eup %5322  ;;  %v3657_v2 = vmax.f32 %v3641_v23, 0.0  ;;  %v3607_v33 = vmul.f32 0.0078125, %v3580_v52  ;;  %v3582_v29 = vpop.xlane.xlu0 %3581  ;;  %v3718_v42 = vmul.f32 %v5321_v7, %v3670_v56 }
 0x57c   : > { %v5325_v45 = vpop.eup %5324  ;;  %v3658_v8 = vmax.f32 %v3642_v9, 0.0  ;;  %v3608_v58 = vmul.f32 0.0078125, %v3582_v29  ;;  %v7700_v43 = vmax.f32 %v3761_v11, 0.0 }
 0x57d   : > { %v5327_v14 = vpop.eup %5326  ;;  %v3689_v10 = vadd.f32 1e-05, %v3657_v2  ;;  %v3639_v37 = vsub.f32 %v3607_v33, %v3623_v18  ;;  %v3740_v40 = vmul.f32 %v7672_v36, %v3718_v42  ;;  %v3338_v2 = vadd.f32 1.0, %v5325_v45 }
 0x57e   : > { %v7703_v41 = vpop.eup %5328  ;;  %v3690_v52 = vadd.f32 1e-05, %v3658_v8  ;;  %v3640_v23 = vsub.f32 %v3608_v58, %v3624_v16  ;;  %3797 = vadd.xlane.f32.xlu1 %v7700_v43  ;;  %v3528_v7 = vpop.xlane.xlu1 %3527  ;;  %v3715_v56 = vmul.f32 %v5327_v14, %v3667_v5  ;;  %v3668_v16 = vsub.f32 %v7510_v49, %v7639_v57 }
 0x57f   : > { %v5331_v24 = vpop.eup %5330  ;;  %5342 = vrsqrt.f32 %v3689_v10  ;;  %v3655_v9 = vmax.f32 %v3639_v37, 0.0  ;;  %v7706_v11 = vmul.f32 0.0078125, %v3528_v7  ;;  %v3524_v29 = vpop.xlane.xlu0 %3523  ;;  %v3762_v61 = vadd.f32 %v7684_v55, %v3740_v40 }
 0x580   : > { %v5333_v18 = vpop.eup %5332  ;;  %5344 = vrsqrt.f32 %v3690_v52  ;;  %v3656_v42 = vmax.f32 %v3640_v23, 0.0  ;;  %v3737_v25 = vmul.f32 %v7672_v36, %v3715_v56  ;;  %v7714_v14 = vmul.f32 0.0078125, %v3524_v29 }
 0x581   : > { %v5335_v33 = vpop.eup %5334  ;;  %5346 = vrcp.f32 %v3340_v20  ;;  %v3687_v5 = vadd.f32 1e-05, %v3655_v9  ;;  %v7712_v8 = vmax.f32 %v3762_v61, 0.0  ;;  %v7719_v45 = vadd.f32 %v7666_v39, %v7653_v32 }
 0x582   : > { %v3688_v58 = vadd.f32 1e-05, %v3656_v42  ;;  %v3592_v10 = vpop.xlane.xlu1 %3591  ;;  %v3759_v37 = vadd.f32 %v7684_v55, %v3737_v25  ;;  %v5337_v40 = vpop.eup %5336  ;;  %v3629_v20 = vmul.f32 %v7706_v11, %v7706_v11  ;;  %v3716_v57 = vmul.f32 %v5333_v18, %v3668_v16 }
 0x583   : > { %5348 = vrsqrt.f32 %v3687_v5  ;;  %v3613_v52 = vmul.f32 0.0078125, %v3592_v10  ;;  %3799 = vadd.xlane.f32.xlu0 %v7712_v8  ;;  %v3530_v49 = vpop.xlane.xlu0 %3529  ;;  %v5339_v23 = vpop.eup %5338  ;;  %v3383_v7 = vmul.f32 %v5323_v51, %v7626_v12  ;;  %v8448_v32 = vrot.slane %v7650_v15, 2 }
 0x584   : > { %5350 = vrsqrt.f32 %v3688_v58  ;;  %v7725_v56 = vmax.f32 %v3759_v37, 0.0  ;;  %v3738_v29 = vmul.f32 %v7672_v36, %v3716_v57  ;;  %v8449_v61 = vrot.slane %v7648_v63, 2  ;;  %v7748_v37 = vpop.eup %5340 }
 0x585   : > { %v7730_v39 = vadd.f32 %v8448_v32, %v7650_v15  ;;  %5352 = vrcp.f32 %v3338_v2  ;;  %v3645_v9 = vsub.f32 %v3613_v52, %v3629_v20  ;;  %v3341_v18 = vadd.f32 1.0, %v5335_v33 }
 0x586   : > { %v7736_v42 = vadd.f32 %v8449_v61, %v7648_v63  ;;  %v3627_v51 = vmul.f32 %v7714_v14, %v7714_v14  ;;  %3793 = vadd.xlane.f32.xlu1 %v7725_v56  ;;  %v3588_v25 = vpop.xlane.xlu1 %3587  ;;  %v3408_v16 = vrot.slane %v7719_v45, 4  ;;  %v7743_v15 = vadd.f32 %v7659_v48, %v3383_v7 }
 0x587   : > { %v3661_v2 = vmax.f32 %v3645_v9, 0.0  ;;  %v7745_v5 = vmul.f32 0.0078125, %v3530_v49  ;;  %v3611_v58 = vmul.f32 0.0078125, %v3588_v25  ;;  %v3760_v10 = vadd.f32 %v7684_v55, %v3738_v29  ;;  %v3526_v63 = vpop.xlane.xlu0 %3525 }
 0x588   : > { %v7750_v33 = vadd.f32 1.0, %v5331_v24  ;;  %v3344_v20 = vadd.f32 1.0, %v5337_v40  ;;  %v3673_v52 = vsub.f32 %v7525_v27, %v7656_v47  ;;  %v3843_v57 = vmul.f32 %v7700_v43, %v7700_v43 }
 0x589   : > { %v5343_v48 = vpop.eup %5342  ;;  %v3342_v7 = vadd.f32 1.0, %v5339_v23  ;;  %v3693_v32 = vadd.f32 1e-05, %v3661_v2  ;;  %v3643_v49 = vsub.f32 %v3611_v58, %v3627_v51  ;;  %v7756_v9 = vmax.f32 %v3760_v10, 0.0 }
 0x58a   : > { %v5345_v61 = vpop.eup %5344  ;;  %5354 = vrcp.f32 %v3341_v18  ;;  %v3674_v29 = vsub.f32 %v7529_v60, %v7663_v54  ;;  %v3671_v24 = vsub.f32 %v7535_v22, %v7679_v59  ;;  %3861 = vadd.xlane.f32.xlu1 %v3843_v57  ;;  %v3536_v40 = vpop.xlane.xlu1 %3535  ;;  %v3721_v27 = vmul.f32 %v5343_v48, %v3673_v52 }
 0x58b   : > { %v7762_v47 = vpop.eup %5346  ;;  %5356 = vrsqrt.f32 %v3693_v32  ;;  %v3630_v23 = vmul.f32 %v7745_v5, %v7745_v5  ;;  %v3659_v51 = vmax.f32 %v3643_v49, 0.0  ;;  %3795 = vadd.xlane.f32.xlu0 %v7756_v9  ;;  %v7767_v25 = vmul.f32 0.0078125, %v3526_v63  ;;  %v3594_v18 = vpop.xlane.xlu0 %3593 }
 0x58c   : > { %v3614_v2 = vmul.f32 0.0078125, %v3594_v18  ;;  %v3841_v60 = vmul.f32 %v7725_v56, %v7725_v56  ;;  %v3743_v22 = vmul.f32 %v7672_v36, %v3721_v27  ;;  %v3722_v54 = vmul.f32 %v5345_v61, %v3674_v29 }
 0x58d   : > { %v5349_v59 = vpop.eup %5348  ;;  %5358 = vrcp.f32 %v3342_v7  ;;  %v3672_v58 = vsub.f32 %v7538_v4, %v7688_v6  ;;  %v3691_v10 = vadd.f32 1e-05, %v3659_v51  ;;  %v3844_v52 = vmul.f32 %v7712_v8, %v7712_v8 }
 0x58e   : > { %v5351_v57 = vpop.eup %5350  ;;  %v3646_v63 = vsub.f32 %v3614_v2, %v3630_v23  ;;  %3857 = vadd.xlane.f32.xlu1 %v3841_v60  ;;  %v3532_v48 = vpop.xlane.xlu1 %3531  ;;  %v3765_v32 = vadd.f32 %v7684_v55, %v3743_v22  ;;  %v3744_v49 = vmul.f32 %v7672_v36, %v3722_v54  ;;  %v3719_v18 = vmul.f32 %v5349_v59, %v3671_v24 }
 0x58f   : > { %v5353_v27 = vpop.eup %5352  ;;  %5360 = vrsqrt.f32 %v3691_v10  ;;  %v3628_v7 = vmul.f32 %v7767_v25, %v7767_v25  ;;  %3863 = vadd.xlane.f32.xlu0 %v3844_v52  ;;  %v7780_v4 = vmul.f32 0.0078125, %v3532_v48  ;;  %v3590_v6 = vpop.xlane.xlu0 %3589  ;;  %v3720_v61 = vmul.f32 %v5351_v57, %v3672_v58 }
 0x590   : > { %v3662_v29 = vmax.f32 %v3646_v63, 0.0  ;;  %v3612_v51 = vmul.f32 0.0078125, %v3590_v6  ;;  %v7782_v23 = vmax.f32 %v3765_v32, 0.0  ;;  %v3766_v2 = vadd.f32 %v7684_v55, %v3744_v49 }
 0x591   : > { %5362 = vrcp.f32 %v3344_v20  ;;  %v3842_v24 = vmul.f32 %v7756_v9, %v7756_v9  ;;  %v3741_v60 = vmul.f32 %v7672_v36, %v3719_v18  ;;  %v3742_v22 = vmul.f32 %v7672_v36, %v3720_v61 }
 0x592   : > { %v7789_v54 = vmul.f32 0.0078125, %v3536_v40  ;;  %v3694_v59 = vadd.f32 1e-05, %v3662_v29  ;;  %v3631_v58 = vmul.f32 %v7780_v4, %v7780_v4  ;;  %v3644_v10 = vsub.f32 %v3612_v51, %v3628_v7  ;;  %3805 = vadd.xlane.f32.xlu1 %v7782_v23  ;;  %v3596_v52 = vpop.xlane.xlu1 %3595 }
 0x593   : > { %3859 = vadd.xlane.f32.xlu0 %v3842_v24  ;;  %v3615_v57 = vmul.f32 0.0078125, %v3596_v52  ;;  %v7794_v20 = vmax.f32 %v3766_v2, 0.0  ;;  %v3538_v63 = vpop.xlane.xlu0 %3537  ;;  %v3763_v48 = vadd.f32 %v7684_v55, %v3741_v60  ;;  %v3764_v32 = vadd.f32 %v7684_v55, %v3742_v22 }
 0x594   : > { %v5355_v49 = vpop.eup %5354  ;;  %v3677_v40 = vsub.f32 %v7557_v3, %v7706_v11  ;;  %5364 = vrsqrt.f32 %v3694_v59  ;;  %v3660_v18 = vmax.f32 %v3644_v10, 0.0  ;;  %v3415_v7 = vrot.slane %v7743_v15, 4 }
 0x595   : > { %v5357_v6 = vpop.eup %5356  ;;  %5366 = vrcp.f32 %v7750_v33  ;;  %v3647_v61 = vsub.f32 %v3615_v57, %v3631_v58  ;;  %v7802_v29 = vmax.f32 %v3763_v48, 0.0  ;;  %v3387_v51 = vmul.f32 %v7703_v41, %v7626_v12 }
 0x596   : > { %v3692_v2 = vadd.f32 1e-05, %v3660_v18  ;;  %v3600_v24 = vpop.xlane.xlu1 %3599  ;;  %v3725_v60 = vmul.f32 %v5357_v6, %v3677_v40  ;;  %v3386_v22 = vmul.f32 %v5353_v27, %v7622_v0  ;;  %v7810_v3 = vadd.f32 %v3408_v16, %v7719_v45 }
 0x597   : > { %v5359_v11 = vpop.eup %5358  ;;  %v3633_v33 = vmul.f32 %v7789_v54, %v7789_v54  ;;  %v3663_v59 = vmax.f32 %v3647_v61, 0.0  ;;  %3807 = vadd.xlane.f32.xlu0 %v7794_v20  ;;  %3801 = vadd.xlane.f32.xlu1 %v7802_v29  ;;  %v3617_v41 = vmul.f32 0.0078125, %v3600_v24  ;;  %v7816_v58 = vmax.f32 %v3764_v32, 0.0  ;;  %v3534_v10 = vpop.xlane.xlu0 %3533 }
 0x598   : > { %v3675_v27 = vsub.f32 %v7559_v26, %v7714_v14  ;;  %5368 = vrsqrt.f32 %v3692_v2  ;;  %v7820_v52 = vmul.f32 0.0078125, %v3534_v10  ;;  %v3385_v45 = vmul.f32 %v7748_v37, %v7626_v12 }
 0x599   : > { %v5361_v16 = vpop.eup %5360  ;;  %v3695_v57 = vadd.f32 1e-05, %v3663_v59  ;;  %v3649_v48 = vsub.f32 %v3617_v41, %v3633_v33  ;;  %v3847_v40 = vmul.f32 %v7782_v23, %v7782_v23  ;;  %v3747_v18 = vmul.f32 %v7672_v36, %v3725_v60 }
 0x59a   : > { %v3723_v32 = vmul.f32 %v5361_v16, %v3675_v27  ;;  %v3388_v6 = vmul.f32 %v7762_v47, %v7622_v0  ;;  %v3389_v26 = vmul.f32 %v5355_v49, %v7626_v12  ;;  %v3421_v14 = vadd.f32 %v3386_v22, %v3385_v45 }
 0x59b   : > { %v5363_v61 = vpop.eup %5362  ;;  %v3678_v2 = vsub.f32 %v7568_v21, %v7745_v5  ;;  %v7832_v37 = vmul.f32 0.0078125, %v3538_v63  ;;  %v3665_v24 = vmax.f32 %v3649_v48, 0.0  ;;  %3803 = vadd.xlane.f32.xlu0 %v7816_v58  ;;  %3869 = vadd.xlane.f32.xlu1 %v3847_v40  ;;  %v3598_v33 = vpop.xlane.xlu0 %3597  ;;  %v3390_v60 = vmul.f32 %v5359_v11, %v7622_v0 }
 0x59c   : > { %5370 = vrsqrt.f32 %v3695_v57  ;;  %v3632_v47 = vmul.f32 %v7820_v52, %v7820_v52  ;;  %v3848_v49 = vmul.f32 %v7794_v20, %v7794_v20  ;;  %v3616_v22 = vmul.f32 0.0078125, %v3598_v33 }
 0x59d   : > { %v3697_v59 = vadd.f32 1e-05, %v3665_v24  ;;  %v3845_v21 = vmul.f32 %v7802_v29, %v7802_v29  ;;  %v3769_v5 = vadd.f32 %v7684_v55, %v3747_v18  ;;  %v3745_v63 = vmul.f32 %v7672_v36, %v3723_v32 }
 0x59e   : > { %v5365_v41 = vpop.eup %5364  ;;  %v3648_v10 = vsub.f32 %v3616_v22, %v3632_v47  ;;  %v7845_v11 = vadd.f32 %v3415_v7, %v7743_v15  ;;  %v3422_v27 = vrot.slane %v3421_v14, 4  ;;  %v3428_v45 = vadd.f32 %v3388_v6, %v3387_v51 }
 0x59f   : > { %v5367_v16 = vpop.eup %5366  ;;  %5372 = vrsqrt.f32 %v3697_v59  ;;  %3871 = vadd.xlane.f32.xlu0 %v3848_v49  ;;  %3865 = vadd.xlane.f32.xlu1 %v3845_v21  ;;  %v3602_v57 = vpop.xlane.xlu0 %3601  ;;  %v3726_v48 = vmul.f32 %v5365_v41, %v3678_v2  ;;  %v3392_v40 = vmul.f32 %v5363_v61, %v7622_v0  ;;  %v3435_v24 = vadd.f32 %v3390_v60, %v3389_v26 }
 0x5a0   : > { %v3676_v18 = vsub.f32 %v7578_v28, %v7767_v25  ;;  %v3634_v32 = vmul.f32 %v7832_v37, %v7832_v37  ;;  %v3664_v33 = vmax.f32 %v3648_v10, 0.0  ;;  %v3618_v15 = vmul.f32 0.0078125, %v3602_v57 }
 0x5a1   : > { %v3846_v7 = vmul.f32 %v7816_v58, %v7816_v58  ;;  %v7854_v51 = vmax.f32 %v3769_v5, 0.0  ;;  %v3767_v6 = vadd.f32 %v7684_v55, %v3745_v63  ;;  %v3748_v2 = vmul.f32 %v7672_v36, %v3726_v48 }
 0x5a2   : > { %v5369_v47 = vpop.eup %5368  ;;  %v3696_v0 = vadd.f32 1e-05, %v3664_v33  ;;  %v3650_v26 = vsub.f32 %v3618_v15, %v3634_v32  ;;  %v3391_v61 = vmul.f32 %v5367_v16, %v7626_v12  ;;  %v3410_v28 = vrot.slane %v7810_v3, 2 }
 0x5a3   : > { %3867 = vadd.xlane.f32.xlu0 %v3846_v7  ;;  %3813 = vadd.xlane.f32.xlu1 %v7854_v51  ;;  %v3770_v25 = vadd.f32 %v7684_v55, %v3748_v2  ;;  %v3724_v60 = vmul.f32 %v5369_v47, %v3676_v18  ;;  %v3423_v49 = vadd.f32 %v3422_v27, %v3421_v14  ;;  %v3436_v22 = vrot.slane %v3435_v24, 4 }
 0x5a4   : > { %5374 = vrsqrt.f32 %v3696_v0  ;;  %v3666_v59 = vmax.f32 %v3650_v26, 0.0  ;;  %v3429_v21 = vrot.slane %v3428_v45, 4  ;;  %v3442_v5 = vadd.f32 %v3392_v40, %v3391_v61 }
 0x5a5   : > { %v7862_v63 = vmax.f32 %v3767_v6, 0.0  ;;  %v7864_v41 = vmax.f32 %v3770_v25, 0.0  ;;  %v3746_v12 = vmul.f32 %v7672_v36, %v3724_v60  ;;  %v3398_v10 = vrot.slane %v7730_v39, 1 }
 0x5a6   : > { %v5371_v16 = vpop.eup %5370  ;;  %v3698_v57 = vadd.f32 1e-05, %v3666_v59  ;;  %v3405_v48 = vrot.slane %v7736_v42, 1  ;;  %v3411_v18 = vadd.f32 %v3410_v28, %v7810_v3  ;;  %v3417_v14 = vrot.slane %v7845_v11, 2 }
 0x5a7   : > { %v3679_v27 = vsub.f32 %v7588_v13, %v7780_v4  ;;  %3809 = vadd.xlane.f32.xlu1 %v7862_v63  ;;  %3815 = vadd.xlane.f32.xlu0 %v7864_v41  ;;  %v3768_v40 = vadd.f32 %v7684_v55, %v3746_v12  ;;  %v3424_v32 = vrot.slane %v3423_v49, 2  ;;  %v3437_v33 = vadd.f32 %v3436_v22, %v3435_v24 }
 0x5a8   : > { %v3681_v15 = vsub.f32 %v7581_v62, %v7789_v54  ;;  %5376 = vrsqrt.f32 %v3698_v57  ;;  %v3430_v7 = vadd.f32 %v3429_v21, %v3428_v45  ;;  %v3443_v6 = vrot.slane %v3442_v5, 4 }
 0x5a9   : > { %v5373_v3 = vpop.eup %5372  ;;  %v3851_v2 = vmul.f32 %v7854_v51, %v7854_v51  ;;  %v7880_v47 = vmax.f32 %v3768_v40, 0.0  ;;  %v3727_v13 = vmul.f32 %v5371_v16, %v3679_v27  ;;  %v3412_v0 = vrot.slane %v3411_v18, 1 }
 0x5aa   : > { %v3729_v4 = vmul.f32 %v5373_v3, %v3681_v15  ;;  %v3399_v24 = vadd.f32 %v3398_v10, %v7730_v39  ;;  %v3406_v62 = vadd.f32 %v3405_v48, %v7736_v42  ;;  %v3425_v54 = vadd.f32 %v3424_v32, %v3423_v49 }
 0x5ab   : > { %3877 = vadd.xlane.f32.xlu1 %v3851_v2  ;;  %3811 = vadd.xlane.f32.xlu0 %v7880_v47  ;;  %v3438_v45 = vrot.slane %v3437_v33, 2  ;;  %v3418_v61 = vadd.f32 %v3417_v14, %v7845_v11  ;;  %v3431_v28 = vrot.slane %v3430_v7, 2  ;;  %v3444_v25 = vadd.f32 %v3443_v6, %v3442_v5 }
 0x5ac   : > { %v3751_v26 = vmul.f32 %v7672_v36, %v3729_v4  ;;  %v3680_v60 = vsub.f32 %v7604_v1, %v7820_v52  ;;  %v3849_v22 = vmul.f32 %v7862_v63, %v7862_v63  ;;  %v3852_v59 = vmul.f32 %v7864_v41, %v7864_v41 }
 0x5ad   : > { %v3749_v39 = vmul.f32 %v7672_v36, %v3727_v13  ;;  %v3413_v21 = vadd.f32 %v3412_v0, %v3411_v18  ;;  %v3426_v5 = vrot.slane %v3425_v54, 1  ;;  %v3439_v12 = vadd.f32 %v3438_v45, %v3437_v33 }
 0x5ae   : > { %v5375_v42 = vpop.eup %5374  ;;  %v3773_v49 = vadd.f32 %v7684_v55, %v3751_v26  ;;  %v3458_v1 = vsel %vm3457_vm8, %v3406_v62, %v3399_v24  ;;  %v3419_v10 = vrot.slane %v3418_v61, 1  ;;  %v3432_v16 = vadd.f32 %v3431_v28, %v3430_v7 }
 0x5af   : > { %3873 = vadd.xlane.f32.xlu1 %v3849_v22  ;;  %3879 = vadd.xlane.f32.xlu0 %v3852_v59  ;;  %v3728_v11 = vmul.f32 %v5375_v42, %v3680_v60  ;;  %v3445_v57 = vrot.slane %v3444_v25, 2  ;;  %v3682_v48 = vsub.f32 %v7597_v34, %v7832_v37  ;;  %v3850_v14 = vmul.f32 %v7880_v47, %v7880_v47  ;;  %v1006_v59 = vld [vmem:[%s1005_s13] sm:$0xff] }
 0x5b0   : > { %v7896_v52 = vmax.f32 %v3773_v49, 0.0  ;;  %v3771_v18 = vadd.f32 %v7684_v55, %v3749_v39  ;;  %v3460_v32 = vsel %vm3459_vm2, %v3413_v21, %v3458_v1  ;;  %v3427_v7 = vadd.f32 %v3426_v5, %v3425_v54  ;;  %v5211_v5 = vld [vmem:[%s8450_s27 + $0x8] sm:$0xff]   ;;  %v5213_v1 = vld [vmem:[%s8450_s27 + $0x18] sm:$0xff]  }
 0x5b1   : > { %v3750_v27 = vmul.f32 %v7672_v36, %v3728_v11  ;;  %v3440_v6 = vrot.slane %v3439_v12, 1  ;;  %v3420_v34 = vadd.f32 %v3419_v10, %v3418_v61  ;;  %v3433_v37 = vrot.slane %v3432_v16, 1  ;;  %v5214_v10 = vld [vmem:[%s8450_s27 + $0x20] sm:$0xff]  }
 0x5b2   : > { %v5377_v40 = vpop.eup %5376  ;;  %v3446_v3 = vadd.f32 %v3445_v57, %v3444_v25  ;;  %v7907_v2 = vmax.f32 %v3771_v18, 0.0  ;;  %v3855_v60 = vmul.f32 %v7896_v52, %v7896_v52  ;;  %v5216_v57 = vld [vmem:[%s8450_s27 + $0x30] sm:$0xff]  }
 0x5b3   : > { %3821 = vadd.xlane.f32.xlu1 %v7896_v52  ;;  %3875 = vadd.xlane.f32.xlu0 %v3850_v14  ;;  %v3730_v33 = vmul.f32 %v5377_v40, %v3682_v48  ;;  %v3772_v15 = vadd.f32 %v7684_v55, %v3750_v27  ;;  %v3462_v4 = vsel %vm3461_vm4, %v3420_v34, %v3460_v32  ;;  %v5217_v48 = vld [vmem:[%s8450_s27 + $0x38] sm:$0xff]  }
 0x5b4   : > { %v3441_v24 = vadd.f32 %v3440_v6, %v3439_v12  ;;  %v3464_v62 = vsel %vm3463_vm0, %v3427_v7, %v3462_v4  ;;  %v3434_v45 = vadd.f32 %v3433_v37, %v3432_v16  ;;  %v3447_v26 = vrot.slane %v3446_v3, 1  ;;  %v5212_v12 = vld [vmem:[%s8450_s27 + $0x10] sm:$0xff]   ;;  %v5215_v16 = vld [vmem:[%s8450_s27 + $0x28] sm:$0xff]  }
 0x5b5   : > { %v3752_v13 = vmul.f32 %v7672_v36, %v3730_v33  ;;  %v3853_v54 = vmul.f32 %v7907_v2, %v7907_v2  ;;  %v5210_v36 = vld [vmem:[%s8450_s27] sm:$0xff]   ;;  %v7922_v22 = vmax.f32 %v3772_v15, 0.0 }
 0x5b6   : > { %v3466_v28 = vsel %vm3465_vm7, %v3434_v45, %v3464_v62  ;;  %v3448_v25 = vadd.f32 %v3447_v26, %v3446_v3  ;;  %4985 = vmatprep.subr.bf16.mxu0 %v5210_v36  ;;  %5017 = vmatprep.subr.bf16.mxu1 %v5210_v36 }
 0x5b7   : > { %3817 = vadd.xlane.f32.xlu1 %v7907_v2  ;;  %v3774_v0 = vadd.f32 %v7684_v55, %v3752_v13  ;;  %v3468_v55 = vsel %vm3467_vm13, %v3441_v24, %v3466_v28  ;;  %4986 = vmatpush3.bf16.msra.mxu0 %v5210_v36  ;;  %v3854_v49 = vmul.f32 %v7922_v22, %v7922_v22 }
 0x5b8   : > { %5025 = vmatpush3.bf16.msra.mxu1 %v5210_v36  ;;  %v3470_v39 = vsel %vm3469_vm14, %v3448_v25, %v3468_v55  ;;  %4987 = vmatprep.subr.bf16.mxu0 %v5211_v5 }
 0x5b9   : > { %v7914_v61 = vmax.f32 %v3774_v0, 0.0  ;;  %v7927_v42 = vadd.f32 %v3470_v39, %v1006_v59  ;;  %5018 = vmatprep.subr.bf16.mxu1 %v5211_v5 }
 0x5bb   : > { %3881 = vadd.xlane.f32.xlu1 %v3853_v54  ;;  %3823 = vadd.xlane.f32.xlu0 %v7914_v61  ;;  %v3856_v21 = vmul.f32 %v7914_v61, %v7914_v61  ;;  %v3479_v11 = vmul.f32 %v7927_v42, %v7927_v42 }
 0x5bc   : > { %4988 = vmatpush3.bf16.msra.mxu0 %v5211_v5  ;;  %5026 = vmatpush3.bf16.msra.mxu1 %v5211_v5 }
 0x5bd   : > { %4989 = vmatprep.subr.bf16.mxu0 %v5212_v12  ;;  %5019 = vmatprep.subr.bf16.mxu1 %v5212_v12 }
 0x5bf   : > { %3885 = vadd.xlane.f32.xlu1 %v3855_v60  ;;  %3819 = vadd.xlane.f32.xlu0 %v7922_v22 }
 0x5c0   : > { %4990 = vmatpush3.bf16.msra.mxu0 %v5212_v12  ;;  %5027 = vmatpush3.bf16.msra.mxu1 %v5212_v12 }
 0x5c1   : > { %4991 = vmatprep.subr.bf16.mxu0 %v5213_v1  ;;  %5020 = vmatprep.subr.bf16.mxu1 %v5213_v1 }
 0x5c3   : > { %3475 = vadd.xlane.f32.xlu1 %v7927_v42  ;;  %3883 = vadd.xlane.f32.xlu0 %v3854_v49 }
 0x5c4   : > { %4992 = vmatpush3.bf16.msra.mxu0 %v5213_v1  ;;  %5028 = vmatpush3.bf16.msra.mxu1 %v5213_v1 }
 0x5c5   : > { %4993 = vmatprep.subr.bf16.mxu0 %v5214_v10  ;;  %5021 = vmatprep.subr.bf16.mxu1 %v5214_v10 }
 0x5c7   : > { %3887 = vadd.xlane.f32.xlu0 %v3856_v21 }
 0x5c8   : > { %4994 = vmatpush3.bf16.msra.mxu0 %v5214_v10  ;;  %5029 = vmatpush3.bf16.msra.mxu1 %v5214_v10 }
 0x5c9   : > { %4995 = vmatprep.subr.bf16.mxu0 %v5215_v16  ;;  %5022 = vmatprep.subr.bf16.mxu1 %v5215_v16 }
 0x5cb   : > { %3480 = vadd.xlane.f32.xlu0 %v3479_v11 }
 0x5cc   : > { %4996 = vmatpush3.bf16.msra.mxu0 %v5215_v16  ;;  %5030 = vmatpush3.bf16.msra.mxu1 %v5215_v16 }
 0x5cd   : > { %4997 = vmatprep.subr.bf16.mxu0 %v5216_v57  ;;  %5023 = vmatprep.subr.bf16.mxu1 %v5216_v57 }
 0x5d0   : > { %4998 = vmatpush3.bf16.msra.mxu0 %v5216_v57  ;;  %5031 = vmatpush3.bf16.msra.mxu1 %v5216_v57 }
 0x5d1   : > { %4999 = vmatprep.subr.bf16.mxu0 %v5217_v48  ;;  %5024 = vmatprep.subr.bf16.mxu1 %v5217_v48 }
 0x5d4   : > { %5000 = vmatpush3.bf16.msra.mxu0 %v5217_v48  ;;  %5032 = vmatpush3.bf16.msra.mxu1 %v5217_v48 }
 0x60b   : > { %v3798_v14 = vpop.xlane.xlu1 %3797 }
 0x60c   : > { %v3827_v40 = vmul.f32 0.0078125, %v3798_v14 }
 0x60e   : > { %v3907_v33 = vmul.f32 %v3827_v40, %v3827_v40 }
 0x610   : > { %v3800_v18 = vpop.xlane.xlu0 %3799 }
 0x611   : > { %v3828_v34 = vmul.f32 0.0078125, %v3800_v18 }
 0x613   : > { %v3794_v27 = vpop.xlane.xlu1 %3793  ;;  %v3908_v62 = vmul.f32 %v3828_v34, %v3828_v34 }
 0x614   : > { %v7957_v15 = vmul.f32 0.0078125, %v3794_v27 }
 0x616   : > { %v3905_v13 = vmul.f32 %v7957_v15, %v7957_v15 }
 0x617   : > { %v3862_v32 = vpop.xlane.xlu1 %3861 }
 0x618   : > { %v3796_v7 = vpop.xlane.xlu0 %3795  ;;  %v3891_v6 = vmul.f32 0.0078125, %v3862_v32  ;;  %v3955_v32 = vsub.f32 %v7700_v43, %v3827_v40 }
 0x619   : > { %v7961_v45 = vmul.f32 0.0078125, %v3796_v7 }
 0x61a   : > { %v3923_v37 = vsub.f32 %v3891_v6, %v3907_v33 }
 0x61b   : > { %v3858_v3 = vpop.xlane.xlu1 %3857  ;;  %v3906_v59 = vmul.f32 %v7961_v45, %v7961_v45 }
 0x61c   : > { %v3939_v4 = vmax.f32 %v3923_v37, 0.0  ;;  %v3864_v0 = vpop.xlane.xlu0 %3863  ;;  %v3889_v24 = vmul.f32 0.0078125, %v3858_v3  ;;  %v7977_v37 = vld [vmem:[%s8451_s20] ss:$0 sm:$0xff] }
 0x61d   : > { %v3892_v26 = vmul.f32 0.0078125, %v3864_v0 }
 0x61e   : > { %v3971_v54 = vadd.f32 1e-05, %v3939_v4  ;;  %v3921_v36 = vsub.f32 %v3889_v24, %v3905_v13  ;;  %v3953_v4 = vsub.f32 %v7725_v56, %v7957_v15  ;;  %v3956_v15 = vsub.f32 %v7712_v8, %v3828_v34 }
 0x61f   : > { %v3924_v28 = vsub.f32 %v3892_v26, %v3908_v62  ;;  %v3806_v55 = vpop.xlane.xlu1 %3805  ;;  %v3954_v8 = vsub.f32 %v7756_v9, %v7961_v45 }
 0x620   : > { %5378 = vrsqrt.f32 %v3971_v54  ;;  %v3937_v25 = vmax.f32 %v3921_v36, 0.0  ;;  %v3860_v60 = vpop.xlane.xlu0 %3859  ;;  %v7965_v16 = vmul.f32 0.0078125, %v3806_v55  ;;  %v7991_v55 = vld [vmem:[%s8452_s11] ss:$0 sm:$0xff] }
 0x621   : > { %v3940_v39 = vmax.f32 %v3924_v28, 0.0  ;;  %v3890_v49 = vmul.f32 0.0078125, %v3860_v60 }
 0x622   : > { %v3969_v21 = vadd.f32 1e-05, %v3937_v25  ;;  %v3911_v33 = vmul.f32 %v7965_v16, %v7965_v16 }
 0x623   : > { %v3972_v11 = vadd.f32 1e-05, %v3940_v39  ;;  %v3922_v5 = vsub.f32 %v3890_v49, %v3906_v59 }
 0x624   : > { %5380 = vrsqrt.f32 %v3969_v21  ;;  %v3808_v12 = vpop.xlane.xlu0 %3807  ;;  %v3802_v1 = vpop.xlane.xlu1 %3801 }
 0x625   : > { %5382 = vrsqrt.f32 %v3972_v11  ;;  %v3938_v10 = vmax.f32 %v3922_v5, 0.0  ;;  %v7967_v48 = vmul.f32 0.0078125, %v3808_v12  ;;  %v7969_v14 = vmul.f32 0.0078125, %v3802_v1 }
 0x627   : > { %v3970_v57 = vadd.f32 1e-05, %v3938_v10  ;;  %v3912_v0 = vmul.f32 %v7967_v48, %v7967_v48  ;;  %v3909_v43 = vmul.f32 %v7969_v14, %v7969_v14 }
 0x628   : > { %v3804_v18 = vpop.xlane.xlu0 %3803  ;;  %v3870_v27 = vpop.xlane.xlu1 %3869 }
 0x629   : > { %5384 = vrsqrt.f32 %v3970_v57  ;;  %v3895_v7 = vmul.f32 0.0078125, %v3870_v27  ;;  %v7985_v40 = vmul.f32 0.0078125, %v3804_v18 }
 0x62a   : > { %v5379_v6 = vpop.eup %5378 }
 0x62b   : > { %v4003_v3 = vmul.f32 %v5379_v6, %v3955_v32  ;;  %v3927_v13 = vsub.f32 %v3895_v7, %v3911_v33  ;;  %v3910_v11 = vmul.f32 %v7985_v40, %v7985_v40 }
 0x62c   : > { %v3872_v24 = vpop.xlane.xlu0 %3871  ;;  %v3866_v62 = vpop.xlane.xlu1 %3865 }
 0x62d   : > { %v4025_v26 = vmul.f32 %v7977_v37, %v4003_v3  ;;  %v3943_v54 = vmax.f32 %v3927_v13, 0.0  ;;  %v3896_v36 = vmul.f32 0.0078125, %v3872_v24  ;;  %v3893_v28 = vmul.f32 0.0078125, %v3866_v62 }
 0x62e   : > { %v5381_v56 = vpop.eup %5380 }
 0x62f   : > { %v5383_v25 = vpop.eup %5382  ;;  %v3975_v60 = vadd.f32 1e-05, %v3943_v54  ;;  %v3928_v59 = vsub.f32 %v3896_v36, %v3912_v0  ;;  %v3925_v39 = vsub.f32 %v3893_v28, %v3909_v43  ;;  %v4001_v49 = vmul.f32 %v5381_v56, %v3953_v4 }
 0x630   : > { %v4004_v21 = vmul.f32 %v5383_v25, %v3956_v15  ;;  %v3868_v5 = vpop.xlane.xlu0 %3867  ;;  %v3814_v12 = vpop.xlane.xlu1 %3813  ;;  %v7997_v1 = vadd.f32 %v7991_v55, %v4025_v26 }
 0x631   : > { %5386 = vrsqrt.f32 %v3975_v60  ;;  %v3944_v10 = vmax.f32 %v3928_v59, 0.0  ;;  %v3941_v57 = vmax.f32 %v3925_v39, 0.0  ;;  %v3894_v18 = vmul.f32 0.0078125, %v3868_v5 }
 0x632   : > { %v4026_v34 = vmul.f32 %v7977_v37, %v4004_v21  ;;  %v4023_v27 = vmul.f32 %v7977_v37, %v4001_v49  ;;  %v8006_v24 = vmul.f32 0.0078125, %v3814_v12  ;;  %v4767_v9 = vmul.f32 -1.442695, %v7997_v1 }
 0x633   : > { %v5385_v32 = vpop.eup %5384  ;;  %v3976_v33 = vadd.f32 1e-05, %v3944_v10  ;;  %v3973_v7 = vadd.f32 1e-05, %v3941_v57  ;;  %v3926_v6 = vsub.f32 %v3894_v18, %v3910_v11  ;;  %v3959_v5 = vsub.f32 %v7782_v23, %v7965_v16 }
 0x634   : > { %v3810_v3 = vpop.xlane.xlu1 %3809  ;;  %v3816_v13 = vpop.xlane.xlu0 %3815  ;;  %v4002_v4 = vmul.f32 %v5385_v32, %v3954_v8  ;;  %v8004_v0 = vadd.f32 %v7991_v55, %v4023_v27  ;;  %v8012_v26 = vadd.f32 %v7991_v55, %v4026_v34  ;;  %v3915_v60 = vmul.f32 %v8006_v24, %v8006_v24 }
 0x635   : > { %5388 = vrsqrt.f32 %v3976_v33  ;;  %v3942_v43 = vmax.f32 %v3926_v6, 0.0  ;;  %v8014_v36 = vmul.f32 0.0078125, %v3810_v3  ;;  %v8022_v59 = vmul.f32 0.0078125, %v3816_v13 }
 0x636   : > { %5390 = vrsqrt.f32 %v3973_v7  ;;  %v4024_v45 = vmul.f32 %v7977_v37, %v4002_v4  ;;  %v4765_v62 = vmul.f32 -1.442695, %v8004_v0  ;;  %v4768_v25 = vmul.f32 -1.442695, %v8012_v26 }
 0x637   : > { %v3974_v54 = vadd.f32 1e-05, %v3942_v43  ;;  %v3913_v12 = vmul.f32 %v8014_v36, %v8014_v36  ;;  %v3916_v18 = vmul.f32 %v8022_v59, %v8022_v59  ;;  %v3960_v32 = vsub.f32 %v7794_v20, %v7967_v48 }
 0x638   : > { %v3878_v28 = vpop.xlane.xlu1 %3877  ;;  %v3812_v56 = vpop.xlane.xlu0 %3811  ;;  %v8017_v15 = vadd.f32 %v7991_v55, %v4024_v45  ;;  %5392 = vpow2.f32 %v4765_v62  ;;  %v3957_v4 = vsub.f32 %v7802_v29, %v7969_v14  ;;  %v3958_v62 = vsub.f32 %v7816_v58, %v7985_v40 }
 0x639   : > { %5394 = vrsqrt.f32 %v3974_v54  ;;  %v3899_v39 = vmul.f32 0.0078125, %v3878_v28  ;;  %v8033_v33 = vmul.f32 0.0078125, %v3812_v56 }
 0x63a   : > { %v4766_v49 = vmul.f32 -1.442695, %v8017_v15  ;;  %5396 = vpow2.f32 %v4767_v9 }
 0x63b   : > { %v5387_v21 = vpop.eup %5386  ;;  %v3931_v11 = vsub.f32 %v3899_v39, %v3915_v60  ;;  %5398 = vpow2.f32 %v4768_v25  ;;  %v3914_v28 = vmul.f32 %v8033_v33, %v8033_v33 }
 0x63c   : > { %v3874_v10 = vpop.xlane.xlu1 %3873  ;;  %v3880_v57 = vpop.xlane.xlu0 %3879  ;;  %5400 = vpow2.f32 %v4766_v49  ;;  %v4007_v7 = vmul.f32 %v5387_v21, %v3959_v5 }
 0x63d   : > { %v3947_v8 = vmax.f32 %v3931_v11, 0.0  ;;  %v3897_v34 = vmul.f32 0.0078125, %v3874_v10  ;;  %v3900_v27 = vmul.f32 0.0078125, %v3880_v57  ;;  %v3963_v57 = vsub.f32 %v7854_v51, %v8006_v24 }
 0x63e   : > { %v4029_v60 = vmul.f32 %v7977_v37, %v4007_v7 }
 0x63f   : > { %v5389_v6 = vpop.eup %5388  ;;  %v3979_v23 = vadd.f32 1e-05, %v3947_v8  ;;  %v3929_v16 = vsub.f32 %v3897_v34, %v3913_v12  ;;  %v3932_v3 = vsub.f32 %v3900_v27, %v3916_v18 }
 0x640   : > { %v5391_v13 = vpop.eup %5390  ;;  %v3822_v43 = vpop.xlane.xlu1 %3821  ;;  %v4008_v45 = vmul.f32 %v5389_v6, %v3960_v32  ;;  %v8050_v7 = vadd.f32 %v7991_v55, %v4029_v60 }
 0x641   : > { %v3876_v9 = vpop.xlane.xlu0 %3875  ;;  %5402 = vrsqrt.f32 %v3979_v23  ;;  %v3945_v54 = vmax.f32 %v3929_v16, 0.0  ;;  %v3948_v20 = vmax.f32 %v3932_v3, 0.0  ;;  %v4005_v25 = vmul.f32 %v5391_v13, %v3957_v4 }
 0x642   : > { %v5393_v48 = vpop.eup %5392  ;;  %v3898_v56 = vmul.f32 0.0078125, %v3876_v9  ;;  %v4030_v14 = vmul.f32 %v7977_v37, %v4008_v45  ;;  %v8061_v9 = vmul.f32 0.0078125, %v3822_v43 }
 0x643   : > { %v5395_v39 = vpop.eup %5394  ;;  %v3977_v49 = vadd.f32 1e-05, %v3945_v54  ;;  %v3980_v29 = vadd.f32 1e-05, %v3948_v20  ;;  %v4109_v58 = vadd.f32 1.0, %v5393_v48  ;;  %v4027_v12 = vmul.f32 %v7977_v37, %v4005_v25 }
 0x644   : > { %v5397_v21 = vpop.eup %5396  ;;  %v3930_v11 = vsub.f32 %v3898_v56, %v3914_v28  ;;  %v3818_v5 = vpop.xlane.xlu1 %3817  ;;  %v4006_v40 = vmul.f32 %v5395_v39, %v3958_v62  ;;  %v8053_v16 = vadd.f32 %v7991_v55, %v4030_v14  ;;  %v4771_v48 = vmul.f32 -1.442695, %v8050_v7 }
 0x645   : > { %v5399_v10 = vpop.eup %5398  ;;  %5404 = vrsqrt.f32 %v3977_v49  ;;  %v8046_v18 = vmul.f32 0.0078125, %v3818_v5  ;;  %v4111_v8 = vadd.f32 1.0, %v5397_v21  ;;  %v8056_v13 = vadd.f32 %v7991_v55, %v4027_v12 }
 0x646   : > { %v5401_v34 = vpop.eup %5400  ;;  %5406 = vrsqrt.f32 %v3980_v29  ;;  %v3946_v27 = vmax.f32 %v3930_v11, 0.0  ;;  %v4028_v32 = vmul.f32 %v7977_v37, %v4006_v40  ;;  %v4112_v23 = vadd.f32 1.0, %v5399_v10 }
 0x647   : > { %v4110_v6 = vadd.f32 1.0, %v5401_v34  ;;  %5408 = vrcp.f32 %v4109_v58  ;;  %v3917_v45 = vmul.f32 %v8046_v18, %v8046_v18  ;;  %v4769_v54 = vmul.f32 -1.442695, %v8056_v13 }
 0x648   : > { %v3978_v3 = vadd.f32 1e-05, %v3946_v27  ;;  %v3882_v51 = vpop.xlane.xlu1 %3881  ;;  %v3824_v24 = vpop.xlane.xlu0 %3823  ;;  %5410 = vrcp.f32 %v4111_v8  ;;  %v8059_v4 = vadd.f32 %v7991_v55, %v4028_v32  ;;  %v4772_v49 = vmul.f32 -1.442695, %v8053_v16 }
 0x649   : > { %v3901_v62 = vmul.f32 0.0078125, %v3882_v51  ;;  %5412 = vrcp.f32 %v4110_v6  ;;  %v8068_v60 = vmul.f32 0.0078125, %v3824_v24  ;;  %v3919_v29 = vmul.f32 %v8061_v9, %v8061_v9 }
 0x64a   : > { %5414 = vrsqrt.f32 %v3978_v3  ;;  %v4770_v20 = vmul.f32 -1.442695, %v8059_v4  ;;  %v3961_v11 = vsub.f32 %v7862_v63, %v8014_v36  ;;  %v3964_v12 = vsub.f32 %v7864_v41, %v8022_v59 }
 0x64b   : > { %v5403_v28 = vpop.eup %5402  ;;  %v3933_v56 = vsub.f32 %v3901_v62, %v3917_v45  ;;  %5416 = vrcp.f32 %v4112_v23  ;;  %v3962_v10 = vsub.f32 %v7880_v47, %v8033_v33  ;;  %v3920_v27 = vmul.f32 %v8068_v60, %v8068_v60 }
 0x64c   : > { %v4011_v25 = vmul.f32 %v5403_v28, %v3963_v57  ;;  %v3886_v43 = vpop.xlane.xlu1 %3885  ;;  %v3820_v39 = vpop.xlane.xlu0 %3819  ;;  %5418 = vpow2.f32 %v4769_v54 }
 0x64d   : > { %v3949_v14 = vmax.f32 %v3933_v56, 0.0  ;;  %v3903_v21 = vmul.f32 0.0078125, %v3886_v43  ;;  %5420 = vpow2.f32 %v4770_v20  ;;  %v8076_v58 = vmul.f32 0.0078125, %v3820_v39 }
 0x64e   : > { %v4033_v5 = vmul.f32 %v7977_v37, %v4011_v25  ;;  %5422 = vpow2.f32 %v4771_v48 }
 0x64f   : > { %v5405_v40 = vpop.eup %5404  ;;  %v3981_v57 = vadd.f32 1e-05, %v3949_v14  ;;  %v3935_v8 = vsub.f32 %v3903_v21, %v3919_v29  ;;  %5424 = vpow2.f32 %v4772_v49  ;;  %v3918_v33 = vmul.f32 %v8076_v58, %v8076_v58 }
 0x650   : > { %v5407_v34 = vpop.eup %5406  ;;  %v3476_v32 = vpop.xlane.xlu1 %3475  ;;  %v4009_v36 = vmul.f32 %v5405_v40, %v3961_v11  ;;  %v8085_v6 = vadd.f32 %v7991_v55, %v4033_v5 }
 0x651   : > { %v3884_v63 = vpop.xlane.xlu0 %3883  ;;  %v5409_v23 = vpop.eup %5408  ;;  %v4012_v3 = vmul.f32 %v5407_v34, %v3964_v12  ;;  %5426 = vrsqrt.f32 %v3981_v57  ;;  %v3951_v41 = vmax.f32 %v3935_v8, 0.0  ;;  %v8087_v59 = vmul.f32 0.0078125, %v3476_v32 }
 0x652   : > { %v5411_v47 = vpop.eup %5410  ;;  %v3902_v51 = vmul.f32 0.0078125, %v3884_v63  ;;  %v4157_v24 = vmul.f32 %v5409_v23, %v8004_v0  ;;  %v4031_v45 = vmul.f32 %v7977_v37, %v4009_v36  ;;  %v4775_v28 = vmul.f32 -1.442695, %v8085_v6 }
 0x653   : > { %v5413_v62 = vpop.eup %5412  ;;  %v4034_v54 = vmul.f32 %v7977_v37, %v4012_v3  ;;  %v3983_v20 = vadd.f32 1e-05, %v3951_v41  ;;  %v3483_v48 = vmul.f32 %v8087_v59, %v8087_v59  ;;  %v4159_v49 = vmul.f32 %v5411_v47, %v7997_v1 }
 0x654   : > { %v5415_v56 = vpop.eup %5414  ;;  %v3934_v25 = vsub.f32 %v3902_v51, %v3918_v33  ;;  %v4158_v39 = vmul.f32 %v5413_v62, %v8017_v15  ;;  %v8100_v0 = vadd.f32 %v7991_v55, %v4031_v45  ;;  %v3965_v51 = vsub.f32 %v7907_v2, %v8046_v18 }
 0x655   : > { %v3888_v43 = vpop.xlane.xlu0 %3887  ;;  %v5417_v29 = vpop.eup %5416  ;;  %5428 = vrsqrt.f32 %v3983_v20  ;;  %v4010_v21 = vmul.f32 %v5415_v56, %v3962_v10  ;;  %v8103_v11 = vadd.f32 %v7991_v55, %v4034_v54  ;;  %v3967_v2 = vsub.f32 %v7896_v52, %v8061_v9 }
 0x656   : > { %v3904_v14 = vmul.f32 0.0078125, %v3888_v43  ;;  %v5419_v5 = vpop.eup %5418  ;;  %v3950_v40 = vmax.f32 %v3934_v25, 0.0  ;;  %v4173_v12 = vpack.c.bf16 %v4158_v39, %v4157_v24  ;;  %v4160_v57 = vmul.f32 %v5417_v29, %v8012_v26 }
 0x657   : > { %v4773_v8 = vmul.f32 -1.442695, %v8100_v0  ;;  %v5421_v15 = vpop.eup %5420  ;;  %v4113_v1 = vadd.f32 1.0, %v5419_v5  ;;  %v4032_v32 = vmul.f32 %v7977_v37, %v4010_v21  ;;  %5430 = vpow2.f32 %v4775_v28 }
 0x658   : > { %v3936_v34 = vsub.f32 %v3904_v14, %v3920_v27  ;;  %v5423_v63 = vpop.eup %5422  ;;  %v3982_v36 = vadd.f32 1e-05, %v3950_v40  ;;  %5001 = vmatprep.mubr.bf16.mxu0 %v4173_v12  ;;  %v4174_v10 = vpack.c.bf16 %v4160_v57, %v4159_v49  ;;  %v4114_v3 = vadd.f32 1.0, %v5421_v15 }
 0x659   : > { %v3481_v23 = vpop.xlane.xlu0 %3480  ;;  %5432 = vpow2.f32 %v4773_v8  ;;  %v4115_v33 = vadd.f32 1.0, %v5423_v63  ;;  %v5425_v26 = vpop.eup %5424  ;;  %v8111_v27 = vadd.f32 %v7991_v55, %v4032_v32  ;;  %v4776_v28 = vmul.f32 -1.442695, %v8103_v11 }
 0x65a   : > { %v3952_v41 = vmax.f32 %v3936_v34, 0.0  ;;  %v3482_v47 = vmul.f32 0.0078125, %v3481_v23  ;;  %5434 = vrcp.f32 %v4113_v1  ;;  %5002 = vmatmul.mubr.bf16.vlgmr.msra.gmra.mrb[16].mxu0 %v4174_v10  ;;  %v4116_v54 = vadd.f32 1.0, %v5425_v26 }
 0x65b   : > { %5436 = vrsqrt.f32 %v3982_v36  ;;  %v5427_v24 = vpop.eup %5426  ;;  %v4774_v20 = vmul.f32 -1.442695, %v8111_v27  ;;  %v3966_v52 = vsub.f32 %v7922_v22, %v8076_v58  ;;  %v3968_v1 = vsub.f32 %v7914_v61, %v8068_v60 }
 0x65c   : > { %v3984_v45 = vadd.f32 1e-05, %v3952_v41  ;;  %v3484_v62 = vsub.f32 %v3482_v47, %v3483_v48  ;;  %5438 = vrcp.f32 %v4114_v3  ;;  %v4013_v56 = vmul.f32 %v5427_v24, %v3965_v51  ;;  %v4759_v24 = vld [vmem:[%s8453_s14] ss:$0 sm:$0xff] }
 0x65d   : > { %5440 = vrcp.f32 %v4115_v33  ;;  %v3486_v60 = vsub.f32 %v7927_v42, %v8087_v59  ;;  %v4760_v59 = vld [vmem:[%s8454_s30] ss:$0 sm:$0xff] }
 0x65e   : > { %5442 = vrsqrt.f32 %v3984_v45  ;;  %v3485_v25 = vmax.f32 %v3484_v62, 0.0  ;;  %v4035_v18 = vmul.f32 %v7977_v37, %v4013_v56  ;;  %v4350_v56 = vld [vmem:[%s4349_s1] sm:$0xff] }
 0x65f   : > { %5444 = vrcp.f32 %v4116_v54  ;;  %v5429_v43 = vpop.eup %5428 }
 0x660   : > { %v3487_v39 = vadd.f32 1e-05, %v3485_v25  ;;  %5446 = vpow2.f32 %v4774_v20  ;;  %v8119_v48 = vadd.f32 %v7991_v55, %v4035_v18  ;;  %v4015_v49 = vmul.f32 %v5429_v43, %v3967_v2 }
 0x661   : > { %5448 = vpow2.f32 %v4776_v28  ;;  %v5431_v29 = vpop.eup %5430 }
 0x662   : > { %5450 = vrsqrt.f32 %v3487_v39  ;;  %v4037_v21 = vmul.f32 %v7977_v37, %v4015_v49  ;;  %v4777_v12 = vmul.f32 -1.442695, %v8119_v48 }
 0x663   : > { %v5433_v14 = vpop.eup %5432 }
 0x664   : > { %v5435_v5 = vpop.eup %5434  ;;  %v8127_v57 = vadd.f32 %v7991_v55, %v4037_v21  ;;  %v4117_v63 = vadd.f32 1.0, %v5433_v14  ;;  %5452 = vpow2.f32 %v4777_v12 }
 0x665   : > { %v5437_v9 = vpop.eup %5436  ;;  %v4161_v40 = vmul.f32 %v5435_v5, %v8056_v13  ;;  %v4119_v13 = vadd.f32 1.0, %v5431_v29 }
 0x666   : > { %v5439_v8 = vpop.eup %5438  ;;  %v4014_v15 = vmul.f32 %v5437_v9, %v3966_v52  ;;  %v4779_v36 = vmul.f32 -1.442695, %v8127_v57 }
 0x667   : > { %v5441_v34 = vpop.eup %5440  ;;  %v4162_v32 = vmul.f32 %v5439_v8, %v8059_v4 }
 0x668   : > { %v5443_v22 = vpop.eup %5442  ;;  %v4163_v58 = vmul.f32 %v5441_v34, %v8050_v7  ;;  %v4036_v10 = vmul.f32 %v7977_v37, %v4014_v15  ;;  %5454 = vpow2.f32 %v4779_v36 }
 0x669   : > { %v5445_v23 = vpop.eup %5444  ;;  %v4175_v3 = vpack.c.bf16 %v4162_v32, %v4161_v40  ;;  %v4016_v41 = vmul.f32 %v5443_v22, %v3968_v1  ;;  %5456 = vrcp.f32 %v4117_v63 }
 0x66a   : > { %v5447_v47 = vpop.eup %5446  ;;  %v4164_v33 = vmul.f32 %v5445_v23, %v8053_v16  ;;  %v4058_v61 = vadd.f32 %v7991_v55, %v4036_v10  ;;  %5458 = vrcp.f32 %v4119_v13  ;;  %v4781_v23 = vld [vmem:[%s8455_s29] ss:$0 sm:$0xff] }
 0x66b   : > { %v5449_v4 = vpop.eup %5448  ;;  %5005 = vmatprep.mubr.bf16.mxu0 %v4175_v3  ;;  %v4118_v7 = vadd.f32 1.0, %v5447_v47  ;;  %v4038_v26 = vmul.f32 %v7977_v37, %v4016_v41 }
 0x66c   : > { %v5451_v51 = vpop.eup %5450  ;;  %v4176_v16 = vpack.c.bf16 %v4164_v33, %v4163_v58  ;;  %v4120_v45 = vadd.f32 1.0, %v5449_v4  ;;  %v4778_v62 = vmul.f32 -1.442695, %v4058_v61 }
 0x66d   : > { %v3489_v54 = vmul.f32 %v5451_v51, %v3486_v60  ;;  %5460 = vrcp.f32 %v4118_v7  ;;  %v4060_v42 = vadd.f32 %v7991_v55, %v4038_v26 }
 0x66e   : > { %5006 = vmatmul.mubr.bf16.gmra.mrb[20].mxu0 %v4176_v16  ;;  %5462 = vrcp.f32 %v4120_v45  ;;  %v5453_v25 = vpop.eup %5452 }
 0x66f   : > { %v3496_v37 = vmul.f32 %v4759_v24, %v3489_v54  ;;  %5464 = vpow2.f32 %v4778_v62  ;;  %v4780_v20 = vmul.f32 -1.442695, %v4060_v42  ;;  %v4121_v49 = vadd.f32 1.0, %v5453_v25 }
 0x671   : > { %v3503_v28 = vadd.f32 %v4760_v59, %v3496_v37  ;;  %5466 = vpow2.f32 %v4780_v20 }
 0x672   : > { %v5455_v18 = vpop.eup %5454  ;;  %5468 = vrcp.f32 %v4121_v49 }
 0x673   : > { %v3504_v2 = vmax.f32 %v3503_v28, 0.0  ;;  %v5457_v43 = vpop.eup %5456  ;;  %v4123_v14 = vadd.f32 1.0, %v5455_v18 }
 0x674   : > { %v5459_v55 = vpop.eup %5458  ;;  %v4165_v5 = vmul.f32 %v5457_v43, %v8100_v0 }
 0x675   : > { %v4351_v39 = vadd.f32 %v4350_v56, %v3504_v2  ;;  %v4167_v40 = vmul.f32 %v5459_v55, %v8085_v6  ;;  %5470 = vrcp.f32 %v4123_v14  ;;  %v8456_v14 = vld [vmem:[#allocation27_spill] sm:$0xff] }
 0x677   : > { %v5461_v29 = vpop.eup %5460  ;;  %4352 = vst [vmem:[%s5677_s15] sm:$0xff] %v4351_v39 }
 0x678   : > { %v5463_v21 = vpop.eup %5462  ;;  %v4166_v52 = vmul.f32 %v5461_v29, %v8111_v27 }
 0x679   : > { %v5465_v9 = vpop.eup %5464  ;;  %v4168_v12 = vmul.f32 %v5463_v21, %v8103_v11  ;;  %v8457_v21 = vld [vmem:[#allocation18_spill] sm:$0xff] }
 0x67a   : > { %v4177_v8 = vpack.c.bf16 %v4166_v52, %v4165_v5  ;;  %v4122_v15 = vadd.f32 1.0, %v5465_v9 }
 0x67b   : > { %v5467_v34 = vpop.eup %5466  ;;  %v4178_v1 = vpack.c.bf16 %v4168_v12, %v4167_v40 }
 0x67c   : > { %5009 = vmatprep.mubr.bf16.mxu1 %v4177_v8  ;;  %5472 = vrcp.f32 %v4122_v15  ;;  %v4124_v32 = vadd.f32 1.0, %v5467_v34  ;;  %v5469_v63 = vpop.eup %5468 }
 0x67d   : > { %5010 = vmatmul.mubr.bf16.vlgmr.msra.gmra.mrb[16].mxu1 %v4178_v1  ;;  %v4169_v27 = vmul.f32 %v5469_v63, %v8119_v48  ;;  %v8458_v63 = vld [vmem:[#allocation11_spill] sm:$0xff] }
 0x67e   : > { %5474 = vrcp.f32 %v4124_v32 }
 0x67f   : > { %v5471_v0 = vpop.eup %5470 }
 0x680   : > { %v4171_v11 = vmul.f32 %v5471_v0, %v8127_v57  ;;  %v8459_v0 = vld [vmem:[#allocation10_spill] sm:$0xff] }
 0x686   : > { %v5473_v36 = vpop.eup %5472 }
 0x687   : > { %v4170_v22 = vmul.f32 %v5473_v36, %v4058_v61 }
 0x688   : > { %v5475_v6 = vpop.eup %5474 }
 0x689   : > { %v4179_v58 = vpack.c.bf16 %v4170_v22, %v4169_v27  ;;  %v4172_v13 = vmul.f32 %v5475_v6, %v4060_v42  ;;  %v8460_v27 = vld [vmem:[#allocation20_spill] sm:$0xff]  ;;  %v8461_v6 = vld [vmem:[#allocation13_spill] sm:$0xff] }
 0x68b   : > { %5013 = vmatprep.mubr.bf16.mxu1 %v4179_v58  ;;  %v4180_v10 = vpack.c.bf16 %v4172_v13, %v4171_v11 }
 0x68d   : > { %5014 = vmatmul.mubr.bf16.gmra.mrb[20].mxu1 %v4180_v10 }
 0x72d   : > { %v5003_v3 = vpop.f32.mrb[16].mxu0 }
 0x72e   : > { %v4295_v41 = vadd.f32 %v5003_v3, %v4781_v23  ;;  %v4286_v47 = vpop.f32.mrb[17].mxu0 }
 0x72f   : > { %v4287_v33 = vadd.f32 %v4781_v23, %v4286_v47  ;;  %v5004_v48 = vpop.f32.mrb[18].mxu0 }
 0x730   : > { %v4298_v61 = vadd.f32 %v5004_v48, %v4781_v23  ;;  %v4289_v4 = vpop.f32.mrb[19].mxu0  ;;  %v4355_v57 = vadd.f32 %v4295_v41, %v7425_v53 }
 0x731   : > { %v4290_v60 = vadd.f32 %v4781_v23, %v4289_v4  ;;  %v4353_v26 = vadd.f32 %v4287_v33, %v7421_v46 }
 0x732   : > { %v4356_v7 = vadd.f32 %v4298_v61, %v7419_v44 }
 0x733   : > { %v4354_v51 = vadd.f32 %v4290_v60, %v7423_v35 }
 0x734   : > { %v4834_v24 = vpack.c.bf16 %v4356_v7, %v4355_v57 }
 0x735   : > { %v4829_v16 = vpack.c.bf16 %v4354_v51, %v4353_v26 }
 0x736   : > { %4866 = vst [vmem:[%s5683_s2 + $0x8] sm:$0xff] %v4834_v24  }
 0x737   : > { %4830 = vst [vmem:[%s5683_s2] sm:$0xff] %v4829_v16  }
 0x741   : > { %v5007_v45 = vpop.f32.mrb[20].mxu0 }
 0x742   : > { %v4311_v62 = vadd.f32 %v5007_v45, %v4781_v23  ;;  %v4302_v54 = vpop.f32.mrb[21].mxu0 }
 0x743   : > { %v4303_v42 = vadd.f32 %v4781_v23, %v4302_v54  ;;  %v5008_v59 = vpop.f32.mrb[22].mxu0 }
 0x744   : > { %v4314_v37 = vadd.f32 %v5008_v59, %v4781_v23  ;;  %v4305_v20 = vpop.f32.mrb[23].mxu0  ;;  %v4359_v44 = vadd.f32 %v4311_v62, %v7437_v31 }
 0x745   : > { %v4306_v53 = vadd.f32 %v4781_v23, %v4305_v20  ;;  %v4357_v35 = vadd.f32 %v4303_v42, %v7433_v17 }
 0x746   : > { %v4360_v46 = vadd.f32 %v4314_v37, %v7431_v50 }
 0x747   : > { %v4358_v28 = vadd.f32 %v4306_v53, %v7435_v38 }
 0x748   : > { %v4844_v56 = vpack.c.bf16 %v4360_v46, %v4359_v44 }
 0x749   : > { %v4839_v25 = vpack.c.bf16 %v4358_v28, %v4357_v35 }
 0x74a   : > { %4868 = vst [vmem:[%s5683_s2 + $0x18] sm:$0xff] %v4844_v56  }
 0x74b   : > { %4867 = vst [vmem:[%s5683_s2 + $0x10] sm:$0xff] %v4839_v25  }
 0x750   : > { %v5011_v2 = vpop.f32.mrb[16].mxu1 }
 0x751   : > { %v4327_v18 = vadd.f32 %v5011_v2, %v4781_v23  ;;  %v4318_v43 = vpop.f32.mrb[17].mxu1 }
 0x752   : > { %v4319_v39 = vadd.f32 %v4781_v23, %v4318_v43  ;;  %v5012_v55 = vpop.f32.mrb[18].mxu1 }
 0x753   : > { %v4330_v49 = vadd.f32 %v5012_v55, %v4781_v23  ;;  %v4321_v29 = vpop.f32.mrb[19].mxu1  ;;  %v4363_v50 = vadd.f32 %v4327_v18, %v7449_v19 }
 0x754   : > { %v4322_v31 = vadd.f32 %v4781_v23, %v4321_v29  ;;  %v4361_v38 = vadd.f32 %v4319_v39, %v8456_v14 }
 0x755   : > { %v4364_v17 = vadd.f32 %v4330_v49, %v7443_v30 }
 0x756   : > { %v4362_v5 = vadd.f32 %v4322_v31, %v8457_v21 }
 0x757   : > { %v4854_v52 = vpack.c.bf16 %v4364_v17, %v4363_v50 }
 0x758   : > { %v4849_v9 = vpack.c.bf16 %v4362_v5, %v4361_v38 }
 0x759   : > { %4870 = vst [vmem:[%s5683_s2 + $0x28] sm:$0xff] %v4854_v52  }
 0x75a   : > { %4869 = vst [vmem:[%s5683_s2 + $0x20] sm:$0xff] %v4849_v9  }
 0x760   : > { %v5015_v40 = vpop.f32.mrb[20].mxu1 }
 0x761   : > { %v4343_v12 = vadd.f32 %v5015_v40, %v4781_v23  ;;  %v4334_v8 = vpop.f32.mrb[21].mxu1 }
 0x762   : > { %v4335_v15 = vadd.f32 %v4781_v23, %v4334_v8  ;;  %v5016_v34 = vpop.f32.mrb[22].mxu1 }
 0x763   : > { %v4346_v1 = vadd.f32 %v5016_v34, %v4781_v23  ;;  %v4337_v32 = vpop.f32.mrb[23].mxu1  ;;  %v4367_v30 = vadd.f32 %v4343_v12, %v8458_v63 }
 0x764   : > { %v4338_v19 = vadd.f32 %v4781_v23, %v4337_v32  ;;  %v4365_v22 = vadd.f32 %v4335_v15, %v8460_v27 }
 0x765   : > { %v4368_v36 = vadd.f32 %v4346_v1, %v8459_v0 }
 0x766   : > { %v4366_v58 = vadd.f32 %v4338_v19, %v8461_v6 }
 0x767   : > { %v4864_v11 = vpack.c.bf16 %v4368_v36, %v4367_v30 }
 0x768   : > { %v4859_v13 = vpack.c.bf16 %v4366_v58, %v4365_v22 }
 0x769   : > { %4872 = vst [vmem:[%s5683_s2 + $0x38] sm:$0xff] %v4864_v11  }
 0x76a   : > { %4871 = vst [vmem:[%s5683_s2 + $0x30] sm:$0xff] %v4859_v13  }
 0x76b PF: > { %s8462_s22 = sld [smem:[#allocation5_spill]]  ;;  %s8463_s0 = sld [smem:[#allocation3_spill]] }
 0x76c   : > { %s8464_s30 = sld [smem:[#allocation4_spill]]  ;;  %s8465_s20 = sld [smem:[#allocation6_spill]] }
 0x76d   : > { %s8466_s21 = sld [smem:[#allocation7_spill]] }
 0x771   : > { %s30_s1 = sadd.s32 1, %s8462_s22  }
 0x772   : > { %p27_p9 = scmp.ge.s32.totalorder %s30_s1, 6  }
 0x774   :  { %29 = sbr.rel (!%p27_p9) target bundleno = 13 (0xd), region = 143 }

// kernel: _lambda_.9
= control target key start
LH: loop header
LB: loop body
LE: loop exit
PB: predicated region body
PF: predicated region fallthrough
CT: control target
= control target key end

     0   :  { %s750_s18 = smov 0   ;;  %s752_s19 = smov 0   ;;  %s879_s0 = inlined_call_operand.vmem [shape: bf16[2,16,16,128], index: 0, kind: input, shape index: {}]   ;;  %s880_s1 = inlined_call_operand.vmem [shape: f32[2,1,128], index: 1, kind: input, shape index: {}]   ;;  %s881_s2 = inlined_call_operand.vmem [shape: f32[2,1,128], index: 2, kind: input, shape index: {}]   ;;  %s882_s3 = inlined_call_operand.vmem [shape: bf16[2,128], index: 3, kind: input, shape index: {}]   ;;  %s883_s4 = inlined_call_operand.vmem [shape: f32[2,1], index: 4, kind: input, shape index: {}]   ;;  %s884_s5 = inlined_call_operand.vmem [shape: f32[2,2,256], index: 5, kind: output, shape index: {}]  }
   0x1   :  { %s754_s20 = smov 0   ;;  %s756_s21 = smov 0  }
   0x2   :  { %s758_s22 = smov 0  }
   0x3 LB: > { %s24_s23 = sadd.s32 1, %s707_s20  ;;  %s27_s24 = sadd.s32 1, %s711_s21  ;;  %s715_s22 = sphi %s758_s22, %s15_s22   ;;  %s711_s21 = sphi %s756_s21, %s888_s21   ;;  %s707_s20 = sphi %s754_s20, %s887_s20   ;;  %s703_s19 = sphi %s752_s19, %s886_s19   ;;  %s699_s18 = sphi %s750_s18, %s885_s18  }
   0x4   : > { %p25_p0 = scmp.ge.s32.totalorder %s24_s23, 2  ;;  %p554_p1 = scmp.ge.s32.totalorder %s715_s22, 1 }
   0x5   : > { %p225_p2 = scmp.lt.s32.totalorder %s715_s22, 5 }
   0x6   : > { %s890_s23 = smov (%p25_p0, %s24_s23), 0  ;;  %s892_s24 = smov (!%p25_p0, %s27_s24), %s711_s21 }
   0x7   : > { %p226_p3 = pnand %p554_p1, %p225_p2  ;;  %p29_p4 = scmp.ge.s32.totalorder %s892_s24, 2 }
   0x8   : > { %s555_s25 = sshll.u32 (!%p226_p3), %s699_s18, 3  ;;  %p268_p5 = scmp.lt.s32.totalorder (!%p226_p3), %s703_s19, 1  ;;  %v717_v0 = vmov (!%p226_p3), 0.0   ;;  %vm718_vm0 = vmmov (!%p226_p3), 0   ;;  %v396_v1 = vld [vmem:[%s883_s4] sm:$0x3] (!%p226_p3) }
   0x9   : > { %s894_s24 = smov (%p29_p4, %s892_s24), 0  ;;  %229 = sbr.rel (%p226_p3) target bundleno = 310 (0x136), region = 40 }
   0xa   : > { %613 = vmatprep.subr.bf16.mxu0 (!%p226_p3), %v717_v0  ;;  %p270_p6 = scmp.lt.s32.totalorder (!%p226_p3), %s555_s25, 15  ;;  %629 = vmatprep.mubr.msk.bf16.mxu0 (!%p226_p3), %vm718_vm0, %v717_v0  ;;  %v719_v2 = vmov (!%p226_p3), 0   ;;  %p286_p7 = scmp.lt.s32.totalorder (!%p226_p3), %s699_s18, 1 }
   0xb   : > { %676 = vset.pattern.permute.xlu0 (!%p226_p3), %v719_v2 }
   0xc   : > { %399 = vperm.xlu0 (!%p226_p3), %676, %v396_v1  }
  0x10   : > { %s896_s19 = smov (!%p268_p5, %s703_s19), 1  ;;  %s898_s25 = smov (!%p270_p6, %s555_s25), 15 }
  0x11   : > { %s557_s28 = sshll.u32 %s896_s19, 5  ;;  %s556_s29 = sshll.u32 %s898_s25, 1 }
  0x12   : > { %s274_s30 = sadd.s32 %s557_s28, %s556_s29  ;;  %s280_s8 = scalar_lea.vmem %s880_s1, %s896_s19 }
  0x13   : > { %s558_s9 = sshll.u32 %s274_s30, 2  ;;  %s283_s15 = scalar_lea.vmem %s881_s2, %s896_s19  ;;  %v805_v4 = vld [vmem:[%s280_s8] ss:$0 sm:$0xff] }
  0x14   : > { %s798_s12 = scalar_lea.vmem %s879_s0, %s558_s9  ;;  %v808_v10 = vld [vmem:[%s283_s15] ss:$0 sm:$0xff]  ;;  %s900_s18 = smov (!%p286_p7, %s699_s18), 1 }
  0x15   : > { %v566_v3 = vld [vmem:[%s798_s12] sm:$0xff]   ;;  %v597_v5 = vld [vmem:[%s798_s12 + $0x8] sm:$0xff]   ;;  %v598_v15 = vld [vmem:[%s798_s12 + $0x10] sm:$0xff]   ;;  %s559_s25 = sshll.u32 %s896_s19, 1 }
  0x16   : > { %v567_v6 = vunpack.c.l.bf16 %v566_v3  ;;  %v568_v7 = vunpack.c.h.bf16 %v566_v3  ;;  %v571_v8 = vunpack.c.l.bf16 %v597_v5  ;;  %v572_v9 = vunpack.c.h.bf16 %v597_v5  ;;  %v599_v29 = vld [vmem:[%s798_s12 + $0x18] sm:$0xff]   ;;  %v600_v39 = vld [vmem:[%s798_s12 + $0x20] sm:$0xff]   ;;  %v601_v49 = vld [vmem:[%s798_s12 + $0x28] sm:$0xff]   ;;  %s289_s26 = sadd.s32 %s559_s25, %s900_s18 }
  0x17   : > { %v575_v18 = vunpack.c.l.bf16 %v598_v15  ;;  %v576_v19 = vunpack.c.h.bf16 %v598_v15  ;;  %v579_v30 = vunpack.c.l.bf16 %v599_v29  ;;  %v580_v31 = vunpack.c.h.bf16 %v599_v29  ;;  %v602_v59 = vld [vmem:[%s798_s12 + $0x30] sm:$0xff]   ;;  %s560_s27 = sshll.u32 %s289_s26, 1 }
  0x18   : > { %v332_v11 = vmul.f32 %v567_v6, %v805_v4  ;;  %v333_v12 = vmul.f32 %v568_v7, %v805_v4  ;;  %v334_v13 = vmul.f32 %v571_v8, %v805_v4  ;;  %v335_v14 = vmul.f32 %v572_v9, %v805_v4  ;;  %v603_v7 = vld [vmem:[%s798_s12 + $0x38] sm:$0xff]   ;;  %s291_s30 = scalar_lea.vmem %s884_s5, %s560_s27 }
  0x19   : > { %v336_v27 = vmul.f32 %v575_v18, %v805_v4  ;;  %v337_v28 = vmul.f32 %v576_v19, %v805_v4  ;;  %v338_v35 = vmul.f32 %v579_v30, %v805_v4  ;;  %v339_v36 = vmul.f32 %v580_v31, %v805_v4 }
  0x1a   : > { %v355_v16 = vadd.f32 %v808_v10, %v332_v11  ;;  %v356_v17 = vadd.f32 %v808_v10, %v333_v12  ;;  %v357_v22 = vadd.f32 %v808_v10, %v334_v13  ;;  %v358_v23 = vadd.f32 %v808_v10, %v335_v14 }
  0x1b   : > { %v359_v33 = vadd.f32 %v808_v10, %v336_v27  ;;  %v360_v34 = vadd.f32 %v808_v10, %v337_v28  ;;  %v361_v40 = vadd.f32 %v808_v10, %v338_v35  ;;  %v362_v41 = vadd.f32 %v808_v10, %v339_v36 }
  0x1c   : > { %v371_v20 = vmax.f32 %v355_v16, 0.0  ;;  %v372_v21 = vmax.f32 %v356_v17, 0.0  ;;  %v373_v25 = vmax.f32 %v357_v22, 0.0  ;;  %v374_v26 = vmax.f32 %v358_v23, 0.0 }
  0x1d   : > { %v375_v37 = vmax.f32 %v359_v33, 0.0  ;;  %v376_v38 = vmax.f32 %v360_v34, 0.0  ;;  %v583_v43 = vunpack.c.l.bf16 %v600_v39  ;;  %v584_v44 = vunpack.c.h.bf16 %v600_v39 }
  0x1e   : > { %v388_v24 = vpack.c.bf16 %v372_v21, %v371_v20  ;;  %v389_v32 = vpack.c.bf16 %v374_v26, %v373_v25  ;;  %v377_v45 = vmax.f32 %v361_v40, 0.0  ;;  %v378_v46 = vmax.f32 %v362_v41, 0.0 }
  0x1f   : > { %v390_v42 = vpack.c.bf16 %v376_v38, %v375_v37  ;;  %v340_v47 = vmul.f32 %v583_v43, %v805_v4  ;;  %v341_v48 = vmul.f32 %v584_v44, %v805_v4  ;;  %v587_v53 = vunpack.c.l.bf16 %v601_v49 }
  0x20   : > { %614 = vmatpush3.bf16.xpose.msra.mxu0 %v388_v24  ;;  %v391_v50 = vpack.c.bf16 %v378_v46, %v377_v45  ;;  %v588_v54 = vunpack.c.h.bf16 %v601_v49  ;;  %v591_v60 = vunpack.c.l.bf16 %v602_v59  ;;  %v592_v1 = vunpack.c.h.bf16 %v602_v59  ;;  %v387_v24 = vld [vmem:[%s882_s3] sm:$0x1] }
  0x21   : > { %615 = vmatprep.subr.bf16.mxu0 %v717_v0  ;;  %v363_v51 = vadd.f32 %v808_v10, %v340_v47  ;;  %v364_v52 = vadd.f32 %v808_v10, %v341_v48  ;;  %v342_v57 = vmul.f32 %v587_v53, %v805_v4  ;;  %v595_v8 = vunpack.c.l.bf16 %v603_v7 }
  0x22   : > { %v343_v58 = vmul.f32 %v588_v54, %v805_v4  ;;  %v344_v5 = vmul.f32 %v591_v60, %v805_v4  ;;  %v345_v6 = vmul.f32 %v592_v1, %v805_v4  ;;  %v596_v13 = vunpack.c.h.bf16 %v603_v7 }
  0x23   : > { %v379_v55 = vmax.f32 %v363_v51, 0.0  ;;  %v380_v56 = vmax.f32 %v364_v52, 0.0  ;;  %v365_v62 = vadd.f32 %v808_v10, %v342_v57  ;;  %v346_v16 = vmul.f32 %v595_v8, %v805_v4 }
  0x24   : > { %v366_v63 = vadd.f32 %v808_v10, %v343_v58  ;;  %v367_v11 = vadd.f32 %v808_v10, %v344_v5  ;;  %v368_v12 = vadd.f32 %v808_v10, %v345_v6  ;;  %v347_v17 = vmul.f32 %v596_v13, %v805_v4 }
  0x25   : > { %v392_v61 = vpack.c.bf16 %v380_v56, %v379_v55  ;;  %v381_v2 = vmax.f32 %v365_v62, 0.0  ;;  %v369_v19 = vadd.f32 %v808_v10, %v346_v16 }
  0x26   : > { %v382_v3 = vmax.f32 %v366_v63, 0.0  ;;  %v383_v14 = vmax.f32 %v367_v11, 0.0  ;;  %v384_v15 = vmax.f32 %v368_v12, 0.0  ;;  %v370_v20 = vadd.f32 %v808_v10, %v347_v17 }
  0x27   : > { %v385_v21 = vmax.f32 %v369_v19, 0.0 }
  0x28   : > { %616 = vmatpush3.bf16.xpose.msra.mxu0 %v389_v32  ;;  %v393_v9 = vpack.c.bf16 %v382_v3, %v381_v2  ;;  %v394_v18 = vpack.c.bf16 %v384_v15, %v383_v14  ;;  %v386_v22 = vmax.f32 %v370_v20, 0.0 }
  0x29   : > { %617 = vmatprep.subr.bf16.mxu0 %v717_v0 }
  0x2a   : > { %v395_v23 = vpack.c.bf16 %v386_v22, %v385_v21 }
  0x30   : > { %618 = vmatpush3.bf16.xpose.msra.mxu0 %v390_v42 }
  0x31   : > { %619 = vmatprep.subr.bf16.mxu0 %v717_v0 }
  0x38   : > { %620 = vmatpush3.bf16.xpose.msra.mxu0 %v391_v50 }
  0x39   : > { %621 = vmatprep.subr.bf16.mxu0 %v717_v0 }
  0x40   : > { %622 = vmatpush3.bf16.xpose.msra.mxu0 %v392_v61 }
  0x41   : > { %623 = vmatprep.subr.bf16.mxu0 %v717_v0 }
  0x48   : > { %624 = vmatpush3.bf16.xpose.msra.mxu0 %v393_v9 }
  0x49   : > { %625 = vmatprep.subr.bf16.mxu0 %v717_v0 }
  0x50   : > { %626 = vmatpush3.bf16.xpose.msra.mxu0 %v394_v18 }
  0x51   : > { %627 = vmatprep.subr.bf16.mxu0 %v717_v0 }
  0x58   : > { %628 = vmatpush3.bf16.xpose.msra.mxu0 %v395_v23 }
  0x5f   : > { %630 = vmatmul.mubr.bf16.vlgmr.msra.gmra.mrb[0].mxu0 %v387_v24 }
  0x8b   : > { %v400_v4 = vpop.permute.xlu0 %399 }
 0x132   : > { %v436_v10 = vpop.f32.mrb[0].mxu0 }
 0x133   : > { %v437_v25 = vadd.f32 %v436_v10, %v400_v4  ;;  %v631_v0 = vpop.f32.mrb[1].mxu0 }
 0x134   : > { %v439_v26 = vpop.f32.mrb[2].mxu0 }
 0x135   : > { %442 = vst [vmem:[%s291_s30] sm:$0x3] %v437_v25  ;;  %v632_v27 = vpop.f32.mrb[3].mxu0 }
 0x136 PF: > { %s15_s22 = sadd.s32 1, %s715_s22   ;;  %s885_s18 = smov %s707_s20 }
 0x137   : > { %p12_p8 = scmp.ge.s32.totalorder %s15_s22, 6   ;;  %s886_s19 = smov %s711_s21 }
 0x138   : > { %s887_s20 = smov %s890_s23  ;;  %s888_s21 = smov %s894_s24 }
 0x139   :  { %14 = sbr.rel (!%p12_p8) target bundleno = 3 (0x3), region = 76 }

</bundles_post_ra>
